<compile_context>
chip_gen: v5e
topology: v5e:2x2
jax: 0.10.0
libtpu: 0.0.40
codegen_flags: <defaults>
</compile_context>

<pallas_src>
import functools

import jax
import jax.numpy as jnp
import numpy as np
from jax.experimental import pallas as pl
from jax.experimental.pallas import tpu as pltpu


# ----------------------------------------------------------------------------
# Fused decoder kernel (one batch element per grid step)
# ----------------------------------------------------------------------------
def _decoder_kernel(z_ref, fcw_ref, fcb_ref, rw1_ref, rw2_ref, wpre_ref,
                    wup_ref, wout_ref, o_ref,
                    xpad_ref, midpad_ref, shufpad_ref,
                    *, H, W, C, r, n_res):
    """Fused HiCDecoder forward for one batch element.

    z_ref       (1, 1, L)        latent vector
    fcw_ref     (H*W, C, L)      fc weight, NHWC-permuted, contraction dim last
    fcb_ref     (H*W, C)         fc bias, NHWC order
    rw1_ref     (n_res, 9C, C)   res-block conv1 weights (im2col layout)
    rw2_ref     (n_res, 9C, C)   res-block conv2 weights (im2col layout)
    wpre_ref    (9C, C)          conv_pre_up weight (im2col layout)
    wup_ref     (9C, r*r)        conv_up weight (im2col layout, out_channels==1)
    wout_ref    (1, 9)           conv_out 3x3 taps, row-major (dy, dx)
    o_ref       (1, r, H, W*r)   output row-groups: o[0, i, h, :] = row h*r+i
    xpad_ref    (H+2, W+2, C)    padded activation scratch
    midpad_ref  (H+2, W+2, C)    padded res-block intermediate scratch
    shufpad_ref (r, H+2, W*r+2)  padded pixel-shuffle row-group slabs
    """
    Ws = W * r
    HW = H * W

    # Borders of the padded scratches must be zero.  Zeroing the (tiny, ~12 KiB
    # total) scratches every grid step keeps this correct even when the batch
    # axis is split across TensorCores ("parallel" megacore semantics), and the
    # interiors are fully overwritten below before any read.
    xpad_ref[...] = jnp.zeros_like(xpad_ref)
    midpad_ref[...] = jnp.zeros_like(midpad_ref)
    shufpad_ref[...] = jnp.zeros_like(shufpad_ref)

    # ---- fc:  x0[p, c] = sum_l fcw[p, c, l] * z[l]  (+ bias) -----------------
    # VPU broadcast-multiply + lane reduction; output is already in the
    # (pixel, channel) activation layout thanks to the trace-time permutation.
    x0 = jnp.sum(fcw_ref[...] * z_ref[...], axis=-1) + fcb_ref[...]   # (HW, C)

    x_cur = x0
    xpad_ref[1:H + 1, 1:W + 1, :] = x_cur.reshape(H, W, C)

    def im2col(src_ref):
        # (H*W, 9*C) patch matrix.  Column order (dy, dx, c) matches the
        # trace-time weight reshape HWIO (3,3,C,Cout) -> (9*C, Cout).
        cols = []
        for dy in range(3):
            for dx in range(3):
                cols.append(src_ref[dy:dy + H, dx:dx + W, :].reshape(HW, C))
        return jnp.concatenate(cols, axis=1)

    # ---- residual blocks:  x <- x + 0.1 * conv2(relu(conv1(x))) -------------
    for blk in range(n_res):
        mid = jnp.maximum(
            jnp.dot(im2col(xpad_ref), rw1_ref[blk],
                    preferred_element_type=jnp.float32), 0.0)          # (HW, C)
        midpad_ref[1:H + 1, 1:W + 1, :] = mid.reshape(H, W, C)
        delta = jnp.dot(im2col(midpad_ref), rw2_ref[blk],
                        preferred_element_type=jnp.float32)            # (HW, C)
        x_cur = x_cur + 0.1 * delta
        xpad_ref[1:H + 1, 1:W + 1, :] = x_cur.reshape(H, W, C)

    # ---- conv_pre_up ---------------------------------------------------------
    pre = jnp.dot(im2col(xpad_ref), wpre_ref[...],
                  preferred_element_type=jnp.float32)                  # (HW, C)
    midpad_ref[1:H + 1, 1:W + 1, :] = pre.reshape(H, W, C)

    # ---- conv_up (out_channels * r^2 channels; out_channels == 1) -----------
    up = jnp.dot(im2col(midpad_ref), wup_ref[...],
                 preferred_element_type=jnp.float32)                   # (HW, r*r)
    up3 = up.reshape(H, W, r * r)

    # ---- pixel shuffle: shuffled[h*r+g, w*r+j] = up3[h, w, g*r+j] ------------
    # Build one lane-dense padded (H+2, Ws+2) slab per output row-group g.
    for g in range(r):
        strips = [up3[:, w, g * r:(g + 1) * r] for w in range(W)]      # W x (H, r)
        shufpad_ref[g, 1:H + 1, 1:Ws + 1] = jnp.concatenate(strips, axis=1)

    # ---- conv_out (Cin = Cout = 1): 9 scalar-weighted shifted slabs on the
    #      VPU, computed directly in the row-group domain.  The vertical tap
    #      dy moves across row groups (with a +/-1 row carry at the group
    #      boundaries); the padded slabs supply the zero image border. --------
    wrow = wout_ref[...]                                               # (1, 9)
    for i in range(r):
        acc = jnp.zeros((H, Ws), jnp.float32)
        for dy in range(3):
            ip = i + dy - 1
            if ip < 0:                       # row above: group r-1, shifted up
                g, row0 = r - 1, 0
            elif ip >= r:                    # row below: group 0, shifted down
                g, row0 = 0, 2
            else:
                g, row0 = ip, 1
            for dx in range(3):
                k = dy * 3 + dx
                wtap = wrow[0:1, k:k + 1]                              # (1, 1)
                acc = acc + wtap * shufpad_ref[g, row0:row0 + H, dx:dx + Ws]
        o_ref[0, i] = acc


# ----------------------------------------------------------------------------
# Wrapper: trace-time weight repacking + single pallas_call
# ----------------------------------------------------------------------------
def hic_decoder_pallas(z, params, *, base_channels, image_size, scale,
                       out_channels=1):
    # TODO(synk): generalize the fused conv_out / pixel-shuffle path to
    # out_channels > 1 (needs a channel-permuted conv_up weight and a channel
    # contraction in conv_out); the module default (out_channels=1) is handled.
    assert out_channels == 1, "fused conv_out path assumes out_channels == 1"

    B, L = z.shape
    C = base_channels
    H = W = image_size
    r = scale
    Hs, Ws = H * r, W * r
    n_res = len(params["res_blocks"])

    # --- trace-time weight repacking (cheap, done once per forward) ---------
    # fc: permute columns from NCHW-flat (c*H*W + h*W + w) to NHWC-flat
    # (h*W*C + w*C + c), and expose as (H*W, C, L) so the kernel's fc output is
    # already in the activation layout with the contraction on the lane axis.
    perm = np.arange(C * H * W).reshape(C, H, W).transpose(1, 2, 0).reshape(-1)
    fcw = jnp.transpose(params["fc_w"][:, perm].reshape(L, H * W, C), (1, 2, 0))
    fcb = params["fc_b"][perm].reshape(H * W, C)

    def flat(w):  # HWIO (3, 3, Cin, Cout) -> im2col layout (9*Cin, Cout)
        return w.reshape(9 * w.shape[2], w.shape[3])

    rw1 = jnp.stack([flat(w1) for (w1, _) in params["res_blocks"]])
    rw2 = jnp.stack([flat(w2) for (_, w2) in params["res_blocks"]])
    wpre = flat(params["conv_pre_up_w"])
    wup = flat(params["conv_up_w"])                  # (9*C, r*r) since oc == 1
    wout = params["conv_out_w"].reshape(1, 9)        # (3,3,1,1) -> taps (dy,dx)

    kernel = functools.partial(_decoder_kernel, H=H, W=W, C=C, r=r, n_res=n_res)

    out = pl.pallas_call(
        kernel,
        out_shape=jax.ShapeDtypeStruct((B, r, H, Ws), jnp.float32),
        grid=(B,),
        in_specs=[
            pl.BlockSpec((1, 1, L), lambda b: (b, 0, 0)),            # z
            pl.BlockSpec((H * W, C, L), lambda b: (0, 0, 0)),        # fc weight
            pl.BlockSpec((H * W, C), lambda b: (0, 0)),              # fc bias
            pl.BlockSpec((n_res, 9 * C, C), lambda b: (0, 0, 0)),    # res conv1
            pl.BlockSpec((n_res, 9 * C, C), lambda b: (0, 0, 0)),    # res conv2
            pl.BlockSpec((9 * C, C), lambda b: (0, 0)),              # conv_pre_up
            pl.BlockSpec((9 * C, r * r), lambda b: (0, 0)),          # conv_up
            pl.BlockSpec((1, 9), lambda b: (0, 0)),                  # conv_out
        ],
        out_specs=pl.BlockSpec((1, r, H, Ws), lambda b: (b, 0, 0, 0)),
        scratch_shapes=[
            pltpu.VMEM((H + 2, W + 2, C), jnp.float32),      # padded activation
            pltpu.VMEM((H + 2, W + 2, C), jnp.float32),      # padded mid / pre
            pltpu.VMEM((r, H + 2, Ws + 2), jnp.float32),     # shuffle slabs
        ],
        compiler_params=pltpu.CompilerParams(
            dimension_semantics=("parallel",)),
    )(z.reshape(B, 1, L), fcw, fcb, rw1, rw2, wpre, wup, wout)

    # (B, r, H, Ws) row-groups -> NHWC (B, Hs, Ws, 1).  Pure layout on the
    # tiny final output, done once in XLA.
    return out.transpose(0, 2, 1, 3).reshape(B, Hs, Ws, 1)


# ----------------------------------------------------------------------------
# Pure-JAX reference (NHWC) for correctness checking
# ----------------------------------------------------------------------------
def pixel_shuffle_nhwc(x, r):
    # PyTorch PixelShuffle semantics in NHWC layout.
    B, H, W, Crr = x.shape
    C = Crr // (r * r)
    x = x.reshape(B, H, W, C, r, r)
    x = jnp.transpose(x, (0, 1, 4, 2, 5, 3))          # (B, H, i, W, j, C)
    return x.reshape(B, H * r, W * r, C)


def _conv_ref(x, w):
    return jax.lax.conv_general_dilated(
        x, w, window_strides=(1, 1), padding="SAME",
        dimension_numbers=("NHWC", "HWIO", "NHWC"))


def hic_decoder_ref(z, params, *, base_channels, image_size, scale):
    B = z.shape[0]
    x = z @ params["fc_w"] + params["fc_b"]
    x = x.reshape(B, base_channels, image_size, image_size)
    x = jnp.transpose(x, (0, 2, 3, 1))                # NCHW -> NHWC
    for (w1, w2) in params["res_blocks"]:
        out = jnp.maximum(_conv_ref(x, w1), 0.0)
        out = _conv_ref(out, w2)
        x = x + 0.1 * out
    x = _conv_ref(x, params["conv_pre_up_w"])
    x = _conv_ref(x, params["conv_up_w"])
    x = pixel_shuffle_nhwc(x, scale)
    x = _conv_ref(x, params["conv_out_w"])
    return x


# ----------------------------------------------------------------------------
# Deterministic parameter construction
# ----------------------------------------------------------------------------
def make_params(key, *, base_channels, out_channels, num_res_blocks,
                latent_dim, image_size, scale):
    keys = jax.random.split(key, 4 + 2 * num_res_blocks)
    n_fc = base_channels * image_size * image_size
    s = 0.05
    params = {
        "fc_w": jax.random.normal(keys[0], (latent_dim, n_fc), jnp.float32) * s,
        "fc_b": jax.random.normal(keys[1], (n_fc,), jnp.float32) * s,
        "conv_pre_up_w": jax.random.normal(
            keys[2], (3, 3, base_channels, base_channels), jnp.float32) * s,
        "conv_up_w": jax.random.normal(
            keys[3], (3, 3, base_channels, out_channels * scale ** 2),
            jnp.float32) * s,
    }
    res = []
    for i in range(num_res_blocks):
        w1 = jax.random.normal(keys[4 + 2 * i],
                               (3, 3, base_channels, base_channels),
                               jnp.float32) * s
        w2 = jax.random.normal(keys[5 + 2 * i],
                               (3, 3, base_channels, base_channels),
                               jnp.float32) * s
        res.append((w1, w2))
    params["res_blocks"] = res
    params["conv_out_w"] = jax.random.normal(
        jax.random.fold_in(key, 999),
        (3, 3, out_channels, out_channels), jnp.float32) * s
    return params


# ----------------------------------------------------------------------------
# Main
# ----------------------------------------------------------------------------
if __name__ == "__main__":
    # Small configuration consistent with the module's forward pass.
    B = 2
    base_channels = 8
    out_channels = 1
    num_res_blocks = 2
    latent_dim = 16
    image_size = 8
    scale = 4

    key = jax.random.PRNGKey(0)
    kz, kp = jax.random.split(key)
    z = jax.random.normal(kz, (B, latent_dim), jnp.float32)
    params = make_params(kp, base_channels=base_channels,
                         out_channels=out_channels,
                         num_res_blocks=num_res_blocks,
                         latent_dim=latent_dim, image_size=image_size,
                         scale=scale)

    fwd = functools.partial(hic_decoder_pallas, base_channels=base_channels,
                            image_size=image_size, scale=scale,
                            out_channels=out_channels)
    out = jax.block_until_ready(jax.jit(fwd)(z, params))

    ref = hic_decoder_ref(z, params, base_channels=base_channels,
                          image_size=image_size, scale=scale)

    assert out.shape == (B, image_size * scale, image_size * scale, out_channels)
    np.testing.assert_allclose(np.asarray(out), np.asarray(ref),
                               rtol=1e-4, atol=1e-4)
    print("KERNEL_OK")
</pallas_src>

<mosaic_0001>
module attributes {stable_mosaic.version = 11 : i64} {
  func.func @_decoder_kernel(%arg0: i32, %arg1: memref<1x1x16xf32, #tpu.memory_space<vmem>>, %arg2: memref<64x8x16xf32, #tpu.memory_space<vmem>>, %arg3: memref<64x8xf32, #tpu.memory_space<vmem>>, %arg4: memref<2x72x8xf32, #tpu.memory_space<vmem>>, %arg5: memref<2x72x8xf32, #tpu.memory_space<vmem>>, %arg6: memref<72x8xf32, #tpu.memory_space<vmem>>, %arg7: memref<72x16xf32, #tpu.memory_space<vmem>>, %arg8: memref<1x9xf32, #tpu.memory_space<vmem>>, %arg9: memref<1x4x8x32xf32, #tpu.memory_space<vmem>>, %arg10: memref<10x10x8xf32, #tpu.memory_space<vmem>>, %arg11: memref<10x10x8xf32, #tpu.memory_space<vmem>>, %arg12: memref<4x10x34xf32, #tpu.memory_space<vmem>>) attributes {dimension_semantics = [#tpu.dimension_semantics<parallel>], iteration_bounds = array<i64: 2>, scalar_prefetch = 0 : i64, scratch_operands = 3 : i64, tpu.core_type = #tpu.core_type<tc>, window_params = [{transform_indices = @transform_0, window_bounds = array<i64: 1, 1, 16>}, {pipeline_mode = #tpu.pipeline_mode<synchronous>, transform_indices = @transform_1, window_bounds = array<i64: 64, 8, 16>}, {pipeline_mode = #tpu.pipeline_mode<synchronous>, transform_indices = @transform_2, window_bounds = array<i64: 64, 8>}, {pipeline_mode = #tpu.pipeline_mode<synchronous>, transform_indices = @transform_3, window_bounds = array<i64: 2, 72, 8>}, {pipeline_mode = #tpu.pipeline_mode<synchronous>, transform_indices = @transform_4, window_bounds = array<i64: 2, 72, 8>}, {pipeline_mode = #tpu.pipeline_mode<synchronous>, transform_indices = @transform_5, window_bounds = array<i64: 72, 8>}, {pipeline_mode = #tpu.pipeline_mode<synchronous>, transform_indices = @transform_6, window_bounds = array<i64: 72, 16>}, {pipeline_mode = #tpu.pipeline_mode<synchronous>, transform_indices = @transform_7, window_bounds = array<i64: 1, 9>}, {transform_indices = @transform_8, window_bounds = array<i64: 1, 4, 8, 32>}]} {
    %cst = arith.constant 0.000000e+00 : f32
    %0 = vector.broadcast %cst : f32 to vector<10x10x8xf32>
    %c0 = arith.constant 0 : index
    %c0_0 = arith.constant 0 : index
    %c0_1 = arith.constant 0 : index
    %1 = vector.load %arg10[%c0, %c0_0, %c0_1] : memref<10x10x8xf32, #tpu.memory_space<vmem>>, vector<10x10x8xf32>
    tpu.vector_store %arg10[%c0, %c0_0, %c0_1], %0 {strides = array<i32>} : memref<10x10x8xf32, #tpu.memory_space<vmem>>, vector<10x10x8xf32>,
    %cst_2 = arith.constant 0.000000e+00 : f32
    %2 = vector.broadcast %cst_2 : f32 to vector<10x10x8xf32>
    %c0_3 = arith.constant 0 : index
    %c0_4 = arith.constant 0 : index
    %c0_5 = arith.constant 0 : index
    %3 = vector.load %arg11[%c0_3, %c0_4, %c0_5] : memref<10x10x8xf32, #tpu.memory_space<vmem>>, vector<10x10x8xf32>
    tpu.vector_store %arg11[%c0_3, %c0_4, %c0_5], %2 {strides = array<i32>} : memref<10x10x8xf32, #tpu.memory_space<vmem>>, vector<10x10x8xf32>,
    %cst_6 = arith.constant 0.000000e+00 : f32
    %4 = vector.broadcast %cst_6 : f32 to vector<4x10x34xf32>
    %c0_7 = arith.constant 0 : index
    %c0_8 = arith.constant 0 : index
    %c0_9 = arith.constant 0 : index
    %5 = vector.load %arg12[%c0_7, %c0_8, %c0_9] : memref<4x10x34xf32, #tpu.memory_space<vmem>>, vector<4x10x34xf32>
    tpu.vector_store %arg12[%c0_7, %c0_8, %c0_9], %4 {strides = array<i32>} : memref<4x10x34xf32, #tpu.memory_space<vmem>>, vector<4x10x34xf32>,
    %c0_10 = arith.constant 0 : index
    %c0_11 = arith.constant 0 : index
    %c0_12 = arith.constant 0 : index
    %6 = vector.load %arg2[%c0_10, %c0_11, %c0_12] : memref<64x8x16xf32, #tpu.memory_space<vmem>>, vector<64x8x16xf32>
    %c0_13 = arith.constant 0 : index
    %c0_14 = arith.constant 0 : index
    %c0_15 = arith.constant 0 : index
    %7 = vector.load %arg1[%c0_13, %c0_14, %c0_15] : memref<1x1x16xf32, #tpu.memory_space<vmem>>, vector<1x1x16xf32>
    %8 = vector.broadcast %7 : vector<1x1x16xf32> to vector<64x8x16xf32>
    %9 = arith.mulf %6, %8 : vector<64x8x16xf32>
    %cst_16 = arith.constant dense<0.000000e+00> : vector<64x8xf32>
    %10 = vector.multi_reduction <add>, %9, %cst_16 [2] : vector<64x8x16xf32> to vector<64x8xf32>
    %c0_17 = arith.constant 0 : index
    %c0_18 = arith.constant 0 : index
    %11 = vector.load %arg3[%c0_17, %c0_18] : memref<64x8xf32, #tpu.memory_space<vmem>>, vector<64x8xf32>
    %12 = arith.addf %10, %11 : vector<64x8xf32>
    %13 = vector.shape_cast %12 : vector<64x8xf32> to vector<8x8x8xf32>
    %c1 = arith.constant 1 : index
    %c1_19 = arith.constant 1 : index
    %c0_20 = arith.constant 0 : index
    %14 = vector.load %arg10[%c1, %c1_19, %c0_20] : memref<10x10x8xf32, #tpu.memory_space<vmem>>, vector<8x8x8xf32>
    tpu.vector_store %arg10[%c1, %c1_19, %c0_20], %13 {strides = array<i32>} : memref<10x10x8xf32, #tpu.memory_space<vmem>>, vector<8x8x8xf32>,
    %c0_21 = arith.constant 0 : index
    %c0_22 = arith.constant 0 : index
    %c0_23 = arith.constant 0 : index
    %15 = vector.load %arg10[%c0_21, %c0_22, %c0_23] : memref<10x10x8xf32, #tpu.memory_space<vmem>>, vector<8x8x8xf32>
    %16 = vector.shape_cast %15 : vector<8x8x8xf32> to vector<64x8xf32>
    %c0_24 = arith.constant 0 : index
    %c1_25 = arith.constant 1 : index
    %c0_26 = arith.constant 0 : index
    %17 = vector.load %arg10[%c0_24, %c1_25, %c0_26] : memref<10x10x8xf32, #tpu.memory_space<vmem>>, vector<8x8x8xf32>
    %18 = vector.shape_cast %17 : vector<8x8x8xf32> to vector<64x8xf32>
    %c0_27 = arith.constant 0 : index
    %c2 = arith.constant 2 : index
    %c0_28 = arith.constant 0 : index
    %19 = vector.load %arg10[%c0_27, %c2, %c0_28] : memref<10x10x8xf32, #tpu.memory_space<vmem>>, vector<8x8x8xf32>
    %20 = vector.shape_cast %19 : vector<8x8x8xf32> to vector<64x8xf32>
    %c1_29 = arith.constant 1 : index
    %c0_30 = arith.constant 0 : index
    %c0_31 = arith.constant 0 : index
    %21 = vector.load %arg10[%c1_29, %c0_30, %c0_31] : memref<10x10x8xf32, #tpu.memory_space<vmem>>, vector<8x8x8xf32>
    %22 = vector.shape_cast %21 : vector<8x8x8xf32> to vector<64x8xf32>
    %c1_32 = arith.constant 1 : index
    %c1_33 = arith.constant 1 : index
    %c0_34 = arith.constant 0 : index
    %23 = vector.load %arg10[%c1_32, %c1_33, %c0_34] : memref<10x10x8xf32, #tpu.memory_space<vmem>>, vector<8x8x8xf32>
    %24 = vector.shape_cast %23 : vector<8x8x8xf32> to vector<64x8xf32>
    %c1_35 = arith.constant 1 : index
    %c2_36 = arith.constant 2 : index
    %c0_37 = arith.constant 0 : index
    %25 = vector.load %arg10[%c1_35, %c2_36, %c0_37] : memref<10x10x8xf32, #tpu.memory_space<vmem>>, vector<8x8x8xf32>
    %26 = vector.shape_cast %25 : vector<8x8x8xf32> to vector<64x8xf32>
    %c2_38 = arith.constant 2 : index
    %c0_39 = arith.constant 0 : index
    %c0_40 = arith.constant 0 : index
    %27 = vector.load %arg10[%c2_38, %c0_39, %c0_40] : memref<10x10x8xf32, #tpu.memory_space<vmem>>, vector<8x8x8xf32>
    %28 = vector.shape_cast %27 : vector<8x8x8xf32> to vector<64x8xf32>
    %c2_41 = arith.constant 2 : index
    %c1_42 = arith.constant 1 : index
    %c0_43 = arith.constant 0 : index
    %29 = vector.load %arg10[%c2_41, %c1_42, %c0_43] : memref<10x10x8xf32, #tpu.memory_space<vmem>>, vector<8x8x8xf32>
    %30 = vector.shape_cast %29 : vector<8x8x8xf32> to vector<64x8xf32>
    %c2_44 = arith.constant 2 : index
    %c2_45 = arith.constant 2 : index
    %c0_46 = arith.constant 0 : index
    %31 = vector.load %arg10[%c2_44, %c2_45, %c0_46] : memref<10x10x8xf32, #tpu.memory_space<vmem>>, vector<8x8x8xf32>
    %32 = vector.shape_cast %31 : vector<8x8x8xf32> to vector<64x8xf32>
    %33 = tpu.concatenate %16, %18, %20, %22, %24, %26, %28, %30, %32 in 1 : vector<64x8xf32>, vector<64x8xf32>, vector<64x8xf32>, vector<64x8xf32>, vector<64x8xf32>, vector<64x8xf32>, vector<64x8xf32>, vector<64x8xf32>, vector<64x8xf32> -> vector<64x72xf32>
    %c0_47 = arith.constant 0 : index
    %c0_48 = arith.constant 0 : index
    %c0_49 = arith.constant 0 : index
    %34 = vector.load %arg4[%c0_47, %c0_48, %c0_49] : memref<2x72x8xf32, #tpu.memory_space<vmem>>, vector<1x72x8xf32>
    %35 = vector.shape_cast %34 : vector<1x72x8xf32> to vector<72x8xf32>
    %cst_50 = arith.constant dense<0.000000e+00> : vector<64x8xf32>
    %36 = tpu.matmul %33, %35, %cst_50 {dimension_numbers = #tpu.dot_dimension_numbers<[1], [0], [0], [1], [0, 0, 1, 1], [], []>} : vector<64x72xf32>, vector<72x8xf32>, vector<64x8xf32> -> vector<64x8xf32>
    %cst_51 = arith.constant 0.000000e+00 : f32
    %37 = vector.broadcast %cst_51 : f32 to vector<64x8xf32>
    %38 = arith.maximumf %36, %37 : vector<64x8xf32>
    %39 = vector.shape_cast %38 : vector<64x8xf32> to vector<8x8x8xf32>
    %c1_52 = arith.constant 1 : index
    %c1_53 = arith.constant 1 : index
    %c0_54 = arith.constant 0 : index
    %40 = vector.load %arg11[%c1_52, %c1_53, %c0_54] : memref<10x10x8xf32, #tpu.memory_space<vmem>>, vector<8x8x8xf32>
    tpu.vector_store %arg11[%c1_52, %c1_53, %c0_54], %39 {strides = array<i32>} : memref<10x10x8xf32, #tpu.memory_space<vmem>>, vector<8x8x8xf32>,
    %c0_55 = arith.constant 0 : index
    %c0_56 = arith.constant 0 : index
    %c0_57 = arith.constant 0 : index
    %41 = vector.load %arg11[%c0_55, %c0_56, %c0_57] : memref<10x10x8xf32, #tpu.memory_space<vmem>>, vector<8x8x8xf32>
    %42 = vector.shape_cast %41 : vector<8x8x8xf32> to vector<64x8xf32>
    %c0_58 = arith.constant 0 : index
    %c1_59 = arith.constant 1 : index
    %c0_60 = arith.constant 0 : index
    %43 = vector.load %arg11[%c0_58, %c1_59, %c0_60] : memref<10x10x8xf32, #tpu.memory_space<vmem>>, vector<8x8x8xf32>
    %44 = vector.shape_cast %43 : vector<8x8x8xf32> to vector<64x8xf32>
    %c0_61 = arith.constant 0 : index
    %c2_62 = arith.constant 2 : index
    %c0_63 = arith.constant 0 : index
    %45 = vector.load %arg11[%c0_61, %c2_62, %c0_63] : memref<10x10x8xf32, #tpu.memory_space<vmem>>, vector<8x8x8xf32>
    %46 = vector.shape_cast %45 : vector<8x8x8xf32> to vector<64x8xf32>
    %c1_64 = arith.constant 1 : index
    %c0_65 = arith.constant 0 : index
    %c0_66 = arith.constant 0 : index
    %47 = vector.load %arg11[%c1_64, %c0_65, %c0_66] : memref<10x10x8xf32, #tpu.memory_space<vmem>>, vector<8x8x8xf32>
    %48 = vector.shape_cast %47 : vector<8x8x8xf32> to vector<64x8xf32>
    %c1_67 = arith.constant 1 : index
    %c1_68 = arith.constant 1 : index
    %c0_69 = arith.constant 0 : index
    %49 = vector.load %arg11[%c1_67, %c1_68, %c0_69] : memref<10x10x8xf32, #tpu.memory_space<vmem>>, vector<8x8x8xf32>
    %50 = vector.shape_cast %49 : vector<8x8x8xf32> to vector<64x8xf32>
    %c1_70 = arith.constant 1 : index
    %c2_71 = arith.constant 2 : index
    %c0_72 = arith.constant 0 : index
    %51 = vector.load %arg11[%c1_70, %c2_71, %c0_72] : memref<10x10x8xf32, #tpu.memory_space<vmem>>, vector<8x8x8xf32>
    %52 = vector.shape_cast %51 : vector<8x8x8xf32> to vector<64x8xf32>
    %c2_73 = arith.constant 2 : index
    %c0_74 = arith.constant 0 : index
    %c0_75 = arith.constant 0 : index
    %53 = vector.load %arg11[%c2_73, %c0_74, %c0_75] : memref<10x10x8xf32, #tpu.memory_space<vmem>>, vector<8x8x8xf32>
    %54 = vector.shape_cast %53 : vector<8x8x8xf32> to vector<64x8xf32>
    %c2_76 = arith.constant 2 : index
    %c1_77 = arith.constant 1 : index
    %c0_78 = arith.constant 0 : index
    %55 = vector.load %arg11[%c2_76, %c1_77, %c0_78] : memref<10x10x8xf32, #tpu.memory_space<vmem>>, vector<8x8x8xf32>
    %56 = vector.shape_cast %55 : vector<8x8x8xf32> to vector<64x8xf32>
    %c2_79 = arith.constant 2 : index
    %c2_80 = arith.constant 2 : index
    %c0_81 = arith.constant 0 : index
    %57 = vector.load %arg11[%c2_79, %c2_80, %c0_81] : memref<10x10x8xf32, #tpu.memory_space<vmem>>, vector<8x8x8xf32>
    %58 = vector.shape_cast %57 : vector<8x8x8xf32> to vector<64x8xf32>
    %59 = tpu.concatenate %42, %44, %46, %48, %50, %52, %54, %56, %58 in 1 : vector<64x8xf32>, vector<64x8xf32>, vector<64x8xf32>, vector<64x8xf32>, vector<64x8xf32>, vector<64x8xf32>, vector<64x8xf32>, vector<64x8xf32>, vector<64x8xf32> -> vector<64x72xf32>
    %c0_82 = arith.constant 0 : index
    %c0_83 = arith.constant 0 : index
    %c0_84 = arith.constant 0 : index
    %60 = vector.load %arg5[%c0_82, %c0_83, %c0_84] : memref<2x72x8xf32, #tpu.memory_space<vmem>>, vector<1x72x8xf32>
    %61 = vector.shape_cast %60 : vector<1x72x8xf32> to vector<72x8xf32>
    %cst_85 = arith.constant dense<0.000000e+00> : vector<64x8xf32>
    %62 = tpu.matmul %59, %61, %cst_85 {dimension_numbers = #tpu.dot_dimension_numbers<[1], [0], [0], [1], [0, 0, 1, 1], [], []>} : vector<64x72xf32>, vector<72x8xf32>, vector<64x8xf32> -> vector<64x8xf32>
    %cst_86 = arith.constant 1.000000e-01 : f32
    %63 = vector.broadcast %cst_86 : f32 to vector<64x8xf32>
    %64 = arith.mulf %63, %62 : vector<64x8xf32>
    %65 = arith.addf %12, %64 : vector<64x8xf32>
    %66 = vector.shape_cast %65 : vector<64x8xf32> to vector<8x8x8xf32>
    %c1_87 = arith.constant 1 : index
    %c1_88 = arith.constant 1 : index
    %c0_89 = arith.constant 0 : index
    %67 = vector.load %arg10[%c1_87, %c1_88, %c0_89] : memref<10x10x8xf32, #tpu.memory_space<vmem>>, vector<8x8x8xf32>
    tpu.vector_store %arg10[%c1_87, %c1_88, %c0_89], %66 {strides = array<i32>} : memref<10x10x8xf32, #tpu.memory_space<vmem>>, vector<8x8x8xf32>,
    %c0_90 = arith.constant 0 : index
    %c0_91 = arith.constant 0 : index
    %c0_92 = arith.constant 0 : index
    %68 = vector.load %arg10[%c0_90, %c0_91, %c0_92] : memref<10x10x8xf32, #tpu.memory_space<vmem>>, vector<8x8x8xf32>
    %69 = vector.shape_cast %68 : vector<8x8x8xf32> to vector<64x8xf32>
    %c0_93 = arith.constant 0 : index
    %c1_94 = arith.constant 1 : index
    %c0_95 = arith.constant 0 : index
    %70 = vector.load %arg10[%c0_93, %c1_94, %c0_95] : memref<10x10x8xf32, #tpu.memory_space<vmem>>, vector<8x8x8xf32>
    %71 = vector.shape_cast %70 : vector<8x8x8xf32> to vector<64x8xf32>
    %c0_96 = arith.constant 0 : index
    %c2_97 = arith.constant 2 : index
    %c0_98 = arith.constant 0 : index
    %72 = vector.load %arg10[%c0_96, %c2_97, %c0_98] : memref<10x10x8xf32, #tpu.memory_space<vmem>>, vector<8x8x8xf32>
    %73 = vector.shape_cast %72 : vector<8x8x8xf32> to vector<64x8xf32>
    %c1_99 = arith.constant 1 : index
    %c0_100 = arith.constant 0 : index
    %c0_101 = arith.constant 0 : index
    %74 = vector.load %arg10[%c1_99, %c0_100, %c0_101] : memref<10x10x8xf32, #tpu.memory_space<vmem>>, vector<8x8x8xf32>
    %75 = vector.shape_cast %74 : vector<8x8x8xf32> to vector<64x8xf32>
    %c1_102 = arith.constant 1 : index
    %c1_103 = arith.constant 1 : index
    %c0_104 = arith.constant 0 : index
    %76 = vector.load %arg10[%c1_102, %c1_103, %c0_104] : memref<10x10x8xf32, #tpu.memory_space<vmem>>, vector<8x8x8xf32>
    %77 = vector.shape_cast %76 : vector<8x8x8xf32> to vector<64x8xf32>
    %c1_105 = arith.constant 1 : index
    %c2_106 = arith.constant 2 : index
    %c0_107 = arith.constant 0 : index
    %78 = vector.load %arg10[%c1_105, %c2_106, %c0_107] : memref<10x10x8xf32, #tpu.memory_space<vmem>>, vector<8x8x8xf32>
    %79 = vector.shape_cast %78 : vector<8x8x8xf32> to vector<64x8xf32>
    %c2_108 = arith.constant 2 : index
    %c0_109 = arith.constant 0 : index
    %c0_110 = arith.constant 0 : index
    %80 = vector.load %arg10[%c2_108, %c0_109, %c0_110] : memref<10x10x8xf32, #tpu.memory_space<vmem>>, vector<8x8x8xf32>
    %81 = vector.shape_cast %80 : vector<8x8x8xf32> to vector<64x8xf32>
    %c2_111 = arith.constant 2 : index
    %c1_112 = arith.constant 1 : index
    %c0_113 = arith.constant 0 : index
    %82 = vector.load %arg10[%c2_111, %c1_112, %c0_113] : memref<10x10x8xf32, #tpu.memory_space<vmem>>, vector<8x8x8xf32>
    %83 = vector.shape_cast %82 : vector<8x8x8xf32> to vector<64x8xf32>
    %c2_114 = arith.constant 2 : index
    %c2_115 = arith.constant 2 : index
    %c0_116 = arith.constant 0 : index
    %84 = vector.load %arg10[%c2_114, %c2_115, %c0_116] : memref<10x10x8xf32, #tpu.memory_space<vmem>>, vector<8x8x8xf32>
    %85 = vector.shape_cast %84 : vector<8x8x8xf32> to vector<64x8xf32>
    %86 = tpu.concatenate %69, %71, %73, %75, %77, %79, %81, %83, %85 in 1 : vector<64x8xf32>, vector<64x8xf32>, vector<64x8xf32>, vector<64x8xf32>, vector<64x8xf32>, vector<64x8xf32>, vector<64x8xf32>, vector<64x8xf32>, vector<64x8xf32> -> vector<64x72xf32>
    %c1_117 = arith.constant 1 : index
    %c0_118 = arith.constant 0 : index
    %c0_119 = arith.constant 0 : index
    %87 = vector.load %arg4[%c1_117, %c0_118, %c0_119] : memref<2x72x8xf32, #tpu.memory_space<vmem>>, vector<1x72x8xf32>
    %88 = vector.shape_cast %87 : vector<1x72x8xf32> to vector<72x8xf32>
    %cst_120 = arith.constant dense<0.000000e+00> : vector<64x8xf32>
    %89 = tpu.matmul %86, %88, %cst_120 {dimension_numbers = #tpu.dot_dimension_numbers<[1], [0], [0], [1], [0, 0, 1, 1], [], []>} : vector<64x72xf32>, vector<72x8xf32>, vector<64x8xf32> -> vector<64x8xf32>
    %cst_121 = arith.constant 0.000000e+00 : f32
    %90 = vector.broadcast %cst_121 : f32 to vector<64x8xf32>
    %91 = arith.maximumf %89, %90 : vector<64x8xf32>
    %92 = vector.shape_cast %91 : vector<64x8xf32> to vector<8x8x8xf32>
    %c1_122 = arith.constant 1 : index
    %c1_123 = arith.constant 1 : index
    %c0_124 = arith.constant 0 : index
    %93 = vector.load %arg11[%c1_122, %c1_123, %c0_124] : memref<10x10x8xf32, #tpu.memory_space<vmem>>, vector<8x8x8xf32>
    tpu.vector_store %arg11[%c1_122, %c1_123, %c0_124], %92 {strides = array<i32>} : memref<10x10x8xf32, #tpu.memory_space<vmem>>, vector<8x8x8xf32>,
    %c0_125 = arith.constant 0 : index
    %c0_126 = arith.constant 0 : index
    %c0_127 = arith.constant 0 : index
    %94 = vector.load %arg11[%c0_125, %c0_126, %c0_127] : memref<10x10x8xf32, #tpu.memory_space<vmem>>, vector<8x8x8xf32>
    %95 = vector.shape_cast %94 : vector<8x8x8xf32> to vector<64x8xf32>
    %c0_128 = arith.constant 0 : index
    %c1_129 = arith.constant 1 : index
    %c0_130 = arith.constant 0 : index
    %96 = vector.load %arg11[%c0_128, %c1_129, %c0_130] : memref<10x10x8xf32, #tpu.memory_space<vmem>>, vector<8x8x8xf32>
    %97 = vector.shape_cast %96 : vector<8x8x8xf32> to vector<64x8xf32>
    %c0_131 = arith.constant 0 : index
    %c2_132 = arith.constant 2 : index
    %c0_133 = arith.constant 0 : index
    %98 = vector.load %arg11[%c0_131, %c2_132, %c0_133] : memref<10x10x8xf32, #tpu.memory_space<vmem>>, vector<8x8x8xf32>
    %99 = vector.shape_cast %98 : vector<8x8x8xf32> to vector<64x8xf32>
    %c1_134 = arith.constant 1 : index
    %c0_135 = arith.constant 0 : index
    %c0_136 = arith.constant 0 : index
    %100 = vector.load %arg11[%c1_134, %c0_135, %c0_136] : memref<10x10x8xf32, #tpu.memory_space<vmem>>, vector<8x8x8xf32>
    %101 = vector.shape_cast %100 : vector<8x8x8xf32> to vector<64x8xf32>
    %c1_137 = arith.constant 1 : index
    %c1_138 = arith.constant 1 : index
    %c0_139 = arith.constant 0 : index
    %102 = vector.load %arg11[%c1_137, %c1_138, %c0_139] : memref<10x10x8xf32, #tpu.memory_space<vmem>>, vector<8x8x8xf32>
    %103 = vector.shape_cast %102 : vector<8x8x8xf32> to vector<64x8xf32>
    %c1_140 = arith.constant 1 : index
    %c2_141 = arith.constant 2 : index
    %c0_142 = arith.constant 0 : index
    %104 = vector.load %arg11[%c1_140, %c2_141, %c0_142] : memref<10x10x8xf32, #tpu.memory_space<vmem>>, vector<8x8x8xf32>
    %105 = vector.shape_cast %104 : vector<8x8x8xf32> to vector<64x8xf32>
    %c2_143 = arith.constant 2 : index
    %c0_144 = arith.constant 0 : index
    %c0_145 = arith.constant 0 : index
    %106 = vector.load %arg11[%c2_143, %c0_144, %c0_145] : memref<10x10x8xf32, #tpu.memory_space<vmem>>, vector<8x8x8xf32>
    %107 = vector.shape_cast %106 : vector<8x8x8xf32> to vector<64x8xf32>
    %c2_146 = arith.constant 2 : index
    %c1_147 = arith.constant 1 : index
    %c0_148 = arith.constant 0 : index
    %108 = vector.load %arg11[%c2_146, %c1_147, %c0_148] : memref<10x10x8xf32, #tpu.memory_space<vmem>>, vector<8x8x8xf32>
    %109 = vector.shape_cast %108 : vector<8x8x8xf32> to vector<64x8xf32>
    %c2_149 = arith.constant 2 : index
    %c2_150 = arith.constant 2 : index
    %c0_151 = arith.constant 0 : index
    %110 = vector.load %arg11[%c2_149, %c2_150, %c0_151] : memref<10x10x8xf32, #tpu.memory_space<vmem>>, vector<8x8x8xf32>
    %111 = vector.shape_cast %110 : vector<8x8x8xf32> to vector<64x8xf32>
    %112 = tpu.concatenate %95, %97, %99, %101, %103, %105, %107, %109, %111 in 1 : vector<64x8xf32>, vector<64x8xf32>, vector<64x8xf32>, vector<64x8xf32>, vector<64x8xf32>, vector<64x8xf32>, vector<64x8xf32>, vector<64x8xf32>, vector<64x8xf32> -> vector<64x72xf32>
    %c1_152 = arith.constant 1 : index
    %c0_153 = arith.constant 0 : index
    %c0_154 = arith.constant 0 : index
    %113 = vector.load %arg5[%c1_152, %c0_153, %c0_154] : memref<2x72x8xf32, #tpu.memory_space<vmem>>, vector<1x72x8xf32>
    %114 = vector.shape_cast %113 : vector<1x72x8xf32> to vector<72x8xf32>
    %cst_155 = arith.constant dense<0.000000e+00> : vector<64x8xf32>
    %115 = tpu.matmul %112, %114, %cst_155 {dimension_numbers = #tpu.dot_dimension_numbers<[1], [0], [0], [1], [0, 0, 1, 1], [], []>} : vector<64x72xf32>, vector<72x8xf32>, vector<64x8xf32> -> vector<64x8xf32>
    %cst_156 = arith.constant 1.000000e-01 : f32
    %116 = vector.broadcast %cst_156 : f32 to vector<64x8xf32>
    %117 = arith.mulf %116, %115 : vector<64x8xf32>
    %118 = arith.addf %65, %117 : vector<64x8xf32>
    %119 = vector.shape_cast %118 : vector<64x8xf32> to vector<8x8x8xf32>
    %c1_157 = arith.constant 1 : index
    %c1_158 = arith.constant 1 : index
    %c0_159 = arith.constant 0 : index
    %120 = vector.load %arg10[%c1_157, %c1_158, %c0_159] : memref<10x10x8xf32, #tpu.memory_space<vmem>>, vector<8x8x8xf32>
    tpu.vector_store %arg10[%c1_157, %c1_158, %c0_159], %119 {strides = array<i32>} : memref<10x10x8xf32, #tpu.memory_space<vmem>>, vector<8x8x8xf32>,
    %c0_160 = arith.constant 0 : index
    %c0_161 = arith.constant 0 : index
    %c0_162 = arith.constant 0 : index
    %121 = vector.load %arg10[%c0_160, %c0_161, %c0_162] : memref<10x10x8xf32, #tpu.memory_space<vmem>>, vector<8x8x8xf32>
    %122 = vector.shape_cast %121 : vector<8x8x8xf32> to vector<64x8xf32>
    %c0_163 = arith.constant 0 : index
    %c1_164 = arith.constant 1 : index
    %c0_165 = arith.constant 0 : index
    %123 = vector.load %arg10[%c0_163, %c1_164, %c0_165] : memref<10x10x8xf32, #tpu.memory_space<vmem>>, vector<8x8x8xf32>
    %124 = vector.shape_cast %123 : vector<8x8x8xf32> to vector<64x8xf32>
    %c0_166 = arith.constant 0 : index
    %c2_167 = arith.constant 2 : index
    %c0_168 = arith.constant 0 : index
    %125 = vector.load %arg10[%c0_166, %c2_167, %c0_168] : memref<10x10x8xf32, #tpu.memory_space<vmem>>, vector<8x8x8xf32>
    %126 = vector.shape_cast %125 : vector<8x8x8xf32> to vector<64x8xf32>
    %c1_169 = arith.constant 1 : index
    %c0_170 = arith.constant 0 : index
    %c0_171 = arith.constant 0 : index
    %127 = vector.load %arg10[%c1_169, %c0_170, %c0_171] : memref<10x10x8xf32, #tpu.memory_space<vmem>>, vector<8x8x8xf32>
    %128 = vector.shape_cast %127 : vector<8x8x8xf32> to vector<64x8xf32>
    %c1_172 = arith.constant 1 : index
    %c1_173 = arith.constant 1 : index
    %c0_174 = arith.constant 0 : index
    %129 = vector.load %arg10[%c1_172, %c1_173, %c0_174] : memref<10x10x8xf32, #tpu.memory_space<vmem>>, vector<8x8x8xf32>
    %130 = vector.shape_cast %129 : vector<8x8x8xf32> to vector<64x8xf32>
    %c1_175 = arith.constant 1 : index
    %c2_176 = arith.constant 2 : index
    %c0_177 = arith.constant 0 : index
    %131 = vector.load %arg10[%c1_175, %c2_176, %c0_177] : memref<10x10x8xf32, #tpu.memory_space<vmem>>, vector<8x8x8xf32>
    %132 = vector.shape_cast %131 : vector<8x8x8xf32> to vector<64x8xf32>
    %c2_178 = arith.constant 2 : index
    %c0_179 = arith.constant 0 : index
    %c0_180 = arith.constant 0 : index
    %133 = vector.load %arg10[%c2_178, %c0_179, %c0_180] : memref<10x10x8xf32, #tpu.memory_space<vmem>>, vector<8x8x8xf32>
    %134 = vector.shape_cast %133 : vector<8x8x8xf32> to vector<64x8xf32>
    %c2_181 = arith.constant 2 : index
    %c1_182 = arith.constant 1 : index
    %c0_183 = arith.constant 0 : index
    %135 = vector.load %arg10[%c2_181, %c1_182, %c0_183] : memref<10x10x8xf32, #tpu.memory_space<vmem>>, vector<8x8x8xf32>
    %136 = vector.shape_cast %135 : vector<8x8x8xf32> to vector<64x8xf32>
    %c2_184 = arith.constant 2 : index
    %c2_185 = arith.constant 2 : index
    %c0_186 = arith.constant 0 : index
    %137 = vector.load %arg10[%c2_184, %c2_185, %c0_186] : memref<10x10x8xf32, #tpu.memory_space<vmem>>, vector<8x8x8xf32>
    %138 = vector.shape_cast %137 : vector<8x8x8xf32> to vector<64x8xf32>
    %139 = tpu.concatenate %122, %124, %126, %128, %130, %132, %134, %136, %138 in 1 : vector<64x8xf32>, vector<64x8xf32>, vector<64x8xf32>, vector<64x8xf32>, vector<64x8xf32>, vector<64x8xf32>, vector<64x8xf32>, vector<64x8xf32>, vector<64x8xf32> -> vector<64x72xf32>
    %c0_187 = arith.constant 0 : index
    %c0_188 = arith.constant 0 : index
    %140 = vector.load %arg6[%c0_187, %c0_188] : memref<72x8xf32, #tpu.memory_space<vmem>>, vector<72x8xf32>
    %cst_189 = arith.constant dense<0.000000e+00> : vector<64x8xf32>
    %141 = tpu.matmul %139, %140, %cst_189 {dimension_numbers = #tpu.dot_dimension_numbers<[1], [0], [0], [1], [0, 0, 1, 1], [], []>} : vector<64x72xf32>, vector<72x8xf32>, vector<64x8xf32> -> vector<64x8xf32>
    %142 = vector.shape_cast %141 : vector<64x8xf32> to vector<8x8x8xf32>
    %c1_190 = arith.constant 1 : index
    %c1_191 = arith.constant 1 : index
    %c0_192 = arith.constant 0 : index
    %143 = vector.load %arg11[%c1_190, %c1_191, %c0_192] : memref<10x10x8xf32, #tpu.memory_space<vmem>>, vector<8x8x8xf32>
    tpu.vector_store %arg11[%c1_190, %c1_191, %c0_192], %142 {strides = array<i32>} : memref<10x10x8xf32, #tpu.memory_space<vmem>>, vector<8x8x8xf32>,
    %c0_193 = arith.constant 0 : index
    %c0_194 = arith.constant 0 : index
    %c0_195 = arith.constant 0 : index
    %144 = vector.load %arg11[%c0_193, %c0_194, %c0_195] : memref<10x10x8xf32, #tpu.memory_space<vmem>>, vector<8x8x8xf32>
    %145 = vector.shape_cast %144 : vector<8x8x8xf32> to vector<64x8xf32>
    %c0_196 = arith.constant 0 : index
    %c1_197 = arith.constant 1 : index
    %c0_198 = arith.constant 0 : index
    %146 = vector.load %arg11[%c0_196, %c1_197, %c0_198] : memref<10x10x8xf32, #tpu.memory_space<vmem>>, vector<8x8x8xf32>
    %147 = vector.shape_cast %146 : vector<8x8x8xf32> to vector<64x8xf32>
    %c0_199 = arith.constant 0 : index
    %c2_200 = arith.constant 2 : index
    %c0_201 = arith.constant 0 : index
    %148 = vector.load %arg11[%c0_199, %c2_200, %c0_201] : memref<10x10x8xf32, #tpu.memory_space<vmem>>, vector<8x8x8xf32>
    %149 = vector.shape_cast %148 : vector<8x8x8xf32> to vector<64x8xf32>
    %c1_202 = arith.constant 1 : index
    %c0_203 = arith.constant 0 : index
    %c0_204 = arith.constant 0 : index
    %150 = vector.load %arg11[%c1_202, %c0_203, %c0_204] : memref<10x10x8xf32, #tpu.memory_space<vmem>>, vector<8x8x8xf32>
    %151 = vector.shape_cast %150 : vector<8x8x8xf32> to vector<64x8xf32>
    %c1_205 = arith.constant 1 : index
    %c1_206 = arith.constant 1 : index
    %c0_207 = arith.constant 0 : index
    %152 = vector.load %arg11[%c1_205, %c1_206, %c0_207] : memref<10x10x8xf32, #tpu.memory_space<vmem>>, vector<8x8x8xf32>
    %153 = vector.shape_cast %152 : vector<8x8x8xf32> to vector<64x8xf32>
    %c1_208 = arith.constant 1 : index
    %c2_209 = arith.constant 2 : index
    %c0_210 = arith.constant 0 : index
    %154 = vector.load %arg11[%c1_208, %c2_209, %c0_210] : memref<10x10x8xf32, #tpu.memory_space<vmem>>, vector<8x8x8xf32>
    %155 = vector.shape_cast %154 : vector<8x8x8xf32> to vector<64x8xf32>
    %c2_211 = arith.constant 2 : index
    %c0_212 = arith.constant 0 : index
    %c0_213 = arith.constant 0 : index
    %156 = vector.load %arg11[%c2_211, %c0_212, %c0_213] : memref<10x10x8xf32, #tpu.memory_space<vmem>>, vector<8x8x8xf32>
    %157 = vector.shape_cast %156 : vector<8x8x8xf32> to vector<64x8xf32>
    %c2_214 = arith.constant 2 : index
    %c1_215 = arith.constant 1 : index
    %c0_216 = arith.constant 0 : index
    %158 = vector.load %arg11[%c2_214, %c1_215, %c0_216] : memref<10x10x8xf32, #tpu.memory_space<vmem>>, vector<8x8x8xf32>
    %159 = vector.shape_cast %158 : vector<8x8x8xf32> to vector<64x8xf32>
    %c2_217 = arith.constant 2 : index
    %c2_218 = arith.constant 2 : index
    %c0_219 = arith.constant 0 : index
    %160 = vector.load %arg11[%c2_217, %c2_218, %c0_219] : memref<10x10x8xf32, #tpu.memory_space<vmem>>, vector<8x8x8xf32>
    %161 = vector.shape_cast %160 : vector<8x8x8xf32> to vector<64x8xf32>
    %162 = tpu.concatenate %145, %147, %149, %151, %153, %155, %157, %159, %161 in 1 : vector<64x8xf32>, vector<64x8xf32>, vector<64x8xf32>, vector<64x8xf32>, vector<64x8xf32>, vector<64x8xf32>, vector<64x8xf32>, vector<64x8xf32>, vector<64x8xf32> -> vector<64x72xf32>
    %c0_220 = arith.constant 0 : index
    %c0_221 = arith.constant 0 : index
    %163 = vector.load %arg7[%c0_220, %c0_221] : memref<72x16xf32, #tpu.memory_space<vmem>>, vector<72x16xf32>
    %cst_222 = arith.constant dense<0.000000e+00> : vector<64x16xf32>
    %164 = tpu.matmul %162, %163, %cst_222 {dimension_numbers = #tpu.dot_dimension_numbers<[1], [0], [0], [1], [0, 0, 1, 1], [], []>} : vector<64x72xf32>, vector<72x16xf32>, vector<64x16xf32> -> vector<64x16xf32>
    %165 = vector.shape_cast %164 : vector<64x16xf32> to vector<8x8x16xf32>
    %166 = vector.extract_strided_slice %165 {offsets = [0, 0, 0], sizes = [8, 1, 4], strides = [1, 1, 1]} : vector<8x8x16xf32> to vector<8x1x4xf32>
    %167 = vector.shape_cast %166 : vector<8x1x4xf32> to vector<8x4xf32>
    %168 = vector.extract_strided_slice %165 {offsets = [0, 1, 0], sizes = [8, 1, 4], strides = [1, 1, 1]} : vector<8x8x16xf32> to vector<8x1x4xf32>
    %169 = vector.shape_cast %168 : vector<8x1x4xf32> to vector<8x4xf32>
    %170 = vector.extract_strided_slice %165 {offsets = [0, 2, 0], sizes = [8, 1, 4], strides = [1, 1, 1]} : vector<8x8x16xf32> to vector<8x1x4xf32>
    %171 = vector.shape_cast %170 : vector<8x1x4xf32> to vector<8x4xf32>
    %172 = vector.extract_strided_slice %165 {offsets = [0, 3, 0], sizes = [8, 1, 4], strides = [1, 1, 1]} : vector<8x8x16xf32> to vector<8x1x4xf32>
    %173 = vector.shape_cast %172 : vector<8x1x4xf32> to vector<8x4xf32>
    %174 = vector.extract_strided_slice %165 {offsets = [0, 4, 0], sizes = [8, 1, 4], strides = [1, 1, 1]} : vector<8x8x16xf32> to vector<8x1x4xf32>
    %175 = vector.shape_cast %174 : vector<8x1x4xf32> to vector<8x4xf32>
    %176 = vector.extract_strided_slice %165 {offsets = [0, 5, 0], sizes = [8, 1, 4], strides = [1, 1, 1]} : vector<8x8x16xf32> to vector<8x1x4xf32>
    %177 = vector.shape_cast %176 : vector<8x1x4xf32> to vector<8x4xf32>
    %178 = vector.extract_strided_slice %165 {offsets = [0, 6, 0], sizes = [8, 1, 4], strides = [1, 1, 1]} : vector<8x8x16xf32> to vector<8x1x4xf32>
    %179 = vector.shape_cast %178 : vector<8x1x4xf32> to vector<8x4xf32>
    %180 = vector.extract_strided_slice %165 {offsets = [0, 7, 0], sizes = [8, 1, 4], strides = [1, 1, 1]} : vector<8x8x16xf32> to vector<8x1x4xf32>
    %181 = vector.shape_cast %180 : vector<8x1x4xf32> to vector<8x4xf32>
    %182 = tpu.concatenate %167, %169, %171, %173, %175, %177, %179, %181 in 1 : vector<8x4xf32>, vector<8x4xf32>, vector<8x4xf32>, vector<8x4xf32>, vector<8x4xf32>, vector<8x4xf32>, vector<8x4xf32>, vector<8x4xf32> -> vector<8x32xf32>
    %c0_223 = arith.constant 0 : index
    %c1_224 = arith.constant 1 : index
    %c1_225 = arith.constant 1 : index
    %183 = vector.load %arg12[%c0_223, %c1_224, %c1_225] : memref<4x10x34xf32, #tpu.memory_space<vmem>>, vector<1x8x32xf32>
    %184 = vector.shape_cast %183 : vector<1x8x32xf32> to vector<8x32xf32>
    %185 = vector.shape_cast %182 : vector<8x32xf32> to vector<1x8x32xf32>
    tpu.vector_store %arg12[%c0_223, %c1_224, %c1_225], %185 {strides = array<i32>} : memref<4x10x34xf32, #tpu.memory_space<vmem>>, vector<1x8x32xf32>,
    %186 = vector.extract_strided_slice %165 {offsets = [0, 0, 4], sizes = [8, 1, 4], strides = [1, 1, 1]} : vector<8x8x16xf32> to vector<8x1x4xf32>
    %187 = vector.shape_cast %186 : vector<8x1x4xf32> to vector<8x4xf32>
    %188 = vector.extract_strided_slice %165 {offsets = [0, 1, 4], sizes = [8, 1, 4], strides = [1, 1, 1]} : vector<8x8x16xf32> to vector<8x1x4xf32>
    %189 = vector.shape_cast %188 : vector<8x1x4xf32> to vector<8x4xf32>
    %190 = vector.extract_strided_slice %165 {offsets = [0, 2, 4], sizes = [8, 1, 4], strides = [1, 1, 1]} : vector<8x8x16xf32> to vector<8x1x4xf32>
    %191 = vector.shape_cast %190 : vector<8x1x4xf32> to vector<8x4xf32>
    %192 = vector.extract_strided_slice %165 {offsets = [0, 3, 4], sizes = [8, 1, 4], strides = [1, 1, 1]} : vector<8x8x16xf32> to vector<8x1x4xf32>
    %193 = vector.shape_cast %192 : vector<8x1x4xf32> to vector<8x4xf32>
    %194 = vector.extract_strided_slice %165 {offsets = [0, 4, 4], sizes = [8, 1, 4], strides = [1, 1, 1]} : vector<8x8x16xf32> to vector<8x1x4xf32>
    %195 = vector.shape_cast %194 : vector<8x1x4xf32> to vector<8x4xf32>
    %196 = vector.extract_strided_slice %165 {offsets = [0, 5, 4], sizes = [8, 1, 4], strides = [1, 1, 1]} : vector<8x8x16xf32> to vector<8x1x4xf32>
    %197 = vector.shape_cast %196 : vector<8x1x4xf32> to vector<8x4xf32>
    %198 = vector.extract_strided_slice %165 {offsets = [0, 6, 4], sizes = [8, 1, 4], strides = [1, 1, 1]} : vector<8x8x16xf32> to vector<8x1x4xf32>
    %199 = vector.shape_cast %198 : vector<8x1x4xf32> to vector<8x4xf32>
    %200 = vector.extract_strided_slice %165 {offsets = [0, 7, 4], sizes = [8, 1, 4], strides = [1, 1, 1]} : vector<8x8x16xf32> to vector<8x1x4xf32>
    %201 = vector.shape_cast %200 : vector<8x1x4xf32> to vector<8x4xf32>
    %202 = tpu.concatenate %187, %189, %191, %193, %195, %197, %199, %201 in 1 : vector<8x4xf32>, vector<8x4xf32>, vector<8x4xf32>, vector<8x4xf32>, vector<8x4xf32>, vector<8x4xf32>, vector<8x4xf32>, vector<8x4xf32> -> vector<8x32xf32>
    %c1_226 = arith.constant 1 : index
    %c1_227 = arith.constant 1 : index
    %c1_228 = arith.constant 1 : index
    %203 = vector.load %arg12[%c1_226, %c1_227, %c1_228] : memref<4x10x34xf32, #tpu.memory_space<vmem>>, vector<1x8x32xf32>
    %204 = vector.shape_cast %203 : vector<1x8x32xf32> to vector<8x32xf32>
    %205 = vector.shape_cast %202 : vector<8x32xf32> to vector<1x8x32xf32>
    tpu.vector_store %arg12[%c1_226, %c1_227, %c1_228], %205 {strides = array<i32>} : memref<4x10x34xf32, #tpu.memory_space<vmem>>, vector<1x8x32xf32>,
    %206 = vector.extract_strided_slice %165 {offsets = [0, 0, 8], sizes = [8, 1, 4], strides = [1, 1, 1]} : vector<8x8x16xf32> to vector<8x1x4xf32>
    %207 = vector.shape_cast %206 : vector<8x1x4xf32> to vector<8x4xf32>
    %208 = vector.extract_strided_slice %165 {offsets = [0, 1, 8], sizes = [8, 1, 4], strides = [1, 1, 1]} : vector<8x8x16xf32> to vector<8x1x4xf32>
    %209 = vector.shape_cast %208 : vector<8x1x4xf32> to vector<8x4xf32>
    %210 = vector.extract_strided_slice %165 {offsets = [0, 2, 8], sizes = [8, 1, 4], strides = [1, 1, 1]} : vector<8x8x16xf32> to vector<8x1x4xf32>
    %211 = vector.shape_cast %210 : vector<8x1x4xf32> to vector<8x4xf32>
    %212 = vector.extract_strided_slice %165 {offsets = [0, 3, 8], sizes = [8, 1, 4], strides = [1, 1, 1]} : vector<8x8x16xf32> to vector<8x1x4xf32>
    %213 = vector.shape_cast %212 : vector<8x1x4xf32> to vector<8x4xf32>
    %214 = vector.extract_strided_slice %165 {offsets = [0, 4, 8], sizes = [8, 1, 4], strides = [1, 1, 1]} : vector<8x8x16xf32> to vector<8x1x4xf32>
    %215 = vector.shape_cast %214 : vector<8x1x4xf32> to vector<8x4xf32>
    %216 = vector.extract_strided_slice %165 {offsets = [0, 5, 8], sizes = [8, 1, 4], strides = [1, 1, 1]} : vector<8x8x16xf32> to vector<8x1x4xf32>
    %217 = vector.shape_cast %216 : vector<8x1x4xf32> to vector<8x4xf32>
    %218 = vector.extract_strided_slice %165 {offsets = [0, 6, 8], sizes = [8, 1, 4], strides = [1, 1, 1]} : vector<8x8x16xf32> to vector<8x1x4xf32>
    %219 = vector.shape_cast %218 : vector<8x1x4xf32> to vector<8x4xf32>
    %220 = vector.extract_strided_slice %165 {offsets = [0, 7, 8], sizes = [8, 1, 4], strides = [1, 1, 1]} : vector<8x8x16xf32> to vector<8x1x4xf32>
    %221 = vector.shape_cast %220 : vector<8x1x4xf32> to vector<8x4xf32>
    %222 = tpu.concatenate %207, %209, %211, %213, %215, %217, %219, %221 in 1 : vector<8x4xf32>, vector<8x4xf32>, vector<8x4xf32>, vector<8x4xf32>, vector<8x4xf32>, vector<8x4xf32>, vector<8x4xf32>, vector<8x4xf32> -> vector<8x32xf32>
    %c2_229 = arith.constant 2 : index
    %c1_230 = arith.constant 1 : index
    %c1_231 = arith.constant 1 : index
    %223 = vector.load %arg12[%c2_229, %c1_230, %c1_231] : memref<4x10x34xf32, #tpu.memory_space<vmem>>, vector<1x8x32xf32>
    %224 = vector.shape_cast %223 : vector<1x8x32xf32> to vector<8x32xf32>
    %225 = vector.shape_cast %222 : vector<8x32xf32> to vector<1x8x32xf32>
    tpu.vector_store %arg12[%c2_229, %c1_230, %c1_231], %225 {strides = array<i32>} : memref<4x10x34xf32, #tpu.memory_space<vmem>>, vector<1x8x32xf32>,
    %226 = vector.extract_strided_slice %165 {offsets = [0, 0, 12], sizes = [8, 1, 4], strides = [1, 1, 1]} : vector<8x8x16xf32> to vector<8x1x4xf32>
    %227 = vector.shape_cast %226 : vector<8x1x4xf32> to vector<8x4xf32>
    %228 = vector.extract_strided_slice %165 {offsets = [0, 1, 12], sizes = [8, 1, 4], strides = [1, 1, 1]} : vector<8x8x16xf32> to vector<8x1x4xf32>
    %229 = vector.shape_cast %228 : vector<8x1x4xf32> to vector<8x4xf32>
    %230 = vector.extract_strided_slice %165 {offsets = [0, 2, 12], sizes = [8, 1, 4], strides = [1, 1, 1]} : vector<8x8x16xf32> to vector<8x1x4xf32>
    %231 = vector.shape_cast %230 : vector<8x1x4xf32> to vector<8x4xf32>
    %232 = vector.extract_strided_slice %165 {offsets = [0, 3, 12], sizes = [8, 1, 4], strides = [1, 1, 1]} : vector<8x8x16xf32> to vector<8x1x4xf32>
    %233 = vector.shape_cast %232 : vector<8x1x4xf32> to vector<8x4xf32>
    %234 = vector.extract_strided_slice %165 {offsets = [0, 4, 12], sizes = [8, 1, 4], strides = [1, 1, 1]} : vector<8x8x16xf32> to vector<8x1x4xf32>
    %235 = vector.shape_cast %234 : vector<8x1x4xf32> to vector<8x4xf32>
    %236 = vector.extract_strided_slice %165 {offsets = [0, 5, 12], sizes = [8, 1, 4], strides = [1, 1, 1]} : vector<8x8x16xf32> to vector<8x1x4xf32>
    %237 = vector.shape_cast %236 : vector<8x1x4xf32> to vector<8x4xf32>
    %238 = vector.extract_strided_slice %165 {offsets = [0, 6, 12], sizes = [8, 1, 4], strides = [1, 1, 1]} : vector<8x8x16xf32> to vector<8x1x4xf32>
    %239 = vector.shape_cast %238 : vector<8x1x4xf32> to vector<8x4xf32>
    %240 = vector.extract_strided_slice %165 {offsets = [0, 7, 12], sizes = [8, 1, 4], strides = [1, 1, 1]} : vector<8x8x16xf32> to vector<8x1x4xf32>
    %241 = vector.shape_cast %240 : vector<8x1x4xf32> to vector<8x4xf32>
    %242 = tpu.concatenate %227, %229, %231, %233, %235, %237, %239, %241 in 1 : vector<8x4xf32>, vector<8x4xf32>, vector<8x4xf32>, vector<8x4xf32>, vector<8x4xf32>, vector<8x4xf32>, vector<8x4xf32>, vector<8x4xf32> -> vector<8x32xf32>
    %c3 = arith.constant 3 : index
    %c1_232 = arith.constant 1 : index
    %c1_233 = arith.constant 1 : index
    %243 = vector.load %arg12[%c3, %c1_232, %c1_233] : memref<4x10x34xf32, #tpu.memory_space<vmem>>, vector<1x8x32xf32>
    %244 = vector.shape_cast %243 : vector<1x8x32xf32> to vector<8x32xf32>
    %245 = vector.shape_cast %242 : vector<8x32xf32> to vector<1x8x32xf32>
    tpu.vector_store %arg12[%c3, %c1_232, %c1_233], %245 {strides = array<i32>} : memref<4x10x34xf32, #tpu.memory_space<vmem>>, vector<1x8x32xf32>,
    %c0_234 = arith.constant 0 : index
    %c0_235 = arith.constant 0 : index
    %246 = vector.load %arg8[%c0_234, %c0_235] : memref<1x9xf32, #tpu.memory_space<vmem>>, vector<1x9xf32>
    %cst_236 = arith.constant 0.000000e+00 : f32
    %247 = vector.broadcast %cst_236 : f32 to vector<8x32xf32>
    %248 = vector.extract_strided_slice %246 {offsets = [0, 0], sizes = [1, 1], strides = [1, 1]} : vector<1x9xf32> to vector<1x1xf32>
    %c3_237 = arith.constant 3 : index
    %c0_238 = arith.constant 0 : index
    %c0_239 = arith.constant 0 : index
    %249 = vector.load %arg12[%c3_237, %c0_238, %c0_239] : memref<4x10x34xf32, #tpu.memory_space<vmem>>, vector<1x8x32xf32>
    %250 = vector.shape_cast %249 : vector<1x8x32xf32> to vector<8x32xf32>
    %251 = vector.broadcast %248 : vector<1x1xf32> to vector<8x32xf32>
    %252 = arith.mulf %251, %250 : vector<8x32xf32>
    %253 = arith.addf %247, %252 : vector<8x32xf32>
    %254 = vector.extract_strided_slice %246 {offsets = [0, 1], sizes = [1, 1], strides = [1, 1]} : vector<1x9xf32> to vector<1x1xf32>
    %c3_240 = arith.constant 3 : index
    %c0_241 = arith.constant 0 : index
    %c1_242 = arith.constant 1 : index
    %255 = vector.load %arg12[%c3_240, %c0_241, %c1_242] : memref<4x10x34xf32, #tpu.memory_space<vmem>>, vector<1x8x32xf32>
    %256 = vector.shape_cast %255 : vector<1x8x32xf32> to vector<8x32xf32>
    %257 = vector.broadcast %254 : vector<1x1xf32> to vector<8x32xf32>
    %258 = arith.mulf %257, %256 : vector<8x32xf32>
    %259 = arith.addf %253, %258 : vector<8x32xf32>
    %260 = vector.extract_strided_slice %246 {offsets = [0, 2], sizes = [1, 1], strides = [1, 1]} : vector<1x9xf32> to vector<1x1xf32>
    %c3_243 = arith.constant 3 : index
    %c0_244 = arith.constant 0 : index
    %c2_245 = arith.constant 2 : index
    %261 = vector.load %arg12[%c3_243, %c0_244, %c2_245] : memref<4x10x34xf32, #tpu.memory_space<vmem>>, vector<1x8x32xf32>
    %262 = vector.shape_cast %261 : vector<1x8x32xf32> to vector<8x32xf32>
    %263 = vector.broadcast %260 : vector<1x1xf32> to vector<8x32xf32>
    %264 = arith.mulf %263, %262 : vector<8x32xf32>
    %265 = arith.addf %259, %264 : vector<8x32xf32>
    %266 = vector.extract_strided_slice %246 {offsets = [0, 3], sizes = [1, 1], strides = [1, 1]} : vector<1x9xf32> to vector<1x1xf32>
    %c0_246 = arith.constant 0 : index
    %c1_247 = arith.constant 1 : index
    %c0_248 = arith.constant 0 : index
    %267 = vector.load %arg12[%c0_246, %c1_247, %c0_248] : memref<4x10x34xf32, #tpu.memory_space<vmem>>, vector<1x8x32xf32>
    %268 = vector.shape_cast %267 : vector<1x8x32xf32> to vector<8x32xf32>
    %269 = vector.broadcast %266 : vector<1x1xf32> to vector<8x32xf32>
    %270 = arith.mulf %269, %268 : vector<8x32xf32>
    %271 = arith.addf %265, %270 : vector<8x32xf32>
    %272 = vector.extract_strided_slice %246 {offsets = [0, 4], sizes = [1, 1], strides = [1, 1]} : vector<1x9xf32> to vector<1x1xf32>
    %c0_249 = arith.constant 0 : index
    %c1_250 = arith.constant 1 : index
    %c1_251 = arith.constant 1 : index
    %273 = vector.load %arg12[%c0_249, %c1_250, %c1_251] : memref<4x10x34xf32, #tpu.memory_space<vmem>>, vector<1x8x32xf32>
    %274 = vector.shape_cast %273 : vector<1x8x32xf32> to vector<8x32xf32>
    %275 = vector.broadcast %272 : vector<1x1xf32> to vector<8x32xf32>
    %276 = arith.mulf %275, %274 : vector<8x32xf32>
    %277 = arith.addf %271, %276 : vector<8x32xf32>
    %278 = vector.extract_strided_slice %246 {offsets = [0, 5], sizes = [1, 1], strides = [1, 1]} : vector<1x9xf32> to vector<1x1xf32>
    %c0_252 = arith.constant 0 : index
    %c1_253 = arith.constant 1 : index
    %c2_254 = arith.constant 2 : index
    %279 = vector.load %arg12[%c0_252, %c1_253, %c2_254] : memref<4x10x34xf32, #tpu.memory_space<vmem>>, vector<1x8x32xf32>
    %280 = vector.shape_cast %279 : vector<1x8x32xf32> to vector<8x32xf32>
    %281 = vector.broadcast %278 : vector<1x1xf32> to vector<8x32xf32>
    %282 = arith.mulf %281, %280 : vector<8x32xf32>
    %283 = arith.addf %277, %282 : vector<8x32xf32>
    %284 = vector.extract_strided_slice %246 {offsets = [0, 6], sizes = [1, 1], strides = [1, 1]} : vector<1x9xf32> to vector<1x1xf32>
    %c1_255 = arith.constant 1 : index
    %c1_256 = arith.constant 1 : index
    %c0_257 = arith.constant 0 : index
    %285 = vector.load %arg12[%c1_255, %c1_256, %c0_257] : memref<4x10x34xf32, #tpu.memory_space<vmem>>, vector<1x8x32xf32>
    %286 = vector.shape_cast %285 : vector<1x8x32xf32> to vector<8x32xf32>
    %287 = vector.broadcast %284 : vector<1x1xf32> to vector<8x32xf32>
    %288 = arith.mulf %287, %286 : vector<8x32xf32>
    %289 = arith.addf %283, %288 : vector<8x32xf32>
    %290 = vector.extract_strided_slice %246 {offsets = [0, 7], sizes = [1, 1], strides = [1, 1]} : vector<1x9xf32> to vector<1x1xf32>
    %c1_258 = arith.constant 1 : index
    %c1_259 = arith.constant 1 : index
    %c1_260 = arith.constant 1 : index
    %291 = vector.load %arg12[%c1_258, %c1_259, %c1_260] : memref<4x10x34xf32, #tpu.memory_space<vmem>>, vector<1x8x32xf32>
    %292 = vector.shape_cast %291 : vector<1x8x32xf32> to vector<8x32xf32>
    %293 = vector.broadcast %290 : vector<1x1xf32> to vector<8x32xf32>
    %294 = arith.mulf %293, %292 : vector<8x32xf32>
    %295 = arith.addf %289, %294 : vector<8x32xf32>
    %296 = vector.extract_strided_slice %246 {offsets = [0, 8], sizes = [1, 1], strides = [1, 1]} : vector<1x9xf32> to vector<1x1xf32>
    %c1_261 = arith.constant 1 : index
    %c1_262 = arith.constant 1 : index
    %c2_263 = arith.constant 2 : index
    %297 = vector.load %arg12[%c1_261, %c1_262, %c2_263] : memref<4x10x34xf32, #tpu.memory_space<vmem>>, vector<1x8x32xf32>
    %298 = vector.shape_cast %297 : vector<1x8x32xf32> to vector<8x32xf32>
    %299 = vector.broadcast %296 : vector<1x1xf32> to vector<8x32xf32>
    %300 = arith.mulf %299, %298 : vector<8x32xf32>
    %301 = arith.addf %295, %300 : vector<8x32xf32>
    %c0_264 = arith.constant 0 : index
    %c0_265 = arith.constant 0 : index
    %c0_266 = arith.constant 0 : index
    %c0_267 = arith.constant 0 : index
    %302 = vector.load %arg9[%c0_264, %c0_265, %c0_266, %c0_267] : memref<1x4x8x32xf32, #tpu.memory_space<vmem>>, vector<1x1x8x32xf32>
    %303 = vector.shape_cast %302 : vector<1x1x8x32xf32> to vector<8x32xf32>
    %304 = vector.shape_cast %301 : vector<8x32xf32> to vector<1x1x8x32xf32>
    tpu.vector_store %arg9[%c0_264, %c0_265, %c0_266, %c0_267], %304 {strides = array<i32>} : memref<1x4x8x32xf32, #tpu.memory_space<vmem>>, vector<1x1x8x32xf32>,
    %cst_268 = arith.constant 0.000000e+00 : f32
    %305 = vector.broadcast %cst_268 : f32 to vector<8x32xf32>
    %306 = vector.extract_strided_slice %246 {offsets = [0, 0], sizes = [1, 1], strides = [1, 1]} : vector<1x9xf32> to vector<1x1xf32>
    %c0_269 = arith.constant 0 : index
    %c1_270 = arith.constant 1 : index
    %c0_271 = arith.constant 0 : index
    %307 = vector.load %arg12[%c0_269, %c1_270, %c0_271] : memref<4x10x34xf32, #tpu.memory_space<vmem>>, vector<1x8x32xf32>
    %308 = vector.shape_cast %307 : vector<1x8x32xf32> to vector<8x32xf32>
    %309 = vector.broadcast %306 : vector<1x1xf32> to vector<8x32xf32>
    %310 = arith.mulf %309, %308 : vector<8x32xf32>
    %311 = arith.addf %305, %310 : vector<8x32xf32>
    %312 = vector.extract_strided_slice %246 {offsets = [0, 1], sizes = [1, 1], strides = [1, 1]} : vector<1x9xf32> to vector<1x1xf32>
    %c0_272 = arith.constant 0 : index
    %c1_273 = arith.constant 1 : index
    %c1_274 = arith.constant 1 : index
    %313 = vector.load %arg12[%c0_272, %c1_273, %c1_274] : memref<4x10x34xf32, #tpu.memory_space<vmem>>, vector<1x8x32xf32>
    %314 = vector.shape_cast %313 : vector<1x8x32xf32> to vector<8x32xf32>
    %315 = vector.broadcast %312 : vector<1x1xf32> to vector<8x32xf32>
    %316 = arith.mulf %315, %314 : vector<8x32xf32>
    %317 = arith.addf %311, %316 : vector<8x32xf32>
    %318 = vector.extract_strided_slice %246 {offsets = [0, 2], sizes = [1, 1], strides = [1, 1]} : vector<1x9xf32> to vector<1x1xf32>
    %c0_275 = arith.constant 0 : index
    %c1_276 = arith.constant 1 : index
    %c2_277 = arith.constant 2 : index
    %319 = vector.load %arg12[%c0_275, %c1_276, %c2_277] : memref<4x10x34xf32, #tpu.memory_space<vmem>>, vector<1x8x32xf32>
    %320 = vector.shape_cast %319 : vector<1x8x32xf32> to vector<8x32xf32>
    %321 = vector.broadcast %318 : vector<1x1xf32> to vector<8x32xf32>
    %322 = arith.mulf %321, %320 : vector<8x32xf32>
    %323 = arith.addf %317, %322 : vector<8x32xf32>
    %324 = vector.extract_strided_slice %246 {offsets = [0, 3], sizes = [1, 1], strides = [1, 1]} : vector<1x9xf32> to vector<1x1xf32>
    %c1_278 = arith.constant 1 : index
    %c1_279 = arith.constant 1 : index
    %c0_280 = arith.constant 0 : index
    %325 = vector.load %arg12[%c1_278, %c1_279, %c0_280] : memref<4x10x34xf32, #tpu.memory_space<vmem>>, vector<1x8x32xf32>
    %326 = vector.shape_cast %325 : vector<1x8x32xf32> to vector<8x32xf32>
    %327 = vector.broadcast %324 : vector<1x1xf32> to vector<8x32xf32>
    %328 = arith.mulf %327, %326 : vector<8x32xf32>
    %329 = arith.addf %323, %328 : vector<8x32xf32>
    %330 = vector.extract_strided_slice %246 {offsets = [0, 4], sizes = [1, 1], strides = [1, 1]} : vector<1x9xf32> to vector<1x1xf32>
    %c1_281 = arith.constant 1 : index
    %c1_282 = arith.constant 1 : index
    %c1_283 = arith.constant 1 : index
    %331 = vector.load %arg12[%c1_281, %c1_282, %c1_283] : memref<4x10x34xf32, #tpu.memory_space<vmem>>, vector<1x8x32xf32>
    %332 = vector.shape_cast %331 : vector<1x8x32xf32> to vector<8x32xf32>
    %333 = vector.broadcast %330 : vector<1x1xf32> to vector<8x32xf32>
    %334 = arith.mulf %333, %332 : vector<8x32xf32>
    %335 = arith.addf %329, %334 : vector<8x32xf32>
    %336 = vector.extract_strided_slice %246 {offsets = [0, 5], sizes = [1, 1], strides = [1, 1]} : vector<1x9xf32> to vector<1x1xf32>
    %c1_284 = arith.constant 1 : index
    %c1_285 = arith.constant 1 : index
    %c2_286 = arith.constant 2 : index
    %337 = vector.load %arg12[%c1_284, %c1_285, %c2_286] : memref<4x10x34xf32, #tpu.memory_space<vmem>>, vector<1x8x32xf32>
    %338 = vector.shape_cast %337 : vector<1x8x32xf32> to vector<8x32xf32>
    %339 = vector.broadcast %336 : vector<1x1xf32> to vector<8x32xf32>
    %340 = arith.mulf %339, %338 : vector<8x32xf32>
    %341 = arith.addf %335, %340 : vector<8x32xf32>
    %342 = vector.extract_strided_slice %246 {offsets = [0, 6], sizes = [1, 1], strides = [1, 1]} : vector<1x9xf32> to vector<1x1xf32>
    %c2_287 = arith.constant 2 : index
    %c1_288 = arith.constant 1 : index
    %c0_289 = arith.constant 0 : index
    %343 = vector.load %arg12[%c2_287, %c1_288, %c0_289] : memref<4x10x34xf32, #tpu.memory_space<vmem>>, vector<1x8x32xf32>
    %344 = vector.shape_cast %343 : vector<1x8x32xf32> to vector<8x32xf32>
    %345 = vector.broadcast %342 : vector<1x1xf32> to vector<8x32xf32>
    %346 = arith.mulf %345, %344 : vector<8x32xf32>
    %347 = arith.addf %341, %346 : vector<8x32xf32>
    %348 = vector.extract_strided_slice %246 {offsets = [0, 7], sizes = [1, 1], strides = [1, 1]} : vector<1x9xf32> to vector<1x1xf32>
    %c2_290 = arith.constant 2 : index
    %c1_291 = arith.constant 1 : index
    %c1_292 = arith.constant 1 : index
    %349 = vector.load %arg12[%c2_290, %c1_291, %c1_292] : memref<4x10x34xf32, #tpu.memory_space<vmem>>, vector<1x8x32xf32>
    %350 = vector.shape_cast %349 : vector<1x8x32xf32> to vector<8x32xf32>
    %351 = vector.broadcast %348 : vector<1x1xf32> to vector<8x32xf32>
    %352 = arith.mulf %351, %350 : vector<8x32xf32>
    %353 = arith.addf %347, %352 : vector<8x32xf32>
    %354 = vector.extract_strided_slice %246 {offsets = [0, 8], sizes = [1, 1], strides = [1, 1]} : vector<1x9xf32> to vector<1x1xf32>
    %c2_293 = arith.constant 2 : index
    %c1_294 = arith.constant 1 : index
    %c2_295 = arith.constant 2 : index
    %355 = vector.load %arg12[%c2_293, %c1_294, %c2_295] : memref<4x10x34xf32, #tpu.memory_space<vmem>>, vector<1x8x32xf32>
    %356 = vector.shape_cast %355 : vector<1x8x32xf32> to vector<8x32xf32>
    %357 = vector.broadcast %354 : vector<1x1xf32> to vector<8x32xf32>
    %358 = arith.mulf %357, %356 : vector<8x32xf32>
    %359 = arith.addf %353, %358 : vector<8x32xf32>
    %c0_296 = arith.constant 0 : index
    %c1_297 = arith.constant 1 : index
    %c0_298 = arith.constant 0 : index
    %c0_299 = arith.constant 0 : index
    %360 = vector.load %arg9[%c0_296, %c1_297, %c0_298, %c0_299] : memref<1x4x8x32xf32, #tpu.memory_space<vmem>>, vector<1x1x8x32xf32>
    %361 = vector.shape_cast %360 : vector<1x1x8x32xf32> to vector<8x32xf32>
    %362 = vector.shape_cast %359 : vector<8x32xf32> to vector<1x1x8x32xf32>
    tpu.vector_store %arg9[%c0_296, %c1_297, %c0_298, %c0_299], %362 {strides = array<i32>} : memref<1x4x8x32xf32, #tpu.memory_space<vmem>>, vector<1x1x8x32xf32>,
    %cst_300 = arith.constant 0.000000e+00 : f32
    %363 = vector.broadcast %cst_300 : f32 to vector<8x32xf32>
    %364 = vector.extract_strided_slice %246 {offsets = [0, 0], sizes = [1, 1], strides = [1, 1]} : vector<1x9xf32> to vector<1x1xf32>
    %c1_301 = arith.constant 1 : index
    %c1_302 = arith.constant 1 : index
    %c0_303 = arith.constant 0 : index
    %365 = vector.load %arg12[%c1_301, %c1_302, %c0_303] : memref<4x10x34xf32, #tpu.memory_space<vmem>>, vector<1x8x32xf32>
    %366 = vector.shape_cast %365 : vector<1x8x32xf32> to vector<8x32xf32>
    %367 = vector.broadcast %364 : vector<1x1xf32> to vector<8x32xf32>
    %368 = arith.mulf %367, %366 : vector<8x32xf32>
    %369 = arith.addf %363, %368 : vector<8x32xf32>
    %370 = vector.extract_strided_slice %246 {offsets = [0, 1], sizes = [1, 1], strides = [1, 1]} : vector<1x9xf32> to vector<1x1xf32>
    %c1_304 = arith.constant 1 : index
    %c1_305 = arith.constant 1 : index
    %c1_306 = arith.constant 1 : index
    %371 = vector.load %arg12[%c1_304, %c1_305, %c1_306] : memref<4x10x34xf32, #tpu.memory_space<vmem>>, vector<1x8x32xf32>
    %372 = vector.shape_cast %371 : vector<1x8x32xf32> to vector<8x32xf32>
    %373 = vector.broadcast %370 : vector<1x1xf32> to vector<8x32xf32>
    %374 = arith.mulf %373, %372 : vector<8x32xf32>
    %375 = arith.addf %369, %374 : vector<8x32xf32>
    %376 = vector.extract_strided_slice %246 {offsets = [0, 2], sizes = [1, 1], strides = [1, 1]} : vector<1x9xf32> to vector<1x1xf32>
    %c1_307 = arith.constant 1 : index
    %c1_308 = arith.constant 1 : index
    %c2_309 = arith.constant 2 : index
    %377 = vector.load %arg12[%c1_307, %c1_308, %c2_309] : memref<4x10x34xf32, #tpu.memory_space<vmem>>, vector<1x8x32xf32>
    %378 = vector.shape_cast %377 : vector<1x8x32xf32> to vector<8x32xf32>
    %379 = vector.broadcast %376 : vector<1x1xf32> to vector<8x32xf32>
    %380 = arith.mulf %379, %378 : vector<8x32xf32>
    %381 = arith.addf %375, %380 : vector<8x32xf32>
    %382 = vector.extract_strided_slice %246 {offsets = [0, 3], sizes = [1, 1], strides = [1, 1]} : vector<1x9xf32> to vector<1x1xf32>
    %c2_310 = arith.constant 2 : index
    %c1_311 = arith.constant 1 : index
    %c0_312 = arith.constant 0 : index
    %383 = vector.load %arg12[%c2_310, %c1_311, %c0_312] : memref<4x10x34xf32, #tpu.memory_space<vmem>>, vector<1x8x32xf32>
    %384 = vector.shape_cast %383 : vector<1x8x32xf32> to vector<8x32xf32>
    %385 = vector.broadcast %382 : vector<1x1xf32> to vector<8x32xf32>
    %386 = arith.mulf %385, %384 : vector<8x32xf32>
    %387 = arith.addf %381, %386 : vector<8x32xf32>
    %388 = vector.extract_strided_slice %246 {offsets = [0, 4], sizes = [1, 1], strides = [1, 1]} : vector<1x9xf32> to vector<1x1xf32>
    %c2_313 = arith.constant 2 : index
    %c1_314 = arith.constant 1 : index
    %c1_315 = arith.constant 1 : index
    %389 = vector.load %arg12[%c2_313, %c1_314, %c1_315] : memref<4x10x34xf32, #tpu.memory_space<vmem>>, vector<1x8x32xf32>
    %390 = vector.shape_cast %389 : vector<1x8x32xf32> to vector<8x32xf32>
    %391 = vector.broadcast %388 : vector<1x1xf32> to vector<8x32xf32>
    %392 = arith.mulf %391, %390 : vector<8x32xf32>
    %393 = arith.addf %387, %392 : vector<8x32xf32>
    %394 = vector.extract_strided_slice %246 {offsets = [0, 5], sizes = [1, 1], strides = [1, 1]} : vector<1x9xf32> to vector<1x1xf32>
    %c2_316 = arith.constant 2 : index
    %c1_317 = arith.constant 1 : index
    %c2_318 = arith.constant 2 : index
    %395 = vector.load %arg12[%c2_316, %c1_317, %c2_318] : memref<4x10x34xf32, #tpu.memory_space<vmem>>, vector<1x8x32xf32>
    %396 = vector.shape_cast %395 : vector<1x8x32xf32> to vector<8x32xf32>
    %397 = vector.broadcast %394 : vector<1x1xf32> to vector<8x32xf32>
    %398 = arith.mulf %397, %396 : vector<8x32xf32>
    %399 = arith.addf %393, %398 : vector<8x32xf32>
    %400 = vector.extract_strided_slice %246 {offsets = [0, 6], sizes = [1, 1], strides = [1, 1]} : vector<1x9xf32> to vector<1x1xf32>
    %c3_319 = arith.constant 3 : index
    %c1_320 = arith.constant 1 : index
    %c0_321 = arith.constant 0 : index
    %401 = vector.load %arg12[%c3_319, %c1_320, %c0_321] : memref<4x10x34xf32, #tpu.memory_space<vmem>>, vector<1x8x32xf32>
    %402 = vector.shape_cast %401 : vector<1x8x32xf32> to vector<8x32xf32>
    %403 = vector.broadcast %400 : vector<1x1xf32> to vector<8x32xf32>
    %404 = arith.mulf %403, %402 : vector<8x32xf32>
    %405 = arith.addf %399, %404 : vector<8x32xf32>
    %406 = vector.extract_strided_slice %246 {offsets = [0, 7], sizes = [1, 1], strides = [1, 1]} : vector<1x9xf32> to vector<1x1xf32>
    %c3_322 = arith.constant 3 : index
    %c1_323 = arith.constant 1 : index
    %c1_324 = arith.constant 1 : index
    %407 = vector.load %arg12[%c3_322, %c1_323, %c1_324] : memref<4x10x34xf32, #tpu.memory_space<vmem>>, vector<1x8x32xf32>
    %408 = vector.shape_cast %407 : vector<1x8x32xf32> to vector<8x32xf32>
    %409 = vector.broadcast %406 : vector<1x1xf32> to vector<8x32xf32>
    %410 = arith.mulf %409, %408 : vector<8x32xf32>
    %411 = arith.addf %405, %410 : vector<8x32xf32>
    %412 = vector.extract_strided_slice %246 {offsets = [0, 8], sizes = [1, 1], strides = [1, 1]} : vector<1x9xf32> to vector<1x1xf32>
    %c3_325 = arith.constant 3 : index
    %c1_326 = arith.constant 1 : index
    %c2_327 = arith.constant 2 : index
    %413 = vector.load %arg12[%c3_325, %c1_326, %c2_327] : memref<4x10x34xf32, #tpu.memory_space<vmem>>, vector<1x8x32xf32>
    %414 = vector.shape_cast %413 : vector<1x8x32xf32> to vector<8x32xf32>
    %415 = vector.broadcast %412 : vector<1x1xf32> to vector<8x32xf32>
    %416 = arith.mulf %415, %414 : vector<8x32xf32>
    %417 = arith.addf %411, %416 : vector<8x32xf32>
    %c0_328 = arith.constant 0 : index
    %c2_329 = arith.constant 2 : index
    %c0_330 = arith.constant 0 : index
    %c0_331 = arith.constant 0 : index
    %418 = vector.load %arg9[%c0_328, %c2_329, %c0_330, %c0_331] : memref<1x4x8x32xf32, #tpu.memory_space<vmem>>, vector<1x1x8x32xf32>
    %419 = vector.shape_cast %418 : vector<1x1x8x32xf32> to vector<8x32xf32>
    %420 = vector.shape_cast %417 : vector<8x32xf32> to vector<1x1x8x32xf32>
    tpu.vector_store %arg9[%c0_328, %c2_329, %c0_330, %c0_331], %420 {strides = array<i32>} : memref<1x4x8x32xf32, #tpu.memory_space<vmem>>, vector<1x1x8x32xf32>,
    %cst_332 = arith.constant 0.000000e+00 : f32
    %421 = vector.broadcast %cst_332 : f32 to vector<8x32xf32>
    %422 = vector.extract_strided_slice %246 {offsets = [0, 0], sizes = [1, 1], strides = [1, 1]} : vector<1x9xf32> to vector<1x1xf32>
    %c2_333 = arith.constant 2 : index
    %c1_334 = arith.constant 1 : index
    %c0_335 = arith.constant 0 : index
    %423 = vector.load %arg12[%c2_333, %c1_334, %c0_335] : memref<4x10x34xf32, #tpu.memory_space<vmem>>, vector<1x8x32xf32>
    %424 = vector.shape_cast %423 : vector<1x8x32xf32> to vector<8x32xf32>
    %425 = vector.broadcast %422 : vector<1x1xf32> to vector<8x32xf32>
    %426 = arith.mulf %425, %424 : vector<8x32xf32>
    %427 = arith.addf %421, %426 : vector<8x32xf32>
    %428 = vector.extract_strided_slice %246 {offsets = [0, 1], sizes = [1, 1], strides = [1, 1]} : vector<1x9xf32> to vector<1x1xf32>
    %c2_336 = arith.constant 2 : index
    %c1_337 = arith.constant 1 : index
    %c1_338 = arith.constant 1 : index
    %429 = vector.load %arg12[%c2_336, %c1_337, %c1_338] : memref<4x10x34xf32, #tpu.memory_space<vmem>>, vector<1x8x32xf32>
    %430 = vector.shape_cast %429 : vector<1x8x32xf32> to vector<8x32xf32>
    %431 = vector.broadcast %428 : vector<1x1xf32> to vector<8x32xf32>
    %432 = arith.mulf %431, %430 : vector<8x32xf32>
    %433 = arith.addf %427, %432 : vector<8x32xf32>
    %434 = vector.extract_strided_slice %246 {offsets = [0, 2], sizes = [1, 1], strides = [1, 1]} : vector<1x9xf32> to vector<1x1xf32>
    %c2_339 = arith.constant 2 : index
    %c1_340 = arith.constant 1 : index
    %c2_341 = arith.constant 2 : index
    %435 = vector.load %arg12[%c2_339, %c1_340, %c2_341] : memref<4x10x34xf32, #tpu.memory_space<vmem>>, vector<1x8x32xf32>
    %436 = vector.shape_cast %435 : vector<1x8x32xf32> to vector<8x32xf32>
    %437 = vector.broadcast %434 : vector<1x1xf32> to vector<8x32xf32>
    %438 = arith.mulf %437, %436 : vector<8x32xf32>
    %439 = arith.addf %433, %438 : vector<8x32xf32>
    %440 = vector.extract_strided_slice %246 {offsets = [0, 3], sizes = [1, 1], strides = [1, 1]} : vector<1x9xf32> to vector<1x1xf32>
    %c3_342 = arith.constant 3 : index
    %c1_343 = arith.constant 1 : index
    %c0_344 = arith.constant 0 : index
    %441 = vector.load %arg12[%c3_342, %c1_343, %c0_344] : memref<4x10x34xf32, #tpu.memory_space<vmem>>, vector<1x8x32xf32>
    %442 = vector.shape_cast %441 : vector<1x8x32xf32> to vector<8x32xf32>
    %443 = vector.broadcast %440 : vector<1x1xf32> to vector<8x32xf32>
    %444 = arith.mulf %443, %442 : vector<8x32xf32>
    %445 = arith.addf %439, %444 : vector<8x32xf32>
    %446 = vector.extract_strided_slice %246 {offsets = [0, 4], sizes = [1, 1], strides = [1, 1]} : vector<1x9xf32> to vector<1x1xf32>
    %c3_345 = arith.constant 3 : index
    %c1_346 = arith.constant 1 : index
    %c1_347 = arith.constant 1 : index
    %447 = vector.load %arg12[%c3_345, %c1_346, %c1_347] : memref<4x10x34xf32, #tpu.memory_space<vmem>>, vector<1x8x32xf32>
    %448 = vector.shape_cast %447 : vector<1x8x32xf32> to vector<8x32xf32>
    %449 = vector.broadcast %446 : vector<1x1xf32> to vector<8x32xf32>
    %450 = arith.mulf %449, %448 : vector<8x32xf32>
    %451 = arith.addf %445, %450 : vector<8x32xf32>
    %452 = vector.extract_strided_slice %246 {offsets = [0, 5], sizes = [1, 1], strides = [1, 1]} : vector<1x9xf32> to vector<1x1xf32>
    %c3_348 = arith.constant 3 : index
    %c1_349 = arith.constant 1 : index
    %c2_350 = arith.constant 2 : index
    %453 = vector.load %arg12[%c3_348, %c1_349, %c2_350] : memref<4x10x34xf32, #tpu.memory_space<vmem>>, vector<1x8x32xf32>
    %454 = vector.shape_cast %453 : vector<1x8x32xf32> to vector<8x32xf32>
    %455 = vector.broadcast %452 : vector<1x1xf32> to vector<8x32xf32>
    %456 = arith.mulf %455, %454 : vector<8x32xf32>
    %457 = arith.addf %451, %456 : vector<8x32xf32>
    %458 = vector.extract_strided_slice %246 {offsets = [0, 6], sizes = [1, 1], strides = [1, 1]} : vector<1x9xf32> to vector<1x1xf32>
    %c0_351 = arith.constant 0 : index
    %c2_352 = arith.constant 2 : index
    %c0_353 = arith.constant 0 : index
    %459 = vector.load %arg12[%c0_351, %c2_352, %c0_353] : memref<4x10x34xf32, #tpu.memory_space<vmem>>, vector<1x8x32xf32>
    %460 = vector.shape_cast %459 : vector<1x8x32xf32> to vector<8x32xf32>
    %461 = vector.broadcast %458 : vector<1x1xf32> to vector<8x32xf32>
    %462 = arith.mulf %461, %460 : vector<8x32xf32>
    %463 = arith.addf %457, %462 : vector<8x32xf32>
    %464 = vector.extract_strided_slice %246 {offsets = [0, 7], sizes = [1, 1], strides = [1, 1]} : vector<1x9xf32> to vector<1x1xf32>
    %c0_354 = arith.constant 0 : index
    %c2_355 = arith.constant 2 : index
    %c1_356 = arith.constant 1 : index
    %465 = vector.load %arg12[%c0_354, %c2_355, %c1_356] : memref<4x10x34xf32, #tpu.memory_space<vmem>>, vector<1x8x32xf32>
    %466 = vector.shape_cast %465 : vector<1x8x32xf32> to vector<8x32xf32>
    %467 = vector.broadcast %464 : vector<1x1xf32> to vector<8x32xf32>
    %468 = arith.mulf %467, %466 : vector<8x32xf32>
    %469 = arith.addf %463, %468 : vector<8x32xf32>
    %470 = vector.extract_strided_slice %246 {offsets = [0, 8], sizes = [1, 1], strides = [1, 1]} : vector<1x9xf32> to vector<1x1xf32>
    %c0_357 = arith.constant 0 : index
    %c2_358 = arith.constant 2 : index
    %c2_359 = arith.constant 2 : index
    %471 = vector.load %arg12[%c0_357, %c2_358, %c2_359] : memref<4x10x34xf32, #tpu.memory_space<vmem>>, vector<1x8x32xf32>
    %472 = vector.shape_cast %471 : vector<1x8x32xf32> to vector<8x32xf32>
    %473 = vector.broadcast %470 : vector<1x1xf32> to vector<8x32xf32>
    %474 = arith.mulf %473, %472 : vector<8x32xf32>
    %475 = arith.addf %469, %474 : vector<8x32xf32>
    %c0_360 = arith.constant 0 : index
    %c3_361 = arith.constant 3 : index
    %c0_362 = arith.constant 0 : index
    %c0_363 = arith.constant 0 : index
    %476 = vector.load %arg9[%c0_360, %c3_361, %c0_362, %c0_363] : memref<1x4x8x32xf32, #tpu.memory_space<vmem>>, vector<1x1x8x32xf32>
    %477 = vector.shape_cast %476 : vector<1x1x8x32xf32> to vector<8x32xf32>
    %478 = vector.shape_cast %475 : vector<8x32xf32> to vector<1x1x8x32xf32>
    tpu.vector_store %arg9[%c0_360, %c3_361, %c0_362, %c0_363], %478 {strides = array<i32>} : memref<1x4x8x32xf32, #tpu.memory_space<vmem>>, vector<1x1x8x32xf32>,
    return
  }
  func.func @transform_0(%arg0: i32) -> (i32, i32, i32) {
    %c0_i32 = arith.constant 0 : i32
    %c0_i32_0 = arith.constant 0 : i32
    %c0_i32_1 = arith.constant 0 : i32
    return %arg0, %c0_i32, %c0_i32_0 : i32, i32, i32
  }
  func.func @transform_1(%arg0: i32) -> (i32, i32, i32) {
    %c0_i32 = arith.constant 0 : i32
    %c0_i32_0 = arith.constant 0 : i32
    %c0_i32_1 = arith.constant 0 : i32
    %c0_i32_2 = arith.constant 0 : i32
    return %c0_i32, %c0_i32_0, %c0_i32_1 : i32, i32, i32
  }
  func.func @transform_2(%arg0: i32) -> (i32, i32) {
    %c0_i32 = arith.constant 0 : i32
    %c0_i32_0 = arith.constant 0 : i32
    %c0_i32_1 = arith.constant 0 : i32
    return %c0_i32, %c0_i32_0 : i32, i32
  }
  func.func @transform_3(%arg0: i32) -> (i32, i32, i32) {
    %c0_i32 = arith.constant 0 : i32
    %c0_i32_0 = arith.constant 0 : i32
    %c0_i32_1 = arith.constant 0 : i32
    %c0_i32_2 = arith.constant 0 : i32
    return %c0_i32, %c0_i32_0, %c0_i32_1 : i32, i32, i32
  }
  func.func @transform_4(%arg0: i32) -> (i32, i32, i32) {
    %c0_i32 = arith.constant 0 : i32
    %c0_i32_0 = arith.constant 0 : i32
    %c0_i32_1 = arith.constant 0 : i32
    %c0_i32_2 = arith.constant 0 : i32
    return %c0_i32, %c0_i32_0, %c0_i32_1 : i32, i32, i32
  }
  func.func @transform_5(%arg0: i32) -> (i32, i32) {
    %c0_i32 = arith.constant 0 : i32
    %c0_i32_0 = arith.constant 0 : i32
    %c0_i32_1 = arith.constant 0 : i32
    return %c0_i32, %c0_i32_0 : i32, i32
  }
  func.func @transform_6(%arg0: i32) -> (i32, i32) {
    %c0_i32 = arith.constant 0 : i32
    %c0_i32_0 = arith.constant 0 : i32
    %c0_i32_1 = arith.constant 0 : i32
    return %c0_i32, %c0_i32_0 : i32, i32
  }
  func.func @transform_7(%arg0: i32) -> (i32, i32) {
    %c0_i32 = arith.constant 0 : i32
    %c0_i32_0 = arith.constant 0 : i32
    %c0_i32_1 = arith.constant 0 : i32
    return %c0_i32, %c0_i32_0 : i32, i32
  }
  func.func @transform_8(%arg0: i32) -> (i32, i32, i32, i32) {
    %c0_i32 = arith.constant 0 : i32
    %c0_i32_0 = arith.constant 0 : i32
    %c0_i32_1 = arith.constant 0 : i32
    %c0_i32_2 = arith.constant 0 : i32
    return %arg0, %c0_i32, %c0_i32_0, %c0_i32_1 : i32, i32, i32, i32
  }
}

</mosaic_0001>

<bundles_post_ra>
// kernel: hic_decoder_pallas.1
= control target key start
LH: loop header
LB: loop body
LE: loop exit
PB: predicated region body
PF: predicated region fallthrough
CT: control target
= control target key end

     0   :  { %s7271_s27 = smov 0   ;;  %s11715_s0 = inlined_call_operand.vmem [shape: f32[2,1,16], index: 0, kind: input, shape index: {}]   ;;  %s11716_s1 = inlined_call_operand.vmem [shape: f32[64,8,16], index: 1, kind: input, shape index: {}]   ;;  %s11717_s2 = inlined_call_operand.vmem [shape: f32[64,8], index: 2, kind: input, shape index: {}]   ;;  %s11718_s3 = inlined_call_operand.vmem [shape: f32[2,72,8], index: 3, kind: input, shape index: {}]   ;;  %s11719_s4 = inlined_call_operand.vmem [shape: f32[2,72,8], index: 4, kind: input, shape index: {}]   ;;  %s11720_s5 = inlined_call_operand.vmem [shape: f32[72,8], index: 5, kind: input, shape index: {}]   ;;  %s11721_s6 = inlined_call_operand.vmem [shape: f32[72,16], index: 6, kind: input, shape index: {}]   ;;  %s11722_s7 = inlined_call_operand.vmem [shape: f32[1,9], index: 7, kind: input, shape index: {}]   ;;  %s11723_s8 = inlined_call_operand.vmem [shape: f32[2,4,8,32], index: 8, kind: output, shape index: {}]  }
   0x1 LB: > { %s7029_s28 = sadd.s32 4294967295, %s7196_s27   ;;  %p7033_p0 = scmp.ge.s32.totalorder %s7196_s27, 1  ;;  %s7196_s27 = sphi %s7271_s27, %s18_s27  }
   0x2   : > { %p260_p1 = scmp.lt.s32.totalorder %s7196_s27, 3 }
   0x4   : > { %p261_p2 = pnand %p7033_p0, %p260_p1 }
   0x6   : > { %264 = sbr.rel (%p261_p2) target bundleno = 4537 (0x11b9), region = 52 }
   0xb   : > { %p292_p3 = scmp.lt.s32.totalorder %s7029_s28, 1  ;;  %v356_v0 = vld [vmem:[%s11716_s1 + $0x20] sm:$0xff]  ;;  %v354_v1 = vld [vmem:[%s11716_s1 + $0x10] sm:$0xff]  ;;  %vm484_vm0 = vcmask 130048   ;;  %v357_v7 = vld [vmem:[%s11716_s1 + $0x28] sm:$0xff]  ;;  %vm300_vm1 = vcmask 64512  }
   0xc   : > { %v352_v2 = vld [vmem:[%s11716_s1] sm:$0xff]  ;;  %v355_v8 = vld [vmem:[%s11716_s1 + $0x18] sm:$0xff]  ;;  %v353_v12 = vld [vmem:[%s11716_s1 + $0x8] sm:$0xff]  ;;  %vm302_vm2 = vcmask 58368   ;;  %vm1591_vm3 = vcmask 1041409   ;;  %vm1593_vm4 = vcmask 1042434  }
   0xd   : > { %s12219_s28 = smov (!%p292_p3, %s7029_s28), 1  ;;  %v360_v19 = vld [vmem:[%s11716_s1 + $0x40] sm:$0xff]  ;;  %v359_v20 = vld [vmem:[%s11716_s1 + $0x38] sm:$0xff]  ;;  %v358_v21 = vld [vmem:[%s11716_s1 + $0x30] sm:$0xff]  ;;  %vm1595_vm5 = vcmask 1043459   ;;  %vm1597_vm6 = vcmask 1044484  }
   0xe   : > { %s294_s11 = scalar_lea.vmem %s11715_s0, %s12219_s28  ;;  %v363_v28 = vld [vmem:[%s11716_s1 + $0x58] sm:$0xff]  ;;  %v362_v29 = vld [vmem:[%s11716_s1 + $0x50] sm:$0xff]  ;;  %v361_v30 = vld [vmem:[%s11716_s1 + $0x48] sm:$0xff]  ;;  %vm1599_vm7 = vcmask 1045509   ;;  %vm1601_vm8 = vcmask 1046534   ;;  %vm1603_vm9 = vcmask 1047559  }
   0xf   : > { %v7294_v3 = vld [vmem:[%s294_s11] ss:$0 sm:$0xff]  ;;  %v366_v37 = vld [vmem:[%s11716_s1 + $0x70] sm:$0xff]  ;;  %v365_v38 = vld [vmem:[%s11716_s1 + $0x68] sm:$0xff]  ;;  %s7200_s14 = smov 8   ;;  %s7201_s15 = smov 16  }
  0x10   : > { %v424_v4 = vmul.f32 %v7294_v3, %v356_v0  ;;  %v422_v5 = vmul.f32 %v7294_v3, %v354_v1  ;;  %v420_v6 = vmul.f32 %v7294_v3, %v352_v2  ;;  %v425_v13 = vmul.f32 %v7294_v3, %v357_v7  ;;  %v364_v39 = vld [vmem:[%s11716_s1 + $0x60] sm:$0xff]  ;;  %v369_v46 = vld [vmem:[%s11716_s1 + $0x88] sm:$0xff]  ;;  %v367_v48 = vld [vmem:[%s11716_s1 + $0x78] sm:$0xff]  ;;  %s7202_s16 = smov 24   ;;  %s7203_s17 = smov 32  }
  0x11   : > { %v423_v14 = vmul.f32 %v7294_v3, %v355_v8  ;;  %v421_v15 = vmul.f32 %v7294_v3, %v353_v12  ;;  %v428_v22 = vmul.f32 %v7294_v3, %v360_v19  ;;  %v427_v23 = vmul.f32 %v7294_v3, %v359_v20  ;;  %v368_v47 = vld [vmem:[%s11716_s1 + $0x80] sm:$0xff]  ;;  %v371_v56 = vld [vmem:[%s11716_s1 + $0x98] sm:$0xff]  ;;  %v370_v57 = vld [vmem:[%s11716_s1 + $0x90] sm:$0xff]  ;;  %s7204_s18 = smov 40   ;;  %s7205_s19 = smov 48  }
  0x12   : > { %v497_v9 = vsel %vm484_vm0, %v424_v4, 0.0  ;;  %v491_v10 = vsel %vm484_vm0, %v422_v5, 0.0  ;;  %v485_v11 = vsel %vm484_vm0, %v420_v6, 0.0  ;;  %v500_v16 = vsel %vm484_vm0, %v425_v13, 0.0  ;;  %v372_v55 = vld [vmem:[%s11716_s1 + $0xa0] sm:$0xff]  ;;  %v375_v0 = vld [vmem:[%s11716_s1 + $0xb8] sm:$0xff] }
  0x13   : > { %498 = vadd.xlane.f32.xlu2 %v497_v9  ;;  %492 = vadd.xlane.f32.xlu1 %v491_v10  ;;  %v494_v17 = vsel %vm484_vm0, %v423_v14, 0.0  ;;  %v488_v18 = vsel %vm484_vm0, %v421_v15, 0.0  ;;  %v426_v24 = vmul.f32 %v7294_v3, %v358_v21  ;;  %v509_v25 = vsel %vm484_vm0, %v428_v22, 0.0  ;;  %v374_v1 = vld [vmem:[%s11716_s1 + $0xb0] sm:$0xff]  ;;  %v373_v2 = vld [vmem:[%s11716_s1 + $0xa8] sm:$0xff]  ;;  %v376_v12 = vld [vmem:[%s11716_s1 + $0xc0] sm:$0xff] }
  0x14   : > { %486 = vadd.xlane.f32.xlu0 %v485_v11  ;;  %v506_v26 = vsel %vm484_vm0, %v427_v23, 0.0  ;;  %v431_v31 = vmul.f32 %v7294_v3, %v363_v28  ;;  %v430_v32 = vmul.f32 %v7294_v3, %v362_v29  ;;  %v429_v33 = vmul.f32 %v7294_v3, %v361_v30  ;;  %v378_v10 = vld [vmem:[%s11716_s1 + $0xd0] sm:$0xff]  ;;  %v377_v11 = vld [vmem:[%s11716_s1 + $0xc8] sm:$0xff]  ;;  %v380_v20 = vld [vmem:[%s11716_s1 + $0xe0] sm:$0xff]  ;;  %s7206_s20 = smov 56   ;;  %s7207_s21 = smov 64  }
  0x15   : > { %v503_v27 = vsel %vm484_vm0, %v426_v24, 0.0  ;;  %v434_v40 = vmul.f32 %v7294_v3, %v366_v37  ;;  %v433_v41 = vmul.f32 %v7294_v3, %v365_v38  ;;  %v432_v42 = vmul.f32 %v7294_v3, %v364_v39  ;;  %v381_v19 = vld [vmem:[%s11716_s1 + $0xe8] sm:$0xff]  ;;  %v379_v21 = vld [vmem:[%s11716_s1 + $0xd8] sm:$0xff]  ;;  %v384_v28 = vld [vmem:[%s11716_s1 + $0x100] sm:$0xff]  ;;  %s7214_s22 = smov 116   ;;  %s7225_s25 = smov 127  }
  0x16   : > { %v518_v34 = vsel %vm484_vm0, %v431_v31, 0.0  ;;  %v515_v35 = vsel %vm484_vm0, %v430_v32, 0.0  ;;  %v512_v36 = vsel %vm484_vm0, %v429_v33, 0.0  ;;  %v437_v49 = vmul.f32 %v7294_v3, %v369_v46  ;;  %v383_v29 = vld [vmem:[%s11716_s1 + $0xf8] sm:$0xff]  ;;  %v382_v30 = vld [vmem:[%s11716_s1 + $0xf0] sm:$0xff]  ;;  %v385_v39 = vld [vmem:[%s11716_s1 + $0x108] sm:$0xff] }
  0x17   : > { %v527_v43 = vsel %vm484_vm0, %v434_v40, 0.0  ;;  %v524_v44 = vsel %vm484_vm0, %v433_v41, 0.0  ;;  %v521_v45 = vsel %vm484_vm0, %v432_v42, 0.0  ;;  %v436_v50 = vmul.f32 %v7294_v3, %v368_v47  ;;  %v387_v37 = vld [vmem:[%s11716_s1 + $0x118] sm:$0xff]  ;;  %v386_v38 = vld [vmem:[%s11716_s1 + $0x110] sm:$0xff]  ;;  %v389_v47 = vld [vmem:[%s11716_s1 + $0x128] sm:$0xff] }
  0x18   : > { %v435_v51 = vmul.f32 %v7294_v3, %v367_v48  ;;  %v536_v52 = vsel %vm484_vm0, %v437_v49, 0.0  ;;  %v440_v58 = vmul.f32 %v7294_v3, %v372_v55  ;;  %v439_v59 = vmul.f32 %v7294_v3, %v371_v56  ;;  %v390_v46 = vld [vmem:[%s11716_s1 + $0x130] sm:$0xff]  ;;  %v388_v48 = vld [vmem:[%s11716_s1 + $0x120] sm:$0xff]  ;;  %v393_v55 = vld [vmem:[%s11716_s1 + $0x148] sm:$0xff]  ;;  %s7107_s26 = sshll.u32 %s12219_s28, 5 }
  0x19   : > { %v533_v53 = vsel %vm484_vm0, %v436_v50, 0.0  ;;  %v438_v60 = vmul.f32 %v7294_v3, %v370_v57  ;;  %v443_v4 = vmul.f32 %v7294_v3, %v375_v0  ;;  %v442_v5 = vmul.f32 %v7294_v3, %v374_v1  ;;  %v392_v56 = vld [vmem:[%s11716_s1 + $0x140] sm:$0xff]  ;;  %v391_v57 = vld [vmem:[%s11716_s1 + $0x138] sm:$0xff]  ;;  %s11691_s9 = scalar_lea.vmem %s11723_s8, %s7107_s26 }
  0x1a   : > { %v530_v54 = vsel %vm484_vm0, %v435_v51, 0.0  ;;  %v545_v61 = vsel %vm484_vm0, %v440_v58, 0.0  ;;  %v542_v62 = vsel %vm484_vm0, %v439_v59, 0.0  ;;  %v441_v6 = vmul.f32 %v7294_v3, %v373_v2  ;;  %v396_v0 = vld [vmem:[%s11716_s1 + $0x160] sm:$0xff]  ;;  %v395_v1 = vld [vmem:[%s11716_s1 + $0x158] sm:$0xff]  ;;  %v394_v2 = vld [vmem:[%s11716_s1 + $0x150] sm:$0xff] }
  0x1b   : > { %501 = vadd.xlane.f32.xlu2 %v500_v16  ;;  %495 = vadd.xlane.f32.xlu1 %v494_v17  ;;  %v539_v63 = vsel %vm484_vm0, %v438_v60, 0.0  ;;  %v554_v7 = vsel %vm484_vm0, %v443_v4, 0.0  ;;  %v551_v8 = vsel %vm484_vm0, %v442_v5, 0.0  ;;  %v446_v13 = vmul.f32 %v7294_v3, %v378_v10  ;;  %v399_v10 = vld [vmem:[%s11716_s1 + $0x178] sm:$0xff] }
  0x1c   : > { %489 = vadd.xlane.f32.xlu0 %v488_v18  ;;  %v548_v9 = vsel %vm484_vm0, %v441_v6, 0.0  ;;  %v445_v14 = vmul.f32 %v7294_v3, %v377_v11  ;;  %v444_v15 = vmul.f32 %v7294_v3, %v376_v12  ;;  %v449_v22 = vmul.f32 %v7294_v3, %v381_v19  ;;  %v398_v11 = vld [vmem:[%s11716_s1 + $0x170] sm:$0xff]  ;;  %v397_v12 = vld [vmem:[%s11716_s1 + $0x168] sm:$0xff] }
  0x1d   : > { %v563_v16 = vsel %vm484_vm0, %v446_v13, 0.0  ;;  %v448_v23 = vmul.f32 %v7294_v3, %v380_v20  ;;  %v447_v24 = vmul.f32 %v7294_v3, %v379_v21  ;;  %v452_v31 = vmul.f32 %v7294_v3, %v384_v28 }
  0x1e   : > { %v560_v17 = vsel %vm484_vm0, %v445_v14, 0.0  ;;  %v557_v18 = vsel %vm484_vm0, %v444_v15, 0.0  ;;  %v451_v32 = vmul.f32 %v7294_v3, %v383_v29  ;;  %v450_v33 = vmul.f32 %v7294_v3, %v382_v30 }
  0x1f   : > { %v455_v40 = vmul.f32 %v7294_v3, %v387_v37  ;;  %v454_v41 = vmul.f32 %v7294_v3, %v386_v38  ;;  %v453_v42 = vmul.f32 %v7294_v3, %v385_v39  ;;  %v458_v49 = vmul.f32 %v7294_v3, %v390_v46  ;;  %v408_v46 = vld [vmem:[%s11716_s1 + $0x1c0] sm:$0xff] }
  0x20   : > { %v457_v50 = vmul.f32 %v7294_v3, %v389_v47  ;;  %v456_v51 = vmul.f32 %v7294_v3, %v388_v48  ;;  %v461_v58 = vmul.f32 %v7294_v3, %v393_v55  ;;  %v460_v59 = vmul.f32 %v7294_v3, %v392_v56  ;;  %v407_v47 = vld [vmem:[%s11716_s1 + $0x1b8] sm:$0xff]  ;;  %v406_v48 = vld [vmem:[%s11716_s1 + $0x1b0] sm:$0xff] }
  0x21   : > { %v459_v60 = vmul.f32 %v7294_v3, %v391_v57  ;;  %v464_v4 = vmul.f32 %v7294_v3, %v396_v0  ;;  %v463_v5 = vmul.f32 %v7294_v3, %v395_v1  ;;  %v462_v6 = vmul.f32 %v7294_v3, %v394_v2 }
  0x22   : > { %v467_v13 = vmul.f32 %v7294_v3, %v399_v10  ;;  %v466_v14 = vmul.f32 %v7294_v3, %v398_v11  ;;  %v465_v15 = vmul.f32 %v7294_v3, %v397_v12  ;;  %v11724_v55 = vlaneseq  ;;  %v413_v10 = vld [vmem:[%s11716_s1 + $0x1e8] sm:$0xff]  ;;  %v412_v11 = vld [vmem:[%s11716_s1 + $0x1e0] sm:$0xff] }
  0x23   : > { %510 = vadd.xlane.f32.xlu2 %v509_v25  ;;  %507 = vadd.xlane.f32.xlu1 %v506_v26  ;;  %v572_v25 = vsel %vm484_vm0, %v449_v22, 0.0  ;;  %v569_v26 = vsel %vm484_vm0, %v448_v23, 0.0  ;;  %v402_v22 = vld [vmem:[%s11716_s1 + $0x190] sm:$0xff]  ;;  %v401_v23 = vld [vmem:[%s11716_s1 + $0x188] sm:$0xff]  ;;  %vm2016_vm10 = vcmask 195584   ;;  %vm2025_vm11 = vcmask 261120  }
  0x24   : > { %504 = vadd.xlane.f32.xlu0 %v503_v27  ;;  %v566_v27 = vsel %vm484_vm0, %v447_v24, 0.0  ;;  %v626_v19 = vsel %vm484_vm0, %v467_v13, 0.0  ;;  %v623_v20 = vsel %vm484_vm0, %v466_v14, 0.0  ;;  %v620_v21 = vsel %vm484_vm0, %v465_v15, 0.0  ;;  %v400_v24 = vld [vmem:[%s11716_s1 + $0x180] sm:$0xff] }
  0x25   : > { %v481_v13 = vmul.f32 %v7294_v3, %v413_v10  ;;  %v480_v14 = vmul.f32 %v7294_v3, %v412_v11  ;;  %vm2034_vm12 = vcmask 326656   ;;  %vm2043_vm13 = vcmask 392192  }
  0x26   : > { %vm2052_vm14 = vcmask 457728   ;;  %vm2079_vm15 = vcmask 588800  }
  0x2b   : > { %519 = vadd.xlane.f32.xlu2 %v518_v34  ;;  %516 = vadd.xlane.f32.xlu1 %v515_v35  ;;  %v581_v34 = vsel %vm484_vm0, %v452_v31, 0.0  ;;  %v578_v35 = vsel %vm484_vm0, %v451_v32, 0.0 }
  0x2c   : > { %513 = vadd.xlane.f32.xlu0 %v512_v36  ;;  %v575_v36 = vsel %vm484_vm0, %v450_v33, 0.0 }
  0x33   : > { %528 = vadd.xlane.f32.xlu2 %v527_v43  ;;  %525 = vadd.xlane.f32.xlu1 %v524_v44  ;;  %v590_v43 = vsel %vm484_vm0, %v455_v40, 0.0  ;;  %v587_v44 = vsel %vm484_vm0, %v454_v41, 0.0 }
  0x34   : > { %522 = vadd.xlane.f32.xlu0 %v521_v45  ;;  %v584_v45 = vsel %vm484_vm0, %v453_v42, 0.0 }
  0x3b   : > { %537 = vadd.xlane.f32.xlu2 %v536_v52  ;;  %534 = vadd.xlane.f32.xlu1 %v533_v53  ;;  %v599_v52 = vsel %vm484_vm0, %v458_v49, 0.0  ;;  %v596_v53 = vsel %vm484_vm0, %v457_v50, 0.0  ;;  %v476_v49 = vmul.f32 %v7294_v3, %v408_v46  ;;  %v475_v50 = vmul.f32 %v7294_v3, %v407_v47 }
  0x3c   : > { %531 = vadd.xlane.f32.xlu0 %v530_v54  ;;  %v593_v54 = vsel %vm484_vm0, %v456_v51, 0.0  ;;  %v474_v51 = vmul.f32 %v7294_v3, %v406_v48 }
  0x3d   : > { %v653_v56 = vsel %vm484_vm0, %v476_v49, 0.0  ;;  %v650_v57 = vsel %vm484_vm0, %v475_v50, 0.0  ;;  %v678_v50 = vld [vmem:[%s11717_s2 + $0x8] sm:$0xff] }
  0x43   : > { %546 = vadd.xlane.f32.xlu2 %v545_v61  ;;  %543 = vadd.xlane.f32.xlu1 %v542_v62  ;;  %v608_v61 = vsel %vm484_vm0, %v461_v58, 0.0  ;;  %v605_v62 = vsel %vm484_vm0, %v460_v59, 0.0  ;;  %v647_v58 = vsel %vm484_vm0, %v474_v51, 0.0  ;;  %v411_v59 = vld [vmem:[%s11716_s1 + $0x1d8] sm:$0xff]  ;;  %v756_v51 = vperm.slane %v678_v50, 1 }
  0x44   : > { %540 = vadd.xlane.f32.xlu0 %v539_v63  ;;  %v602_v63 = vsel %vm484_vm0, %v459_v60, 0.0  ;;  %v410_v60 = vld [vmem:[%s11716_s1 + $0x1d0] sm:$0xff] }
  0x45   : > { %v478_v0 = vmul.f32 %v7294_v3, %v410_v60 }
  0x4b   : > { %555 = vadd.xlane.f32.xlu2 %v554_v7  ;;  %552 = vadd.xlane.f32.xlu1 %v551_v8  ;;  %v617_v7 = vsel %vm484_vm0, %v464_v4, 0.0  ;;  %v614_v8 = vsel %vm484_vm0, %v463_v5, 0.0 }
  0x4c   : > { %549 = vadd.xlane.f32.xlu0 %v548_v9  ;;  %v611_v9 = vsel %vm484_vm0, %v462_v6, 0.0 }
  0x53   : > { %564 = vadd.xlane.f32.xlu2 %v563_v16  ;;  %561 = vadd.xlane.f32.xlu1 %v560_v17 }
  0x54   : > { %558 = vadd.xlane.f32.xlu0 %v557_v18 }
  0x5b   : > { %573 = vadd.xlane.f32.xlu2 %v572_v25  ;;  %570 = vadd.xlane.f32.xlu1 %v569_v26  ;;  %v470_v25 = vmul.f32 %v7294_v3, %v402_v22  ;;  %v469_v26 = vmul.f32 %v7294_v3, %v401_v23  ;;  %v668_v22 = vsel %vm484_vm0, %v481_v13, 0.0  ;;  %v665_v23 = vsel %vm484_vm0, %v480_v14, 0.0  ;;  %v679_v14 = vld [vmem:[%s11717_s2 + $0x10] sm:$0xff] }
  0x5c   : > { %567 = vadd.xlane.f32.xlu0 %v566_v27  ;;  %v468_v27 = vmul.f32 %v7294_v3, %v400_v24  ;;  %v415_v24 = vld [vmem:[%s11716_s1 + $0x1f8] sm:$0xff]  ;;  %v770_v13 = vperm.slane %v678_v50, 3 }
  0x5d   : > { %v635_v31 = vsel %vm484_vm0, %v470_v25, 0.0  ;;  %v632_v32 = vsel %vm484_vm0, %v469_v26, 0.0  ;;  %v483_v25 = vmul.f32 %v7294_v3, %v415_v24 }
  0x5e   : > { %v629_v33 = vsel %vm484_vm0, %v468_v27, 0.0 }
  0x63   : > { %582 = vadd.xlane.f32.xlu2 %v581_v34  ;;  %579 = vadd.xlane.f32.xlu1 %v578_v35  ;;  %v405_v34 = vld [vmem:[%s11716_s1 + $0x1a8] sm:$0xff]  ;;  %v404_v35 = vld [vmem:[%s11716_s1 + $0x1a0] sm:$0xff] }
  0x64   : > { %576 = vadd.xlane.f32.xlu0 %v575_v36  ;;  %v403_v36 = vld [vmem:[%s11716_s1 + $0x198] sm:$0xff]  ;;  %v473_v37 = vmul.f32 %v7294_v3, %v405_v34  ;;  %v472_v38 = vmul.f32 %v7294_v3, %v404_v35 }
  0x65   : > { %v471_v39 = vmul.f32 %v7294_v3, %v403_v36  ;;  %v677_v36 = vld [vmem:[%s11717_s2] sm:$0xff] }
  0x66   : > { %v714_v48 = vperm.slane %v677_v36, 3  ;;  %v721_v49 = vperm.slane %v677_v36, 4  ;;  %v735_v60 = vperm.slane %v677_v36, 6 }
  0x6b   : > { %591 = vadd.xlane.f32.xlu2 %v590_v43  ;;  %588 = vadd.xlane.f32.xlu1 %v587_v44  ;;  %v644_v43 = vsel %vm484_vm0, %v473_v37, 0.0  ;;  %v641_v44 = vsel %vm484_vm0, %v472_v38, 0.0 }
  0x6c   : > { %585 = vadd.xlane.f32.xlu0 %v584_v45  ;;  %v638_v45 = vsel %vm484_vm0, %v471_v39, 0.0  ;;  %v700_v39 = vperm.slane %v677_v36, 1 }
  0x73   : > { %600 = vadd.xlane.f32.xlu2 %v599_v52  ;;  %597 = vadd.xlane.f32.xlu1 %v596_v53 }
  0x74   : > { %594 = vadd.xlane.f32.xlu0 %v593_v54 }
  0x7b   : > { %609 = vadd.xlane.f32.xlu2 %v608_v61  ;;  %606 = vadd.xlane.f32.xlu1 %v605_v62  ;;  %v7603_v61 = vshrl.u32 %v11724_v55, 7  ;;  %v409_v62 = vld [vmem:[%s11716_s1 + $0x1c8] sm:$0xff] }
  0x7c   : > { %603 = vadd.xlane.f32.xlu0 %v602_v63  ;;  %v479_v63 = vmul.f32 %v7294_v3, %v411_v59  ;;  %v477_v1 = vmul.f32 %v7294_v3, %v409_v62  ;;  %v728_v59 = vperm.slane %v677_v36, 5  ;;  %v777_v62 = vperm.slane %v678_v50, 4 }
  0x7d   : > { %11865 = vst [vmem:[#allocation5_spill] sm:$0xff] %v7603_v61  ;;  %7163 = vset.pattern.permute.xlu2 %v7603_v61  ;;  %7162 = vset.pattern.permute.xlu1 %v7603_v61 }
  0x7e   : > { %7164 = vset.pattern.permute.xlu0 %v7603_v61  ;;  %v662_v6 = vsel %vm484_vm0, %v479_v63, 0.0 }
  0x83   : > { %618 = vadd.xlane.f32.xlu2 %v617_v7  ;;  %615 = vadd.xlane.f32.xlu1 %v614_v8  ;;  %v659_v7 = vsel %vm484_vm0, %v478_v0, 0.0  ;;  %v656_v8 = vsel %vm484_vm0, %v477_v1, 0.0 }
  0x84   : > { %612 = vadd.xlane.f32.xlu0 %v611_v9  ;;  %v414_v9 = vld [vmem:[%s11716_s1 + $0x1f0] sm:$0xff] }
  0x85   : > { %v482_v12 = vmul.f32 %v7294_v3, %v414_v9 }
  0x86   : > { %v7524_v16 = vpop.xlane.xlu2 %498  ;;  %v7526_v17 = vpop.xlane.xlu1 %492 }
  0x87   : > { %v7528_v18 = vpop.xlane.xlu0 %486 }
  0x8b   : > { %627 = vadd.xlane.f32.xlu2 %v626_v19  ;;  %624 = vadd.xlane.f32.xlu1 %v623_v20 }
  0x8c   : > { %621 = vadd.xlane.f32.xlu0 %v620_v21  ;;  %v671_v21 = vsel %vm484_vm0, %v482_v12, 0.0  ;;  %v763_v12 = vperm.slane %v678_v50, 2 }
  0x8e   : > { %v7545_v28 = vpop.xlane.xlu2 %501  ;;  %v7547_v29 = vpop.xlane.xlu1 %495 }
  0x8f   : > { %v7549_v30 = vpop.xlane.xlu0 %489 }
  0x93   : > { %636 = vadd.xlane.f32.xlu2 %v635_v31  ;;  %633 = vadd.xlane.f32.xlu1 %v632_v32  ;;  %v674_v32 = vsel %vm484_vm0, %v483_v25, 0.0  ;;  %v784_v25 = vperm.slane %v678_v50, 5 }
  0x94   : > { %630 = vadd.xlane.f32.xlu0 %v629_v33 }
  0x96   : > { %v7566_v40 = vpop.xlane.xlu2 %510  ;;  %v7568_v41 = vpop.xlane.xlu1 %507 }
  0x97   : > { %v7570_v42 = vpop.xlane.xlu0 %504 }
  0x9b   : > { %645 = vadd.xlane.f32.xlu2 %v644_v43  ;;  %642 = vadd.xlane.f32.xlu1 %v641_v44  ;;  %v693_v43 = vperm.slane %v677_v36, 0  ;;  %v707_v44 = vperm.slane %v677_v36, 2 }
  0x9c   : > { %639 = vadd.xlane.f32.xlu0 %v638_v45 }
  0x9e   : > { %v7587_v52 = vpop.xlane.xlu2 %519  ;;  %v7589_v53 = vpop.xlane.xlu1 %516 }
  0x9f   : > { %v7591_v54 = vpop.xlane.xlu0 %513 }
  0xa3   : > { %654 = vadd.xlane.f32.xlu2 %v653_v56  ;;  %651 = vadd.xlane.f32.xlu1 %v650_v57 }
  0xa4   : > { %648 = vadd.xlane.f32.xlu0 %v647_v58 }
  0xa6   : > { %v7614_v2 = vpop.xlane.xlu2 %528  ;;  %v7616_v4 = vpop.xlane.xlu1 %525 }
  0xa7   : > { %v7618_v5 = vpop.xlane.xlu0 %522 }
  0xab   : > { %663 = vadd.xlane.f32.xlu2 %v662_v6  ;;  %660 = vadd.xlane.f32.xlu1 %v659_v7  ;;  %v742_v6 = vperm.slane %v677_v36, 7  ;;  %v749_v7 = vperm.slane %v678_v50, 0  ;;  %v840_v36 = vperm.slane %v679_v14, 5 }
  0xac   : > { %657 = vadd.xlane.f32.xlu0 %v656_v8  ;;  %v798_v8 = vperm.slane %v678_v50, 7 }
  0xae   : > { %v7635_v15 = vpop.xlane.xlu2 %537  ;;  %v7637_v19 = vpop.xlane.xlu1 %534 }
  0xaf   : > { %v7639_v20 = vpop.xlane.xlu0 %531 }
  0xb3   : > { %672 = vadd.xlane.f32.xlu2 %v671_v21  ;;  %669 = vadd.xlane.f32.xlu1 %v668_v22  ;;  %v819_v21 = vperm.slane %v679_v14, 2 }
  0xb4   : > { %666 = vadd.xlane.f32.xlu0 %v665_v23 }
  0xb6   : > { %v7648_v26 = vpop.xlane.xlu2 %546  ;;  %v7650_v27 = vpop.xlane.xlu1 %543 }
  0xb7   : > { %v7652_v31 = vpop.xlane.xlu0 %540 }
  0xbc   : > { %675 = vadd.xlane.f32.xlu0 %v674_v32  ;;  %v791_v32 = vperm.slane %v678_v50, 6 }
  0xbe   : > { %v7655_v33 = vpop.xlane.xlu2 %555  ;;  %v7657_v34 = vpop.xlane.xlu1 %552 }
  0xbf   : > { %v7659_v35 = vpop.xlane.xlu0 %549 }
  0xc6   : > { %v7664_v3 = vpop.xlane.xlu2 %564  ;;  %v7666_v37 = vpop.xlane.xlu1 %561 }
  0xc7   : > { %v7668_v38 = vpop.xlane.xlu0 %558 }
  0xcb   : > { %705 = vperm.xlu2 %7163, %v700_v39  }
  0xcc   : > { %698 = vperm.xlu1 %7162, %v693_v43  }
  0xce   : > { %v7670_v45 = vpop.xlane.xlu2 %573  ;;  %v7672_v46 = vpop.xlane.xlu1 %570 }
  0xcf   : > { %v7674_v47 = vpop.xlane.xlu0 %567 }
  0xd0   : > { %712 = vperm.xlu0 %7164, %v707_v44   ;;  %v805_v44 = vperm.slane %v679_v14, 0 }
  0xd3   : > { %719 = vperm.xlu2 %7163, %v714_v48   ;;  %v812_v48 = vperm.slane %v679_v14, 1 }
  0xd4   : > { %726 = vperm.xlu1 %7162, %v721_v49  }
  0xd6   : > { %v7679_v56 = vpop.xlane.xlu2 %582  ;;  %v7681_v57 = vpop.xlane.xlu1 %579 }
  0xd7   : > { %11866 = vst [vmem:[#allocation6_spill] sm:$0xff] %v7679_v56  ;;  %v7683_v58 = vpop.xlane.xlu0 %576 }
  0xd8   : > { %761 = vperm.xlu0 %7164, %v756_v51   ;;  %v680_v51 = vld [vmem:[%s11717_s2 + $0x18] sm:$0xff] }
  0xd9   : > { %v896_v55 = vperm.slane %v680_v51, 5 }
  0xdb   : > { %733 = vperm.xlu2 %7163, %v728_v59   ;;  %v861_v59 = vperm.slane %v680_v51, 0 }
  0xdc   : > { %740 = vperm.xlu1 %7162, %v735_v60  }
  0xde   : > { %v7685_v63 = vpop.xlane.xlu2 %591  ;;  %v7687_v0 = vpop.xlane.xlu1 %588 }
  0xdf   : > { %11867 = vst [vmem:[#allocation7_spill] sm:$0xff] %v7685_v63  ;;  %v7689_v1 = vpop.xlane.xlu0 %585 }
  0xe0   : > { %11868 = vst [vmem:[#allocation8_spill] sm:$0xff] %v7689_v1  ;;  %782 = vperm.xlu0 %7164, %v777_v62   ;;  %v826_v62 = vperm.slane %v679_v14, 3 }
  0xe3   : > { %747 = vperm.xlu2 %7163, %v742_v6   ;;  %v833_v6 = vperm.slane %v679_v14, 4 }
  0xe4   : > { %754 = vperm.xlu1 %7162, %v749_v7  }
  0xe6   : > { %v7691_v9 = vpop.xlane.xlu2 %600  ;;  %v7693_v10 = vpop.xlane.xlu1 %597 }
  0xe7   : > { %11869 = vst [vmem:[#allocation9_spill] sm:$0xff] %v7691_v9  ;;  %v7695_v11 = vpop.xlane.xlu0 %594 }
  0xe8   : > { %11870 = vst [vmem:[#allocation10_spill] sm:$0xff] %v7695_v11  ;;  %803 = vperm.xlu0 %7164, %v798_v8   ;;  %v882_v8 = vperm.slane %v680_v51, 3 }
  0xeb   : > { %768 = vperm.xlu2 %7163, %v763_v12  }
  0xec   : > { %775 = vperm.xlu1 %7162, %v770_v13   ;;  %v847_v13 = vperm.slane %v679_v14, 6 }
  0xee   : > { %v7700_v22 = vpop.xlane.xlu2 %609  ;;  %v7702_v23 = vpop.xlane.xlu1 %606 }
  0xef   : > { %11871 = vst [vmem:[#allocation11_spill] sm:$0xff] %v7700_v22  ;;  %v7704_v24 = vpop.xlane.xlu0 %603 }
  0xf0   : > { %11872 = vst [vmem:[#allocation12_spill] sm:$0xff] %v7704_v24  ;;  %824 = vperm.xlu0 %7164, %v819_v21  }
  0xf3   : > { %789 = vperm.xlu2 %7163, %v784_v25   ;;  %v854_v25 = vperm.slane %v679_v14, 7 }
  0xf4   : > { %796 = vperm.xlu1 %7162, %v791_v32   ;;  %v903_v32 = vperm.slane %v680_v51, 6 }
  0xf6   : > { %v7706_v39 = vpop.xlane.xlu2 %618  ;;  %v7710_v49 = vpop.xlane.xlu1 %615 }
  0xf7   : > { %11873 = vst [vmem:[#allocation13_spill] sm:$0xff] %v7706_v39  ;;  %v7708_v43 = vpop.xlane.xlu0 %612 }
  0xf8   : > { %11874 = vst [vmem:[#allocation14_spill] sm:$0xff] %v7708_v43  ;;  %845 = vperm.xlu0 %7164, %v840_v36  }
  0xf9   : > { %11875 = vst [vmem:[#allocation15_spill] sm:$0xff] %v7710_v49 }
  0xfb   : > { %810 = vperm.xlu2 %7163, %v805_v44  }
  0xfc   : > { %817 = vperm.xlu1 %7162, %v812_v48   ;;  %v868_v48 = vperm.slane %v680_v51, 1 }
  0xfe   : > { %v7715_v50 = vpop.xlane.xlu2 %627  ;;  %v7719_v7 = vpop.xlane.xlu1 %624 }
  0xff   : > { %11876 = vst [vmem:[#allocation16_spill] sm:$0xff] %v7715_v50  ;;  %v7717_v60 = vpop.xlane.xlu0 %621 }
 0x100   : > { %11877 = vst [vmem:[#allocation17_spill] sm:$0xff] %v7717_v60  ;;  %866 = vperm.xlu0 %7164, %v861_v59   ;;  %v875_v59 = vperm.slane %v680_v51, 2 }
 0x101   : > { %11878 = vst [vmem:[#allocation18_spill] sm:$0xff] %v7719_v7 }
 0x103   : > { %831 = vperm.xlu2 %7163, %v826_v62   ;;  %v681_v62 = vld [vmem:[%s11717_s2 + $0x20] sm:$0xff] }
 0x104   : > { %838 = vperm.xlu1 %7162, %v833_v6  }
 0x106   : > { %v7721_v12 = vpop.xlane.xlu2 %636  ;;  %v7725_v36 = vpop.xlane.xlu1 %633 }
 0x107   : > { %11879 = vst [vmem:[#allocation19_spill] sm:$0xff] %v7721_v12  ;;  %v7723_v21 = vpop.xlane.xlu0 %630  ;;  %v910_v12 = vperm.slane %v680_v51, 7 }
 0x108   : > { %11880 = vst [vmem:[#allocation20_spill] sm:$0xff] %v7723_v21  ;;  %887 = vperm.xlu0 %7164, %v882_v8   ;;  %v924_v8 = vperm.slane %v681_v62, 1 }
 0x109   : > { %11881 = vst [vmem:[#allocation21_spill] sm:$0xff] %v7725_v36 }
 0x10b   : > { %852 = vperm.xlu2 %7163, %v847_v13  }
 0x10c   : > { %859 = vperm.xlu1 %7162, %v854_v25   ;;  %v889_v25 = vperm.slane %v680_v51, 4 }
 0x10e   : > { %v7727_v44 = vpop.xlane.xlu2 %645  ;;  %v7736_v13 = vpop.xlane.xlu1 %642 }
 0x10f   : > { %11882 = vst [vmem:[#allocation22_spill] sm:$0xff] %v7727_v44  ;;  %v7732_v6 = vpop.xlane.xlu0 %639 }
 0x110   : > { %908 = vperm.xlu0 %7164, %v903_v32   ;;  %11883 = vst [vmem:[#allocation23_spill] sm:$0xff] %v7732_v6  ;;  %v945_v32 = vperm.slane %v681_v62, 4  ;;  %v917_v6 = vperm.slane %v681_v62, 0 }
 0x111   : > { %11885 = vst [vmem:[#allocation25_spill] sm:$0xff] %v7736_v13 }
 0x113   : > { %873 = vperm.xlu2 %7163, %v868_v48  }
 0x114   : > { %880 = vperm.xlu1 %7162, %v875_v59   ;;  %v966_v59 = vperm.slane %v681_v62, 7 }
 0x116   : > { %v7734_v14 = vpop.xlane.xlu2 %654  ;;  %v7742_v48 = vpop.xlane.xlu1 %651 }
 0x117   : > { %11884 = vst [vmem:[#allocation24_spill] sm:$0xff] %v7734_v14  ;;  %v7738_v44 = vpop.xlane.xlu0 %648 }
 0x118   : > { %929 = vperm.xlu0 %7164, %v924_v8   ;;  %11886 = vst [vmem:[#allocation26_spill] sm:$0xff] %v7738_v44  ;;  %v931_v8 = vperm.slane %v681_v62, 2 }
 0x119   : > { %11888 = vst [vmem:[#allocation28_spill] sm:$0xff] %v7742_v48 }
 0x11b   : > { %894 = vperm.xlu2 %7163, %v889_v25   ;;  %v938_v25 = vperm.slane %v681_v62, 3 }
 0x11c   : > { %901 = vperm.xlu1 %7162, %v896_v55   ;;  %v682_v55 = vld [vmem:[%s11717_s2 + $0x28] sm:$0xff] }
 0x11d   : > { %v987_v51 = vperm.slane %v682_v55, 2  ;;  %v973_v50 = vperm.slane %v682_v55, 0  ;;  %v1015_v48 = vperm.slane %v682_v55, 6 }
 0x11e   : > { %v7740_v61 = vpop.xlane.xlu2 %663 }
 0x11f   : > { %11887 = vst [vmem:[#allocation27_spill] sm:$0xff] %v7740_v61  ;;  %v7744_v14 = vpop.xlane.xlu0 %657  ;;  %v7751_v61 = vpop.xlane.xlu1 %660 }
 0x120   : > { %950 = vperm.xlu0 %7164, %v945_v32   ;;  %11889 = vst [vmem:[#allocation29_spill] sm:$0xff] %v7744_v14  ;;  %v959_v14 = vperm.slane %v681_v62, 6 }
 0x121   : > { %11891 = vst [vmem:[#allocation31_spill] sm:$0xff] %v7751_v61  ;;  %v980_v61 = vperm.slane %v682_v55, 1 }
 0x123   : > { %915 = vperm.xlu2 %7163, %v910_v12   ;;  %v952_v12 = vperm.slane %v681_v62, 5 }
 0x124   : > { %922 = vperm.xlu1 %7162, %v917_v6  }
 0x126   : > { %v7746_v21 = vpop.xlane.xlu2 %672 }
 0x127   : > { %11890 = vst [vmem:[#allocation30_spill] sm:$0xff] %v7746_v21  ;;  %v7755_v6 = vpop.xlane.xlu0 %666  ;;  %v1008_v21 = vperm.slane %v682_v55, 5 }
 0x128   : > { %971 = vperm.xlu0 %7164, %v966_v59   ;;  %11892 = vst [vmem:[#allocation32_spill] sm:$0xff] %v7755_v6  ;;  %v7757_v59 = vpop.xlane.xlu1 %669  ;;  %v1001_v6 = vperm.slane %v682_v55, 4 }
 0x129   : > { %11893 = vst [vmem:[#allocation33_spill] sm:$0xff] %v7757_v59 }
 0x12b   : > { %936 = vperm.xlu2 %7163, %v931_v8   ;;  %v683_v8 = vld [vmem:[%s11717_s2 + $0x30] sm:$0xff] }
 0x12c   : > { %943 = vperm.xlu1 %7162, %v938_v25   ;;  %v1043_v13 = vperm.slane %v683_v8, 2  ;;  %v1064_v24 = vperm.slane %v683_v8, 5  ;;  %v1078_v63 = vperm.slane %v683_v8, 7 }
 0x12e   : > { %v7753_v32 = vpop.permute.xlu2 %705 }
 0x12f   : > { %v7764_v25 = vpop.xlane.xlu0 %675 }
 0x130   : > { %992 = vperm.xlu0 %7164, %v987_v51   ;;  %11894 = vst [vmem:[#allocation34_spill] sm:$0xff] %v7764_v25  ;;  %v1029_v51 = vperm.slane %v683_v8, 0  ;;  %v1022_v25 = vperm.slane %v682_v55, 7 }
 0x133   : > { %957 = vperm.xlu2 %7163, %v952_v12   ;;  %v994_v12 = vperm.slane %v682_v55, 3 }
 0x134   : > { %964 = vperm.xlu1 %7162, %v959_v14  }
 0x136   : > { %v7759_v44 = vpop.permute.xlu2 %719 }
 0x138   : > { %1013 = vperm.xlu0 %7164, %v1008_v21   ;;  %v1050_v21 = vperm.slane %v683_v8, 3 }
 0x13b   : > { %978 = vperm.xlu2 %7163, %v973_v50  }
 0x13c   : > { %985 = vperm.xlu1 %7162, %v980_v61   ;;  %v1071_v61 = vperm.slane %v683_v8, 6 }
 0x13e   : > { %v7766_v62 = vpop.permute.xlu2 %733  ;;  %v7768_v14 = vpop.permute.xlu1 %698 }
 0x140   : > { %1034 = vperm.xlu0 %7164, %v1029_v51   ;;  %v1036_v51 = vperm.slane %v683_v8, 1 }
 0x142   : > { %v713_v59 = vpop.permute.xlu0 %712 }
 0x143   : > { %999 = vperm.xlu2 %7163, %v994_v12   ;;  %v7797_v1 = vadd.f32 %v713_v59, %v7526_v17 }
 0x144   : > { %1006 = vperm.xlu1 %7162, %v1001_v6   ;;  %v7779_v6 = vld [vmem:[%s11717_s2 + $0x38] sm:$0xff] }
 0x145   : > { %v1092_v55 = vperm.slane %v7779_v6, 1  ;;  %11895 = vst [vmem:[#allocation35_spill] sm:$0xff] %v7797_v1  ;;  %v1120_v17 = vperm.slane %v7779_v6, 5  ;;  %v1127_v59 = vperm.slane %v7779_v6, 6 }
 0x146   : > { %v748_v60 = vpop.permute.xlu2 %747  ;;  %v7770_v39 = vpop.permute.xlu1 %726 }
 0x147   : > { %v7808_v56 = vadd.f32 %v748_v60, %v7568_v41  ;;  %v7823_v41 = vadd.f32 %v7768_v14, %v7528_v18  ;;  %v7849_v14 = vadd.f32 %v7770_v39, %v7524_v16 }
 0x148   : > { %1055 = vperm.xlu0 %7164, %v1050_v21   ;;  %v1057_v21 = vperm.slane %v683_v8, 4  ;;  %v1106_v8 = vperm.slane %v7779_v6, 3 }
 0x149   : > { %11896 = vst [vmem:[#allocation36_spill] sm:$0xff] %v7808_v56 }
 0x14a   : > { %v7772_v50 = vpop.permute.xlu0 %761  ;;  %11898 = vst [vmem:[#allocation38_spill] sm:$0xff] %v7823_v41 }
 0x14b   : > { %1020 = vperm.xlu2 %7163, %v1015_v48   ;;  %11903 = vst [vmem:[#allocation42_spill] sm:$0xff] %v7849_v14 }
 0x14c   : > { %1027 = vperm.xlu1 %7162, %v1022_v25  }
 0x14e   : > { %v769_v43 = vpop.permute.xlu2 %768  ;;  %v7774_v22 = vpop.permute.xlu1 %740 }
 0x14f   : > { %v7867_v16 = vadd.f32 %v7774_v22, %v7570_v42  ;;  %v7885_v42 = vadd.f32 %v7772_v50, %v7591_v54 }
 0x150   : > { %1076 = vperm.xlu0 %7164, %v1071_v61   ;;  %v1113_v61 = vperm.slane %v7779_v6, 4 }
 0x151   : > { %11906 = vst [vmem:[#allocation45_spill] sm:$0xff] %v7867_v16 }
 0x152   : > { %v7781_v12 = vpop.permute.xlu0 %782  ;;  %11909 = vst [vmem:[#allocation48_spill] sm:$0xff] %v7885_v42 }
 0x153   : > { %1041 = vperm.xlu2 %7163, %v1036_v51   ;;  %v7903_v54 = vadd.f32 %v7781_v12, %v7618_v5 }
 0x154   : > { %1048 = vperm.xlu1 %7162, %v1043_v13   ;;  %v1085_v13 = vperm.slane %v7779_v6, 0 }
 0x155   : > { %11912 = vst [vmem:[#allocation51_spill] sm:$0xff] %v7903_v54 }
 0x156   : > { %v790_v48 = vpop.permute.xlu2 %789  ;;  %v7784_v25 = vpop.permute.xlu1 %754 }
 0x157   : > { %v7838_v18 = vadd.f32 %v790_v48, %v7616_v4 }
 0x158   : > { %1097 = vperm.xlu0 %7164, %v1092_v55  }
 0x159   : > { %11901 = vst [vmem:[#allocation40_spill] sm:$0xff] %v7838_v18 }
 0x15a   : > { %v7786_v9 = vpop.permute.xlu0 %803 }
 0x15b   : > { %1062 = vperm.xlu2 %7163, %v1057_v21   ;;  %v11727_v21 = vmov 0   ;;  %v7921_v5 = vadd.f32 %v7786_v9, %v7639_v20 }
 0x15c   : > { %1069 = vperm.xlu1 %7162, %v1064_v24   ;;  %v1099_v24 = vperm.slane %v7779_v6, 2 }
 0x15d   : > { %11915 = vst [vmem:[#allocation54_spill] sm:$0xff] %v7921_v5 }
 0x15e   : > { %v811_v36 = vpop.permute.xlu2 %810  ;;  %v7789_v11 = vpop.permute.xlu1 %775 }
 0x15f   : > { %v7856_v4 = vadd.f32 %v811_v36, %v7637_v19 }
 0x160   : > { %1118 = vperm.xlu0 %7164, %v1113_v61  }
 0x161   : > { %11904 = vst [vmem:[#allocation43_spill] sm:$0xff] %v7856_v4 }
 0x162   : > { %v7792_v51 = vpop.permute.xlu0 %824 }
 0x163   : > { %1083 = vperm.xlu2 %7163, %v1078_v63   ;;  %v7939_v20 = vadd.f32 %v7792_v51, %v7652_v31 }
 0x164   : > { %1090 = vperm.xlu1 %7162, %v1085_v13  }
 0x165   : > { %11918 = vst [vmem:[#allocation57_spill] sm:$0xff] %v7939_v20 }
 0x166   : > { %v832_v7 = vpop.permute.xlu2 %831  ;;  %v7794_v55 = vpop.permute.xlu1 %796 }
 0x167   : > { %v7874_v19 = vadd.f32 %v832_v7, %v7650_v27 }
 0x168   : > { %7167 = vset.pattern.permute.xlu0 %v11727_v21 }
 0x169   : > { %1340 = vperm.xlu0 %7167, %v7797_v1   ;;  %11907 = vst [vmem:[#allocation46_spill] sm:$0xff] %v7874_v19 }
 0x16a   : > { %v7803_v61 = vpop.permute.xlu0 %845 }
 0x16b   : > { %1104 = vperm.xlu2 %7163, %v1099_v24   ;;  %v7818_v24 = vadd.f32 %v769_v43, %v7589_v53  ;;  %v7957_v31 = vadd.f32 %v7803_v61, %v7659_v35 }
 0x16c   : > { %1111 = vperm.xlu1 %7162, %v1106_v8   ;;  %v7829_v8 = vadd.f32 %v7753_v32, %v7549_v30  ;;  %v7843_v30 = vadd.f32 %v7759_v44, %v7547_v29  ;;  %v7861_v29 = vadd.f32 %v7766_v62, %v7545_v28  ;;  %v7879_v28 = vadd.f32 %v7784_v25, %v7566_v40 }
 0x16d   : > { %11897 = vst [vmem:[#allocation37_spill] sm:$0xff] %v7818_v24  ;;  %v7897_v40 = vadd.f32 %v7789_v11, %v7587_v52  ;;  %v7915_v52 = vadd.f32 %v7794_v55, %v7614_v2 }
 0x16e   : > { %v853_v63 = vpop.permute.xlu2 %852  ;;  %v7805_v13 = vpop.permute.xlu1 %817  ;;  %11899 = vst [vmem:[#allocation39_spill] sm:$0xff] %v7829_v8 }
 0x16f   : > { %11902 = vst [vmem:[#allocation41_spill] sm:$0xff] %v7843_v30  ;;  %v7892_v27 = vadd.f32 %v853_v63, %v7657_v34  ;;  %v7933_v2 = vadd.f32 %v7805_v13, %v7635_v15 }
 0x170   : > { %11905 = vst [vmem:[#allocation44_spill] sm:$0xff] %v7861_v29 }
 0x171   : > { %1355 = vperm.xlu0 %7167, %v7808_v56   ;;  %11908 = vst [vmem:[#allocation47_spill] sm:$0xff] %v7879_v28 }
 0x172   : > { %v7813_v21 = vpop.permute.xlu0 %866  ;;  %11910 = vst [vmem:[#allocation49_spill] sm:$0xff] %v7892_v27 }
 0x173   : > { %1125 = vperm.xlu2 %7163, %v1120_v17   ;;  %v11900_v17 = vmov 0   ;;  %11911 = vst [vmem:[#allocation50_spill] sm:$0xff] %v7897_v40  ;;  %v7975_v35 = vadd.f32 %v7813_v21, %v7668_v38 }
 0x174   : > { %1132 = vperm.xlu1 %7162, %v1127_v59   ;;  %11914 = vst [vmem:[#allocation53_spill] sm:$0xff] %v7915_v52 }
 0x175   : > { %11917 = vst [vmem:[#allocation56_spill] sm:$0xff] %v7933_v2 }
 0x176   : > { %v874_v1 = vpop.permute.xlu2 %873  ;;  %v7815_v49 = vpop.permute.xlu1 %838  ;;  %11921 = vst [vmem:[#allocation60_spill] sm:$0xff] %v7957_v31 }
 0x177   : > { %v7910_v34 = vadd.f32 %v874_v1, %v7666_v37  ;;  %v7951_v15 = vadd.f32 %v7815_v49, %v7648_v26  ;;  %11924 = vst [vmem:[#allocation63_spill] sm:$0xff] %v7975_v35 }
 0x179   : > { %1364 = vperm.xlu0 %7167, %v7818_v24   ;;  %11913 = vst [vmem:[#allocation52_spill] sm:$0xff] %v7910_v34 }
 0x17a   : > { %v7825_v60 = vpop.permute.xlu0 %887  ;;  %11920 = vst [vmem:[#allocation59_spill] sm:$0xff] %v7951_v15 }
 0x17b   : > { %7165 = vset.pattern.permute.xlu2 %v11900_v17  ;;  %v7993_v38 = vadd.f32 %v7825_v60, %v7674_v47 }
 0x17c   : > { %7166 = vset.pattern.permute.xlu1 %v11900_v17  ;;  %1334 = vperm.xlu2 %7165, %v7823_v41  }
 0x17d   : > { %1337 = vperm.xlu1 %7166, %v7829_v8   ;;  %11927 = vst [vmem:[#allocation66_spill] sm:$0xff] %v7993_v38 }
 0x17e   : > { %v895_v53 = vpop.permute.xlu2 %894  ;;  %v7835_v43 = vpop.permute.xlu1 %859 }
 0x17f   : > { %v7928_v37 = vadd.f32 %v895_v53, %v7672_v46  ;;  %v7969_v26 = vadd.f32 %v7835_v43, %v7655_v33 }
 0x181   : > { %1373 = vperm.xlu0 %7167, %v7838_v18   ;;  %11916 = vst [vmem:[#allocation55_spill] sm:$0xff] %v7928_v37 }
 0x182   : > { %v7845_v32 = vpop.permute.xlu0 %908  ;;  %11923 = vst [vmem:[#allocation62_spill] sm:$0xff] %v7969_v26 }
 0x183   : > { %v8013_v47 = vadd.f32 %v7845_v32, %v7683_v58  ;;  %v11935_v58 = vld [vmem:[#allocation8_spill] sm:$0xff] }
 0x184   : > { %1343 = vperm.xlu2 %7165, %v7843_v30  }
 0x185   : > { %1346 = vperm.xlu1 %7166, %v7849_v14   ;;  %11930 = vst [vmem:[#allocation69_spill] sm:$0xff] %v8013_v47 }
 0x186   : > { %v916_v59 = vpop.permute.xlu2 %915  ;;  %v7853_v8 = vpop.permute.xlu1 %880 }
 0x187   : > { %v7946_v46 = vadd.f32 %v916_v59, %v7681_v57  ;;  %v7987_v33 = vadd.f32 %v7853_v8, %v7664_v3 }
 0x189   : > { %1382 = vperm.xlu0 %7167, %v7856_v4   ;;  %11919 = vst [vmem:[#allocation58_spill] sm:$0xff] %v7946_v46 }
 0x18a   : > { %v7863_v44 = vpop.permute.xlu0 %929  ;;  %11926 = vst [vmem:[#allocation65_spill] sm:$0xff] %v7987_v33 }
 0x18b   : > { %v8033_v32 = vadd.f32 %v7863_v44, %v11935_v58 }
 0x18c   : > { %1349 = vperm.xlu2 %7165, %v7861_v29  }
 0x18d   : > { %1352 = vperm.xlu1 %7166, %v7867_v16   ;;  %11936 = vst [vmem:[#allocation8_spill] sm:$0xff] %v8033_v32 }
 0x18e   : > { %v937_v39 = vpop.permute.xlu2 %936  ;;  %v7871_v48 = vpop.permute.xlu1 %901 }
 0x18f   : > { %v7964_v57 = vadd.f32 %v937_v39, %v7687_v0  ;;  %v8007_v3 = vadd.f32 %v7871_v48, %v7670_v45  ;;  %v11933_v45 = vld [vmem:[#allocation6_spill] sm:$0xff] }
 0x191   : > { %1391 = vperm.xlu0 %7167, %v7874_v19   ;;  %11922 = vst [vmem:[#allocation61_spill] sm:$0xff] %v7964_v57  ;;  %v2075_v19 = vld [vmem:[%s11718_s3 + $0x28] sm:$0xff] }
 0x192   : > { %v7881_v36 = vpop.permute.xlu0 %950  ;;  %11929 = vst [vmem:[#allocation68_spill] sm:$0xff] %v8007_v3 }
 0x194   : > { %1358 = vperm.xlu2 %7165, %v7879_v28  }
 0x195   : > { %1361 = vperm.xlu1 %7166, %v7885_v42   ;;  %v2073_v42 = vld [vmem:[%s11718_s3 + $0x18] sm:$0xff] }
 0x196   : > { %v958_v22 = vpop.permute.xlu2 %957  ;;  %v7889_v62 = vpop.permute.xlu1 %922 }
 0x197   : > { %v7982_v0 = vadd.f32 %v958_v22, %v7693_v10  ;;  %v11931_v22 = vld [vmem:[#allocation15_spill] sm:$0xff]  ;;  %v8027_v48 = vadd.f32 %v7889_v62, %v11933_v45 }
 0x198   : > { %v11939_v62 = vld [vmem:[#allocation7_spill] sm:$0xff] }
 0x199   : > { %1400 = vperm.xlu0 %7167, %v7892_v27   ;;  %11925 = vst [vmem:[#allocation64_spill] sm:$0xff] %v7982_v0  ;;  %v2076_v27 = vld [vmem:[%s11718_s3 + $0x30] sm:$0xff] }
 0x19a   : > { %v7899_v7 = vpop.permute.xlu0 %971  ;;  %11934 = vst [vmem:[#allocation6_spill] sm:$0xff] %v8027_v48 }
 0x19c   : > { %1367 = vperm.xlu2 %7165, %v7897_v40  }
 0x19d   : > { %1370 = vperm.xlu1 %7166, %v7903_v54  }
 0x19e   : > { %v979_v50 = vpop.permute.xlu2 %978  ;;  %v7907_v25 = vpop.permute.xlu1 %943 }
 0x19f   : > { %v8002_v39 = vadd.f32 %v979_v50, %v7702_v23  ;;  %v8047_v45 = vadd.f32 %v7907_v25, %v11939_v62  ;;  %v11749_v25 = vmov 0.0  }
 0x1a0   : > { %304 = vst.msk [vmem:[#allocation2 + $0x10] sm:$0xff] %vm300_vm1, %v11749_v25 }
 0x1a1   : > { %1409 = vperm.xlu0 %7167, %v7910_v34   ;;  %11928 = vst [vmem:[#allocation67_spill] sm:$0xff] %v8002_v39 }
 0x1a2   : > { %v7917_v11 = vpop.permute.xlu0 %992  ;;  %11940 = vst [vmem:[#allocation7_spill] sm:$0xff] %v8047_v45 }
 0x1a3   : > { %305 = vst.msk [vmem:[#allocation2 + $0x18] sm:$0x3] %vm302_vm2, %v11749_v25 }
 0x1a4   : > { %1376 = vperm.xlu2 %7165, %v7915_v52   ;;  %301 = vst.msk [vmem:[#allocation2] sm:$0xff] %vm300_vm1, %v11749_v25 }
 0x1a5   : > { %1379 = vperm.xlu1 %7166, %v7921_v5   ;;  %303 = vst.msk [vmem:[#allocation2 + $0x8] sm:$0x3] %vm302_vm2, %v11749_v25 }
 0x1a6   : > { %v1000_v12 = vpop.permute.xlu2 %999  ;;  %v7925_v63 = vpop.permute.xlu1 %964  ;;  %306 = vst.msk [vmem:[#allocation2 + $0x20] sm:$0xff] %vm300_vm1, %v11749_v25 }
 0x1a7   : > { %v8022_v50 = vadd.f32 %v1000_v12, %v11931_v22  ;;  %v11937_v22 = vld [vmem:[#allocation18_spill] sm:$0xff]  ;;  %307 = vst.msk [vmem:[#allocation2 + $0x28] sm:$0x3] %vm302_vm2, %v11749_v25 }
 0x1a8   : > { %308 = vst.msk [vmem:[#allocation2 + $0x30] sm:$0xff] %vm300_vm1, %v11749_v25 }
 0x1a9   : > { %1418 = vperm.xlu0 %7167, %v7928_v37   ;;  %11932 = vst [vmem:[#allocation15_spill] sm:$0xff] %v8022_v50 }
 0x1aa   : > { %v7935_v1 = vpop.permute.xlu0 %1013  ;;  %309 = vst.msk [vmem:[#allocation2 + $0x38] sm:$0x3] %vm302_vm2, %v11749_v25 }
 0x1ab   : > { %310 = vst.msk [vmem:[#allocation2 + $0x40] sm:$0xff] %vm300_vm1, %v11749_v25 }
 0x1ac   : > { %1385 = vperm.xlu2 %7165, %v7933_v2   ;;  %311 = vst.msk [vmem:[#allocation2 + $0x48] sm:$0x3] %vm302_vm2, %v11749_v25 }
 0x1ad   : > { %1388 = vperm.xlu1 %7166, %v7939_v20   ;;  %312 = vst.msk [vmem:[#allocation2 + $0x50] sm:$0xff] %vm300_vm1, %v11749_v25 }
 0x1ae   : > { %v1021_v9 = vpop.permute.xlu2 %1020  ;;  %v7943_v55 = vpop.permute.xlu1 %985  ;;  %313 = vst.msk [vmem:[#allocation2 + $0x58] sm:$0x3] %vm302_vm2, %v11749_v25 }
 0x1af   : > { %314 = vst.msk [vmem:[#allocation2 + $0x60] sm:$0xff] %vm300_vm1, %v11749_v25 }
 0x1b0   : > { %315 = vst.msk [vmem:[#allocation2 + $0x68] sm:$0x3] %vm302_vm2, %v11749_v25 }
 0x1b1   : > { %1427 = vperm.xlu0 %7167, %v7946_v46   ;;  %316 = vst.msk [vmem:[#allocation2 + $0x70] sm:$0xff] %vm300_vm1, %v11749_v25 }
 0x1b2   : > { %v7953_v13 = vpop.permute.xlu0 %1034  ;;  %317 = vst.msk [vmem:[#allocation2 + $0x78] sm:$0x3] %vm302_vm2, %v11749_v25 }
 0x1b3   : > { %318 = vst.msk [vmem:[#allocation2 + $0x80] sm:$0xff] %vm300_vm1, %v11749_v25 }
 0x1b4   : > { %1394 = vperm.xlu2 %7165, %v7951_v15   ;;  %319 = vst.msk [vmem:[#allocation2 + $0x88] sm:$0x3] %vm302_vm2, %v11749_v25 }
 0x1b5   : > { %1397 = vperm.xlu1 %7166, %v7957_v31   ;;  %320 = vst.msk [vmem:[#allocation2 + $0x90] sm:$0xff] %vm300_vm1, %v11749_v25 }
 0x1b6   : > { %v1042_v51 = vpop.permute.xlu2 %1041  ;;  %v7961_v53 = vpop.permute.xlu1 %1006  ;;  %321 = vst.msk [vmem:[#allocation2 + $0x98] sm:$0x3] %vm302_vm2, %v11749_v25 }
 0x1b7   : > { %322 = vst.msk [vmem:[#allocation3] sm:$0xff] %vm300_vm1, %v11749_v25 }
 0x1b8   : > { %323 = vst.msk [vmem:[#allocation3 + $0x8] sm:$0x3] %vm302_vm2, %v11749_v25 }
 0x1b9   : > { %1436 = vperm.xlu0 %7167, %v7964_v57   ;;  %324 = vst.msk [vmem:[#allocation3 + $0x10] sm:$0xff] %vm300_vm1, %v11749_v25 }
 0x1ba   : > { %v7971_v49 = vpop.permute.xlu0 %1055  ;;  %325 = vst.msk [vmem:[#allocation3 + $0x18] sm:$0x3] %vm302_vm2, %v11749_v25 }
 0x1bb   : > { %326 = vst.msk [vmem:[#allocation3 + $0x20] sm:$0xff] %vm300_vm1, %v11749_v25 }
 0x1bc   : > { %1403 = vperm.xlu2 %7165, %v7969_v26   ;;  %327 = vst.msk [vmem:[#allocation3 + $0x28] sm:$0x3] %vm302_vm2, %v11749_v25 }
 0x1bd   : > { %1406 = vperm.xlu1 %7166, %v7975_v35   ;;  %328 = vst.msk [vmem:[#allocation3 + $0x30] sm:$0xff] %vm300_vm1, %v11749_v25 }
 0x1be   : > { %v1063_v61 = vpop.permute.xlu2 %1062  ;;  %v7979_v59 = vpop.permute.xlu1 %1027  ;;  %329 = vst.msk [vmem:[#allocation3 + $0x38] sm:$0x3] %vm302_vm2, %v11749_v25 }
 0x1bf   : > { %330 = vst.msk [vmem:[#allocation3 + $0x40] sm:$0xff] %vm300_vm1, %v11749_v25 }
 0x1c0   : > { %331 = vst.msk [vmem:[#allocation3 + $0x48] sm:$0x3] %vm302_vm2, %v11749_v25 }
 0x1c1   : > { %1445 = vperm.xlu0 %7167, %v7982_v0   ;;  %v11941_v0 = vld [vmem:[#allocation10_spill] sm:$0xff]  ;;  %332 = vst.msk [vmem:[#allocation3 + $0x50] sm:$0xff] %vm300_vm1, %v11749_v25 }
 0x1c2   : > { %v7989_v43 = vpop.permute.xlu0 %1076  ;;  %v8051_v44 = vadd.f32 %v7881_v36, %v11941_v0  ;;  %v11945_v36 = vld [vmem:[#allocation9_spill] sm:$0xff]  ;;  %333 = vst.msk [vmem:[#allocation3 + $0x58] sm:$0x3] %vm302_vm2, %v11749_v25 }
 0x1c3   : > { %v8069_v0 = vadd.f32 %v7925_v63, %v11945_v36  ;;  %334 = vst.msk [vmem:[#allocation3 + $0x60] sm:$0xff] %vm300_vm1, %v11749_v25 }
 0x1c4   : > { %1412 = vperm.xlu2 %7165, %v7987_v33   ;;  %11942 = vst [vmem:[#allocation10_spill] sm:$0xff] %v8051_v44 }
 0x1c5   : > { %1415 = vperm.xlu1 %7166, %v7993_v38   ;;  %11946 = vst [vmem:[#allocation9_spill] sm:$0xff] %v8069_v0 }
 0x1c6   : > { %v7997_v21 = vpop.permute.xlu2 %1083  ;;  %v7999_v10 = vpop.permute.xlu1 %1048  ;;  %335 = vst.msk [vmem:[#allocation3 + $0x68] sm:$0x3] %vm302_vm2, %v11749_v25 }
 0x1c7   : > { %336 = vst.msk [vmem:[#allocation3 + $0x70] sm:$0xff] %vm300_vm1, %v11749_v25 }
 0x1c8   : > { %337 = vst.msk [vmem:[#allocation3 + $0x78] sm:$0x3] %vm302_vm2, %v11749_v25 }
 0x1c9   : > { %1454 = vperm.xlu0 %7167, %v8002_v39   ;;  %338 = vst.msk [vmem:[#allocation3 + $0x80] sm:$0xff] %vm300_vm1, %v11749_v25 }
 0x1ca   : > { %v8009_v8 = vpop.permute.xlu0 %1097  ;;  %339 = vst.msk [vmem:[#allocation3 + $0x88] sm:$0x3] %vm302_vm2, %v11749_v25 }
 0x1cb   : > { %340 = vst.msk [vmem:[#allocation3 + $0x90] sm:$0xff] %vm300_vm1, %v11749_v25 }
 0x1cc   : > { %1421 = vperm.xlu2 %7165, %v8007_v3   ;;  %341 = vst.msk [vmem:[#allocation3 + $0x98] sm:$0x3] %vm302_vm2, %v11749_v25  ;;  %vm2061_vm2 = vcmask 523264  }
 0x1cd   : > { %1424 = vperm.xlu1 %7166, %v8013_v47  }
 0x1ce   : > { %v8017_v60 = vpop.permute.xlu2 %1104  ;;  %v8019_v23 = vpop.permute.xlu1 %1069 }
 0x1d1   : > { %1463 = vperm.xlu0 %7167, %v8022_v50   ;;  %v8042_v50 = vadd.f32 %v1021_v9, %v11937_v22  ;;  %v11943_v22 = vld [vmem:[#allocation21_spill] sm:$0xff] }
 0x1d2   : > { %v8029_v39 = vpop.permute.xlu0 %1118 }
 0x1d3   : > { %11938 = vst [vmem:[#allocation18_spill] sm:$0xff] %v8042_v50 }
 0x1d4   : > { %1430 = vperm.xlu2 %7165, %v8027_v48   ;;  %v8060_v48 = vadd.f32 %v1042_v51, %v11943_v22  ;;  %v11947_v51 = vld [vmem:[#allocation12_spill] sm:$0xff] }
 0x1d5   : > { %1433 = vperm.xlu1 %7166, %v8033_v32   ;;  %v8075_v62 = vadd.f32 %v7899_v7, %v11947_v51  ;;  %v11949_v7 = vld [vmem:[#allocation25_spill] sm:$0xff] }
 0x1d6   : > { %v8037_v47 = vpop.permute.xlu2 %1125  ;;  %v8039_v12 = vpop.permute.xlu1 %1090  ;;  %11944 = vst [vmem:[#allocation21_spill] sm:$0xff] %v8060_v48  ;;  %v8092_v51 = vadd.f32 %v1063_v61, %v11949_v7  ;;  %v11953_v61 = vld [vmem:[#allocation14_spill] sm:$0xff] }
 0x1d7   : > { %11948 = vst [vmem:[#allocation12_spill] sm:$0xff] %v8075_v62  ;;  %v8109_v7 = vadd.f32 %v7917_v11, %v11953_v61  ;;  %v11955_v11 = vld [vmem:[#allocation28_spill] sm:$0xff] }
 0x1d8   : > { %11950 = vst [vmem:[#allocation25_spill] sm:$0xff] %v8092_v51 }
 0x1d9   : > { %1472 = vperm.xlu0 %7167, %v8042_v50   ;;  %11954 = vst [vmem:[#allocation14_spill] sm:$0xff] %v8109_v7 }
 0x1db   : > { %v8053_v58 = vpop.permute.xlu0 %1340 }
 0x1dc   : > { %1439 = vperm.xlu2 %7165, %v8047_v45  }
 0x1dd   : > { %1442 = vperm.xlu1 %7166, %v8051_v44  }
 0x1de   : > { %v8057_v32 = vpop.permute.xlu1 %1111  ;;  %v1335_v9 = vpop.permute.xlu2 %1334 }
 0x1e1   : > { %1481 = vperm.xlu0 %7167, %v8060_v48   ;;  %v11951_v48 = vld [vmem:[#allocation11_spill] sm:$0xff] }
 0x1e3   : > { %v8077_v22 = vpop.permute.xlu0 %1355 }
 0x1e4   : > { %1448 = vperm.xlu2 %7165, %v8069_v0  }
 0x1e5   : > { %1451 = vperm.xlu1 %7166, %v8075_v62   ;;  %v8103_v62 = vadd.f32 %v7943_v55, %v11951_v48  ;;  %v8125_v48 = vadd.f32 %v7997_v21, %v11955_v11  ;;  %v11961_v21 = vld [vmem:[#allocation17_spill] sm:$0xff] }
 0x1e6   : > { %v8087_v63 = vpop.permute.xlu1 %1132  ;;  %v1344_v36 = vpop.permute.xlu2 %1343  ;;  %v8145_v11 = vadd.f32 %v7935_v1, %v11961_v21 }
 0x1e7   : > { %11952 = vst [vmem:[#allocation11_spill] sm:$0xff] %v8103_v62 }
 0x1e8   : > { %11956 = vst [vmem:[#allocation28_spill] sm:$0xff] %v8125_v48 }
 0x1e9   : > { %1490 = vperm.xlu0 %7167, %v8092_v51   ;;  %v11957_v51 = vlaneseq  ;;  %11962 = vst [vmem:[#allocation17_spill] sm:$0xff] %v8145_v11 }
 0x1eb   : > { %v8111_v50 = vpop.permute.xlu0 %1364 }
 0x1ec   : > { %1457 = vperm.xlu2 %7165, %v8103_v62   ;;  %v11959_v62 = vld [vmem:[#allocation13_spill] sm:$0xff] }
 0x1ed   : > { %1460 = vperm.xlu1 %7166, %v8109_v7   ;;  %v8132_v7 = vand.u32 127, %v11957_v51  ;;  %v8139_v44 = vadd.f32 %v7961_v53, %v11959_v62  ;;  %v11963_v62 = vld [vmem:[#allocation31_spill] sm:$0xff] }
 0x1ee   : > { %v1350_v55 = vpop.permute.xlu2 %1349 }
 0x1ef   : > { %v1338_v61 = vpop.permute.xlu1 %1337  ;;  %11958 = vst [vmem:[#allocation70_spill] sm:$0xff] %v8132_v7  ;;  %v1527_v53 = vperm.slane %v1335_v9, %v8132_v7  ;;  %v1529_v9 = vperm.slane %v8053_v58, %v8132_v7  ;;  %v11967_v58 = vld [vmem:[#allocation20_spill] sm:$0xff] }
 0x1f0   : > { %11960 = vst [vmem:[#allocation13_spill] sm:$0xff] %v8139_v44  ;;  %v1528_v0 = vperm.slane %v1338_v61, %v8132_v7  ;;  %v8165_v61 = vadd.f32 %v8017_v60, %v11963_v62  ;;  %v11965_v60 = vld [vmem:[#allocation16_spill] sm:$0xff] }
 0x1f1   : > { %1499 = vperm.xlu0 %7167, %v8125_v48   ;;  %v8179_v62 = vadd.f32 %v7979_v59, %v11965_v60 }
 0x1f2   : > { %11964 = vst [vmem:[#allocation31_spill] sm:$0xff] %v8165_v61  ;;  %v1592_v21 = vsel %vm1591_vm3, %v1528_v0, %v1527_v53 }
 0x1f3   : > { %v8148_v51 = vpop.permute.xlu0 %1373  ;;  %11966 = vst [vmem:[#allocation16_spill] sm:$0xff] %v8179_v62  ;;  %v1594_v0 = vsel %vm1593_vm4, %v1529_v9, %v1592_v21  ;;  %v1532_v9 = vperm.slane %v1350_v55, %v8132_v7 }
 0x1f4   : > { %1466 = vperm.xlu2 %7165, %v8139_v44  }
 0x1f5   : > { %1469 = vperm.xlu1 %7166, %v8145_v11   ;;  %v8187_v11 = vadd.f32 %v7953_v13, %v11967_v58 }
 0x1f6   : > { %v8159_v1 = vpop.permute.xlu2 %1358 }
 0x1f7   : > { %v1347_v48 = vpop.permute.xlu1 %1346  ;;  %11968 = vst [vmem:[#allocation20_spill] sm:$0xff] %v8187_v11 }
 0x1f8   : > { %v1531_v53 = vperm.slane %v1347_v48, %v8132_v7  ;;  %v11969_v48 = vld [vmem:[#allocation33_spill] sm:$0xff] }
 0x1f9   : > { %1508 = vperm.xlu0 %7167, %v8165_v61   ;;  %v1530_v61 = vperm.slane %v1344_v36, %v8132_v7  ;;  %v8206_v21 = vadd.f32 %v8037_v47, %v11969_v48  ;;  %v11971_v47 = vld [vmem:[#allocation19_spill] sm:$0xff] }
 0x1fa   : > { %v8222_v55 = vadd.f32 %v7999_v10, %v11971_v47  ;;  %v11978_v47 = vld [vmem:[#allocation26_spill] sm:$0xff] }
 0x1fb   : > { %v8190_v44 = vpop.permute.xlu0 %1382  ;;  %v1596_v59 = vsel %vm1595_vm5, %v1530_v61, %v1594_v0  ;;  %11970 = vst [vmem:[#allocation33_spill] sm:$0xff] %v8206_v21  ;;  %v1534_v0 = vperm.slane %v8077_v22, %v8132_v7 }
 0x1fc   : > { %1475 = vperm.xlu2 %7165, %v8179_v62   ;;  %v1598_v13 = vsel %vm1597_vm6, %v1531_v53, %v1596_v59  ;;  %11972 = vst [vmem:[#allocation19_spill] sm:$0xff] %v8222_v55  ;;  %v11973_v59 = vld [vmem:[#allocation23_spill] sm:$0xff] }
 0x1fd   : > { %1478 = vperm.xlu1 %7166, %v8187_v11   ;;  %v1600_v53 = vsel %vm1599_vm7, %v1532_v9, %v1598_v13  ;;  %v8229_v48 = vadd.f32 %v7971_v49, %v11973_v59 }
 0x1fe   : > { %v1368_v36 = vpop.permute.xlu2 %1367 }
 0x1ff   : > { %v1353_v61 = vpop.permute.xlu1 %1352  ;;  %11974 = vst [vmem:[#allocation23_spill] sm:$0xff] %v8229_v48 }
 0x200   : > { %v1533_v60 = vperm.slane %v1353_v61, %v8132_v7  ;;  %v11975_v61 = vld [vmem:[#allocation5_spill] sm:$0xff] }
 0x201   : > { %1517 = vperm.xlu0 %7167, %v8206_v21   ;;  %v1538_v21 = vperm.slane %v1368_v36, %v8132_v7 }
 0x202   : > { %v1602_v58 = vsel %vm1601_vm8, %v1533_v60, %v1600_v53  ;;  %v11976_v60 = vld [vmem:[#allocation22_spill] sm:$0xff]  ;;  %v1535_v53 = vperm.slane %v8159_v1, %v8132_v7 }
 0x203   : > { %v1604_v22 = vsel %vm1603_vm9, %v1534_v0, %v1602_v58  ;;  %v8234_v13 = vpop.permute.xlu0 %1391  ;;  %v8251_v0 = vadd.f32 %v8019_v23, %v11976_v60  ;;  %v8257_v58 = vadd.f32 %v7989_v43, %v11978_v47  ;;  %v1134_v23 = vperm.slane %v7779_v6, 7  ;;  %v11980_v47 = vld [vmem:[#allocation24_spill] sm:$0xff] }
 0x204   : > { %1663 = vst.msk [vmem:[#allocation2 + $0x11] sm:$0xff] %vm300_vm1, %v1604_v22  ;;  %1484 = vperm.xlu2 %7165, %v8222_v55  }
 0x205   : > { %1487 = vperm.xlu1 %7166, %v8229_v48   ;;  %11977 = vst [vmem:[#allocation22_spill] sm:$0xff] %v8251_v0 }
 0x206   : > { %v1377_v49 = vpop.permute.xlu2 %1376  ;;  %11979 = vst [vmem:[#allocation26_spill] sm:$0xff] %v8257_v58 }
 0x207   : > { %v1362_v10 = vpop.permute.xlu1 %1361 }
 0x208   : > { %v1536_v9 = vperm.slane %v1362_v10, %v8132_v7  ;;  %v1537_v10 = vperm.slane %v8111_v50, %v8132_v7  ;;  %v11982_v50 = vld [vmem:[#allocation29_spill] sm:$0xff] }
 0x209   : > { %7168 = vset.pattern.permute.xlu0 %v11975_v61 }
 0x20a   : > { %v1605_v22 = vsel %vm1591_vm3, %v1536_v9, %v1535_v53  ;;  %v8270_v9 = vadd.f32 %v8039_v12, %v11980_v47  ;;  %v11986_v47 = vld [vmem:[#allocation32_spill] sm:$0xff] }
 0x20b   : > { %v1401_v59 = vpop.permute.xlu0 %1400  ;;  %v1606_v25 = vsel %vm1593_vm4, %v1537_v10, %v1605_v22  ;;  %v1540_v22 = vperm.slane %v8148_v51, %v8132_v7  ;;  %v1679_v10 = vld [vmem:[#allocation2 + $0x1] sm:$0xff] }
 0x20c   : > { %1493 = vperm.xlu2 %7165, %v8251_v0   ;;  %11981 = vst [vmem:[#allocation24_spill] sm:$0xff] %v8270_v9  ;;  %v1607_v53 = vsel %vm1595_vm5, %v1538_v21, %v1606_v25  ;;  %v1541_v25 = vperm.slane %v1377_v49, %v8132_v7 }
 0x20d   : > { %1496 = vperm.xlu1 %7166, %v8257_v58   ;;  %v8275_v58 = vadd.f32 %v8009_v8, %v11982_v50 }
 0x20e   : > { %v1386_v60 = vpop.permute.xlu2 %1385 }
 0x20f   : > { %v1371_v1 = vpop.permute.xlu1 %1370  ;;  %11983 = vst [vmem:[#allocation29_spill] sm:$0xff] %v8275_v58  ;;  %v1544_v50 = vperm.slane %v1386_v60, %v8132_v7 }
 0x210   : > { %v1539_v43 = vperm.slane %v1371_v1, %v8132_v7  ;;  %v11984_v1 = vld [vmem:[#allocation27_spill] sm:$0xff] }
 0x211   : > { %1139 = vperm.xlu0 %7168, %v1134_v23   ;;  %v8289_v51 = vadd.f32 %v8057_v32, %v11984_v1  ;;  %v1543_v32 = vperm.slane %v8190_v44, %v8132_v7 }
 0x212   : > { %v1608_v6 = vsel %vm1597_vm6, %v1539_v43, %v1607_v53  ;;  %v8294_v53 = vadd.f32 %v8029_v39, %v11986_v47 }
 0x213   : > { %v1410_v48 = vpop.permute.xlu0 %1409  ;;  %v1609_v36 = vsel %vm1599_vm7, %v1540_v22, %v1608_v6  ;;  %11985 = vst [vmem:[#allocation27_spill] sm:$0xff] %v8289_v51 }
 0x214   : > { %1502 = vperm.xlu2 %7165, %v8270_v9   ;;  %v1610_v23 = vsel %vm1601_vm8, %v1541_v25, %v1609_v36  ;;  %11987 = vst [vmem:[#allocation32_spill] sm:$0xff] %v8294_v53  ;;  %v1612_v25 = vsel %vm1591_vm3, %v1544_v50, %v1543_v32 }
 0x215   : > { %1505 = vperm.xlu1 %7166, %v8275_v58  }
 0x216   : > { %v1395_v12 = vpop.permute.xlu2 %1394 }
 0x217   : > { %v1380_v21 = vpop.permute.xlu1 %1379  ;;  %v1547_v44 = vperm.slane %v1395_v12, %v8132_v7 }
 0x218   : > { %v1542_v8 = vperm.slane %v1380_v21, %v8132_v7 }
 0x219   : > { %1752 = vrot.lane.b32.xlu0 %v1679_v10, %s7200_s14  ;;  %v11988_v10 = vld [vmem:[#allocation30_spill] sm:$0xff] }
 0x21a   : > { %v1611_v43 = vsel %vm1603_vm9, %v1542_v8, %v1610_v23  ;;  %v8305_v39 = vadd.f32 %v8087_v63, %v11988_v10  ;;  %v1546_v23 = vperm.slane %v8234_v13, %v8132_v7  ;;  %v1549_v63 = vperm.slane %v1401_v59, %v8132_v7  ;;  %v8320_v10 = vld [vmem:[#allocation2 + $0x11] sm:$0xff] }
 0x21b   : > { %1664 = vst.msk [vmem:[#allocation2 + $0x21] sm:$0xff] %vm300_vm1, %v1611_v43  ;;  %v1419_v49 = vpop.permute.xlu0 %1418 }
 0x21c   : > { %1511 = vperm.xlu2 %7165, %v8289_v51   ;;  %11989 = vst [vmem:[#allocation30_spill] sm:$0xff] %v8305_v39 }
 0x21d   : > { %1514 = vperm.xlu1 %7166, %v8294_v53  }
 0x21e   : > { %v1404_v6 = vpop.permute.xlu2 %1403 }
 0x21f   : > { %v1389_v22 = vpop.permute.xlu1 %1388 }
 0x220   : > { %v1545_v36 = vperm.slane %v1389_v22, %v8132_v7  ;;  %v1550_v22 = vperm.slane %v1404_v6, %v8132_v7 }
 0x222   : > { %v1613_v21 = vsel %vm1593_vm4, %v1545_v36, %v1612_v25 }
 0x223   : > { %v1428_v8 = vpop.permute.xlu0 %1427  ;;  %v1614_v60 = vsel %vm1595_vm5, %v1546_v23, %v1613_v21 }
 0x224   : > { %1520 = vperm.xlu2 %7165, %v8305_v39   ;;  %v1615_v50 = vsel %vm1597_vm6, %v1547_v44, %v1614_v60  ;;  %v1552_v60 = vperm.slane %v1410_v48, %v8132_v7 }
 0x226   : > { %v1413_v1 = vpop.permute.xlu2 %1412 }
 0x227   : > { %v1398_v43 = vpop.permute.xlu1 %1397 }
 0x228   : > { %v1548_v47 = vperm.slane %v1398_v43, %v8132_v7 }
 0x22a   : > { %v1616_v32 = vsel %vm1599_vm7, %v1548_v47, %v1615_v50 }
 0x22b   : > { %v1617_v13 = vsel %vm1601_vm8, %v1549_v63, %v1616_v32  ;;  %v1437_v36 = vpop.permute.xlu0 %1436  ;;  %v1553_v63 = vperm.slane %v1413_v1, %v8132_v7 }
 0x22c   : > { %v1618_v25 = vsel %vm1603_vm9, %v1550_v22, %v1617_v13  ;;  %1754 = vrot.lane.b32.xlu2 %v8320_v10, %s7200_s14 }
 0x22d   : > { %1665 = vst.msk [vmem:[#allocation2 + $0x31] sm:$0xff] %vm300_vm1, %v1618_v25  ;;  %7170 = vset.pattern.permute.xlu2 %v11975_v61  ;;  %v1555_v25 = vperm.slane %v1419_v49, %v8132_v7 }
 0x22e   : > { %v1422_v59 = vpop.permute.xlu2 %1421 }
 0x22f   : > { %v1407_v12 = vpop.permute.xlu1 %1406  ;;  %v1556_v53 = vperm.slane %v1422_v59, %v8132_v7 }
 0x230   : > { %v1551_v6 = vperm.slane %v1407_v12, %v8132_v7 }
 0x232   : > { %v1619_v43 = vsel %vm1591_vm3, %v1552_v60, %v1551_v6  ;;  %v1558_v60 = vperm.slane %v1428_v8, %v8132_v7 }
 0x233   : > { %v1446_v21 = vpop.permute.xlu0 %1445  ;;  %v1620_v22 = vsel %vm1593_vm4, %v1553_v63, %v1619_v43 }
 0x234   : > { %v8328_v23 = vld [vmem:[#allocation2 + $0x31] sm:$0xff] }
 0x235   : > { %1758 = vrot.lane.b32.xlu0 %v8328_v23, %s7200_s14 }
 0x236   : > { %v1431_v44 = vpop.permute.xlu2 %1430 }
 0x237   : > { %v1416_v47 = vpop.permute.xlu1 %1415  ;;  %v1559_v59 = vperm.slane %v1431_v44, %v8132_v7 }
 0x238   : > { %v1554_v50 = vperm.slane %v1416_v47, %v8132_v7 }
 0x23a   : > { %v1621_v32 = vsel %vm1595_vm5, %v1554_v50, %v1620_v22 }
 0x23b   : > { %v1455_v13 = vpop.permute.xlu0 %1454  ;;  %v1622_v48 = vsel %vm1597_vm6, %v1555_v25, %v1621_v32 }
 0x23c   : > { %v1623_v1 = vsel %vm1599_vm7, %v1556_v53, %v1622_v48  ;;  %v1561_v53 = vperm.slane %v1437_v36, %v8132_v7 }
 0x23e   : > { %v1440_v12 = vpop.permute.xlu2 %1439 }
 0x23f   : > { %v1425_v39 = vpop.permute.xlu1 %1424 }
 0x240   : > { %v1557_v6 = vperm.slane %v1425_v39, %v8132_v7 }
 0x242   : > { %v1624_v47 = vsel %vm1601_vm8, %v1557_v6, %v1623_v1  ;;  %v1562_v6 = vperm.slane %v1440_v12, %v8132_v7 }
 0x243   : > { %v1625_v43 = vsel %vm1603_vm9, %v1558_v60, %v1624_v47  ;;  %v1464_v63 = vpop.permute.xlu0 %1463 }
 0x244   : > { %1666 = vst.msk [vmem:[#allocation2 + $0x41] sm:$0xff] %vm300_vm1, %v1625_v43 }
 0x246   : > { %v1449_v50 = vpop.permute.xlu2 %1448 }
 0x247   : > { %v1434_v49 = vpop.permute.xlu1 %1433 }
 0x248   : > { %v1560_v22 = vperm.slane %v1434_v49, %v8132_v7  ;;  %v1564_v49 = vperm.slane %v1446_v21, %v8132_v7  ;;  %v1567_v21 = vperm.slane %v1455_v13, %v8132_v7 }
 0x24a   : > { %v1626_v39 = vsel %vm1591_vm3, %v1560_v22, %v1559_v59  ;;  %v1565_v59 = vperm.slane %v1449_v50, %v8132_v7 }
 0x24b   : > { %v1473_v32 = vpop.permute.xlu0 %1472  ;;  %v8349_v25 = vld [vmem:[#allocation2 + $0x41] sm:$0xff]  ;;  %v1627_v8 = vsel %vm1593_vm4, %v1561_v53, %v1626_v39 }
 0x24c   : > { %1760 = vrot.lane.b32.xlu2 %v8349_v25, %s7200_s14  ;;  %v1628_v44 = vsel %vm1595_vm5, %v1562_v6, %v1627_v8 }
 0x24e   : > { %v1458_v1 = vpop.permute.xlu2 %1457 }
 0x24f   : > { %v1443_v48 = vpop.permute.xlu1 %1442  ;;  %v1568_v6 = vperm.slane %v1458_v1, %v8132_v7 }
 0x250   : > { %v1563_v60 = vperm.slane %v1443_v48, %v8132_v7 }
 0x251   : > { %v1633_v50 = vsel %vm1591_vm3, %v1568_v6, %v1567_v21 }
 0x252   : > { %v1629_v47 = vsel %vm1597_vm6, %v1563_v60, %v1628_v44 }
 0x253   : > { %v1482_v43 = vpop.permute.xlu0 %1481  ;;  %v1630_v22 = vsel %vm1599_vm7, %v1564_v49, %v1629_v47  ;;  %v1570_v49 = vperm.slane %v1464_v63, %v8132_v7 }
 0x254   : > { %v1631_v53 = vsel %vm1601_vm8, %v1565_v59, %v1630_v22 }
 0x256   : > { %v1467_v48 = vpop.permute.xlu2 %1466 }
 0x257   : > { %v1452_v36 = vpop.permute.xlu1 %1451 }
 0x258   : > { %v1566_v39 = vperm.slane %v1452_v36, %v8132_v7  ;;  %v1571_v36 = vperm.slane %v1467_v48, %v8132_v7 }
 0x25a   : > { %v1632_v12 = vsel %vm1603_vm9, %v1566_v39, %v1631_v53 }
 0x25b   : > { %1667 = vst.msk [vmem:[#allocation2 + $0x51] sm:$0xff] %vm300_vm1, %v1632_v12  ;;  %v1491_v8 = vpop.permute.xlu0 %1490  ;;  %v1573_v12 = vperm.slane %v1473_v32, %v8132_v7  ;;  %v1576_v32 = vperm.slane %v1482_v43, %v8132_v7  ;;  %v8399_v43 = vld [vmem:[#allocation2 + $0x12] sm:$0xff] }
 0x25e   : > { %v1476_v22 = vpop.permute.xlu2 %1475 }
 0x25f   : > { %v1461_v60 = vpop.permute.xlu1 %1460 }
 0x260   : > { %v1569_v44 = vperm.slane %v1461_v60, %v8132_v7  ;;  %v1574_v60 = vperm.slane %v1476_v22, %v8132_v7 }
 0x262   : > { %v1634_v47 = vsel %vm1593_vm4, %v1569_v44, %v1633_v50 }
 0x263   : > { %v1635_v59 = vsel %vm1595_vm5, %v1570_v49, %v1634_v47  ;;  %v1500_v39 = vpop.permute.xlu0 %1499 }
 0x264   : > { %v1636_v13 = vsel %vm1597_vm6, %v1571_v36, %v1635_v59 }
 0x266   : > { %v1485_v50 = vpop.permute.xlu2 %1484 }
 0x267   : > { %v1470_v53 = vpop.permute.xlu1 %1469  ;;  %v1577_v36 = vperm.slane %v1485_v50, %v8132_v7 }
 0x268   : > { %v1572_v1 = vperm.slane %v1470_v53, %v8132_v7 }
 0x26a   : > { %v1637_v6 = vsel %vm1599_vm7, %v1572_v1, %v1636_v13 }
 0x26b   : > { %v1638_v21 = vsel %vm1601_vm8, %v1573_v12, %v1637_v6  ;;  %v8383_v48 = vpop.permute.xlu0 %1508 }
 0x26c   : > { %v1639_v63 = vsel %vm1603_vm9, %v1574_v60, %v1638_v21  ;;  %v1579_v60 = vperm.slane %v1491_v8, %v8132_v7  ;;  %v1585_v55 = vperm.slane %v8383_v48, %v8132_v7 }
 0x26d   : > { %1668 = vst.msk [vmem:[#allocation2 + $0x61] sm:$0xff] %vm300_vm1, %v1639_v63 }
 0x26e   : > { %v1494_v6 = vpop.permute.xlu2 %1493 }
 0x26f   : > { %v1479_v44 = vpop.permute.xlu1 %1478  ;;  %v1580_v63 = vperm.slane %v1494_v6, %v8132_v7  ;;  %v8432_v6 = vld [vmem:[#allocation2 + $0x22] sm:$0xff] }
 0x270   : > { %v1575_v47 = vperm.slane %v1479_v44, %v8132_v7 }
 0x272   : > { %v1640_v22 = vsel %vm1591_vm3, %v1576_v32, %v1575_v47  ;;  %v1582_v47 = vperm.slane %v1500_v39, %v8132_v7 }
 0x273   : > { %v1641_v1 = vsel %vm1593_vm4, %v1577_v36, %v1640_v22  ;;  %v8395_v12 = vpop.permute.xlu0 %1517  ;;  %v11990_v36 = vld [vmem:[#allocation34_spill] sm:$0xff] }
 0x274   : > { %v8386_v49 = vld [vmem:[#allocation2 + $0x61] sm:$0xff] }
 0x275   : > { %1764 = vrot.lane.b32.xlu0 %v8386_v49, %s7200_s14 }
 0x277   : > { %v1488_v59 = vpop.permute.xlu1 %1487 }
 0x278   : > { %v1578_v53 = vperm.slane %v1488_v59, %v8132_v7 }
 0x27a   : > { %v1642_v13 = vsel %vm1595_vm5, %v1578_v53, %v1641_v1  ;;  %v8414_v1 = vld [vmem:[#allocation2 + $0x42] sm:$0xff] }
 0x27b   : > { %v1643_v21 = vsel %vm1597_vm6, %v1579_v60, %v1642_v13  ;;  %v8427_v60 = vld [vmem:[#allocation2 + $0x21] sm:$0xff] }
 0x27c   : > { %v1644_v32 = vsel %vm1599_vm7, %v1580_v63, %v1643_v21  ;;  %v8436_v21 = vld [vmem:[#allocation2 + $0x30] sm:$0xff] }
 0x27d   : > { %1786 = vrot.lane.b32.xlu0 %v8399_v43, %s7201_s15  ;;  %v8440_v63 = vld [vmem:[#allocation2 + $0x51] sm:$0xff] }
 0x27f   : > { %v1497_v44 = vpop.permute.xlu1 %1496 }
 0x280   : > { %v1581_v50 = vperm.slane %v1497_v44, %v8132_v7  ;;  %v8444_v44 = vld [vmem:[#allocation2 + $0x52] sm:$0xff] }
 0x282   : > { %v1645_v8 = vsel %vm1601_vm8, %v1581_v50, %v1644_v32  ;;  %v1687_v50 = vld [vmem:[#allocation2 + $0x2] sm:$0xff]  ;;  %v8453_v32 = vld [vmem:[#allocation2 + $0x10] sm:$0xff] }
 0x283   : > { %v1646_v22 = vsel %vm1603_vm9, %v1582_v47, %v1645_v8  ;;  %v1140_v59 = vpop.permute.xlu0 %1139  ;;  %v8448_v47 = vld [vmem:[#allocation2 + $0x60] sm:$0xff]  ;;  %v8459_v8 = vld [vmem:[#allocation2 + $0x32] sm:$0xff] }
 0x284   : > { %1669 = vst.msk [vmem:[#allocation2 + $0x71] sm:$0xff] %vm300_vm1, %v1646_v22  ;;  %v8412_v53 = vadd.f32 %v1140_v59, %v11990_v36  ;;  %v8463_v22 = vld [vmem:[#allocation2 + $0x40] sm:$0xff] }
 0x285   : > { %1792 = vrot.lane.b32.xlu0 %v8414_v1, %s7201_s15  ;;  %v8469_v59 = vld [vmem:[#allocation2 + $0x62] sm:$0xff] }
 0x286   : > { %11991 = vst [vmem:[#allocation34_spill] sm:$0xff] %v8412_v53  ;;  %1523 = vperm.xlu1 %7166, %v8412_v53   ;;  %v1503_v53 = vpop.permute.xlu2 %1502 }
 0x287   : > { %v1506_v58 = vpop.permute.xlu1 %1505 }
 0x288   : > { %v1584_v51 = vperm.slane %v1506_v58, %v8132_v7  ;;  %v1588_v58 = vperm.slane %v8395_v12, %v8132_v7 }
 0x28b   : > { %v8419_v39 = vld [vmem:[#allocation2 + $0x71] sm:$0xff]  ;;  %v8509_v35 = vpop.permute.xlu0 %1752 }
 0x28c   : > { %v8421_v13 = vld [vmem:[#allocation2 + $0x72] sm:$0xff]  ;;  %1766 = vrot.lane.b32.xlu2 %v8419_v39, %s7200_s14 }
 0x28d   : > { %1798 = vrot.lane.b32.xlu0 %v8421_v13, %s7201_s15  ;;  %v8473_v36 = vld [vmem:[#allocation2 + $0x70] sm:$0xff] }
 0x28e   : > { %1756 = vrot.lane.b32.xlu1 %v8427_v60, %s7200_s14  ;;  %v1512_v9 = vpop.permute.xlu2 %1511 }
 0x28f   : > { %7169 = vset.pattern.permute.xlu1 %v11975_v61  ;;  %v1583_v61 = vperm.slane %v1503_v53, %v8132_v7  ;;  %v1515_v11 = vpop.permute.xlu1 %1514  ;;  %v1586_v38 = vperm.slane %v1512_v9, %v8132_v7 }
 0x290   : > { %v1587_v45 = vperm.slane %v1515_v11, %v8132_v7 }
 0x291   : > { %v1647_v0 = vsel %vm1591_vm3, %v1584_v51, %v1583_v61 }
 0x292   : > { %v1648_v62 = vsel %vm1593_vm4, %v1585_v55, %v1647_v0 }
 0x293   : > { %v1649_v3 = vsel %vm1595_vm5, %v1586_v38, %v1648_v62 }
 0x294   : > { %1788 = vrot.lane.b32.xlu2 %v8432_v6, %s7201_s15  ;;  %v1650_v57 = vsel %vm1597_vm6, %v1587_v45, %v1649_v3 }
 0x295   : > { %1820 = vrot.lane.b32.xlu0 %v8436_v21, %s7202_s16  ;;  %v1651_v61 = vsel %vm1599_vm7, %v1588_v58, %v1650_v57 }
 0x296   : > { %1762 = vrot.lane.b32.xlu1 %v8440_v63, %s7200_s14  ;;  %v1521_v53 = vpop.permute.xlu2 %1520 }
 0x297   : > { %v1589_v51 = vperm.slane %v1521_v53, %v8132_v7 }
 0x299   : > { %v1652_v11 = vsel %vm1601_vm8, %v1589_v51, %v1651_v61 }
 0x29c   : > { %1794 = vrot.lane.b32.xlu2 %v8444_v44, %s7201_s15 }
 0x29d   : > { %1826 = vrot.lane.b32.xlu0 %v8448_v47, %s7202_s16 }
 0x29e   : > { %1784 = vrot.lane.b32.xlu1 %v1687_v50, %s7201_s15  ;;  %v8487_v50 = vld [vmem:[#allocation2 + $0x50] sm:$0xff]  ;;  %v8523_v57 = vpop.permute.xlu2 %1754 }
 0x2a4   : > { %1816 = vrot.lane.b32.xlu2 %v8453_v32, %s7202_s16 }
 0x2a5   : > { %1848 = vrot.lane.b32.xlu0 %v8320_v10, %s7203_s17  ;;  %v8479_v10 = vld [vmem:[#allocation2 + $0x20] sm:$0xff] }
 0x2a6   : > { %1790 = vrot.lane.b32.xlu1 %v8459_v8, %s7201_s15  ;;  %v8533_v12 = vpop.permute.xlu2 %1760 }
 0x2a7   : > { %v8515_v38 = vpop.permute.xlu0 %1758 }
 0x2ac   : > { %1822 = vrot.lane.b32.xlu2 %v8463_v22, %s7202_s16 }
 0x2ad   : > { %1854 = vrot.lane.b32.xlu0 %v8349_v25, %s7203_s17 }
 0x2ae   : > { %1796 = vrot.lane.b32.xlu1 %v8469_v59, %s7201_s15 }
 0x2b4   : > { %1828 = vrot.lane.b32.xlu2 %v8473_v36, %s7202_s16 }
 0x2b5   : > { %1860 = vrot.lane.b32.xlu0 %v8419_v39, %s7203_s17 }
 0x2b6   : > { %1818 = vrot.lane.b32.xlu1 %v8479_v10, %s7202_s16 }
 0x2bc   : > { %1850 = vrot.lane.b32.xlu2 %v8427_v60, %s7203_s17 }
 0x2bd   : > { %1882 = vrot.lane.b32.xlu0 %v8432_v6, %s7204_s18 }
 0x2be   : > { %1824 = vrot.lane.b32.xlu1 %v8487_v50, %s7202_s16 }
 0x2c4   : > { %1856 = vrot.lane.b32.xlu2 %v8440_v63, %s7203_s17 }
 0x2c5   : > { %1888 = vrot.lane.b32.xlu0 %v8444_v44, %s7204_s18 }
 0x2e6   : > { %v8543_v53 = vpop.permute.xlu2 %1766 }
 0x2e7   : > { %v8525_v9 = vpop.permute.xlu0 %1764 }
 0x2ee   : > { %v8553_v51 = vpop.permute.xlu2 %1788 }
 0x2ef   : > { %v8535_v58 = vpop.permute.xlu0 %1786 }
 0x2f7   : > { %v8551_v61 = vpop.permute.xlu0 %1792 }
 0x2f8   : > { %v1524_v48 = vpop.permute.xlu1 %1523 }
 0x2f9   : > { %v1590_v55 = vperm.slane %v1524_v48, %v8132_v7  ;;  %v8563_v48 = vpop.permute.xlu2 %1794 }
 0x2fb   : > { %v1653_v0 = vsel %vm1603_vm9, %v1590_v55, %v1652_v11 }
 0x2fc   : > { %1670 = vst.msk [vmem:[#allocation2 + $0x81] sm:$0xff] %vm300_vm1, %v1653_v0 }
 0x301   : > { %v8573_v55 = vpop.permute.xlu2 %1816 }
 0x303   : > { %v8517_v3 = vld [vmem:[#allocation2 + $0x82] sm:$0xff] }
 0x304   : > { %v1710_v45 = vld [vmem:[#allocation2 + $0x81] sm:$0xff]  ;;  %1894 = vrot.lane.b32.xlu0 %v8517_v3, %s7204_s18 }
 0x305   : > { %v1702_v62 = vld [vmem:[#allocation2 + $0x80] sm:$0xff]  ;;  %1862 = vrot.lane.b32.xlu2 %v1710_v45, %s7203_s17 }
 0x306   : > { %1830 = vrot.lane.b32.xlu1 %v1702_v62, %s7202_s16 }
 0x30c   : > { %1916 = vrot.lane.b32.xlu0 %v8463_v22, %s7205_s19 }
 0x30d   : > { %1884 = vrot.lane.b32.xlu2 %v8459_v8, %s7204_s18 }
 0x30e   : > { %1852 = vrot.lane.b32.xlu1 %v8328_v23, %s7203_s17 }
 0x314   : > { %1922 = vrot.lane.b32.xlu0 %v8473_v36, %s7205_s19 }
 0x315   : > { %1890 = vrot.lane.b32.xlu2 %v8469_v59, %s7204_s18 }
 0x316   : > { %1858 = vrot.lane.b32.xlu1 %v8386_v49, %s7203_s17 }
 0x31c   : > { %1944 = vrot.lane.b32.xlu0 %v8427_v60, %s7206_s20  ;;  %v8561_v60 = vpop.permute.xlu0 %1798 }
 0x31d   : > { %1912 = vrot.lane.b32.xlu2 %v8479_v10, %s7205_s19 }
 0x31e   : > { %1880 = vrot.lane.b32.xlu1 %v8399_v43, %s7204_s18 }
 0x324   : > { %1950 = vrot.lane.b32.xlu0 %v8440_v63, %s7206_s20  ;;  %v8569_v43 = vpop.permute.xlu0 %1820  ;;  %v8571_v63 = vpop.permute.xlu1 %1756 }
 0x325   : > { %1918 = vrot.lane.b32.xlu2 %v8487_v50, %s7205_s19 }
 0x326   : > { %1886 = vrot.lane.b32.xlu1 %v8414_v1, %s7204_s18 }
 0x32c   : > { %1956 = vrot.lane.b32.xlu0 %v1710_v45, %s7206_s20  ;;  %v8581_v11 = vpop.permute.xlu0 %1826  ;;  %v8587_v0 = vpop.permute.xlu1 %1762  ;;  %v1735_v45 = vld [vmem:[#allocation2 + $0x91] sm:$0xff] }
 0x32d   : > { %1924 = vrot.lane.b32.xlu2 %v1702_v62, %s7205_s19  ;;  %v1727_v62 = vld [vmem:[#allocation2 + $0x90] sm:$0xff] }
 0x32e   : > { %1892 = vrot.lane.b32.xlu1 %v8421_v13, %s7204_s18 }
 0x334   : > { %1978 = vrot.lane.b32.xlu0 %v8459_v8, %s7207_s21  ;;  %v8591_v8 = vpop.permute.xlu2 %1822  ;;  %v8598_v7 = vpop.permute.xlu1 %1784 }
 0x335   : > { %1946 = vrot.lane.b32.xlu2 %v8328_v23, %s7206_s20  ;;  %v1743_v23 = vld [vmem:[#allocation2 + $0x92] sm:$0xff] }
 0x336   : > { %1914 = vrot.lane.b32.xlu1 %v8436_v21, %s7205_s19 }
 0x33c   : > { %1984 = vrot.lane.b32.xlu0 %v8469_v59, %s7207_s21  ;;  %v8596_v59 = vpop.permute.xlu0 %1848  ;;  %v8608_v46 = vpop.permute.xlu1 %1790 }
 0x33d   : > { %1952 = vrot.lane.b32.xlu2 %v8386_v49, %s7206_s20  ;;  %v8600_v49 = vpop.permute.xlu2 %1828 }
 0x33e   : > { %1920 = vrot.lane.b32.xlu1 %v8448_v47, %s7205_s19 }
 0x344   : > { %1990 = vrot.lane.b32.xlu0 %v1743_v23, %s7207_s21  ;;  %v8606_v33 = vpop.permute.xlu0 %1854 }
 0x345   : > { %1958 = vrot.lane.b32.xlu2 %v1735_v45, %s7206_s20  ;;  %v8610_v45 = vpop.permute.xlu2 %1850 }
 0x346   : > { %1926 = vrot.lane.b32.xlu1 %v1727_v62, %s7205_s19  ;;  %v8618_v62 = vpop.permute.xlu1 %1796 }
 0x34c   : > { %v8616_v23 = vpop.permute.xlu0 %1860 }
 0x34d   : > { %1980 = vrot.lane.b32.xlu2 %v8414_v1, %s7207_s21  ;;  %v8620_v1 = vpop.permute.xlu2 %1856 }
 0x34e   : > { %1948 = vrot.lane.b32.xlu1 %v8349_v25, %s7206_s20  ;;  %v8628_v26 = vpop.permute.xlu1 %1818 }
 0x354   : > { %v8624_v25 = vpop.permute.xlu0 %1882 }
 0x355   : > { %1986 = vrot.lane.b32.xlu2 %v8421_v13, %s7207_s21 }
 0x356   : > { %1954 = vrot.lane.b32.xlu1 %v8419_v39, %s7206_s20  ;;  %v1825_v37 = vpop.permute.xlu1 %1824 }
 0x35c   : > { %v1889_v39 = vpop.permute.xlu0 %1888 }
 0x35e   : > { %1976 = vrot.lane.b32.xlu1 %v8432_v6, %s7207_s21 }
 0x35f   : > { %v8626_v31 = vpop.permute.xlu2 %1862 }
 0x366   : > { %1982 = vrot.lane.b32.xlu1 %v8444_v44, %s7207_s21  ;;  %v2078_v44 = vld [vmem:[%s11718_s3 + $0x40] sm:$0xff] }
 0x367   : > { %v8634_v13 = vpop.permute.xlu2 %1884  ;;  %7108 = vmatpush.msra.mxu2 %v2078_v44  ;;  %2111 = vmatpush.msra.mxu0 %v2078_v44  ;;  %v2074_v44 = vld [vmem:[%s11718_s3 + $0x20] sm:$0xff] }
 0x36e   : > { %1988 = vrot.lane.b32.xlu1 %v8517_v3, %s7207_s21  ;;  %v2077_v3 = vld [vmem:[%s11718_s3 + $0x38] sm:$0xff] }
 0x36f   : > { %v8640_v6 = vpop.permute.xlu2 %1890  ;;  %7109 = vmatpush.msra.mxu2 %v2077_v3  ;;  %2112 = vmatpush.msra.mxu0 %v2077_v3 }
 0x371   : > { %7110 = vmatpush.msra.mxu2 %v2076_v27  ;;  %2113 = vmatpush.msra.mxu0 %v2076_v27  ;;  %v2072_v27 = vld [vmem:[%s11718_s3 + $0x10] sm:$0xff] }
 0x373   : > { %7111 = vmatpush.msra.mxu2 %v2075_v19  ;;  %2114 = vmatpush.msra.mxu0 %v2075_v19  ;;  %v2071_v19 = vld [vmem:[%s11718_s3 + $0x8] sm:$0xff] }
 0x375   : > { %7112 = vmatpush.msra.mxu2 %v2074_v44  ;;  %2115 = vmatpush.msra.mxu0 %v2074_v44  ;;  %v2070_v44 = vld [vmem:[%s11718_s3] sm:$0xff] }
 0x376   : > { %v8636_v20 = vpop.permute.xlu0 %1894 }
 0x377   : > { %v8649_v2 = vpop.permute.xlu2 %1912  ;;  %7113 = vmatpush.msra.mxu2 %v2073_v42  ;;  %2116 = vmatpush.msra.mxu0 %v2073_v42 }
 0x378   : > { %v8638_v15 = vpop.permute.xlu1 %1830 }
 0x379   : > { %7114 = vmatpush.msra.mxu2 %v2072_v27  ;;  %2117 = vmatpush.msra.mxu0 %v2072_v27 }
 0x37b   : > { %7115 = vmatpush.msra.mxu2 %v2071_v19  ;;  %2118 = vmatpush.msra.mxu0 %v2071_v19  ;;  %v2004_v19 = vsel %vm300_vm1, %v8463_v22, %v8533_v12 }
 0x37d   : > { %7116 = vmatpush.msra.mxu2 %v2070_v44  ;;  %2119 = vmatpush.msra.mxu0 %v2070_v44  ;;  %v2012_v44 = vsel %vm484_vm0, %v2004_v19, %v8551_v61 }
 0x37e   : > { %v8642_v34 = vpop.permute.xlu0 %1916  ;;  %v2021_v56 = vsel %vm2016_vm10, %v2012_v44, %v1825_v37 }
 0x37f   : > { %v8671_v3 = vpop.permute.xlu2 %1918  ;;  %v2030_v41 = vsel %vm2025_vm11, %v2021_v56, %v8620_v1  ;;  %v2005_v56 = vsel %vm300_vm1, %v8487_v50, %v8587_v0 }
 0x380   : > { %v8644_v5 = vpop.permute.xlu1 %1852  ;;  %11992 = vst [vmem:[#allocation71_spill] sm:$0xff] %v8671_v3  ;;  %v2039_v17 = vsel %vm2034_vm12, %v2030_v41, %v1889_v39  ;;  %v1671_v41 = vld [vmem:[#allocation2] sm:$0xff] }
 0x386   : > { %v8657_v54 = vpop.permute.xlu0 %1922 }
 0x387   : > { %v8681_v16 = vpop.permute.xlu2 %1924 }
 0x388   : > { %v1859_v52 = vpop.permute.xlu1 %1858 }
 0x38e   : > { %v8673_v40 = vpop.permute.xlu0 %1944 }
 0x38f   : > { %v1947_v14 = vpop.permute.xlu2 %1946 }
 0x390   : > { %v1881_v4 = vpop.permute.xlu1 %1880 }
 0x396   : > { %v8683_v42 = vpop.permute.xlu0 %1950 }
 0x397   : > { %11993 = vst [vmem:[#allocation72_spill] sm:$0xff] %v8683_v42  ;;  %v1953_v30 = vpop.permute.xlu2 %1952 }
 0x398   : > { %v8685_v28 = vpop.permute.xlu1 %1886 }
 0x39e   : > { %v8687_v27 = vpop.permute.xlu0 %1956 }
 0x39f   : > { %v8706_v37 = vpop.permute.xlu2 %1958 }
 0x3a0   : > { %v8689_v18 = vpop.permute.xlu1 %1892 }
 0x3a6   : > { %v8691_v24 = vpop.permute.xlu0 %1978 }
 0x3a7   : > { %v1981_v1 = vpop.permute.xlu2 %1980 }
 0x3a8   : > { %v1915_v29 = vpop.permute.xlu1 %1914 }
 0x3ae   : > { %v1985_v22 = vpop.permute.xlu0 %1984 }
 0x3b0   : > { %v1921_v42 = vpop.permute.xlu1 %1920 }
 0x3b1   : > { %v2048_v3 = vsel %vm2043_vm13, %v2039_v17, %v1921_v42  ;;  %v2013_v17 = vsel %vm484_vm0, %v2005_v56, %v8563_v48 }
 0x3b2   : > { %v2057_v12 = vsel %vm2052_vm14, %v2048_v3, %v1953_v30  ;;  %v2022_v30 = vsel %vm2016_vm10, %v2013_v17, %v8581_v11  ;;  %v2000_v3 = vsel %vm300_vm1, %v1671_v41, %v8509_v35  ;;  %v11995_v17 = vld [vmem:[#allocation72_spill] sm:$0xff] }
 0x3b3   : > { %v2066_v61 = vsel %vm2061_vm2, %v2057_v12, %v1985_v22  ;;  %v2031_v42 = vsel %vm2025_vm11, %v2022_v30, %v1859_v52  ;;  %v2008_v44 = vsel %vm484_vm0, %v2000_v3, %v8598_v7  ;;  %v1987_v12 = vpop.permute.xlu2 %1986  ;;  %v2170_v3 = vld [vmem:[#allocation3 + $0x1] sm:$0xff] }
 0x3b4   : > { %7040 = vmatmul.msk.f32.vlgmr.msra.gmra.mxu2 %vm2079_vm15, %v2066_v61  ;;  %v2040_v50 = vsel %vm2034_vm12, %v2031_v42, %v8640_v6  ;;  %v2017_v0 = vsel %vm2016_vm10, %v2008_v44, %v8573_v55  ;;  %v2001_v55 = vsel %vm300_vm1, %v8453_v32, %v8523_v57  ;;  %v2002_v32 = vsel %vm300_vm1, %v8479_v10, %v8571_v63 }
 0x3b5   : > { %v2049_v48 = vsel %vm2043_vm13, %v2040_v50, %v8657_v54  ;;  %v2026_v11 = vsel %vm2025_vm11, %v2017_v0, %v8596_v59  ;;  %v2009_v54 = vsel %vm484_vm0, %v2001_v55, %v8535_v58  ;;  %2243 = vrot.lane.b32.xlu2 %v2170_v3, %s7200_s14 }
 0x3b6   : > { %v2035_v52 = vsel %vm2034_vm12, %v2026_v11, %v1881_v4  ;;  %v2018_v59 = vsel %vm2016_vm10, %v2009_v54, %v8628_v26  ;;  %v2010_v26 = vsel %vm484_vm0, %v2002_v32, %v8553_v51  ;;  %v2007_v51 = vsel %vm300_vm1, %v8473_v36, %v8543_v53 }
 0x3b7   : > { %v2044_v6 = vsel %vm2043_vm13, %v2035_v52, %v8649_v2  ;;  %v2027_v56 = vsel %vm2025_vm11, %v2018_v59, %v8610_v45  ;;  %v2019_v10 = vsel %vm2016_vm10, %v2010_v26, %v8569_v43  ;;  %v2015_v43 = vsel %vm484_vm0, %v2007_v51, %v8561_v60 }
 0x3b8   : > { %v8708_v19 = vpop.permute.xlu1 %1926  ;;  %v2053_v4 = vsel %vm2052_vm14, %v2044_v6, %v8673_v40  ;;  %v2036_v57 = vsel %vm2034_vm12, %v2027_v56, %v8624_v25  ;;  %v2006_v40 = vsel %vm300_vm1, %v8448_v47, %v8525_v9  ;;  %v2028_v45 = vsel %vm2025_vm11, %v2019_v10, %v8644_v5  ;;  %v2178_v56 = vld [vmem:[#allocation3 + $0x2] sm:$0xff] }
 0x3b9   : > { %v2045_v2 = vsel %vm2043_vm13, %v2036_v57, %v1915_v29  ;;  %v2014_v58 = vsel %vm484_vm0, %v2006_v40, %v8618_v62 }
 0x3ba   : > { %v2054_v63 = vsel %vm2052_vm14, %v2045_v2, %v1947_v14  ;;  %v2023_v29 = vsel %vm2016_vm10, %v2014_v58, %v8600_v49  ;;  %v2037_v14 = vsel %vm2034_vm12, %v2028_v45, %v8634_v13  ;;  %v2003_v49 = vsel %vm300_vm1, %v8436_v21, %v8515_v38  ;;  %v11994_v13 = vld [vmem:[#allocation71_spill] sm:$0xff] }
 0x3bb   : > { %v2032_v47 = vsel %vm2025_vm11, %v2023_v29, %v8616_v23  ;;  %v2063_v9 = vsel %vm2061_vm2, %v2054_v63, %v8691_v24  ;;  %v2024_v24 = vsel %vm2016_vm10, %v2015_v43, %v8638_v15  ;;  %v2011_v36 = vsel %vm484_vm0, %v2003_v49, %v8608_v46 }
 0x3bc   : > { %v2041_v5 = vsel %vm2034_vm12, %v2032_v47, %v8689_v18  ;;  %v2046_v53 = vsel %vm2043_vm13, %v2037_v14, %v8642_v34  ;;  %v2033_v60 = vsel %vm2025_vm11, %v2024_v24, %v8626_v31  ;;  %v2020_v21 = vsel %vm2016_vm10, %v2011_v36, %v8591_v8 }
 0x3bd   : > { %v2050_v18 = vsel %vm2043_vm13, %v2041_v5, %v8681_v16  ;;  %v2029_v46 = vsel %vm2025_vm11, %v2020_v21, %v8606_v33  ;;  %v2042_v16 = vsel %vm2034_vm12, %v2033_v60, %v8636_v20  ;;  %v2218_v21 = vld [vmem:[#allocation3 + $0x90] sm:$0xff] }
 0x3be   : > { %v2059_v15 = vsel %vm2052_vm14, %v2050_v18, %v8687_v27  ;;  %v2038_v31 = vsel %vm2034_vm12, %v2029_v46, %v8685_v28  ;;  %v2051_v8 = vsel %vm2043_vm13, %v2042_v16, %v8708_v19  ;;  %v1991_v27 = vpop.permute.xlu0 %1990 }
 0x3bf   : > { %v2047_v33 = vsel %vm2043_vm13, %v2038_v31, %v11994_v13 }
 0x3c0   : > { %v1949_v39 = vpop.permute.xlu1 %1948  ;;  %v2056_v20 = vsel %vm2052_vm14, %v2047_v33, %v11995_v17  ;;  %v2226_v17 = vld [vmem:[#allocation3 + $0x91] sm:$0xff] }
 0x3c1   : > { %v2055_v23 = vsel %vm2052_vm14, %v2046_v53, %v1949_v39 }
 0x3c2   : > { %v2064_v34 = vsel %vm2061_vm2, %v2055_v23, %v1981_v1  ;;  %v2060_v1 = vsel %vm2052_vm14, %v2051_v8, %v8706_v37 }
 0x3c3   : > { %v2069_v28 = vsel %vm2061_vm2, %v2060_v1, %v1991_v27 }
 0x3c8   : > { %v1955_v22 = vpop.permute.xlu1 %1954 }
 0x3c9   : > { %v2058_v35 = vsel %vm2052_vm14, %v2049_v48, %v1955_v22 }
 0x3ca   : > { %v2067_v7 = vsel %vm2061_vm2, %v2058_v35, %v1987_v12 }
 0x3cb   : > { %7041 = vmatmul.msk.f32.gmra.mxu2 %vm2079_vm15, %v2067_v7 }
 0x3d0   : > { %v1977_v61 = vpop.permute.xlu1 %1976 }
 0x3d1   : > { %v2062_v41 = vsel %vm2061_vm2, %v2053_v4, %v1977_v61 }
 0x3d2   : > { %7036 = vmatmul.msk.f32.vlgmr.msra.gmra.mxu0 %vm2079_vm15, %v2062_v41 }
 0x3d8   : > { %v1983_v25 = vpop.permute.xlu1 %1982 }
 0x3d9   : > { %v2065_v39 = vsel %vm2061_vm2, %v2056_v20, %v1983_v25 }
 0x3da   : > { %7037 = vmatmul.msk.f32.gmra.mxu0 %vm2079_vm15, %v2063_v9 }
 0x3e0   : > { %v1989_v38 = vpop.permute.xlu1 %1988 }
 0x3e1   : > { %v2068_v62 = vsel %vm2061_vm2, %v2059_v15, %v1989_v38 }
 0x3e2   : > { %7038 = vmatmul.msk.f32.gmra.mxu0 %vm2079_vm15, %v2064_v34  ;;  %7042 = vmatmul.msk.f32.gmra.mxu2 %vm2079_vm15, %v2068_v62 }
 0x3ea   : > { %7039 = vmatmul.msk.f32.gmra.mxu0 %vm2079_vm15, %v2065_v39  ;;  %7043 = vmatmul.msk.f32.gmra.mxu2 %vm2079_vm15, %v2069_v28 }
 0x40f   : > { %v8929_v24 = vpop.permute.xlu2 %2243 }
 0x437   : > { %v2133_v30 = vpop.f32.mrf.mxu2 }
 0x438   : > { %v2149_v19 = vmax.f32 %v2133_v30, 0.0 }
 0x43a   : > { %2158 = vst.msk [vmem:[#allocation3 + $0x51] sm:$0xff] %vm300_vm1, %v2149_v19 }
 0x441   : > { %v8837_v59 = vld [vmem:[#allocation3 + $0x51] sm:$0xff] }
 0x442   : > { %v8877_v45 = vld [vmem:[#allocation3 + $0x52] sm:$0xff] }
 0x443   : > { %v8887_v25 = vld [vmem:[#allocation3 + $0x50] sm:$0xff] }
 0x44e   : > { %v2136_v42 = vpop.f32.mrf.mxu2 }
 0x44f   : > { %v2150_v37 = vmax.f32 %v2136_v42, 0.0  ;;  %v2121_v44 = vpop.f32.mrf.mxu0  ;;  %v2234_v42 = vld [vmem:[#allocation3 + $0x92] sm:$0xff] }
 0x450   : > { %v2145_v50 = vmax.f32 %v2121_v44, 0.0 }
 0x451   : > { %2159 = vst.msk [vmem:[#allocation3 + $0x61] sm:$0xff] %vm300_vm1, %v2150_v37 }
 0x452   : > { %2154 = vst.msk [vmem:[#allocation3 + $0x11] sm:$0xff] %vm300_vm1, %v2145_v50 }
 0x457   : > { %v2124_v0 = vpop.f32.mrf.mxu0 }
 0x458   : > { %v2146_v48 = vmax.f32 %v2124_v0, 0.0  ;;  %v8850_v32 = vld [vmem:[#allocation3 + $0x61] sm:$0xff] }
 0x459   : > { %v2171_v22 = vld [vmem:[#allocation3 + $0x11] sm:$0xff]  ;;  %v8863_v26 = vld [vmem:[#allocation3 + $0x62] sm:$0xff] }
 0x45a   : > { %2155 = vst.msk [vmem:[#allocation3 + $0x21] sm:$0xff] %vm300_vm1, %v2146_v48  ;;  %2245 = vrot.lane.b32.xlu1 %v2171_v22, %s7200_s14  ;;  %v2179_v40 = vld [vmem:[#allocation3 + $0x12] sm:$0xff]  ;;  %v8901_v5 = vld [vmem:[#allocation3 + $0x60] sm:$0xff] }
 0x45b   : > { %v8889_v47 = vld [vmem:[#allocation3 + $0x10] sm:$0xff] }
 0x45f   : > { %v2127_v11 = vpop.f32.mrf.mxu0 }
 0x460   : > { %v2147_v12 = vmax.f32 %v2127_v11, 0.0 }
 0x461   : > { %v8829_v35 = vld [vmem:[#allocation3 + $0x21] sm:$0xff] }
 0x462   : > { %2156 = vst.msk [vmem:[#allocation3 + $0x31] sm:$0xff] %vm300_vm1, %v2147_v12  ;;  %2247 = vrot.lane.b32.xlu0 %v8829_v35, %s7200_s14  ;;  %v8865_v58 = vld [vmem:[#allocation3 + $0x22] sm:$0xff] }
 0x463   : > { %v8875_v63 = vld [vmem:[#allocation3 + $0x20] sm:$0xff] }
 0x465   : > { %v2139_v52 = vpop.f32.mrf.mxu2 }
 0x466   : > { %v2151_v7 = vmax.f32 %v2139_v52, 0.0 }
 0x467   : > { %v2130_v55 = vpop.f32.mrf.mxu0 }
 0x468   : > { %2160 = vst.msk [vmem:[#allocation3 + $0x71] sm:$0xff] %vm300_vm1, %v2151_v7  ;;  %v2148_v54 = vmax.f32 %v2130_v55, 0.0 }
 0x469   : > { %v8835_v6 = vld [vmem:[#allocation3 + $0x31] sm:$0xff] }
 0x46a   : > { %2157 = vst.msk [vmem:[#allocation3 + $0x41] sm:$0xff] %vm300_vm1, %v2148_v54  ;;  %2249 = vrot.lane.b32.xlu2 %v8835_v6, %s7200_s14  ;;  %2253 = vrot.lane.b32.xlu0 %v8837_v59, %s7200_s14  ;;  %v8854_v57 = vld [vmem:[#allocation3 + $0x32] sm:$0xff] }
 0x46b   : > { %v8893_v9 = vld [vmem:[#allocation3 + $0x30] sm:$0xff] }
 0x46d   : > { %v2142_v4 = vpop.f32.mrf.mxu2 }
 0x46e   : > { %v2152_v61 = vmax.f32 %v2142_v4, 0.0 }
 0x46f   : > { %v8856_v2 = vld [vmem:[#allocation3 + $0x71] sm:$0xff] }
 0x470   : > { %2161 = vst.msk [vmem:[#allocation3 + $0x81] sm:$0xff] %vm300_vm1, %v2152_v61  ;;  %v8881_v29 = vld [vmem:[#allocation3 + $0x72] sm:$0xff] }
 0x471   : > { %v8845_v41 = vld [vmem:[#allocation3 + $0x41] sm:$0xff]  ;;  %v8908_v43 = vld [vmem:[#allocation3 + $0x70] sm:$0xff] }
 0x472   : > { %2251 = vrot.lane.b32.xlu1 %v8845_v41, %s7200_s14  ;;  %2275 = vrot.lane.b32.xlu0 %v2178_v56, %s7201_s15  ;;  %v8869_v10 = vld [vmem:[#allocation3 + $0x42] sm:$0xff] }
 0x473   : > { %2255 = vrot.lane.b32.xlu2 %v8850_v32, %s7200_s14  ;;  %v8899_v51 = vld [vmem:[#allocation3 + $0x40] sm:$0xff] }
 0x477   : > { %v2193_v14 = vld [vmem:[#allocation3 + $0x80] sm:$0xff] }
 0x478   : > { %v2201_v49 = vld [vmem:[#allocation3 + $0x81] sm:$0xff] }
 0x479   : > { %v2209_v53 = vld [vmem:[#allocation3 + $0x82] sm:$0xff] }
 0x47a   : > { %2281 = vrot.lane.b32.xlu0 %v8854_v57, %s7201_s15  ;;  %2257 = vrot.lane.b32.xlu1 %v8856_v2, %s7200_s14 }
 0x47b   : > { %2277 = vrot.lane.b32.xlu2 %v2179_v40, %s7201_s15 }
 0x482   : > { %2287 = vrot.lane.b32.xlu0 %v8863_v26, %s7201_s15  ;;  %2279 = vrot.lane.b32.xlu1 %v8865_v58, %s7201_s15 }
 0x483   : > { %2283 = vrot.lane.b32.xlu2 %v8869_v10, %s7201_s15 }
 0x48a   : > { %2309 = vrot.lane.b32.xlu0 %v8875_v63, %s7202_s16  ;;  %2285 = vrot.lane.b32.xlu1 %v8877_v45, %s7201_s15 }
 0x48b   : > { %2289 = vrot.lane.b32.xlu2 %v8881_v29, %s7201_s15 }
 0x492   : > { %2315 = vrot.lane.b32.xlu0 %v8887_v25, %s7202_s16  ;;  %2307 = vrot.lane.b32.xlu1 %v8889_v47, %s7202_s16 }
 0x493   : > { %2311 = vrot.lane.b32.xlu2 %v8893_v9, %s7202_s16 }
 0x49a   : > { %2313 = vrot.lane.b32.xlu1 %v8899_v51, %s7202_s16  ;;  %2321 = vrot.lane.b32.xlu0 %v2193_v14, %s7202_s16 }
 0x49b   : > { %2317 = vrot.lane.b32.xlu2 %v8901_v5, %s7202_s16 }
 0x4a2   : > { %2319 = vrot.lane.b32.xlu1 %v8908_v43, %s7202_s16  ;;  %2343 = vrot.lane.b32.xlu0 %v8835_v6, %s7203_s17 }
 0x4a3   : > { %2339 = vrot.lane.b32.xlu2 %v2171_v22, %s7203_s17 }
 0x4aa   : > { %2341 = vrot.lane.b32.xlu1 %v8829_v35, %s7203_s17  ;;  %2349 = vrot.lane.b32.xlu0 %v8850_v32, %s7203_s17 }
 0x4ab   : > { %2345 = vrot.lane.b32.xlu2 %v8845_v41, %s7203_s17 }
 0x4b2   : > { %2347 = vrot.lane.b32.xlu1 %v8837_v59, %s7203_s17  ;;  %2371 = vrot.lane.b32.xlu0 %v2179_v40, %s7204_s18 }
 0x4b3   : > { %2351 = vrot.lane.b32.xlu2 %v8856_v2, %s7203_s17 }
 0x4ba   : > { %2353 = vrot.lane.b32.xlu1 %v2201_v49, %s7203_s17  ;;  %2377 = vrot.lane.b32.xlu0 %v8869_v10, %s7204_s18 }
 0x4bb   : > { %2373 = vrot.lane.b32.xlu2 %v8865_v58, %s7204_s18 }
 0x4c2   : > { %2375 = vrot.lane.b32.xlu1 %v8854_v57, %s7204_s18  ;;  %2383 = vrot.lane.b32.xlu0 %v8881_v29, %s7204_s18 }
 0x4c3   : > { %2379 = vrot.lane.b32.xlu2 %v8877_v45, %s7204_s18 }
 0x4c4   : > { %v8939_v36 = vpop.permute.xlu2 %2249 }
 0x4ca   : > { %2381 = vrot.lane.b32.xlu1 %v8863_v26, %s7204_s18  ;;  %2405 = vrot.lane.b32.xlu0 %v8893_v9, %s7205_s19 }
 0x4cb   : > { %2385 = vrot.lane.b32.xlu2 %v2209_v53, %s7204_s18 }
 0x4cc   : > { %v8963_v15 = vpop.permute.xlu1 %2245 }
 0x4cd   : > { %v8946_v18 = vpop.permute.xlu2 %2255 }
 0x4d2   : > { %2403 = vrot.lane.b32.xlu1 %v8875_v63, %s7205_s19  ;;  %2411 = vrot.lane.b32.xlu0 %v8901_v5, %s7205_s19 }
 0x4d3   : > { %2407 = vrot.lane.b32.xlu2 %v8899_v51, %s7205_s19 }
 0x4d4   : > { %v8954_v23 = vpop.permute.xlu0 %2247 }
 0x4d5   : > { %v8956_v60 = vpop.permute.xlu2 %2277 }
 0x4da   : > { %2409 = vrot.lane.b32.xlu1 %v8887_v25, %s7205_s19  ;;  %2417 = vrot.lane.b32.xlu0 %v2218_v21, %s7205_s19  ;;  %v2555_v21 = vld [vmem:[%s11719_s4] sm:$0xff] }
 0x4db   : > { %2413 = vrot.lane.b32.xlu2 %v8908_v43, %s7205_s19 }
 0x4dc   : > { %v8965_v38 = vpop.permute.xlu0 %2253 }
 0x4dd   : > { %v8967_v46 = vpop.permute.xlu2 %2283 }
 0x4e2   : > { %2415 = vrot.lane.b32.xlu1 %v2193_v14, %s7205_s19  ;;  %2439 = vrot.lane.b32.xlu0 %v8845_v41, %s7206_s20  ;;  %v2563_v41 = vld [vmem:[%s11719_s4 + $0x40] sm:$0xff]  ;;  %v2556_v14 = vld [vmem:[%s11719_s4 + $0x8] sm:$0xff] }
 0x4e3   : > { %2435 = vrot.lane.b32.xlu2 %v8829_v35, %s7206_s20  ;;  %2595 = vmatpush.msra.mxu1 %v2563_v41 }
 0x4e4   : > { %v8974_v34 = vpop.permute.xlu1 %2251  ;;  %v8976_v62 = vpop.permute.xlu0 %2275  ;;  %7117 = vmatpush.msra.mxu3 %v2563_v41 }
 0x4e5   : > { %v8978_v16 = vpop.permute.xlu2 %2289 }
 0x4ea   : > { %2437 = vrot.lane.b32.xlu1 %v8835_v6, %s7206_s20  ;;  %2445 = vrot.lane.b32.xlu0 %v8856_v2, %s7206_s20  ;;  %v2560_v2 = vld [vmem:[%s11719_s4 + $0x28] sm:$0xff] }
 0x4eb   : > { %2441 = vrot.lane.b32.xlu2 %v8837_v59, %s7206_s20 }
 0x4ec   : > { %v8986_v31 = vpop.permute.xlu1 %2257  ;;  %v8988_v8 = vpop.permute.xlu0 %2281 }
 0x4ed   : > { %v8990_v13 = vpop.permute.xlu2 %2311 }
 0x4f2   : > { %2443 = vrot.lane.b32.xlu1 %v8850_v32, %s7206_s20  ;;  %2467 = vrot.lane.b32.xlu0 %v8865_v58, %s7207_s21  ;;  %v2562_v32 = vld [vmem:[%s11719_s4 + $0x38] sm:$0xff] }
 0x4f3   : > { %2447 = vrot.lane.b32.xlu2 %v2201_v49, %s7206_s20  ;;  %2596 = vmatpush.msra.mxu1 %v2562_v32 }
 0x4f4   : > { %v8997_v33 = vpop.permute.xlu1 %2279  ;;  %v8999_v27 = vpop.permute.xlu0 %2287  ;;  %7118 = vmatpush.msra.mxu3 %v2562_v32 }
 0x4f5   : > { %v9001_v1 = vpop.permute.xlu2 %2317 }
 0x4fa   : > { %2449 = vrot.lane.b32.xlu1 %v2226_v17, %s7206_s20  ;;  %2473 = vrot.lane.b32.xlu0 %v8877_v45, %s7207_s21  ;;  %v2558_v45 = vld [vmem:[%s11719_s4 + $0x18] sm:$0xff] }
 0x4fb   : > { %2469 = vrot.lane.b32.xlu2 %v8854_v57, %s7207_s21  ;;  %v2561_v57 = vld [vmem:[%s11719_s4 + $0x30] sm:$0xff] }
 0x4fc   : > { %v9008_v20 = vpop.permute.xlu1 %2285  ;;  %v9010_v39 = vpop.permute.xlu0 %2309  ;;  %2597 = vmatpush.msra.mxu1 %v2561_v57  ;;  %7119 = vmatpush.msra.mxu3 %v2561_v57 }
 0x4fd   : > { %v9012_v28 = vpop.permute.xlu2 %2339 }
 0x4fe   : > { %2598 = vmatpush.msra.mxu1 %v2560_v2  ;;  %7120 = vmatpush.msra.mxu3 %v2560_v2 }
 0x502   : > { %2471 = vrot.lane.b32.xlu1 %v8869_v10, %s7207_s21  ;;  %2479 = vrot.lane.b32.xlu0 %v2209_v53, %s7207_s21  ;;  %v2559_v10 = vld [vmem:[%s11719_s4 + $0x20] sm:$0xff] }
 0x503   : > { %2475 = vrot.lane.b32.xlu2 %v8863_v26, %s7207_s21  ;;  %2599 = vmatpush.msra.mxu1 %v2559_v10 }
 0x504   : > { %v9019_v30 = vpop.permute.xlu1 %2307  ;;  %v9021_v19 = vpop.permute.xlu0 %2315  ;;  %7121 = vmatpush.msra.mxu3 %v2559_v10  ;;  %v2162_v10 = vld [vmem:[#allocation3] sm:$0xff] }
 0x505   : > { %v9023_v3 = vpop.permute.xlu2 %2345  ;;  %2600 = vmatpush.msra.mxu1 %v2558_v45 }
 0x506   : > { %7122 = vmatpush.msra.mxu3 %v2558_v45  ;;  %v2491_v45 = vsel %vm300_vm1, %v2162_v10, %v8929_v24 }
 0x50a   : > { %2477 = vrot.lane.b32.xlu1 %v8881_v29, %s7207_s21  ;;  %v2557_v29 = vld [vmem:[%s11719_s4 + $0x10] sm:$0xff] }
 0x50b   : > { %2481 = vrot.lane.b32.xlu2 %v2234_v42, %s7207_s21  ;;  %2601 = vmatpush.msra.mxu1 %v2557_v29 }
 0x50c   : > { %v9028_v37 = vpop.permute.xlu1 %2313  ;;  %v9030_v44 = vpop.permute.xlu0 %2321  ;;  %7123 = vmatpush.msra.mxu3 %v2557_v29  ;;  %v2495_v29 = vsel %vm300_vm1, %v8899_v51, %v8974_v34 }
 0x50d   : > { %11996 = vst [vmem:[#allocation71_spill] sm:$0xff] %v9030_v44  ;;  %v9032_v50 = vpop.permute.xlu2 %2351  ;;  %2602 = vmatpush.msra.mxu1 %v2556_v14 }
 0x50e   : > { %7124 = vmatpush.msra.mxu3 %v2556_v14  ;;  %v2499_v14 = vsel %vm484_vm0, %v2491_v45, %v8976_v62 }
 0x50f   : > { %2603 = vmatpush.msra.mxu1 %v2555_v21 }
 0x510   : > { %7125 = vmatpush.msra.mxu3 %v2555_v21 }
 0x514   : > { %v9034_v0 = vpop.permute.xlu1 %2319  ;;  %v9036_v48 = vpop.permute.xlu0 %2343 }
 0x515   : > { %v9038_v22 = vpop.permute.xlu2 %2373 }
 0x51c   : > { %v9040_v11 = vpop.permute.xlu1 %2341  ;;  %v9042_v12 = vpop.permute.xlu0 %2349 }
 0x51d   : > { %v9044_v35 = vpop.permute.xlu2 %2379 }
 0x524   : > { %v2348_v52 = vpop.permute.xlu1 %2347  ;;  %v2372_v7 = vpop.permute.xlu0 %2371 }
 0x525   : > { %v9046_v55 = vpop.permute.xlu2 %2385 }
 0x526   : > { %11997 = vst [vmem:[#allocation72_spill] sm:$0xff] %v9046_v55 }
 0x52c   : > { %v9048_v54 = vpop.permute.xlu1 %2353  ;;  %v9050_v6 = vpop.permute.xlu0 %2377 }
 0x52d   : > { %11998 = vst [vmem:[#allocation73_spill] sm:$0xff] %v9048_v54  ;;  %v9052_v59 = vpop.permute.xlu2 %2407 }
 0x534   : > { %v9054_v4 = vpop.permute.xlu1 %2375  ;;  %v9056_v61 = vpop.permute.xlu0 %2383 }
 0x535   : > { %v9058_v56 = vpop.permute.xlu2 %2413 }
 0x53c   : > { %v9072_v40 = vpop.permute.xlu1 %2381  ;;  %v2406_v26 = vpop.permute.xlu0 %2405 }
 0x53d   : > { %v2436_v58 = vpop.permute.xlu2 %2435 }
 0x544   : > { %v2404_v49 = vpop.permute.xlu1 %2403  ;;  %v2412_v53 = vpop.permute.xlu0 %2411 }
 0x545   : > { %v9089_v17 = vpop.permute.xlu2 %2441 }
 0x54c   : > { %v2410_v42 = vpop.permute.xlu1 %2409  ;;  %v9091_v41 = vpop.permute.xlu0 %2417 }
 0x54d   : > { %11999 = vst [vmem:[#allocation74_spill] sm:$0xff] %v9091_v41  ;;  %v9093_v32 = vpop.permute.xlu2 %2447  ;;  %v2507_v41 = vsel %vm2016_vm10, %v2499_v14, %v9019_v30  ;;  %v2492_v30 = vsel %vm300_vm1, %v8889_v47, %v8963_v15 }
 0x54e   : > { %12000 = vst [vmem:[#allocation75_spill] sm:$0xff] %v9093_v32  ;;  %v2503_v32 = vsel %vm484_vm0, %v2495_v29, %v8967_v46  ;;  %v2515_v24 = vsel %vm2025_vm11, %v2507_v41, %v9012_v28  ;;  %v2500_v10 = vsel %vm484_vm0, %v2492_v30, %v8956_v60 }
 0x54f   : > { %v2511_v44 = vsel %vm2016_vm10, %v2503_v32, %v9021_v19  ;;  %v2523_v34 = vsel %vm2034_vm12, %v2515_v24, %v2372_v7  ;;  %v2508_v19 = vsel %vm2016_vm10, %v2500_v10, %v9010_v39 }
 0x550   : > { %v2519_v51 = vsel %vm2025_vm11, %v2511_v44, %v2348_v52  ;;  %v2531_v62 = vsel %vm2043_vm13, %v2523_v34, %v2404_v49  ;;  %v2516_v49 = vsel %vm2025_vm11, %v2508_v19, %v9040_v11  ;;  %v2493_v11 = vsel %vm300_vm1, %v8875_v63, %v8954_v23 }
 0x551   : > { %v2527_v46 = vsel %vm2034_vm12, %v2519_v51, %v9044_v35  ;;  %v2539_v7 = vsel %vm2052_vm14, %v2531_v62, %v2436_v58  ;;  %v2524_v39 = vsel %vm2034_vm12, %v2516_v49, %v9038_v22  ;;  %v2494_v63 = vsel %vm300_vm1, %v8893_v9, %v8939_v36  ;;  %v12003_v62 = vld [vmem:[#allocation73_spill] sm:$0xff] }
 0x552   : > { %v2535_v28 = vsel %vm2043_vm13, %v2527_v46, %v2412_v53  ;;  %v2532_v35 = vsel %vm2043_vm13, %v2524_v39, %v2406_v26  ;;  %v2501_v53 = vsel %vm484_vm0, %v2493_v11, %v8997_v33  ;;  %v2496_v23 = vsel %vm300_vm1, %v8887_v25, %v8965_v38 }
 0x553   : > { %v2509_v29 = vsel %vm2016_vm10, %v2501_v53, %v8990_v13  ;;  %v2502_v33 = vsel %vm484_vm0, %v2494_v63, %v8988_v8  ;;  %v2504_v13 = vsel %vm484_vm0, %v2496_v23, %v9008_v20 }
 0x554   : > { %v9095_v57 = vpop.permute.xlu1 %2415  ;;  %v2440_v2 = vpop.permute.xlu0 %2439  ;;  %v2517_v22 = vsel %vm2025_vm11, %v2509_v29, %v9036_v48  ;;  %v2512_v25 = vsel %vm2016_vm10, %v2504_v13, %v9001_v1  ;;  %v2497_v1 = vsel %vm300_vm1, %v8901_v5, %v8946_v18  ;;  %v2498_v18 = vsel %vm300_vm1, %v8908_v43, %v8986_v31  ;;  %v12004_v31 = vld [vmem:[#allocation72_spill] sm:$0xff] }
 0x555   : > { %v2470_v21 = vpop.permute.xlu2 %2469  ;;  %v2525_v26 = vsel %vm2034_vm12, %v2517_v22, %v9054_v4  ;;  %v2520_v36 = vsel %vm2025_vm11, %v2512_v25, %v9042_v12  ;;  %v12002_v34 = vld [vmem:[#allocation75_spill] sm:$0xff] }
 0x556   : > { %v2533_v48 = vsel %vm2043_vm13, %v2525_v26, %v9052_v59  ;;  %v2528_v20 = vsel %vm2034_vm12, %v2520_v36, %v9072_v40 }
 0x557   : > { %v2541_v4 = vsel %vm2052_vm14, %v2533_v48, %v2440_v2  ;;  %v2505_v2 = vsel %vm484_vm0, %v2497_v1, %v8999_v27  ;;  %v2536_v12 = vsel %vm2043_vm13, %v2528_v20, %v9058_v56  ;;  %v2506_v56 = vsel %vm484_vm0, %v2498_v18, %v8978_v16 }
 0x55c   : > { %v2438_v55 = vpop.permute.xlu1 %2437  ;;  %v2446_v54 = vpop.permute.xlu0 %2445 }
 0x55d   : > { %v2476_v41 = vpop.permute.xlu2 %2475  ;;  %v2540_v58 = vsel %vm2052_vm14, %v2532_v35, %v2438_v55  ;;  %v2510_v55 = vsel %vm2016_vm10, %v2502_v33, %v9028_v37 }
 0x55e   : > { %v2548_v45 = vsel %vm2061_vm2, %v2540_v58, %v2470_v21  ;;  %v2518_v38 = vsel %vm2025_vm11, %v2510_v55, %v9023_v3  ;;  %v2513_v3 = vsel %vm2016_vm10, %v2505_v2, %v9034_v0 }
 0x55f   : > { %v2526_v8 = vsel %vm2034_vm12, %v2518_v38, %v9050_v6  ;;  %v2544_v6 = vsel %vm2052_vm14, %v2536_v12, %v2446_v54  ;;  %v2521_v5 = vsel %vm2025_vm11, %v2513_v3, %v9032_v50 }
 0x560   : > { %v2534_v59 = vsel %vm2043_vm13, %v2526_v8, %v2410_v42  ;;  %v2529_v27 = vsel %vm2034_vm12, %v2521_v5, %v9056_v61 }
 0x561   : > { %v2542_v40 = vsel %vm2052_vm14, %v2534_v59, %v9089_v17  ;;  %v2537_v0 = vsel %vm2043_vm13, %v2529_v27, %v9095_v57  ;;  %v12001_v17 = vld [vmem:[#allocation71_spill] sm:$0xff]  ;;  %v12005_v57 = vld [vmem:[#allocation74_spill] sm:$0xff] }
 0x562   : > { %v2514_v51 = vsel %vm2016_vm10, %v2506_v56, %v12001_v17  ;;  %v2545_v50 = vsel %vm2052_vm14, %v2537_v0, %v12002_v34 }
 0x563   : > { %v2522_v30 = vsel %vm2025_vm11, %v2514_v51, %v12003_v62 }
 0x564   : > { %v2444_v44 = vpop.permute.xlu1 %2443  ;;  %v2468_v52 = vpop.permute.xlu0 %2467  ;;  %v2530_v61 = vsel %vm2034_vm12, %v2522_v30, %v12004_v31 }
 0x565   : > { %v2543_v47 = vsel %vm2052_vm14, %v2535_v28, %v2444_v44  ;;  %v2547_v60 = vsel %vm2061_vm2, %v2539_v7, %v2468_v52  ;;  %v2538_v10 = vsel %vm2043_vm13, %v2530_v61, %v12005_v57  ;;  %v2482_v46 = vpop.permute.xlu2 %2481 }
 0x566   : > { %7044 = vmatmul.msk.f32.vlgmr.msra.gmra.mxu1 %vm2079_vm15, %v2547_v60  ;;  %v2551_v15 = vsel %vm2061_vm2, %v2543_v47, %v2476_v41 }
 0x567   : > { %7048 = vmatmul.msk.f32.vlgmr.msra.gmra.mxu3 %vm2079_vm15, %v2551_v15 }
 0x56c   : > { %v2450_v32 = vpop.permute.xlu1 %2449  ;;  %v2474_v37 = vpop.permute.xlu0 %2473 }
 0x56d   : > { %v2550_v42 = vsel %vm2061_vm2, %v2542_v40, %v2474_v37  ;;  %v2546_v16 = vsel %vm2052_vm14, %v2538_v10, %v2450_v32 }
 0x56e   : > { %7045 = vmatmul.msk.f32.gmra.mxu1 %vm2079_vm15, %v2548_v45  ;;  %v2554_v19 = vsel %vm2061_vm2, %v2546_v16, %v2482_v46 }
 0x574   : > { %v2472_v14 = vpop.permute.xlu1 %2471  ;;  %v2480_v54 = vpop.permute.xlu0 %2479 }
 0x575   : > { %v2549_v9 = vsel %vm2061_vm2, %v2541_v4, %v2472_v14  ;;  %v2553_v43 = vsel %vm2061_vm2, %v2545_v50, %v2480_v54 }
 0x576   : > { %7046 = vmatmul.msk.f32.gmra.mxu1 %vm2079_vm15, %v2549_v9 }
 0x57c   : > { %v2478_v21 = vpop.permute.xlu1 %2477 }
 0x57d   : > { %v2552_v24 = vsel %vm2061_vm2, %v2544_v6, %v2478_v21 }
 0x57e   : > { %7047 = vmatmul.msk.f32.gmra.mxu1 %vm2079_vm15, %v2550_v42  ;;  %7049 = vmatmul.msk.f32.gmra.mxu3 %vm2079_vm15, %v2552_v24 }
 0x586   : > { %7050 = vmatmul.msk.f32.gmra.mxu3 %vm2079_vm15, %v2553_v43 }
 0x58e   : > { %7051 = vmatmul.msk.f32.gmra.mxu3 %vm2079_vm15, %v2554_v19 }
 0x5e3   : > { %v2605_v28 = vpop.f32.mrf.mxu1 }
 0x5e4   : > { %v2629_v44 = vmul.f32 0.1, %v2605_v28 }
 0x5e6   : > { %v2659_v52 = vperm.slane %v2629_v44, 2  ;;  %v2652_v7 = vperm.slane %v2629_v44, 1  ;;  %v2645_v49 = vperm.slane %v2629_v44, 0  ;;  %v2673_v41 = vperm.slane %v2629_v44, 4 }
 0x5e7   : > { %v2687_v47 = vperm.slane %v2629_v44, 6  ;;  %v2666_v15 = vperm.slane %v2629_v44, 3  ;;  %v2694_v35 = vperm.slane %v2629_v44, 7  ;;  %v2680_v58 = vperm.slane %v2629_v44, 5 }
 0x5e8   : > { %2664 = vperm.xlu2 %7170, %v2659_v52   ;;  %2657 = vperm.xlu0 %7168, %v2652_v7  }
 0x5e9   : > { %2650 = vperm.xlu1 %7169, %v2645_v49  }
 0x5ea   : > { %v2617_v12 = vpop.f32.mrf.mxu3 }
 0x5eb   : > { %v2608_v60 = vpop.f32.mrf.mxu1  ;;  %v2633_v6 = vmul.f32 0.1, %v2617_v12  ;;  %v12008_v12 = vmov 0  }
 0x5ec   : > { %v2630_v39 = vmul.f32 0.1, %v2608_v60 }
 0x5ed   : > { %v2876_v40 = vperm.slane %v2633_v6, 1  ;;  %v2883_v24 = vperm.slane %v2633_v6, 2  ;;  %v2897_v5 = vperm.slane %v2633_v6, 4  ;;  %v2869_v18 = vperm.slane %v2633_v6, 0 }
 0x5ee   : > { %v2708_v11 = vperm.slane %v2630_v39, 1  ;;  %v2715_v53 = vperm.slane %v2630_v39, 2  ;;  %v2729_v32 = vperm.slane %v2630_v39, 4  ;;  %v2701_v45 = vperm.slane %v2630_v39, 0 }
 0x5ef   : > { %v2736_v29 = vperm.slane %v2630_v39, 5  ;;  %v2750_v22 = vperm.slane %v2630_v39, 7  ;;  %v2722_v63 = vperm.slane %v2630_v39, 3  ;;  %v2743_v48 = vperm.slane %v2630_v39, 6 }
 0x5f0   : > { %2678 = vperm.xlu2 %7170, %v2673_v41   ;;  %2692 = vperm.xlu0 %7168, %v2687_v47   ;;  %v2904_v0 = vperm.slane %v2633_v6, 5  ;;  %v2918_v54 = vperm.slane %v2633_v6, 7  ;;  %v2890_v17 = vperm.slane %v2633_v6, 3  ;;  %v2911_v30 = vperm.slane %v2633_v6, 6 }
 0x5f1   : > { %2671 = vperm.xlu1 %7169, %v2666_v15  }
 0x5f3   : > { %v2611_v26 = vpop.f32.mrf.mxu1 }
 0x5f4   : > { %v2631_v23 = vmul.f32 0.1, %v2611_v26 }
 0x5f6   : > { %v2771_v33 = vperm.slane %v2631_v23, 2  ;;  %v2757_v13 = vperm.slane %v2631_v23, 0  ;;  %v2792_v55 = vperm.slane %v2631_v23, 5  ;;  %v2778_v4 = vperm.slane %v2631_v23, 3 }
 0x5f7   : > { %v2764_v9 = vperm.slane %v2631_v23, 1  ;;  %v2799_v36 = vperm.slane %v2631_v23, 6  ;;  %v2785_v8 = vperm.slane %v2631_v23, 4  ;;  %v2806_v59 = vperm.slane %v2631_v23, 7 }
 0x5f8   : > { %2699 = vperm.xlu2 %7170, %v2694_v35   ;;  %2713 = vperm.xlu0 %7168, %v2708_v11  }
 0x5f9   : > { %2685 = vperm.xlu1 %7169, %v2680_v58  }
 0x5fb   : > { %v2614_v14 = vpop.f32.mrf.mxu1 }
 0x5fc   : > { %v2632_v25 = vmul.f32 0.1, %v2614_v14 }
 0x5fe   : > { %v2813_v38 = vperm.slane %v2632_v25, 0  ;;  %v2820_v20 = vperm.slane %v2632_v25, 1  ;;  %v2834_v37 = vperm.slane %v2632_v25, 3  ;;  %v2841_v1 = vperm.slane %v2632_v25, 4 }
 0x5ff   : > { %v2855_v2 = vperm.slane %v2632_v25, 6  ;;  %v2827_v3 = vperm.slane %v2632_v25, 2  ;;  %v2862_v21 = vperm.slane %v2632_v25, 7  ;;  %v2848_v42 = vperm.slane %v2632_v25, 5 }
 0x600   : > { %2720 = vperm.xlu2 %7170, %v2715_v53   ;;  %2734 = vperm.xlu0 %7168, %v2729_v32  }
 0x601   : > { %2706 = vperm.xlu1 %7169, %v2701_v45   ;;  %v2620_v56 = vpop.f32.mrf.mxu3 }
 0x602   : > { %v2634_v51 = vmul.f32 0.1, %v2620_v56  ;;  %v12013_v56 = vld [vmem:[#allocation41_spill] sm:$0xff] }
 0x604   : > { %v2925_v50 = vperm.slane %v2634_v51, 0  ;;  %v2939_v62 = vperm.slane %v2634_v51, 2  ;;  %v2946_v31 = vperm.slane %v2634_v51, 3  ;;  %v2960_v61 = vperm.slane %v2634_v51, 5 }
 0x605   : > { %v2932_v10 = vperm.slane %v2634_v51, 1  ;;  %v2967_v44 = vperm.slane %v2634_v51, 6  ;;  %v2953_v7 = vperm.slane %v2634_v51, 4  ;;  %v2974_v39 = vperm.slane %v2634_v51, 7  ;;  %v12015_v51 = vld [vmem:[#allocation37_spill] sm:$0xff] }
 0x608   : > { %2741 = vperm.xlu2 %7170, %v2736_v29   ;;  %2755 = vperm.xlu0 %7168, %v2750_v22  }
 0x609   : > { %2727 = vperm.xlu1 %7169, %v2722_v63   ;;  %v2623_v57 = vpop.f32.mrf.mxu3 }
 0x60a   : > { %v2635_v16 = vmul.f32 0.1, %v2623_v57  ;;  %v12019_v57 = vld [vmem:[#allocation44_spill] sm:$0xff] }
 0x60c   : > { %v2981_v52 = vperm.slane %v2635_v16, 0  ;;  %v2988_v60 = vperm.slane %v2635_v16, 1  ;;  %v3002_v15 = vperm.slane %v2635_v16, 3  ;;  %v3009_v53 = vperm.slane %v2635_v16, 4 }
 0x60d   : > { %v3023_v32 = vperm.slane %v2635_v16, 6  ;;  %v2995_v29 = vperm.slane %v2635_v16, 2 }
 0x610   : > { %2776 = vperm.xlu0 %7168, %v2771_v33   ;;  %2762 = vperm.xlu2 %7170, %v2757_v13   ;;  %v3030_v33 = vperm.slane %v2635_v16, 7 }
 0x611   : > { %2748 = vperm.xlu1 %7169, %v2743_v48   ;;  %v2626_v45 = vpop.f32.mrf.mxu3  ;;  %v3016_v48 = vperm.slane %v2635_v16, 5  ;;  %v12021_v16 = vld [vmem:[#allocation42_spill] sm:$0xff] }
 0x612   : > { %v9238_v22 = vmul.f32 0.1, %v2626_v45  ;;  %v12031_v45 = vld [vmem:[#allocation50_spill] sm:$0xff] }
 0x614   : > { %v3044_v13 = vperm.slane %v9238_v22, 1  ;;  %v3065_v25 = vperm.slane %v9238_v22, 4 }
 0x618   : > { %2797 = vperm.xlu0 %7168, %v2792_v55   ;;  %2783 = vperm.xlu2 %7170, %v2778_v4  }
 0x619   : > { %2769 = vperm.xlu1 %7169, %v2764_v9   ;;  %v3051_v9 = vperm.slane %v9238_v22, 2 }
 0x620   : > { %2804 = vperm.xlu2 %7170, %v2799_v36   ;;  %2818 = vperm.xlu0 %7168, %v2813_v38   ;;  %v3037_v36 = vperm.slane %v9238_v22, 0 }
 0x621   : > { %2790 = vperm.xlu1 %7169, %v2785_v8  }
 0x628   : > { %2825 = vperm.xlu2 %7170, %v2820_v20   ;;  %2839 = vperm.xlu0 %7168, %v2834_v37   ;;  %v3072_v37 = vperm.slane %v9238_v22, 5 }
 0x629   : > { %2811 = vperm.xlu1 %7169, %v2806_v59   ;;  %v12006_v59 = vld [vmem:[#allocation35_spill] sm:$0xff] }
 0x630   : > { %2846 = vperm.xlu2 %7170, %v2841_v1   ;;  %2860 = vperm.xlu0 %7168, %v2855_v2   ;;  %v3058_v2 = vperm.slane %v9238_v22, 3 }
 0x631   : > { %2832 = vperm.xlu1 %7169, %v2827_v3  }
 0x638   : > { %2867 = vperm.xlu2 %7170, %v2862_v21   ;;  %2881 = vperm.xlu0 %7168, %v2876_v40   ;;  %v12009_v40 = vld [vmem:[#allocation38_spill] sm:$0xff] }
 0x639   : > { %2853 = vperm.xlu1 %7169, %v2848_v42  }
 0x640   : > { %2888 = vperm.xlu2 %7170, %v2883_v24   ;;  %2902 = vperm.xlu0 %7168, %v2897_v5   ;;  %v3079_v24 = vperm.slane %v9238_v22, 6  ;;  %v12011_v5 = vld [vmem:[#allocation36_spill] sm:$0xff] }
 0x641   : > { %2874 = vperm.xlu1 %7169, %v2869_v18  }
 0x642   : > { %v9220_v27 = vpop.permute.xlu2 %2664 }
 0x643   : > { %v9259_v1 = vadd.f32 %v9220_v27, %v12006_v59 }
 0x645   : > { %12007 = vst [vmem:[#allocation71_spill] sm:$0xff] %v9259_v1 }
 0x648   : > { %2909 = vperm.xlu2 %7170, %v2904_v0   ;;  %2923 = vperm.xlu0 %7168, %v2918_v54  }
 0x649   : > { %2895 = vperm.xlu1 %7169, %v2890_v17  }
 0x64a   : > { %v9222_v34 = vpop.permute.xlu2 %2678 }
 0x650   : > { %2930 = vperm.xlu2 %7170, %v2925_v50   ;;  %2944 = vperm.xlu0 %7168, %v2939_v62   ;;  %v12017_v62 = vld [vmem:[#allocation39_spill] sm:$0xff] }
 0x651   : > { %2916 = vperm.xlu1 %7169, %v2911_v30  }
 0x652   : > { %v9224_v43 = vpop.permute.xlu2 %2699 }
 0x653   : > { %v9274_v18 = vadd.f32 %v9224_v43, %v12011_v5 }
 0x655   : > { %12012 = vst [vmem:[#allocation73_spill] sm:$0xff] %v9274_v18 }
 0x658   : > { %2951 = vperm.xlu2 %7170, %v2946_v31   ;;  %2965 = vperm.xlu0 %7168, %v2960_v61  }
 0x659   : > { %2937 = vperm.xlu1 %7169, %v2932_v10  }
 0x65a   : > { %v9226_v46 = vpop.permute.xlu2 %2720  ;;  %v9228_v19 = vpop.permute.xlu0 %2657 }
 0x65b   : > { %v2651_v28 = vpop.permute.xlu1 %2650  ;;  %v9288_v50 = vadd.f32 %v9226_v46, %v12015_v51  ;;  %v9292_v30 = vadd.f32 %v9228_v19, %v12017_v62  ;;  %v9307_v46 = vadd.f32 %v9222_v34, %v12021_v16  ;;  %v12023_v19 = vld [vmem:[#allocation40_spill] sm:$0xff]  ;;  %v12027_v34 = vld [vmem:[#allocation45_spill] sm:$0xff] }
 0x65c   : > { %v9269_v42 = vadd.f32 %v2651_v28, %v12009_v40  ;;  %v12043_v40 = vld [vmem:[#allocation56_spill] sm:$0xff] }
 0x65d   : > { %12016 = vst [vmem:[#allocation74_spill] sm:$0xff] %v9288_v50 }
 0x65e   : > { %12010 = vst [vmem:[#allocation75_spill] sm:$0xff] %v9269_v42 }
 0x65f   : > { %12018 = vst [vmem:[#allocation35_spill] sm:$0xff] %v9292_v30 }
 0x660   : > { %2972 = vperm.xlu2 %7170, %v2967_v44   ;;  %2986 = vperm.xlu0 %7168, %v2981_v52   ;;  %12022 = vst [vmem:[#allocation36_spill] sm:$0xff] %v9307_v46 }
 0x661   : > { %2958 = vperm.xlu1 %7169, %v2953_v7  }
 0x662   : > { %v9230_v49 = vpop.permute.xlu2 %2741  ;;  %v9232_v41 = vpop.permute.xlu0 %2692 }
 0x663   : > { %v2672_v47 = vpop.permute.xlu1 %2671  ;;  %v9311_v28 = vadd.f32 %v9230_v49, %v12023_v19  ;;  %v12029_v49 = vld [vmem:[#allocation43_spill] sm:$0xff] }
 0x664   : > { %v9284_v17 = vadd.f32 %v2672_v47, %v12013_v56  ;;  %v12025_v47 = vld [vmem:[#allocation47_spill] sm:$0xff] }
 0x665   : > { %12024 = vst [vmem:[#allocation41_spill] sm:$0xff] %v9311_v28 }
 0x666   : > { %12014 = vst [vmem:[#allocation72_spill] sm:$0xff] %v9284_v17 }
 0x668   : > { %2993 = vperm.xlu2 %7170, %v2988_v60   ;;  %3007 = vperm.xlu0 %7168, %v3002_v15   ;;  %v9325_v15 = vadd.f32 %v9232_v41, %v12027_v34  ;;  %v12033_v41 = vld [vmem:[#allocation48_spill] sm:$0xff] }
 0x669   : > { %2979 = vperm.xlu1 %7169, %v2974_v39  }
 0x66a   : > { %v9234_v35 = vpop.permute.xlu2 %2762  ;;  %v9236_v11 = vpop.permute.xlu0 %2713  ;;  %12028 = vst [vmem:[#allocation39_spill] sm:$0xff] %v9325_v15 }
 0x66b   : > { %v2686_v58 = vpop.permute.xlu1 %2685  ;;  %v9329_v39 = vadd.f32 %v9234_v35, %v12029_v49  ;;  %v12035_v35 = vld [vmem:[#allocation46_spill] sm:$0xff] }
 0x66c   : > { %v9303_v10 = vadd.f32 %v2686_v58, %v12019_v57  ;;  %v12049_v57 = vld [vmem:[#allocation59_spill] sm:$0xff] }
 0x66d   : > { %12030 = vst [vmem:[#allocation44_spill] sm:$0xff] %v9329_v39 }
 0x66e   : > { %12020 = vst [vmem:[#allocation38_spill] sm:$0xff] %v9303_v10 }
 0x670   : > { %3014 = vperm.xlu2 %7170, %v3009_v53   ;;  %3028 = vperm.xlu0 %7168, %v3023_v32  }
 0x671   : > { %3000 = vperm.xlu1 %7169, %v2995_v29  }
 0x672   : > { %v9240_v26 = vpop.permute.xlu2 %2783  ;;  %v9242_v63 = vpop.permute.xlu0 %2734 }
 0x673   : > { %v2707_v23 = vpop.permute.xlu1 %2706 }
 0x674   : > { %v9321_v60 = vadd.f32 %v2707_v23, %v12025_v47  ;;  %v9343_v23 = vadd.f32 %v9236_v11, %v12033_v41  ;;  %v12039_v11 = vld [vmem:[#allocation51_spill] sm:$0xff] }
 0x676   : > { %12026 = vst [vmem:[#allocation37_spill] sm:$0xff] %v9321_v60 }
 0x677   : > { %12034 = vst [vmem:[#allocation40_spill] sm:$0xff] %v9343_v23 }
 0x678   : > { %3035 = vperm.xlu2 %7170, %v3030_v33   ;;  %3049 = vperm.xlu0 %7168, %v3044_v13   ;;  %v9347_v33 = vadd.f32 %v9240_v26, %v12035_v35  ;;  %v12041_v26 = vld [vmem:[#allocation49_spill] sm:$0xff] }
 0x679   : > { %3021 = vperm.xlu1 %7169, %v3016_v48  }
 0x67a   : > { %v9245_v55 = vpop.permute.xlu2 %2804  ;;  %v9247_v4 = vpop.permute.xlu0 %2755  ;;  %12036 = vst [vmem:[#allocation47_spill] sm:$0xff] %v9347_v33 }
 0x67b   : > { %v2728_v14 = vpop.permute.xlu1 %2727 }
 0x67c   : > { %v9339_v29 = vadd.f32 %v2728_v14, %v12031_v45  ;;  %v12055_v45 = vld [vmem:[#allocation62_spill] sm:$0xff] }
 0x67e   : > { %12032 = vst [vmem:[#allocation42_spill] sm:$0xff] %v9339_v29 }
 0x680   : > { %3056 = vperm.xlu2 %7170, %v3051_v9   ;;  %3070 = vperm.xlu0 %7168, %v3065_v25   ;;  %v12037_v9 = vld [vmem:[#allocation53_spill] sm:$0xff] }
 0x681   : > { %3042 = vperm.xlu1 %7169, %v3037_v36   ;;  %v9361_v36 = vadd.f32 %v9242_v63, %v12039_v11  ;;  %v12045_v63 = vld [vmem:[#allocation54_spill] sm:$0xff] }
 0x682   : > { %v9252_v38 = vpop.permute.xlu2 %2825  ;;  %v9254_v8 = vpop.permute.xlu0 %2776  ;;  %v9379_v5 = vadd.f32 %v9247_v4, %v12045_v63  ;;  %v12051_v4 = vld [vmem:[#allocation57_spill] sm:$0xff] }
 0x683   : > { %v2749_v20 = vpop.permute.xlu1 %2748  ;;  %12040 = vst [vmem:[#allocation43_spill] sm:$0xff] %v9361_v36  ;;  %v9397_v19 = vadd.f32 %v9254_v8, %v12051_v4  ;;  %v12057_v8 = vld [vmem:[#allocation60_spill] sm:$0xff] }
 0x684   : > { %v9357_v25 = vadd.f32 %v2749_v20, %v12037_v9  ;;  %12046 = vst [vmem:[#allocation46_spill] sm:$0xff] %v9379_v5 }
 0x685   : > { %12052 = vst [vmem:[#allocation49_spill] sm:$0xff] %v9397_v19 }
 0x686   : > { %12038 = vst [vmem:[#allocation45_spill] sm:$0xff] %v9357_v25 }
 0x688   : > { %3077 = vperm.xlu2 %7170, %v3072_v37   ;;  %7173 = vset.pattern.permute.xlu0 %v12008_v12  ;;  %v9365_v37 = vadd.f32 %v9245_v55, %v12041_v26  ;;  %v12047_v55 = vld [vmem:[#allocation52_spill] sm:$0xff] }
 0x689   : > { %3063 = vperm.xlu1 %7169, %v3058_v2   ;;  %3292 = vperm.xlu0 %7173, %v9259_v1   ;;  %v9383_v56 = vadd.f32 %v9252_v38, %v12047_v55  ;;  %v12053_v38 = vld [vmem:[#allocation55_spill] sm:$0xff] }
 0x68a   : > { %v9264_v3 = vpop.permute.xlu2 %2846  ;;  %v9266_v6 = vpop.permute.xlu0 %2797  ;;  %12042 = vst [vmem:[#allocation50_spill] sm:$0xff] %v9365_v37 }
 0x68b   : > { %v2770_v21 = vpop.permute.xlu1 %2769  ;;  %12048 = vst [vmem:[#allocation53_spill] sm:$0xff] %v9383_v56  ;;  %v9401_v47 = vadd.f32 %v9264_v3, %v12053_v38  ;;  %v9415_v35 = vadd.f32 %v9266_v6, %v12057_v8  ;;  %v12059_v3 = vld [vmem:[#allocation58_spill] sm:$0xff]  ;;  %v12063_v6 = vld [vmem:[#allocation63_spill] sm:$0xff] }
 0x68d   : > { %12054 = vst [vmem:[#allocation56_spill] sm:$0xff] %v9401_v47 }
 0x68e   : > { %12058 = vst [vmem:[#allocation52_spill] sm:$0xff] %v9415_v35 }
 0x690   : > { %7171 = vset.pattern.permute.xlu2 %v12008_v12 }
 0x691   : > { %3084 = vperm.xlu1 %7169, %v3079_v24   ;;  %3286 = vperm.xlu2 %7171, %v9269_v42   ;;  %v9375_v24 = vadd.f32 %v2770_v21, %v12043_v40  ;;  %v12061_v40 = vld [vmem:[#allocation65_spill] sm:$0xff] }
 0x692   : > { %3307 = vperm.xlu0 %7173, %v9274_v18   ;;  %v9279_v27 = vpop.permute.xlu2 %2867  ;;  %v9281_v0 = vpop.permute.xlu0 %2818 }
 0x693   : > { %v2791_v54 = vpop.permute.xlu1 %2790  ;;  %12044 = vst [vmem:[#allocation48_spill] sm:$0xff] %v9375_v24  ;;  %v9419_v9 = vadd.f32 %v9279_v27, %v12059_v3  ;;  %v9433_v55 = vadd.f32 %v9281_v0, %v12063_v6  ;;  %v12065_v27 = vld [vmem:[#allocation61_spill] sm:$0xff]  ;;  %v12069_v0 = vld [vmem:[#allocation66_spill] sm:$0xff] }
 0x694   : > { %v9393_v16 = vadd.f32 %v2791_v54, %v12049_v57 }
 0x695   : > { %12060 = vst [vmem:[#allocation59_spill] sm:$0xff] %v9419_v9 }
 0x696   : > { %12050 = vst [vmem:[#allocation51_spill] sm:$0xff] %v9393_v16 }
 0x697   : > { %12064 = vst [vmem:[#allocation55_spill] sm:$0xff] %v9433_v55 }
 0x699   : > { %7172 = vset.pattern.permute.xlu1 %v12008_v12  ;;  %3295 = vperm.xlu2 %7171, %v9284_v17  }
 0x69a   : > { %3316 = vperm.xlu0 %7173, %v9288_v50   ;;  %3289 = vperm.xlu1 %7172, %v9292_v30   ;;  %v9298_v43 = vpop.permute.xlu2 %2888  ;;  %v9300_v31 = vpop.permute.xlu0 %2839  ;;  %v3613_v30 = vld [vmem:[#allocation2] sm:$0xff] }
 0x69b   : > { %v2812_v61 = vpop.permute.xlu1 %2811  ;;  %v9437_v57 = vadd.f32 %v9298_v43, %v12065_v27  ;;  %v9451_v3 = vadd.f32 %v9300_v31, %v12069_v0  ;;  %v12071_v43 = vld [vmem:[#allocation64_spill] sm:$0xff]  ;;  %v12075_v31 = vld [vmem:[#allocation69_spill] sm:$0xff] }
 0x69c   : > { %v9411_v41 = vadd.f32 %v2812_v61, %v12055_v45  ;;  %v12067_v45 = vld [vmem:[#allocation68_spill] sm:$0xff] }
 0x69d   : > { %12066 = vst [vmem:[#allocation62_spill] sm:$0xff] %v9437_v57 }
 0x69e   : > { %12056 = vst [vmem:[#allocation54_spill] sm:$0xff] %v9411_v41 }
 0x69f   : > { %12070 = vst [vmem:[#allocation58_spill] sm:$0xff] %v9451_v3 }
 0x6a1   : > { %3301 = vperm.xlu2 %7171, %v9303_v10  }
 0x6a2   : > { %3325 = vperm.xlu0 %7173, %v9311_v28   ;;  %3298 = vperm.xlu1 %7172, %v9307_v46   ;;  %v9316_v44 = vpop.permute.xlu2 %2909  ;;  %v9318_v52 = vpop.permute.xlu0 %2860  ;;  %v7053_v28 = vld [vmem:[%s11718_s3 + $0x50] sm:$0xff] }
 0x6a3   : > { %v2833_v7 = vpop.permute.xlu1 %2832  ;;  %v9469_v0 = vadd.f32 %v9318_v52, %v12075_v31  ;;  %v12081_v52 = vld [vmem:[#allocation8_spill] sm:$0xff] }
 0x6a4   : > { %v9429_v63 = vadd.f32 %v2833_v7, %v12061_v40  ;;  %v9455_v40 = vadd.f32 %v9316_v44, %v12071_v43  ;;  %v12077_v44 = vld [vmem:[#allocation67_spill] sm:$0xff] }
 0x6a5   : > { %12076 = vst [vmem:[#allocation61_spill] sm:$0xff] %v9469_v0 }
 0x6a6   : > { %12062 = vst [vmem:[#allocation57_spill] sm:$0xff] %v9429_v63 }
 0x6a7   : > { %12072 = vst [vmem:[#allocation65_spill] sm:$0xff] %v9455_v40 }
 0x6a9   : > { %3310 = vperm.xlu2 %7171, %v9321_v60   ;;  %v7052_v60 = vld [vmem:[%s11718_s3 + $0x48] sm:$0xff] }
 0x6aa   : > { %3334 = vperm.xlu0 %7173, %v9329_v39   ;;  %3304 = vperm.xlu1 %7172, %v9325_v15   ;;  %v9334_v58 = vpop.permute.xlu2 %2930  ;;  %v9336_v53 = vpop.permute.xlu0 %2881  ;;  %v7055_v39 = vld [vmem:[%s11718_s3 + $0x60] sm:$0xff] }
 0x6ab   : > { %v2854_v32 = vpop.permute.xlu1 %2853  ;;  %v9473_v43 = vadd.f32 %v9334_v58, %v12077_v44  ;;  %v9487_v31 = vadd.f32 %v9336_v53, %v12081_v52  ;;  %v12083_v58 = vld [vmem:[#allocation15_spill] sm:$0xff]  ;;  %v12087_v53 = vld [vmem:[#allocation10_spill] sm:$0xff] }
 0x6ac   : > { %v9447_v8 = vadd.f32 %v2854_v32, %v12067_v45  ;;  %v12073_v45 = vld [vmem:[#allocation6_spill] sm:$0xff] }
 0x6ad   : > { %12078 = vst [vmem:[#allocation68_spill] sm:$0xff] %v9473_v43 }
 0x6ae   : > { %12068 = vst [vmem:[#allocation60_spill] sm:$0xff] %v9447_v8 }
 0x6af   : > { %12082 = vst [vmem:[#allocation64_spill] sm:$0xff] %v9487_v31 }
 0x6b1   : > { %3319 = vperm.xlu2 %7171, %v9339_v29   ;;  %v7054_v29 = vld [vmem:[%s11718_s3 + $0x58] sm:$0xff] }
 0x6b2   : > { %3343 = vperm.xlu0 %7173, %v9347_v33   ;;  %3313 = vperm.xlu1 %7172, %v9343_v23   ;;  %v9352_v13 = vpop.permute.xlu2 %2951  ;;  %v9354_v48 = vpop.permute.xlu0 %2902  ;;  %v7057_v33 = vld [vmem:[%s11718_s3 + $0x70] sm:$0xff] }
 0x6b3   : > { %v2875_v14 = vpop.permute.xlu1 %2874  ;;  %v9491_v44 = vadd.f32 %v9352_v13, %v12083_v58  ;;  %v9505_v52 = vadd.f32 %v9354_v48, %v12087_v53  ;;  %v12089_v13 = vld [vmem:[#allocation18_spill] sm:$0xff]  ;;  %v12095_v53 = vld [vmem:[#allocation21_spill] sm:$0xff] }
 0x6b5   : > { %12084 = vst [vmem:[#allocation6_spill] sm:$0xff] %v9491_v44 }
 0x6b6   : > { %12088 = vst [vmem:[#allocation67_spill] sm:$0xff] %v9505_v52 }
 0x6b9   : > { %3328 = vperm.xlu2 %7171, %v9357_v25  }
 0x6ba   : > { %3352 = vperm.xlu0 %7173, %v9365_v37   ;;  %3322 = vperm.xlu1 %7172, %v9361_v36   ;;  %v9370_v59 = vpop.permute.xlu2 %2972  ;;  %v9372_v2 = vpop.permute.xlu0 %2923  ;;  %v7058_v36 = vld [vmem:[%s11718_s3 + $0x78] sm:$0xff] }
 0x6bb   : > { %v2896_v20 = vpop.permute.xlu1 %2895  ;;  %v9509_v58 = vadd.f32 %v9370_v59, %v12089_v13 }
 0x6c1   : > { %3337 = vperm.xlu2 %7171, %v9375_v24  }
 0x6c2   : > { %3361 = vperm.xlu0 %7173, %v9383_v56   ;;  %3331 = vperm.xlu1 %7172, %v9379_v5   ;;  %v9388_v51 = vpop.permute.xlu2 %2993  ;;  %v9390_v62 = vpop.permute.xlu0 %2944  ;;  %v7059_v5 = vld [vmem:[%s11718_s3 + $0x80] sm:$0xff] }
 0x6c3   : > { %v2917_v21 = vpop.permute.xlu1 %2916  ;;  %v9525_v59 = vadd.f32 %v9388_v51, %v12095_v53 }
 0x6c9   : > { %3346 = vperm.xlu2 %7171, %v9393_v16   ;;  %v7060_v16 = vld [vmem:[%s11718_s3 + $0x88] sm:$0xff] }
 0x6ca   : > { %3370 = vperm.xlu0 %7173, %v9401_v47   ;;  %3340 = vperm.xlu1 %7172, %v9397_v19   ;;  %v9406_v34 = vpop.permute.xlu2 %3014  ;;  %v9408_v49 = vpop.permute.xlu0 %2965 }
 0x6cb   : > { %v2938_v54 = vpop.permute.xlu1 %2937  ;;  %4046 = vmatpush.msrb.mxu2 %v7060_v16 }
 0x6cd   : > { %4047 = vmatpush.msrb.mxu2 %v7059_v5  ;;  %v7056_v5 = vld [vmem:[%s11718_s3 + $0x68] sm:$0xff] }
 0x6cf   : > { %4048 = vmatpush.msrb.mxu2 %v7058_v36 }
 0x6d1   : > { %3355 = vperm.xlu2 %7171, %v9411_v41   ;;  %4049 = vmatpush.msrb.mxu2 %v7057_v33 }
 0x6d2   : > { %3379 = vperm.xlu0 %7173, %v9419_v9   ;;  %3349 = vperm.xlu1 %7172, %v9415_v35   ;;  %v9424_v11 = vpop.permute.xlu2 %3035  ;;  %v9426_v26 = vpop.permute.xlu0 %2986  ;;  %v12110_v9 = vld [vmem:[#allocation19_spill] sm:$0xff] }
 0x6d3   : > { %v2959_v61 = vpop.permute.xlu1 %2958  ;;  %4050 = vmatpush.msrb.mxu2 %v7056_v5 }
 0x6d5   : > { %4051 = vmatpush.msrb.mxu2 %v7055_v39 }
 0x6d7   : > { %4052 = vmatpush.msrb.mxu2 %v7054_v29 }
 0x6d9   : > { %3364 = vperm.xlu2 %7171, %v9429_v63   ;;  %4053 = vmatpush.msrb.mxu2 %v7053_v28 }
 0x6da   : > { %3388 = vperm.xlu0 %7173, %v9437_v57   ;;  %3358 = vperm.xlu1 %7172, %v9433_v55   ;;  %v9442_v4 = vpop.permute.xlu2 %3056  ;;  %v9444_v38 = vpop.permute.xlu0 %3007  ;;  %v9465_v57 = vadd.f32 %v2875_v14, %v12073_v45  ;;  %v12079_v45 = vld [vmem:[#allocation7_spill] sm:$0xff]  ;;  %v12093_v55 = vld [vmem:[#allocation12_spill] sm:$0xff] }
 0x6db   : > { %v2980_v7 = vpop.permute.xlu1 %2979  ;;  %12090 = vst [vmem:[#allocation7_spill] sm:$0xff] %v9509_v58  ;;  %v9521_v48 = vadd.f32 %v9372_v2, %v12093_v55  ;;  %v12101_v55 = vld [vmem:[#allocation25_spill] sm:$0xff]  ;;  %4054 = vmatpush.msrb.mxu2 %v7052_v60 }
 0x6dc   : > { %12074 = vst [vmem:[#allocation63_spill] sm:$0xff] %v9465_v57  ;;  %v9541_v51 = vadd.f32 %v9406_v34, %v12101_v55  ;;  %v12109_v55 = vld [vmem:[#allocation70_spill] sm:$0xff] }
 0x6dd   : > { %12094 = vst [vmem:[#allocation15_spill] sm:$0xff] %v9521_v48 }
 0x6e1   : > { %3373 = vperm.xlu2 %7171, %v9447_v8   ;;  %v9483_v8 = vadd.f32 %v2896_v20, %v12079_v45  ;;  %v12085_v45 = vld [vmem:[#allocation9_spill] sm:$0xff] }
 0x6e2   : > { %3397 = vperm.xlu0 %7173, %v9455_v40   ;;  %3367 = vperm.xlu1 %7172, %v9451_v3   ;;  %v9460_v6 = vpop.permute.xlu2 %3077  ;;  %v9462_v27 = vpop.permute.xlu0 %3028  ;;  %12096 = vst [vmem:[#allocation9_spill] sm:$0xff] %v9525_v59 }
 0x6e3   : > { %v3001_v32 = vpop.permute.xlu1 %3000  ;;  %12080 = vst [vmem:[#allocation66_spill] sm:$0xff] %v9483_v8 }
 0x6e9   : > { %3382 = vperm.xlu2 %7171, %v9465_v57   ;;  %v9501_v57 = vadd.f32 %v2917_v21, %v12085_v45  ;;  %v12091_v21 = vld [vmem:[#allocation11_spill] sm:$0xff] }
 0x6ea   : > { %3406 = vperm.xlu0 %7173, %v9473_v43   ;;  %3376 = vperm.xlu1 %7172, %v9469_v0   ;;  %v9478_v40 = vpop.permute.xlu0 %3049  ;;  %v9517_v45 = vadd.f32 %v2938_v54, %v12091_v21  ;;  %v12097_v54 = vld [vmem:[#allocation13_spill] sm:$0xff]  ;;  %12102 = vst [vmem:[#allocation11_spill] sm:$0xff] %v9541_v51 }
 0x6eb   : > { %v9480_v3 = vpop.permute.xlu1 %3021  ;;  %v3287_v14 = vpop.permute.xlu2 %3286  ;;  %12086 = vst [vmem:[#allocation69_spill] sm:$0xff] %v9501_v57  ;;  %v9533_v21 = vadd.f32 %v2959_v61, %v12097_v54  ;;  %v12103_v61 = vld [vmem:[#allocation16_spill] sm:$0xff] }
 0x6ec   : > { %12092 = vst [vmem:[#allocation8_spill] sm:$0xff] %v9517_v45  ;;  %v9549_v54 = vadd.f32 %v2980_v7, %v12103_v61 }
 0x6ed   : > { %12098 = vst [vmem:[#allocation10_spill] sm:$0xff] %v9533_v21 }
 0x6ee   : > { %12104 = vst [vmem:[#allocation12_spill] sm:$0xff] %v9549_v54 }
 0x6f1   : > { %3391 = vperm.xlu2 %7171, %v9483_v8  }
 0x6f2   : > { %3415 = vperm.xlu0 %7173, %v9491_v44   ;;  %3385 = vperm.xlu1 %7172, %v9487_v31   ;;  %v9496_v43 = vpop.permute.xlu0 %3070 }
 0x6f3   : > { %v9498_v0 = vpop.permute.xlu1 %3042  ;;  %v3296_v20 = vpop.permute.xlu2 %3295 }
 0x6f9   : > { %3400 = vperm.xlu2 %7171, %v9501_v57   ;;  %v12099_v57 = vld [vmem:[#allocation14_spill] sm:$0xff] }
 0x6fa   : > { %3424 = vperm.xlu0 %7173, %v9509_v58   ;;  %3394 = vperm.xlu1 %7172, %v9505_v52   ;;  %v9537_v2 = vadd.f32 %v9390_v62, %v12099_v57  ;;  %v12107_v57 = vld [vmem:[#allocation28_spill] sm:$0xff] }
 0x6fb   : > { %v9514_v44 = vpop.permute.xlu1 %3063  ;;  %v3302_v31 = vpop.permute.xlu2 %3301  ;;  %v9557_v34 = vadd.f32 %v9424_v11, %v12107_v57  ;;  %v9567_v11 = vadd.f32 %v3001_v32, %v12110_v9 }
 0x6fc   : > { %v3293_v8 = vpop.permute.xlu0 %3292  ;;  %12100 = vst [vmem:[#allocation18_spill] sm:$0xff] %v9537_v2  ;;  %v3482_v32 = vperm.slane %v3302_v31, %v12109_v55  ;;  %v12120_v31 = vld [vmem:[#allocation33_spill] sm:$0xff] }
 0x6fd   : > { %12108 = vst [vmem:[#allocation13_spill] sm:$0xff] %v9557_v34 }
 0x6fe   : > { %12111 = vst [vmem:[#allocation14_spill] sm:$0xff] %v9567_v11 }
 0x701   : > { %3409 = vperm.xlu2 %7171, %v9517_v45   ;;  %v12105_v45 = vld [vmem:[#allocation17_spill] sm:$0xff] }
 0x702   : > { %3433 = vperm.xlu0 %7173, %v9525_v59   ;;  %3403 = vperm.xlu1 %7172, %v9521_v48   ;;  %v9553_v62 = vadd.f32 %v9408_v49, %v12105_v45  ;;  %v3479_v49 = vperm.slane %v3293_v8, %v12109_v55 }
 0x703   : > { %v9530_v13 = vpop.permute.xlu1 %3084  ;;  %v3311_v58 = vpop.permute.xlu2 %3310 }
 0x704   : > { %v3308_v52 = vpop.permute.xlu0 %3307  ;;  %12106 = vst [vmem:[#allocation21_spill] sm:$0xff] %v9553_v62 }
 0x709   : > { %3418 = vperm.xlu2 %7171, %v9533_v21  }
 0x70a   : > { %3442 = vperm.xlu0 %7173, %v9541_v51   ;;  %3412 = vperm.xlu1 %7172, %v9537_v2   ;;  %v3477_v51 = vperm.slane %v3287_v14, %v12109_v55 }
 0x70b   : > { %v9546_v53 = vpop.permute.xlu2 %3319 }
 0x70c   : > { %v3290_v59 = vpop.permute.xlu1 %3289  ;;  %v3317_v48 = vpop.permute.xlu0 %3316 }
 0x70d   : > { %v3478_v21 = vperm.slane %v3290_v59, %v12109_v55 }
 0x70f   : > { %v3541_v7 = vsel %vm1591_vm3, %v3478_v21, %v3477_v51  ;;  %v3480_v21 = vperm.slane %v3296_v20, %v12109_v55 }
 0x710   : > { %v3542_v59 = vsel %vm1593_vm4, %v3479_v49, %v3541_v7 }
 0x711   : > { %3427 = vperm.xlu2 %7171, %v9549_v54   ;;  %v12112_v54 = vld [vmem:[#allocation20_spill] sm:$0xff]  ;;  %v3543_v8 = vsel %vm1595_vm5, %v3480_v21, %v3542_v59  ;;  %v12118_v59 = vld [vmem:[#allocation23_spill] sm:$0xff]  ;;  %v9602_v21 = vadd.f32 %v9460_v6, %v12120_v31  ;;  %v3485_v6 = vperm.slane %v3311_v58, %v12109_v55  ;;  %v3488_v58 = vperm.slane %v9546_v53, %v12109_v55 }
 0x712   : > { %3451 = vperm.xlu0 %7173, %v9557_v34   ;;  %3421 = vperm.xlu1 %7172, %v9553_v62   ;;  %v9573_v14 = vadd.f32 %v9426_v26, %v12112_v54  ;;  %v12114_v34 = vld [vmem:[#allocation31_spill] sm:$0xff]  ;;  %v3484_v54 = vperm.slane %v3308_v52, %v12109_v55 }
 0x713   : > { %v3329_v45 = vpop.permute.xlu2 %3328  ;;  %v9577_v62 = vadd.f32 %v9442_v4, %v12114_v34  ;;  %v12116_v34 = vld [vmem:[#allocation22_spill] sm:$0xff]  ;;  %12121 = vst [vmem:[#allocation19_spill] sm:$0xff] %v9602_v21 }
 0x714   : > { %v3299_v61 = vpop.permute.xlu1 %3298  ;;  %v3326_v2 = vpop.permute.xlu0 %3325  ;;  %12113 = vst [vmem:[#allocation25_spill] sm:$0xff] %v9573_v14  ;;  %v9593_v7 = vadd.f32 %v9480_v3, %v12116_v34  ;;  %v3487_v34 = vperm.slane %v3317_v48, %v12109_v55  ;;  %v12129_v48 = vld [vmem:[#allocation29_spill] sm:$0xff] }
 0x715   : > { %v3481_v57 = vperm.slane %v3299_v61, %v12109_v55  ;;  %12115 = vst [vmem:[#allocation16_spill] sm:$0xff] %v9577_v62 }
 0x716   : > { %12117 = vst [vmem:[#allocation17_spill] sm:$0xff] %v9593_v7 }
 0x717   : > { %v3544_v9 = vsel %vm1597_vm6, %v3481_v57, %v3543_v8  ;;  %v9598_v57 = vadd.f32 %v9444_v38, %v12118_v59  ;;  %v12122_v38 = vld [vmem:[#allocation24_spill] sm:$0xff] }
 0x718   : > { %v3545_v20 = vsel %vm1599_vm7, %v3482_v32, %v3544_v9  ;;  %v9612_v32 = vadd.f32 %v9498_v0, %v12122_v38  ;;  %v9635_v38 = vadd.f32 %v9478_v40, %v12129_v48 }
 0x719   : > { %3436 = vperm.xlu2 %7171, %v9567_v11   ;;  %12119 = vst [vmem:[#allocation28_spill] sm:$0xff] %v9598_v57 }
 0x71a   : > { %3460 = vperm.xlu0 %7173, %v9577_v62   ;;  %3430 = vperm.xlu1 %7172, %v9573_v14   ;;  %12123 = vst [vmem:[#allocation20_spill] sm:$0xff] %v9612_v32 }
 0x71b   : > { %v3338_v61 = vpop.permute.xlu2 %3337  ;;  %12130 = vst [vmem:[#allocation23_spill] sm:$0xff] %v9635_v38 }
 0x71c   : > { %v3305_v26 = vpop.permute.xlu1 %3304  ;;  %v9586_v51 = vpop.permute.xlu0 %3334 }
 0x71d   : > { %v3483_v4 = vperm.slane %v3305_v26, %v12109_v55  ;;  %v12124_v26 = vld [vmem:[#allocation26_spill] sm:$0xff] }
 0x71f   : > { %v3546_v49 = vsel %vm1601_vm8, %v3483_v4, %v3545_v20  ;;  %v9617_v4 = vadd.f32 %v9462_v27, %v12124_v26  ;;  %v3086_v26 = vperm.slane %v9238_v22, 7 }
 0x720   : > { %v3547_v8 = vsel %vm1603_vm9, %v3484_v54, %v3546_v49  ;;  %v12126_v49 = vld [vmem:[#allocation5_spill] sm:$0xff] }
 0x721   : > { %3605 = vst.msk [vmem:[#allocation2 + $0x11] sm:$0xff] %vm300_vm1, %v3547_v8  ;;  %3445 = vperm.xlu2 %7171, %v9593_v7   ;;  %v12127_v8 = vld [vmem:[#allocation27_spill] sm:$0xff] }
 0x722   : > { %3469 = vperm.xlu0 %7173, %v9602_v21   ;;  %3439 = vperm.xlu1 %7172, %v9598_v57   ;;  %12125 = vst [vmem:[#allocation31_spill] sm:$0xff] %v9617_v4 }
 0x723   : > { %v3347_v54 = vpop.permute.xlu2 %3346 }
 0x724   : > { %v3314_v3 = vpop.permute.xlu1 %3313  ;;  %v3344_v52 = vpop.permute.xlu0 %3343 }
 0x725   : > { %v3486_v9 = vperm.slane %v3314_v3, %v12109_v55  ;;  %v9630_v3 = vadd.f32 %v9514_v44, %v12127_v8  ;;  %v3621_v8 = vld [vmem:[#allocation2 + $0x1] sm:$0xff] }
 0x727   : > { %v3548_v20 = vsel %vm1591_vm3, %v3486_v9, %v3485_v6  ;;  %12128 = vst [vmem:[#allocation22_spill] sm:$0xff] %v9630_v3 }
 0x728   : > { %v3549_v0 = vsel %vm1593_vm4, %v3487_v34, %v3548_v20  ;;  %v3490_v20 = vperm.slane %v3326_v2, %v12109_v55  ;;  %v3491_v34 = vperm.slane %v3329_v45, %v12109_v55  ;;  %v3494_v45 = vperm.slane %v3338_v61, %v12109_v55 }
 0x729   : > { %3454 = vperm.xlu2 %7171, %v9612_v32   ;;  %v3550_v9 = vsel %vm1595_vm5, %v3488_v58, %v3549_v0  ;;  %v3497_v61 = vperm.slane %v3347_v54, %v12109_v55 }
 0x72a   : > { %7174 = vset.pattern.permute.xlu0 %v12126_v49  ;;  %3448 = vperm.xlu1 %7172, %v9617_v4  }
 0x72b   : > { %v3356_v53 = vpop.permute.xlu2 %3355 }
 0x72c   : > { %v3323_v59 = vpop.permute.xlu1 %3322  ;;  %v3353_v31 = vpop.permute.xlu0 %3352 }
 0x72d   : > { %v3489_v27 = vperm.slane %v3323_v59, %v12109_v55 }
 0x72f   : > { %v3551_v6 = vsel %vm1597_vm6, %v3489_v27, %v3550_v9  ;;  %v12131_v27 = vld [vmem:[#allocation30_spill] sm:$0xff]  ;;  %v12133_v9 = vld [vmem:[#allocation32_spill] sm:$0xff] }
 0x730   : > { %v3552_v44 = vsel %vm1599_vm7, %v3490_v20, %v3551_v6  ;;  %v9648_v22 = vadd.f32 %v9530_v13, %v12131_v27  ;;  %v9653_v48 = vadd.f32 %v9496_v43, %v12133_v9  ;;  %v3493_v13 = vperm.slane %v9586_v51, %v12109_v55 }
 0x731   : > { %3463 = vperm.xlu2 %7171, %v9630_v3   ;;  %v3553_v58 = vsel %vm1601_vm8, %v3491_v34, %v3552_v44 }
 0x732   : > { %3091 = vperm.xlu0 %7174, %v3086_v26   ;;  %3457 = vperm.xlu1 %7172, %v9635_v38   ;;  %12132 = vst [vmem:[#allocation33_spill] sm:$0xff] %v9648_v22  ;;  %v3555_v43 = vsel %vm1591_vm3, %v3494_v45, %v3493_v13  ;;  %v3500_v45 = vperm.slane %v3356_v53, %v12109_v55 }
 0x733   : > { %12134 = vst [vmem:[#allocation24_spill] sm:$0xff] %v9653_v48  ;;  %v3365_v20 = vpop.permute.xlu2 %3364 }
 0x734   : > { %v3332_v0 = vpop.permute.xlu1 %3331  ;;  %v3362_v59 = vpop.permute.xlu0 %3361 }
 0x735   : > { %v3492_v40 = vperm.slane %v3332_v0, %v12109_v55  ;;  %v9665_v0 = vld [vmem:[#allocation2 + $0x11] sm:$0xff] }
 0x737   : > { %v3554_v2 = vsel %vm1603_vm9, %v3492_v40, %v3553_v58  ;;  %v3496_v40 = vperm.slane %v3344_v52, %v12109_v55 }
 0x738   : > { %3606 = vst.msk [vmem:[#allocation2 + $0x21] sm:$0xff] %vm300_vm1, %v3554_v2 }
 0x739   : > { %3472 = vperm.xlu2 %7171, %v9648_v22  }
 0x73a   : > { %3466 = vperm.xlu1 %7172, %v9653_v48   ;;  %3693 = vrot.lane.b32.xlu0 %v3621_v8, %s7200_s14  ;;  %v3499_v8 = vperm.slane %v3353_v31, %v12109_v55  ;;  %v3502_v31 = vperm.slane %v3362_v59, %v12109_v55 }
 0x73b   : > { %v3374_v52 = vpop.permute.xlu2 %3373 }
 0x73c   : > { %v3341_v6 = vpop.permute.xlu1 %3340  ;;  %v3371_v26 = vpop.permute.xlu0 %3370 }
 0x73d   : > { %v3495_v44 = vperm.slane %v3341_v6, %v12109_v55 }
 0x73f   : > { %v3556_v34 = vsel %vm1593_vm4, %v3495_v44, %v3555_v43 }
 0x740   : > { %v3557_v51 = vsel %vm1595_vm5, %v3496_v40, %v3556_v34 }
 0x741   : > { %3695 = vrot.lane.b32.xlu2 %v9665_v0, %s7200_s14  ;;  %v3558_v9 = vsel %vm1597_vm6, %v3497_v61, %v3557_v51 }
 0x742   : > { %7176 = vset.pattern.permute.xlu2 %v12126_v49 }
 0x743   : > { %v3383_v40 = vpop.permute.xlu2 %3382 }
 0x744   : > { %v3350_v58 = vpop.permute.xlu1 %3349  ;;  %v3380_v27 = vpop.permute.xlu0 %3379 }
 0x745   : > { %v3498_v2 = vperm.slane %v3350_v58, %v12109_v55 }
 0x747   : > { %v3559_v13 = vsel %vm1599_vm7, %v3498_v2, %v3558_v9  ;;  %v3503_v2 = vperm.slane %v3365_v20, %v12109_v55 }
 0x748   : > { %v3560_v6 = vsel %vm1601_vm8, %v3499_v8, %v3559_v13  ;;  %v3505_v13 = vperm.slane %v3371_v26, %v12109_v55 }
 0x749   : > { %v3561_v44 = vsel %vm1603_vm9, %v3500_v45, %v3560_v6 }
 0x74a   : > { %3607 = vst.msk [vmem:[#allocation2 + $0x31] sm:$0xff] %vm300_vm1, %v3561_v44  ;;  %v3506_v44 = vperm.slane %v3374_v52, %v12109_v55  ;;  %v3509_v52 = vperm.slane %v3383_v40, %v12109_v55 }
 0x74b   : > { %v3392_v6 = vpop.permute.xlu2 %3391 }
 0x74c   : > { %v3359_v54 = vpop.permute.xlu1 %3358  ;;  %v3389_v43 = vpop.permute.xlu0 %3388 }
 0x74d   : > { %v3501_v34 = vperm.slane %v3359_v54, %v12109_v55 }
 0x74f   : > { %v3562_v53 = vsel %vm1591_vm3, %v3502_v31, %v3501_v34  ;;  %v3508_v31 = vperm.slane %v3380_v27, %v12109_v55  ;;  %v3511_v27 = vperm.slane %v3389_v43, %v12109_v55 }
 0x750   : > { %v3563_v9 = vsel %vm1593_vm4, %v3503_v2, %v3562_v53 }
 0x751   : > { %v9682_v58 = vld [vmem:[#allocation2 + $0x31] sm:$0xff] }
 0x752   : > { %3699 = vrot.lane.b32.xlu0 %v9682_v58, %s7200_s14 }
 0x754   : > { %v3368_v51 = vpop.permute.xlu1 %3367  ;;  %v3398_v61 = vpop.permute.xlu0 %3397 }
 0x755   : > { %v3504_v8 = vperm.slane %v3368_v51, %v12109_v55 }
 0x757   : > { %v3564_v45 = vsel %vm1595_vm5, %v3504_v8, %v3563_v9  ;;  %v3401_v9 = vpop.permute.xlu2 %3400 }
 0x758   : > { %v3565_v59 = vsel %vm1597_vm6, %v3505_v13, %v3564_v45 }
 0x759   : > { %v3566_v20 = vsel %vm1599_vm7, %v3506_v44, %v3565_v59 }
 0x75c   : > { %v3377_v54 = vpop.permute.xlu1 %3376  ;;  %v3407_v48 = vpop.permute.xlu0 %3406 }
 0x75d   : > { %v3507_v34 = vperm.slane %v3377_v54, %v12109_v55 }
 0x75f   : > { %v3567_v51 = vsel %vm1601_vm8, %v3507_v34, %v3566_v20  ;;  %v3512_v34 = vperm.slane %v3392_v6, %v12109_v55  ;;  %v3410_v40 = vpop.permute.xlu2 %3409 }
 0x760   : > { %v3568_v53 = vsel %vm1603_vm9, %v3508_v31, %v3567_v51 }
 0x761   : > { %3608 = vst.msk [vmem:[#allocation2 + $0x41] sm:$0xff] %vm300_vm1, %v3568_v53  ;;  %v3514_v53 = vperm.slane %v3398_v61, %v12109_v55 }
 0x764   : > { %v3386_v26 = vpop.permute.xlu1 %3385  ;;  %v3416_v2 = vpop.permute.xlu0 %3415 }
 0x765   : > { %v3510_v8 = vperm.slane %v3386_v26, %v12109_v55 }
 0x767   : > { %v3569_v13 = vsel %vm1591_vm3, %v3510_v8, %v3509_v52  ;;  %v3515_v8 = vperm.slane %v3401_v9, %v12109_v55 }
 0x768   : > { %v9703_v45 = vld [vmem:[#allocation2 + $0x41] sm:$0xff]  ;;  %v3570_v59 = vsel %vm1593_vm4, %v3511_v27, %v3569_v13 }
 0x769   : > { %3701 = vrot.lane.b32.xlu2 %v9703_v45, %s7200_s14  ;;  %v3571_v20 = vsel %vm1595_vm5, %v3512_v34, %v3570_v59  ;;  %v3419_v59 = vpop.permute.xlu2 %3418  ;;  %v3517_v34 = vperm.slane %v3407_v48, %v12109_v55 }
 0x76c   : > { %v3395_v44 = vpop.permute.xlu1 %3394  ;;  %v3425_v54 = vpop.permute.xlu0 %3424 }
 0x76d   : > { %v3513_v31 = vperm.slane %v3395_v44, %v12109_v55  ;;  %v3518_v44 = vperm.slane %v3410_v40, %v12109_v55  ;;  %v3523_v48 = vperm.slane %v3425_v54, %v12109_v55 }
 0x76f   : > { %v3572_v51 = vsel %vm1597_vm6, %v3513_v31, %v3571_v20  ;;  %v3576_v9 = vsel %vm1591_vm3, %v3518_v44, %v3517_v34 }
 0x770   : > { %v3573_v26 = vsel %vm1599_vm7, %v3514_v53, %v3572_v51  ;;  %v3520_v53 = vperm.slane %v3416_v2, %v12109_v55 }
 0x771   : > { %v3574_v27 = vsel %vm1601_vm8, %v3515_v8, %v3573_v26  ;;  %v3521_v8 = vperm.slane %v3419_v59, %v12109_v55 }
 0x774   : > { %v3404_v43 = vpop.permute.xlu1 %3403  ;;  %v3434_v52 = vpop.permute.xlu0 %3433 }
 0x775   : > { %v3516_v13 = vperm.slane %v3404_v43, %v12109_v55  ;;  %v3428_v43 = vpop.permute.xlu2 %3427  ;;  %v3526_v54 = vperm.slane %v3434_v52, %v12109_v55  ;;  %v9751_v52 = vld [vmem:[#allocation2 + $0x12] sm:$0xff] }
 0x777   : > { %v3575_v6 = vsel %vm1603_vm9, %v3516_v13, %v3574_v27 }
 0x778   : > { %3609 = vst.msk [vmem:[#allocation2 + $0x51] sm:$0xff] %vm300_vm1, %v3575_v6  ;;  %v3524_v6 = vperm.slane %v3428_v43, %v12109_v55 }
 0x77c   : > { %v3413_v61 = vpop.permute.xlu1 %3412  ;;  %v3443_v20 = vpop.permute.xlu0 %3442 }
 0x77d   : > { %v3519_v31 = vperm.slane %v3413_v61, %v12109_v55 }
 0x77f   : > { %v3577_v51 = vsel %vm1593_vm4, %v3519_v31, %v3576_v9  ;;  %v3437_v31 = vpop.permute.xlu2 %3436 }
 0x780   : > { %v3578_v26 = vsel %vm1595_vm5, %v3520_v53, %v3577_v51  ;;  %v3527_v43 = vperm.slane %v3437_v31, %v12109_v55 }
 0x781   : > { %v3579_v27 = vsel %vm1597_vm6, %v3521_v8, %v3578_v26 }
 0x784   : > { %v3422_v13 = vpop.permute.xlu1 %3421  ;;  %v3452_v61 = vpop.permute.xlu0 %3451 }
 0x785   : > { %v3522_v40 = vperm.slane %v3422_v13, %v12109_v55 }
 0x787   : > { %v3580_v44 = vsel %vm1599_vm7, %v3522_v40, %v3579_v27  ;;  %v3446_v27 = vpop.permute.xlu2 %3445 }
 0x788   : > { %v3581_v34 = vsel %vm1601_vm8, %v3523_v48, %v3580_v44 }
 0x789   : > { %v3582_v2 = vsel %vm1603_vm9, %v3524_v6, %v3581_v34  ;;  %v3529_v6 = vperm.slane %v3443_v20, %v12109_v55  ;;  %v3530_v34 = vperm.slane %v3446_v27, %v12109_v55  ;;  %v9781_v27 = vld [vmem:[#allocation2 + $0x21] sm:$0xff] }
 0x78a   : > { %3610 = vst.msk [vmem:[#allocation2 + $0x61] sm:$0xff] %vm300_vm1, %v3582_v2 }
 0x78c   : > { %v3431_v59 = vpop.permute.xlu1 %3430  ;;  %v9741_v53 = vpop.permute.xlu0 %3460 }
 0x78d   : > { %v3525_v9 = vperm.slane %v3431_v59, %v12109_v55  ;;  %v3535_v32 = vperm.slane %v9741_v53, %v12109_v55 }
 0x78f   : > { %v3583_v26 = vsel %vm1591_vm3, %v3526_v54, %v3525_v9  ;;  %v3532_v9 = vperm.slane %v3452_v61, %v12109_v55 }
 0x790   : > { %v3584_v40 = vsel %vm1593_vm4, %v3527_v43, %v3583_v26 }
 0x791   : > { %v9738_v51 = vld [vmem:[#allocation2 + $0x61] sm:$0xff] }
 0x792   : > { %3705 = vrot.lane.b32.xlu0 %v9738_v51, %s7200_s14 }
 0x794   : > { %v3440_v8 = vpop.permute.xlu1 %3439  ;;  %v9757_v2 = vpop.permute.xlu0 %3469 }
 0x795   : > { %v3528_v13 = vperm.slane %v3440_v8, %v12109_v55  ;;  %v9765_v8 = vld [vmem:[#allocation2 + $0x42] sm:$0xff] }
 0x797   : > { %v3585_v48 = vsel %vm1595_vm5, %v3528_v13, %v3584_v40  ;;  %v12135_v13 = vld [vmem:[#allocation34_spill] sm:$0xff] }
 0x798   : > { %v3586_v44 = vsel %vm1597_vm6, %v3529_v6, %v3585_v48  ;;  %v9785_v6 = vld [vmem:[#allocation2 + $0x22] sm:$0xff] }
 0x799   : > { %v3587_v54 = vsel %vm1599_vm7, %v3530_v34, %v3586_v44  ;;  %v9790_v44 = vld [vmem:[#allocation2 + $0x30] sm:$0xff] }
 0x79a   : > { %3727 = vrot.lane.b32.xlu0 %v9751_v52, %s7201_s15  ;;  %v9794_v34 = vld [vmem:[#allocation2 + $0x51] sm:$0xff] }
 0x79c   : > { %v3449_v59 = vpop.permute.xlu1 %3448 }
 0x79d   : > { %v3531_v31 = vperm.slane %v3449_v59, %v12109_v55  ;;  %v9798_v59 = vld [vmem:[#allocation2 + $0x52] sm:$0xff] }
 0x79f   : > { %v3588_v20 = vsel %vm1601_vm8, %v3531_v31, %v3587_v54  ;;  %v9802_v31 = vld [vmem:[#allocation2 + $0x60] sm:$0xff]  ;;  %v9813_v54 = vld [vmem:[#allocation2 + $0x32] sm:$0xff] }
 0x7a0   : > { %v3589_v26 = vsel %vm1603_vm9, %v3532_v9, %v3588_v20  ;;  %v9807_v9 = vld [vmem:[#allocation2 + $0x10] sm:$0xff]  ;;  %v9817_v20 = vld [vmem:[#allocation2 + $0x40] sm:$0xff] }
 0x7a1   : > { %3611 = vst.msk [vmem:[#allocation2 + $0x71] sm:$0xff] %vm300_vm1, %v3589_v26  ;;  %v9823_v26 = vld [vmem:[#allocation2 + $0x62] sm:$0xff] }
 0x7a2   : > { %3733 = vrot.lane.b32.xlu0 %v9765_v8, %s7201_s15 }
 0x7a4   : > { %v3092_v43 = vpop.permute.xlu0 %3091 }
 0x7a5   : > { %v9770_v40 = vadd.f32 %v3092_v43, %v12135_v13  ;;  %v9841_v13 = vld [vmem:[#allocation2 + $0x50] sm:$0xff] }
 0x7a7   : > { %12136 = vst [vmem:[#allocation26_spill] sm:$0xff] %v9770_v40  ;;  %3475 = vperm.xlu1 %7172, %v9770_v40   ;;  %v3458_v40 = vpop.permute.xlu1 %3457 }
 0x7a8   : > { %v9773_v61 = vld [vmem:[#allocation2 + $0x71] sm:$0xff]  ;;  %v3534_v22 = vperm.slane %v3458_v40, %v12109_v55 }
 0x7a9   : > { %v9775_v48 = vld [vmem:[#allocation2 + $0x72] sm:$0xff]  ;;  %3707 = vrot.lane.b32.xlu2 %v9773_v61, %s7200_s14 }
 0x7aa   : > { %3739 = vrot.lane.b32.xlu0 %v9775_v48, %s7201_s15  ;;  %v9827_v43 = vld [vmem:[#allocation2 + $0x70] sm:$0xff] }
 0x7af   : > { %3697 = vrot.lane.b32.xlu1 %v9781_v27, %s7200_s14  ;;  %v3467_v21 = vpop.permute.xlu1 %3466 }
 0x7b0   : > { %7175 = vset.pattern.permute.xlu1 %v12126_v49  ;;  %v3629_v49 = vld [vmem:[#allocation2 + $0x2] sm:$0xff]  ;;  %v3537_v62 = vperm.slane %v3467_v21, %v12109_v55 }
 0x7b1   : > { %3729 = vrot.lane.b32.xlu2 %v9785_v6, %s7201_s15 }
 0x7b2   : > { %3761 = vrot.lane.b32.xlu0 %v9790_v44, %s7202_s16 }
 0x7b7   : > { %3703 = vrot.lane.b32.xlu1 %v9794_v34, %s7200_s14 }
 0x7b9   : > { %3735 = vrot.lane.b32.xlu2 %v9798_v59, %s7201_s15 }
 0x7ba   : > { %3767 = vrot.lane.b32.xlu0 %v9802_v31, %s7202_s16 }
 0x7bf   : > { %3725 = vrot.lane.b32.xlu1 %v3629_v49, %s7201_s15  ;;  %v3455_v49 = vpop.permute.xlu2 %3454 }
 0x7c0   : > { %v3533_v38 = vperm.slane %v3455_v49, %v12109_v55  ;;  %v3538_v49 = vperm.slane %v9757_v2, %v12109_v55 }
 0x7c1   : > { %3757 = vrot.lane.b32.xlu2 %v9807_v9, %s7202_s16 }
 0x7c2   : > { %3789 = vrot.lane.b32.xlu0 %v9665_v0, %s7203_s17  ;;  %v9833_v0 = vld [vmem:[#allocation2 + $0x20] sm:$0xff]  ;;  %v3590_v4 = vsel %vm1591_vm3, %v3534_v22, %v3533_v38 }
 0x7c3   : > { %v3591_v57 = vsel %vm1593_vm4, %v3535_v32, %v3590_v4 }
 0x7c7   : > { %3731 = vrot.lane.b32.xlu1 %v9813_v54, %s7201_s15  ;;  %v3464_v3 = vpop.permute.xlu2 %3463 }
 0x7c8   : > { %v3536_v7 = vperm.slane %v3464_v3, %v12109_v55 }
 0x7c9   : > { %3763 = vrot.lane.b32.xlu2 %v9817_v20, %s7202_s16 }
 0x7ca   : > { %3795 = vrot.lane.b32.xlu0 %v9703_v45, %s7203_s17  ;;  %v3592_v14 = vsel %vm1595_vm5, %v3536_v7, %v3591_v57 }
 0x7cb   : > { %v3593_v11 = vsel %vm1597_vm6, %v3537_v62, %v3592_v14 }
 0x7cc   : > { %v3594_v38 = vsel %vm1599_vm7, %v3538_v49, %v3593_v11  ;;  %v3668_v49 = vld [vmem:[#allocation2 + $0x90] sm:$0xff] }
 0x7cf   : > { %3737 = vrot.lane.b32.xlu1 %v9823_v26, %s7201_s15  ;;  %v3473_v40 = vpop.permute.xlu2 %3472 }
 0x7d0   : > { %v3539_v22 = vperm.slane %v3473_v40, %v12109_v55  ;;  %v3684_v40 = vld [vmem:[#allocation2 + $0x92] sm:$0xff] }
 0x7d1   : > { %3769 = vrot.lane.b32.xlu2 %v9827_v43, %s7202_s16 }
 0x7d2   : > { %3801 = vrot.lane.b32.xlu0 %v9773_v61, %s7203_s17  ;;  %v3595_v32 = vsel %vm1601_vm8, %v3539_v22, %v3594_v38 }
 0x7d7   : > { %3759 = vrot.lane.b32.xlu1 %v9833_v0, %s7202_s16  ;;  %v9896_v11 = vpop.permute.xlu2 %3695 }
 0x7d9   : > { %3791 = vrot.lane.b32.xlu2 %v9781_v27, %s7203_s17 }
 0x7da   : > { %3823 = vrot.lane.b32.xlu0 %v9785_v6, %s7204_s18 }
 0x7df   : > { %3765 = vrot.lane.b32.xlu1 %v9841_v13, %s7202_s16  ;;  %v9904_v4 = vpop.permute.xlu2 %3701 }
 0x7e1   : > { %3797 = vrot.lane.b32.xlu2 %v9794_v34, %s7203_s17 }
 0x7e2   : > { %3829 = vrot.lane.b32.xlu0 %v9798_v59, %s7204_s18 }
 0x803   : > { %v9916_v2 = vpop.permute.xlu2 %3707 }
 0x819   : > { %v3476_v63 = vpop.permute.xlu1 %3475 }
 0x81a   : > { %v3540_v53 = vperm.slane %v3476_v63, %v12109_v55  ;;  %v9886_v63 = vpop.permute.xlu0 %3693 }
 0x81b   : > { %v3941_v18 = vsel %vm300_vm1, %v3613_v30, %v9886_v63 }
 0x81c   : > { %v3596_v21 = vsel %vm1603_vm9, %v3540_v53, %v3595_v32 }
 0x81d   : > { %3612 = vst.msk [vmem:[#allocation2 + $0x81] sm:$0xff] %vm300_vm1, %v3596_v21 }
 0x822   : > { %v9898_v14 = vpop.permute.xlu0 %3699 }
 0x824   : > { %v3660_v7 = vld [vmem:[#allocation2 + $0x82] sm:$0xff] }
 0x825   : > { %v3652_v57 = vld [vmem:[#allocation2 + $0x81] sm:$0xff]  ;;  %3835 = vrot.lane.b32.xlu0 %v3660_v7, %s7204_s18 }
 0x826   : > { %v3644_v62 = vld [vmem:[#allocation2 + $0x80] sm:$0xff]  ;;  %3803 = vrot.lane.b32.xlu2 %v3652_v57, %s7203_s17 }
 0x827   : > { %3771 = vrot.lane.b32.xlu1 %v3644_v62, %s7202_s16 }
 0x82a   : > { %v9906_v3 = vpop.permute.xlu0 %3705 }
 0x82d   : > { %3857 = vrot.lane.b32.xlu0 %v9817_v20, %s7205_s19 }
 0x82e   : > { %3825 = vrot.lane.b32.xlu2 %v9813_v54, %s7204_s18 }
 0x82f   : > { %3793 = vrot.lane.b32.xlu1 %v9682_v58, %s7203_s17 }
 0x835   : > { %3863 = vrot.lane.b32.xlu0 %v9827_v43, %s7205_s19 }
 0x836   : > { %3831 = vrot.lane.b32.xlu2 %v9823_v26, %s7204_s18 }
 0x837   : > { %3799 = vrot.lane.b32.xlu1 %v9738_v51, %s7203_s17 }
 0x83d   : > { %3885 = vrot.lane.b32.xlu0 %v9781_v27, %s7206_s20  ;;  %v9918_v27 = vpop.permute.xlu0 %3727 }
 0x83e   : > { %3853 = vrot.lane.b32.xlu2 %v9833_v0, %s7205_s19 }
 0x83f   : > { %3821 = vrot.lane.b32.xlu1 %v9751_v52, %s7204_s18  ;;  %v9908_v52 = vpop.permute.xlu1 %3697 }
 0x845   : > { %3891 = vrot.lane.b32.xlu0 %v9794_v34, %s7206_s20  ;;  %v9930_v38 = vpop.permute.xlu0 %3733 }
 0x846   : > { %3859 = vrot.lane.b32.xlu2 %v9841_v13, %s7205_s19 }
 0x847   : > { %3827 = vrot.lane.b32.xlu1 %v9765_v8, %s7204_s18  ;;  %v9924_v34 = vpop.permute.xlu1 %3703 }
 0x84d   : > { %3897 = vrot.lane.b32.xlu0 %v3652_v57, %s7206_s20  ;;  %v9941_v22 = vpop.permute.xlu0 %3739 }
 0x84e   : > { %3865 = vrot.lane.b32.xlu2 %v3644_v62, %s7205_s19 }
 0x84f   : > { %3833 = vrot.lane.b32.xlu1 %v9775_v48, %s7204_s18 }
 0x855   : > { %3919 = vrot.lane.b32.xlu0 %v9813_v54, %s7207_s21  ;;  %v9928_v54 = vpop.permute.xlu2 %3729  ;;  %v9953_v21 = vpop.permute.xlu0 %3761 }
 0x856   : > { %3887 = vrot.lane.b32.xlu2 %v9682_v58, %s7206_s20  ;;  %v3676_v58 = vld [vmem:[#allocation2 + $0x91] sm:$0xff] }
 0x857   : > { %3855 = vrot.lane.b32.xlu1 %v9790_v44, %s7205_s19 }
 0x85d   : > { %3925 = vrot.lane.b32.xlu0 %v9823_v26, %s7207_s21  ;;  %v9935_v26 = vpop.permute.xlu1 %3725 }
 0x85e   : > { %3893 = vrot.lane.b32.xlu2 %v9738_v51, %s7206_s20  ;;  %v9937_v51 = vpop.permute.xlu2 %3735  ;;  %v3949_v1 = vsel %vm484_vm0, %v3941_v18, %v9935_v26 }
 0x85f   : > { %3861 = vrot.lane.b32.xlu1 %v9802_v31, %s7205_s19 }
 0x865   : > { %3931 = vrot.lane.b32.xlu0 %v3684_v40, %s7207_s21  ;;  %v9945_v53 = vpop.permute.xlu1 %3731 }
 0x866   : > { %3899 = vrot.lane.b32.xlu2 %v3676_v58, %s7206_s20  ;;  %v9949_v32 = vpop.permute.xlu2 %3757 }
 0x867   : > { %3867 = vrot.lane.b32.xlu1 %v3668_v49, %s7205_s19  ;;  %v3957_v60 = vsel %vm2016_vm10, %v3949_v1, %v9949_v32  ;;  %v3943_v32 = vsel %vm300_vm1, %v9833_v0, %v9908_v52 }
 0x86d   : > { %v9955_v57 = vpop.permute.xlu1 %3737 }
 0x86e   : > { %3921 = vrot.lane.b32.xlu2 %v9765_v8, %s7207_s21  ;;  %v9959_v8 = vpop.permute.xlu2 %3763 }
 0x86f   : > { %3889 = vrot.lane.b32.xlu1 %v9703_v45, %s7206_s20  ;;  %v9961_v45 = vpop.permute.xlu0 %3767 }
 0x875   : > { %v3760_v62 = vpop.permute.xlu1 %3759 }
 0x876   : > { %3927 = vrot.lane.b32.xlu2 %v9775_v48, %s7207_s21  ;;  %v9965_v48 = vpop.permute.xlu2 %3769 }
 0x877   : > { %3895 = vrot.lane.b32.xlu1 %v9773_v61, %s7206_s20  ;;  %v3790_v58 = vpop.permute.xlu0 %3789 }
 0x87d   : > { %v9968_v61 = vpop.permute.xlu1 %3765 }
 0x87e   : > { %v3792_v40 = vpop.permute.xlu2 %3791 }
 0x87f   : > { %3917 = vrot.lane.b32.xlu1 %v9785_v6, %s7207_s21  ;;  %v9970_v49 = vpop.permute.xlu0 %3795 }
 0x886   : > { %v9974_v6 = vpop.permute.xlu2 %3797 }
 0x887   : > { %3923 = vrot.lane.b32.xlu1 %v9798_v59, %s7207_s21  ;;  %v9976_v35 = vpop.permute.xlu0 %3801 }
 0x88e   : > { %v9980_v41 = vpop.permute.xlu2 %3803 }
 0x88f   : > { %3929 = vrot.lane.b32.xlu1 %v3660_v7, %s7207_s21  ;;  %12137 = vst [vmem:[#allocation5_spill] sm:$0xff] %v9980_v41  ;;  %v3824_v19 = vpop.permute.xlu0 %3823 }
 0x896   : > { %v9984_v56 = vpop.permute.xlu2 %3825 }
 0x897   : > { %v9992_v37 = vpop.permute.xlu0 %3829 }
 0x899   : > { %v9972_v55 = vpop.permute.xlu1 %3771 }
 0x89e   : > { %v10002_v25 = vpop.permute.xlu2 %3831 }
 0x89f   : > { %v10004_v23 = vpop.permute.xlu0 %3835 }
 0x8a0   : > { %12138 = vst [vmem:[#allocation27_spill] sm:$0xff] %v10004_v23  ;;  %v3965_v23 = vsel %vm2025_vm11, %v3957_v60, %v3790_v58 }
 0x8a1   : > { %v9978_v47 = vpop.permute.xlu1 %3793 }
 0x8a6   : > { %v3854_v15 = vpop.permute.xlu2 %3853 }
 0x8a7   : > { %v3858_v36 = vpop.permute.xlu0 %3857 }
 0x8a9   : > { %v9982_v59 = vpop.permute.xlu1 %3799 }
 0x8ae   : > { %v3860_v5 = vpop.permute.xlu2 %3859 }
 0x8af   : > { %v10023_v50 = vpop.permute.xlu0 %3863 }
 0x8b1   : > { %v3822_v7 = vpop.permute.xlu1 %3821 }
 0x8b2   : > { %v3973_v41 = vsel %vm2034_vm12, %v3965_v23, %v3822_v7 }
 0x8b3   : > { %v3981_v18 = vsel %vm2043_vm13, %v3973_v41, %v3854_v15  ;;  %v3951_v15 = vsel %vm484_vm0, %v3943_v32, %v9928_v54 }
 0x8b6   : > { %v10025_v10 = vpop.permute.xlu2 %3865 }
 0x8b7   : > { %12139 = vst [vmem:[#allocation29_spill] sm:$0xff] %v10025_v10  ;;  %v3886_v29 = vpop.permute.xlu0 %3885 }
 0x8b9   : > { %v9994_v24 = vpop.permute.xlu1 %3827 }
 0x8be   : > { %v3888_v12 = vpop.permute.xlu2 %3887 }
 0x8bf   : > { %v3892_v28 = vpop.permute.xlu0 %3891 }
 0x8c1   : > { %v10006_v16 = vpop.permute.xlu1 %3833 }
 0x8c6   : > { %v3894_v10 = vpop.permute.xlu2 %3893 }
 0x8c7   : > { %v10044_v26 = vpop.permute.xlu0 %3897 }
 0x8c9   : > { %v3856_v33 = vpop.permute.xlu1 %3855 }
 0x8ce   : > { %v3900_v58 = vpop.permute.xlu2 %3899 }
 0x8d1   : > { %v3862_v46 = vpop.permute.xlu1 %3861 }
 0x8d9   : > { %v10027_v39 = vpop.permute.xlu1 %3867 }
 0x8da   : > { %12140 = vst [vmem:[#allocation30_spill] sm:$0xff] %v10027_v39  ;;  %v3942_v39 = vsel %vm300_vm1, %v9807_v9, %v9896_v11  ;;  %v3989_v9 = vsel %vm2052_vm14, %v3981_v18, %v3886_v29  ;;  %v12142_v18 = vld [vmem:[#allocation5_spill] sm:$0xff] }
 0x8db   : > { %v3950_v30 = vsel %vm484_vm0, %v3942_v39, %v9918_v27  ;;  %v3922_v39 = vpop.permute.xlu2 %3921 }
 0x8dc   : > { %v3958_v63 = vsel %vm2016_vm10, %v3950_v30, %v3760_v62  ;;  %v3959_v62 = vsel %vm2016_vm10, %v3951_v15, %v9953_v21 }
 0x8dd   : > { %v3966_v1 = vsel %vm2025_vm11, %v3958_v63, %v3792_v40  ;;  %v3967_v52 = vsel %vm2025_vm11, %v3959_v62, %v9978_v47  ;;  %v3920_v40 = vpop.permute.xlu0 %3919 }
 0x8de   : > { %v3974_v27 = vsel %vm2034_vm12, %v3966_v1, %v3824_v19  ;;  %v3944_v19 = vsel %vm300_vm1, %v9790_v44, %v9898_v14  ;;  %v3975_v54 = vsel %vm2034_vm12, %v3967_v52, %v9984_v56  ;;  %v3945_v56 = vsel %vm300_vm1, %v9817_v20, %v9904_v4 }
 0x8df   : > { %v3982_v41 = vsel %vm2043_vm13, %v3974_v27, %v3856_v33  ;;  %v3952_v21 = vsel %vm484_vm0, %v3944_v19, %v9945_v53  ;;  %v3953_v53 = vsel %vm484_vm0, %v3945_v56, %v9930_v38  ;;  %v3946_v20 = vsel %vm300_vm1, %v9841_v13, %v9924_v34  ;;  %v4104_v27 = vld [vmem:[#allocation3 + $0x1] sm:$0xff] }
 0x8e0   : > { %v3990_v0 = vsel %vm2052_vm14, %v3982_v41, %v3888_v12  ;;  %v3983_v12 = vsel %vm2043_vm13, %v3975_v54, %v3858_v36  ;;  %v3960_v47 = vsel %vm2016_vm10, %v3952_v21, %v9959_v8  ;;  %4176 = vrot.lane.b32.xlu2 %v4104_v27, %s7200_s14  ;;  %v4112_v56 = vld [vmem:[#allocation3 + $0x2] sm:$0xff] }
 0x8e1   : > { %v3890_v17 = vpop.permute.xlu1 %3889  ;;  %v3998_v7 = vsel %vm2061_vm2, %v3990_v0, %v3920_v40  ;;  %v3968_v29 = vsel %vm2025_vm11, %v3960_v47, %v9970_v49 }
 0x8e2   : > { %v3991_v33 = vsel %vm2052_vm14, %v3983_v12, %v3890_v17  ;;  %v3976_v14 = vsel %vm2034_vm12, %v3968_v29, %v9994_v24  ;;  %v3961_v17 = vsel %vm2016_vm10, %v3953_v53, %v9968_v61  ;;  %v3954_v61 = vsel %vm484_vm0, %v3946_v20, %v9937_v51 }
 0x8e3   : > { %v3999_v44 = vsel %vm2061_vm2, %v3991_v33, %v3922_v39  ;;  %v3984_v8 = vsel %vm2043_vm13, %v3976_v14, %v3860_v5  ;;  %v3969_v36 = vsel %vm2025_vm11, %v3961_v17, %v9974_v6  ;;  %v3962_v6 = vsel %vm2016_vm10, %v3954_v61, %v9961_v45  ;;  %v3928_v30 = vpop.permute.xlu2 %3927 }
 0x8e4   : > { %v3992_v24 = vsel %vm2052_vm14, %v3984_v8, %v3892_v28  ;;  %v3977_v38 = vsel %vm2034_vm12, %v3969_v36, %v9992_v37  ;;  %v3970_v13 = vsel %vm2025_vm11, %v3962_v6, %v9982_v59  ;;  %v3947_v37 = vsel %vm300_vm1, %v9802_v31, %v9906_v3 }
 0x8e5   : > { %v3985_v5 = vsel %vm2043_vm13, %v3977_v38, %v3862_v46  ;;  %v3926_v34 = vpop.permute.xlu0 %3925  ;;  %v3978_v51 = vsel %vm2034_vm12, %v3970_v13, %v10002_v25  ;;  %v3955_v46 = vsel %vm484_vm0, %v3947_v37, %v9955_v57  ;;  %v3948_v25 = vsel %vm300_vm1, %v9827_v43, %v9916_v2 }
 0x8e6   : > { %v3993_v60 = vsel %vm2052_vm14, %v3985_v5, %v3894_v10  ;;  %v3986_v10 = vsel %vm2043_vm13, %v3978_v51, %v10023_v50  ;;  %v3963_v45 = vsel %vm2016_vm10, %v3955_v46, %v9965_v48  ;;  %v3956_v50 = vsel %vm484_vm0, %v3948_v25, %v9941_v22  ;;  %v12141_v48 = vld [vmem:[#allocation29_spill] sm:$0xff]  ;;  %v12144_v22 = vld [vmem:[#allocation30_spill] sm:$0xff] }
 0x8e7   : > { %v4001_v28 = vsel %vm2061_vm2, %v3993_v60, %v3926_v34  ;;  %v3971_v31 = vsel %vm2025_vm11, %v3963_v45, %v9976_v35 }
 0x8e8   : > { %v3979_v57 = vsel %vm2034_vm12, %v3971_v31, %v10006_v16  ;;  %v12143_v16 = vld [vmem:[#allocation27_spill] sm:$0xff] }
 0x8e9   : > { %v3896_v42 = vpop.permute.xlu1 %3895  ;;  %v3987_v35 = vsel %vm2043_vm13, %v3979_v57, %v12141_v48  ;;  %v4151_v57 = vld [vmem:[#allocation3 + $0x90] sm:$0xff] }
 0x8ea   : > { %v3994_v59 = vsel %vm2052_vm14, %v3986_v10, %v3896_v42  ;;  %v3964_v42 = vsel %vm2016_vm10, %v3956_v50, %v9972_v55  ;;  %v3995_v43 = vsel %vm2052_vm14, %v3987_v35, %v10044_v26 }
 0x8eb   : > { %v4002_v3 = vsel %vm2061_vm2, %v3994_v59, %v3928_v30  ;;  %v3972_v1 = vsel %vm2025_vm11, %v3964_v42, %v12142_v18 }
 0x8ec   : > { %v3980_v32 = vsel %vm2034_vm12, %v3972_v1, %v12143_v16 }
 0x8ed   : > { %v3988_v55 = vsel %vm2043_vm13, %v3980_v32, %v12144_v22 }
 0x8f1   : > { %v3918_v11 = vpop.permute.xlu1 %3917 }
 0x8f2   : > { %v3997_v23 = vsel %vm2061_vm2, %v3989_v9, %v3918_v11  ;;  %v3932_v9 = vpop.permute.xlu0 %3931  ;;  %v3996_v11 = vsel %vm2052_vm14, %v3988_v55, %v3900_v58  ;;  %v4159_v55 = vld [vmem:[#allocation3 + $0x91] sm:$0xff] }
 0x8f3   : > { %7061 = vmatmul.msk.f32.vlgmr.msrb.gmra.mxu2 %vm2079_vm15, %v3997_v23  ;;  %v4004_v23 = vsel %vm2061_vm2, %v3996_v11, %v3932_v9 }
 0x8f9   : > { %v3924_v49 = vpop.permute.xlu1 %3923 }
 0x8fa   : > { %v4000_v4 = vsel %vm2061_vm2, %v3992_v24, %v3924_v49 }
 0x8fb   : > { %7062 = vmatmul.msk.f32.gmra.mxu2 %vm2079_vm15, %v3998_v7 }
 0x901   : > { %v3930_v63 = vpop.permute.xlu1 %3929 }
 0x902   : > { %v4003_v2 = vsel %vm2061_vm2, %v3995_v43, %v3930_v63 }
 0x903   : > { %7063 = vmatmul.msk.f32.gmra.mxu2 %vm2079_vm15, %v3999_v44 }
 0x90b   : > { %7064 = vmatmul.msk.f32.gmra.mxu2 %vm2079_vm15, %v4000_v4 }
 0x913   : > { %7065 = vmatmul.msk.f32.gmra.mxu2 %vm2079_vm15, %v4001_v28 }
 0x91b   : > { %7066 = vmatmul.msk.f32.gmra.mxu2 %vm2079_vm15, %v4002_v3 }
 0x923   : > { %7067 = vmatmul.msk.f32.gmra.mxu2 %vm2079_vm15, %v4003_v2 }
 0x92b   : > { %7068 = vmatmul.msk.f32.gmra.mxu2 %vm2079_vm15, %v4004_v23 }
 0x93a   : > { %v10252_v10 = vpop.permute.xlu2 %4176 }
 0x976   : > { %v4056_v26 = vpop.f32.mrf.mxu2 }
 0x977   : > { %v4080_v15 = vmax.f32 %v4056_v26, 0.0 }
 0x979   : > { %4088 = vst.msk [vmem:[#allocation3 + $0x11] sm:$0xff] %vm300_vm1, %v4080_v15  ;;  %v4167_v15 = vld [vmem:[#allocation3 + $0x92] sm:$0xff] }
 0x97e   : > { %v4059_v41 = vpop.f32.mrf.mxu2 }
 0x97f   : > { %v4081_v62 = vmax.f32 %v4059_v41, 0.0 }
 0x980   : > { %v4105_v0 = vld [vmem:[#allocation3 + $0x11] sm:$0xff] }
 0x981   : > { %4089 = vst.msk [vmem:[#allocation3 + $0x21] sm:$0xff] %vm300_vm1, %v4081_v62  ;;  %4178 = vrot.lane.b32.xlu1 %v4105_v0, %s7200_s14  ;;  %v4113_v36 = vld [vmem:[#allocation3 + $0x12] sm:$0xff] }
 0x982   : > { %v10221_v34 = vld [vmem:[#allocation3 + $0x10] sm:$0xff] }
 0x986   : > { %v4062_v52 = vpop.f32.mrf.mxu2 }
 0x987   : > { %v4082_v58 = vmax.f32 %v4062_v52, 0.0 }
 0x988   : > { %v10153_v40 = vld [vmem:[#allocation3 + $0x21] sm:$0xff] }
 0x989   : > { %4090 = vst.msk [vmem:[#allocation3 + $0x31] sm:$0xff] %vm300_vm1, %v4082_v58  ;;  %4180 = vrot.lane.b32.xlu0 %v10153_v40, %s7200_s14  ;;  %v10197_v38 = vld [vmem:[#allocation3 + $0x22] sm:$0xff] }
 0x98a   : > { %v10201_v61 = vld [vmem:[#allocation3 + $0x20] sm:$0xff] }
 0x98e   : > { %v4065_v7 = vpop.f32.mrf.mxu2 }
 0x98f   : > { %v4083_v19 = vmax.f32 %v4065_v7, 0.0 }
 0x990   : > { %v10158_v54 = vld [vmem:[#allocation3 + $0x31] sm:$0xff] }
 0x991   : > { %4091 = vst.msk [vmem:[#allocation3 + $0x41] sm:$0xff] %vm300_vm1, %v4083_v19  ;;  %4182 = vrot.lane.b32.xlu2 %v10158_v54, %s7200_s14  ;;  %v10179_v49 = vld [vmem:[#allocation3 + $0x32] sm:$0xff] }
 0x992   : > { %v10215_v13 = vld [vmem:[#allocation3 + $0x30] sm:$0xff] }
 0x996   : > { %v4068_v21 = vpop.f32.mrf.mxu2 }
 0x997   : > { %v4084_v12 = vmax.f32 %v4068_v21, 0.0 }
 0x998   : > { %v10163_v47 = vld [vmem:[#allocation3 + $0x41] sm:$0xff] }
 0x999   : > { %4092 = vst.msk [vmem:[#allocation3 + $0x51] sm:$0xff] %vm300_vm1, %v4084_v12  ;;  %4184 = vrot.lane.b32.xlu1 %v10163_v47, %s7200_s14  ;;  %v10191_v4 = vld [vmem:[#allocation3 + $0x42] sm:$0xff] }
 0x99a   : > { %v10229_v51 = vld [vmem:[#allocation3 + $0x40] sm:$0xff] }
 0x99e   : > { %v4071_v33 = vpop.f32.mrf.mxu2 }
 0x99f   : > { %v4085_v39 = vmax.f32 %v4071_v33, 0.0  ;;  %v7077_v33 = vld [vmem:[%s11719_s4 + $0x88] sm:$0xff] }
 0x9a0   : > { %v10168_v29 = vld [vmem:[#allocation3 + $0x51] sm:$0xff]  ;;  %4529 = vmatpush.msrb.mxu3 %v7077_v33 }
 0x9a1   : > { %4093 = vst.msk [vmem:[#allocation3 + $0x61] sm:$0xff] %vm300_vm1, %v4085_v39  ;;  %4186 = vrot.lane.b32.xlu0 %v10168_v29, %s7200_s14  ;;  %v10209_v6 = vld [vmem:[#allocation3 + $0x52] sm:$0xff]  ;;  %v7076_v39 = vld [vmem:[%s11719_s4 + $0x80] sm:$0xff] }
 0x9a2   : > { %v10213_v60 = vld [vmem:[#allocation3 + $0x50] sm:$0xff]  ;;  %4530 = vmatpush.msrb.mxu3 %v7076_v39  ;;  %v4096_v39 = vld [vmem:[#allocation3] sm:$0xff] }
 0x9a6   : > { %v4074_v44 = vpop.f32.mrf.mxu2 }
 0x9a7   : > { %v4086_v14 = vmax.f32 %v4074_v44, 0.0 }
 0x9a8   : > { %v10173_v53 = vld [vmem:[#allocation3 + $0x61] sm:$0xff] }
 0x9a9   : > { %4094 = vst.msk [vmem:[#allocation3 + $0x71] sm:$0xff] %vm300_vm1, %v4086_v14  ;;  %4208 = vrot.lane.b32.xlu0 %v4112_v56, %s7201_s15  ;;  %4188 = vrot.lane.b32.xlu2 %v10173_v53, %s7200_s14  ;;  %v10189_v24 = vld [vmem:[#allocation3 + $0x62] sm:$0xff]  ;;  %v7075_v56 = vld [vmem:[%s11719_s4 + $0x78] sm:$0xff]  ;;  %v7074_v14 = vld [vmem:[%s11719_s4 + $0x70] sm:$0xff] }
 0x9aa   : > { %v10225_v28 = vld [vmem:[#allocation3 + $0x60] sm:$0xff]  ;;  %4531 = vmatpush.msrb.mxu3 %v7075_v56 }
 0x9ac   : > { %4532 = vmatpush.msrb.mxu3 %v7074_v14  ;;  %v4424_v14 = vsel %vm300_vm1, %v4096_v39, %v10252_v10 }
 0x9ae   : > { %v4077_v17 = vpop.f32.mrf.mxu2 }
 0x9af   : > { %v4087_v8 = vmax.f32 %v4077_v17, 0.0 }
 0x9b0   : > { %v10181_v20 = vld [vmem:[#allocation3 + $0x71] sm:$0xff] }
 0x9b1   : > { %4095 = vst.msk [vmem:[#allocation3 + $0x81] sm:$0xff] %vm300_vm1, %v4087_v8  ;;  %4214 = vrot.lane.b32.xlu0 %v10179_v49, %s7201_s15  ;;  %4210 = vrot.lane.b32.xlu2 %v4113_v36, %s7201_s15  ;;  %v10203_v5 = vld [vmem:[#allocation3 + $0x72] sm:$0xff] }
 0x9b2   : > { %4190 = vrot.lane.b32.xlu1 %v10181_v20, %s7200_s14  ;;  %v10235_v46 = vld [vmem:[#allocation3 + $0x70] sm:$0xff] }
 0x9b8   : > { %v4127_v37 = vld [vmem:[#allocation3 + $0x80] sm:$0xff] }
 0x9b9   : > { %4220 = vrot.lane.b32.xlu0 %v10189_v24, %s7201_s15  ;;  %4216 = vrot.lane.b32.xlu2 %v10191_v4, %s7201_s15  ;;  %v4135_v45 = vld [vmem:[#allocation3 + $0x81] sm:$0xff] }
 0x9ba   : > { %4212 = vrot.lane.b32.xlu1 %v10197_v38, %s7201_s15  ;;  %v4143_v30 = vld [vmem:[#allocation3 + $0x82] sm:$0xff] }
 0x9c1   : > { %4242 = vrot.lane.b32.xlu0 %v10201_v61, %s7202_s16  ;;  %4222 = vrot.lane.b32.xlu2 %v10203_v5, %s7201_s15 }
 0x9c2   : > { %4218 = vrot.lane.b32.xlu1 %v10209_v6, %s7201_s15 }
 0x9c9   : > { %4248 = vrot.lane.b32.xlu0 %v10213_v60, %s7202_s16  ;;  %4244 = vrot.lane.b32.xlu2 %v10215_v13, %s7202_s16 }
 0x9ca   : > { %4240 = vrot.lane.b32.xlu1 %v10221_v34, %s7202_s16 }
 0x9d1   : > { %4250 = vrot.lane.b32.xlu2 %v10225_v28, %s7202_s16  ;;  %4254 = vrot.lane.b32.xlu0 %v4127_v37, %s7202_s16 }
 0x9d2   : > { %4246 = vrot.lane.b32.xlu1 %v10229_v51, %s7202_s16 }
 0x9d9   : > { %4272 = vrot.lane.b32.xlu2 %v4105_v0, %s7203_s17  ;;  %4276 = vrot.lane.b32.xlu0 %v10158_v54, %s7203_s17 }
 0x9da   : > { %4252 = vrot.lane.b32.xlu1 %v10235_v46, %s7202_s16 }
 0x9e1   : > { %4278 = vrot.lane.b32.xlu2 %v10163_v47, %s7203_s17  ;;  %4282 = vrot.lane.b32.xlu0 %v10173_v53, %s7203_s17 }
 0x9e2   : > { %4274 = vrot.lane.b32.xlu1 %v10153_v40, %s7203_s17 }
 0x9e9   : > { %4284 = vrot.lane.b32.xlu2 %v10181_v20, %s7203_s17  ;;  %4304 = vrot.lane.b32.xlu0 %v4113_v36, %s7204_s18  ;;  %v7072_v36 = vld [vmem:[%s11719_s4 + $0x60] sm:$0xff] }
 0x9ea   : > { %4280 = vrot.lane.b32.xlu1 %v10168_v29, %s7203_s17 }
 0x9eb   : > { %v10265_v59 = vpop.permute.xlu2 %4182 }
 0x9f1   : > { %4306 = vrot.lane.b32.xlu2 %v10197_v38, %s7204_s18  ;;  %4310 = vrot.lane.b32.xlu0 %v10191_v4, %s7204_s18 }
 0x9f2   : > { %4286 = vrot.lane.b32.xlu1 %v4135_v45, %s7203_s17 }
 0x9f3   : > { %v10293_v48 = vpop.permute.xlu1 %4178 }
 0x9f4   : > { %v4425_v10 = vsel %vm300_vm1, %v10221_v34, %v10293_v48 }
 0x9f9   : > { %4312 = vrot.lane.b32.xlu2 %v10209_v6, %s7204_s18  ;;  %4316 = vrot.lane.b32.xlu0 %v10203_v5, %s7204_s18 }
 0x9fa   : > { %4308 = vrot.lane.b32.xlu1 %v10179_v49, %s7204_s18 }
 0x9fb   : > { %v10280_v3 = vpop.permute.xlu0 %4180 }
 0xa01   : > { %4318 = vrot.lane.b32.xlu2 %v4143_v30, %s7204_s18  ;;  %4338 = vrot.lane.b32.xlu0 %v10215_v13, %s7205_s19 }
 0xa02   : > { %4314 = vrot.lane.b32.xlu1 %v10189_v24, %s7204_s18 }
 0xa03   : > { %v10272_v31 = vpop.permute.xlu2 %4188 }
 0xa09   : > { %4340 = vrot.lane.b32.xlu2 %v10229_v51, %s7205_s19  ;;  %4344 = vrot.lane.b32.xlu0 %v10225_v28, %s7205_s19 }
 0xa0a   : > { %4336 = vrot.lane.b32.xlu1 %v10201_v61, %s7205_s19 }
 0xa0b   : > { %v10282_v25 = vpop.permute.xlu2 %4210  ;;  %v10304_v18 = vpop.permute.xlu1 %4184 }
 0xa11   : > { %4346 = vrot.lane.b32.xlu2 %v10235_v46, %s7205_s19  ;;  %4350 = vrot.lane.b32.xlu0 %v4151_v57, %s7205_s19 }
 0xa12   : > { %4342 = vrot.lane.b32.xlu1 %v10213_v60, %s7205_s19 }
 0xa13   : > { %v10289_v50 = vpop.permute.xlu2 %4216  ;;  %v10291_v42 = vpop.permute.xlu0 %4186 }
 0xa19   : > { %4368 = vrot.lane.b32.xlu2 %v10153_v40, %s7206_s20  ;;  %4372 = vrot.lane.b32.xlu0 %v10163_v47, %s7206_s20 }
 0xa1a   : > { %4348 = vrot.lane.b32.xlu1 %v4127_v37, %s7205_s19 }
 0xa1b   : > { %v10300_v35 = vpop.permute.xlu2 %4222  ;;  %v10302_v63 = vpop.permute.xlu0 %4208 }
 0xa21   : > { %4374 = vrot.lane.b32.xlu2 %v10168_v29, %s7206_s20  ;;  %4378 = vrot.lane.b32.xlu0 %v10181_v20, %s7206_s20  ;;  %v7071_v20 = vld [vmem:[%s11719_s4 + $0x58] sm:$0xff] }
 0xa22   : > { %4370 = vrot.lane.b32.xlu1 %v10158_v54, %s7206_s20 }
 0xa23   : > { %v10312_v1 = vpop.permute.xlu2 %4244  ;;  %v10314_v43 = vpop.permute.xlu0 %4214 }
 0xa24   : > { %v10316_v2 = vpop.permute.xlu1 %4190 }
 0xa29   : > { %4380 = vrot.lane.b32.xlu2 %v4135_v45, %s7206_s20  ;;  %4400 = vrot.lane.b32.xlu0 %v10197_v38, %s7207_s21 }
 0xa2a   : > { %4376 = vrot.lane.b32.xlu1 %v10173_v53, %s7206_s20 }
 0xa2b   : > { %v10323_v16 = vpop.permute.xlu2 %4250  ;;  %v10325_v32 = vpop.permute.xlu0 %4220 }
 0xa2c   : > { %v10327_v22 = vpop.permute.xlu1 %4212 }
 0xa31   : > { %4402 = vrot.lane.b32.xlu2 %v10179_v49, %s7207_s21  ;;  %4406 = vrot.lane.b32.xlu0 %v10209_v6, %s7207_s21  ;;  %v7073_v49 = vld [vmem:[%s11719_s4 + $0x68] sm:$0xff] }
 0xa32   : > { %4382 = vrot.lane.b32.xlu1 %v4159_v55, %s7206_s20  ;;  %4533 = vmatpush.msrb.mxu3 %v7073_v49  ;;  %v7069_v6 = vld [vmem:[%s11719_s4 + $0x48] sm:$0xff] }
 0xa33   : > { %v10334_v9 = vpop.permute.xlu0 %4242  ;;  %v10338_v23 = vpop.permute.xlu2 %4272 }
 0xa34   : > { %v10336_v11 = vpop.permute.xlu1 %4218  ;;  %4534 = vmatpush.msrb.mxu3 %v7072_v36  ;;  %v4432_v36 = vsel %vm484_vm0, %v4424_v14, %v10302_v63  ;;  %v4433_v63 = vsel %vm484_vm0, %v4425_v10, %v10282_v25  ;;  %v4426_v25 = vsel %vm300_vm1, %v10201_v61, %v10280_v3  ;;  %v4427_v61 = vsel %vm300_vm1, %v10215_v13, %v10265_v59 }
 0xa35   : > { %v4435_v3 = vsel %vm484_vm0, %v4427_v61, %v10314_v43  ;;  %v4428_v43 = vsel %vm300_vm1, %v10229_v51, %v10304_v18 }
 0xa36   : > { %4535 = vmatpush.msrb.mxu3 %v7071_v20 }
 0xa39   : > { %4408 = vrot.lane.b32.xlu2 %v10189_v24, %s7207_s21  ;;  %4412 = vrot.lane.b32.xlu0 %v4143_v30, %s7207_s21 }
 0xa3a   : > { %4404 = vrot.lane.b32.xlu1 %v10191_v4, %s7207_s21 }
 0xa3b   : > { %v10345_v27 = vpop.permute.xlu0 %4248  ;;  %v10347_v41 = vpop.permute.xlu2 %4278 }
 0xa3c   : > { %v4241_v26 = vpop.permute.xlu1 %4240 }
 0xa3d   : > { %v4440_v20 = vsel %vm2016_vm10, %v4432_v36, %v4241_v26  ;;  %v4441_v26 = vsel %vm2016_vm10, %v4433_v63, %v10334_v9  ;;  %v4434_v9 = vsel %vm484_vm0, %v4426_v25, %v10327_v22 }
 0xa41   : > { %4414 = vrot.lane.b32.xlu2 %v4167_v15, %s7207_s21 }
 0xa42   : > { %4410 = vrot.lane.b32.xlu1 %v10203_v5, %s7207_s21  ;;  %v7070_v5 = vld [vmem:[%s11719_s4 + $0x50] sm:$0xff] }
 0xa43   : > { %v10352_v62 = vpop.permute.xlu0 %4254  ;;  %v10356_v52 = vpop.permute.xlu2 %4284  ;;  %4536 = vmatpush.msrb.mxu3 %v7070_v5 }
 0xa44   : > { %v10354_v0 = vpop.permute.xlu1 %4246 }
 0xa45   : > { %4537 = vmatpush.msrb.mxu3 %v7069_v6 }
 0xa4b   : > { %v10358_v58 = vpop.permute.xlu0 %4276  ;;  %v4307_v7 = vpop.permute.xlu2 %4306 }
 0xa4c   : > { %v10360_v40 = vpop.permute.xlu1 %4252 }
 0xa53   : > { %v10362_v19 = vpop.permute.xlu0 %4282  ;;  %v10366_v47 = vpop.permute.xlu2 %4312 }
 0xa54   : > { %v4275_v54 = vpop.permute.xlu1 %4274 }
 0xa5b   : > { %v4305_v21 = vpop.permute.xlu0 %4304  ;;  %v10384_v53 = vpop.permute.xlu2 %4318 }
 0xa5c   : > { %v10364_v12 = vpop.permute.xlu1 %4280  ;;  %12146 = vst [vmem:[#allocation34_spill] sm:$0xff] %v10384_v53 }
 0xa63   : > { %v10374_v29 = vpop.permute.xlu0 %4310  ;;  %v4341_v24 = vpop.permute.xlu2 %4340 }
 0xa64   : > { %v10376_v44 = vpop.permute.xlu1 %4286 }
 0xa65   : > { %12145 = vst [vmem:[#allocation32_spill] sm:$0xff] %v10376_v44 }
 0xa6b   : > { %v10386_v17 = vpop.permute.xlu0 %4316  ;;  %v10405_v37 = vpop.permute.xlu2 %4346 }
 0xa6c   : > { %v4309_v8 = vpop.permute.xlu1 %4308 }
 0xa73   : > { %v4339_v4 = vpop.permute.xlu0 %4338  ;;  %v4369_v15 = vpop.permute.xlu2 %4368 }
 0xa74   : > { %v10397_v38 = vpop.permute.xlu1 %4314 }
 0xa7b   : > { %v4345_v45 = vpop.permute.xlu0 %4344  ;;  %v4375_v49 = vpop.permute.xlu2 %4374 }
 0xa7c   : > { %v4337_v30 = vpop.permute.xlu1 %4336 }
 0xa83   : > { %v10407_v57 = vpop.permute.xlu0 %4350  ;;  %v10425_v39 = vpop.permute.xlu2 %4380 }
 0xa84   : > { %12147 = vst [vmem:[#allocation29_spill] sm:$0xff] %v10407_v57  ;;  %v4343_v55 = vpop.permute.xlu1 %4342  ;;  %v4448_v57 = vsel %vm2025_vm11, %v4440_v20, %v10338_v23  ;;  %v4449_v23 = vsel %vm2025_vm11, %v4441_v26, %v4275_v54  ;;  %v4443_v20 = vsel %vm2016_vm10, %v4435_v3, %v10354_v0 }
 0xa85   : > { %v4456_v53 = vsel %vm2034_vm12, %v4448_v57, %v4305_v21  ;;  %v4457_v34 = vsel %vm2034_vm12, %v4449_v23, %v4307_v7  ;;  %v4442_v7 = vsel %vm2016_vm10, %v4434_v9, %v10312_v1 }
 0xa86   : > { %v4464_v44 = vsel %vm2043_vm13, %v4456_v53, %v4337_v30  ;;  %v4465_v48 = vsel %vm2043_vm13, %v4457_v34, %v4339_v4  ;;  %v4450_v4 = vsel %vm2025_vm11, %v4442_v7, %v10358_v58  ;;  %v4451_v58 = vsel %vm2025_vm11, %v4443_v20, %v10347_v41 }
 0xa87   : > { %v4472_v14 = vsel %vm2052_vm14, %v4464_v44, %v4369_v15  ;;  %v4458_v15 = vsel %vm2034_vm12, %v4450_v4, %v4309_v8  ;;  %v4459_v13 = vsel %vm2034_vm12, %v4451_v58, %v10374_v29  ;;  %v4436_v8 = vsel %vm484_vm0, %v4428_v43, %v10289_v50 }
 0xa88   : > { %v4466_v22 = vsel %vm2043_vm13, %v4458_v15, %v4341_v24  ;;  %v4467_v59 = vsel %vm2043_vm13, %v4459_v13, %v4343_v55  ;;  %v4444_v24 = vsel %vm2016_vm10, %v4436_v8, %v10345_v27  ;;  %v4429_v50 = vsel %vm300_vm1, %v10213_v60, %v10291_v42 }
 0xa89   : > { %v4452_v41 = vsel %vm2025_vm11, %v4444_v24, %v10364_v12  ;;  %v4437_v27 = vsel %vm484_vm0, %v4429_v50, %v10336_v11  ;;  %v4430_v60 = vsel %vm300_vm1, %v10225_v28, %v10272_v31  ;;  %v4431_v31 = vsel %vm300_vm1, %v10235_v46, %v10316_v2  ;;  %v12149_v2 = vld [vmem:[#allocation34_spill] sm:$0xff] }
 0xa8a   : > { %v4460_v55 = vsel %vm2034_vm12, %v4452_v41, %v10366_v47  ;;  %v4445_v63 = vsel %vm2016_vm10, %v4437_v27, %v10323_v16  ;;  %v4438_v11 = vsel %vm484_vm0, %v4430_v60, %v10325_v32 }
 0xa8b   : > { %v4373_v33 = vpop.permute.xlu0 %4372  ;;  %v4403_v44 = vpop.permute.xlu2 %4402  ;;  %v4468_v51 = vsel %vm2043_vm13, %v4460_v55, %v4345_v45  ;;  %v4453_v47 = vsel %vm2025_vm11, %v4445_v63, %v10362_v19  ;;  %v4446_v16 = vsel %vm2016_vm10, %v4438_v11, %v10360_v40 }
 0xa8c   : > { %v10409_v56 = vpop.permute.xlu1 %4348  ;;  %v4461_v45 = vsel %vm2034_vm12, %v4453_v47, %v10397_v38  ;;  %v4454_v28 = vsel %vm2025_vm11, %v4446_v16, %v10356_v52 }
 0xa8d   : > { %v4469_v26 = vsel %vm2043_vm13, %v4461_v45, %v10405_v37  ;;  %v4462_v32 = vsel %vm2034_vm12, %v4454_v28, %v10386_v17  ;;  %v4439_v37 = vsel %vm484_vm0, %v4431_v31, %v10300_v35 }
 0xa8e   : > { %v4470_v40 = vsel %vm2043_vm13, %v4462_v32, %v10409_v56  ;;  %v12150_v56 = vld [vmem:[#allocation29_spill] sm:$0xff] }
 0xa8f   : > { %v4478_v52 = vsel %vm2052_vm14, %v4470_v40, %v10425_v39 }
 0xa93   : > { %v10416_v5 = vpop.permute.xlu0 %4378 }
 0xa94   : > { %v4371_v6 = vpop.permute.xlu1 %4370  ;;  %v4477_v19 = vsel %vm2052_vm14, %v4469_v26, %v10416_v5  ;;  %v4447_v5 = vsel %vm2016_vm10, %v4439_v37, %v10352_v62 }
 0xa95   : > { %v4473_v30 = vsel %vm2052_vm14, %v4465_v48, %v4371_v6  ;;  %v4474_v6 = vsel %vm2052_vm14, %v4466_v22, %v4373_v33  ;;  %v4475_v33 = vsel %vm2052_vm14, %v4467_v59, %v4375_v49  ;;  %v4409_v49 = vpop.permute.xlu2 %4408 }
 0xa96   : > { %v4481_v57 = vsel %vm2061_vm2, %v4473_v30, %v4403_v44 }
 0xa9b   : > { %v4401_v36 = vpop.permute.xlu0 %4400 }
 0xa9c   : > { %v4377_v21 = vpop.permute.xlu1 %4376  ;;  %v4480_v53 = vsel %vm2061_vm2, %v4472_v14, %v4401_v36  ;;  %v12148_v36 = vld [vmem:[#allocation32_spill] sm:$0xff] }
 0xa9d   : > { %7078 = vmatmul.msk.f32.vlgmr.msrb.gmra.mxu3 %vm2079_vm15, %v4480_v53  ;;  %v4476_v18 = vsel %vm2052_vm14, %v4468_v51, %v4377_v21  ;;  %v4455_v23 = vsel %vm2025_vm11, %v4447_v5, %v12148_v36  ;;  %v4415_v53 = vpop.permute.xlu2 %4414 }
 0xa9e   : > { %v4484_v12 = vsel %vm2061_vm2, %v4476_v18, %v4409_v49  ;;  %v4463_v17 = vsel %vm2034_vm12, %v4455_v23, %v12149_v2 }
 0xa9f   : > { %v4471_v21 = vsel %vm2043_vm13, %v4463_v17, %v12150_v56 }
 0xaa3   : > { %v4407_v0 = vpop.permute.xlu0 %4406 }
 0xaa4   : > { %v4383_v54 = vpop.permute.xlu1 %4382  ;;  %v4483_v29 = vsel %vm2061_vm2, %v4475_v33, %v4407_v0 }
 0xaa5   : > { %7079 = vmatmul.msk.f32.gmra.mxu3 %vm2079_vm15, %v4481_v57  ;;  %v4479_v35 = vsel %vm2052_vm14, %v4471_v21, %v4383_v54 }
 0xaa6   : > { %v4487_v62 = vsel %vm2061_vm2, %v4479_v35, %v4415_v53 }
 0xaab   : > { %v4413_v38 = vpop.permute.xlu0 %4412 }
 0xaac   : > { %v4405_v1 = vpop.permute.xlu1 %4404  ;;  %v4486_v46 = vsel %vm2061_vm2, %v4478_v52, %v4413_v38 }
 0xaad   : > { %v4482_v10 = vsel %vm2061_vm2, %v4474_v6, %v4405_v1 }
 0xaae   : > { %7080 = vmatmul.msk.f32.gmra.mxu3 %vm2079_vm15, %v4482_v10 }
 0xab4   : > { %v4411_v42 = vpop.permute.xlu1 %4410 }
 0xab5   : > { %v4485_v14 = vsel %vm2061_vm2, %v4477_v19, %v4411_v42 }
 0xab6   : > { %7081 = vmatmul.msk.f32.gmra.mxu3 %vm2079_vm15, %v4483_v29 }
 0xabe   : > { %7082 = vmatmul.msk.f32.gmra.mxu3 %vm2079_vm15, %v4484_v12 }
 0xac6   : > { %7083 = vmatmul.msk.f32.gmra.mxu3 %vm2079_vm15, %v4485_v14 }
 0xace   : > { %7084 = vmatmul.msk.f32.gmra.mxu3 %vm2079_vm15, %v4486_v46 }
 0xad6   : > { %7085 = vmatmul.msk.f32.gmra.mxu3 %vm2079_vm15, %v4487_v62 }
 0xb20   : > { %v4539_v39 = vpop.f32.mrf.mxu3 }
 0xb21   : > { %v4563_v34 = vmul.f32 0.1, %v4539_v39 }
 0xb23   : > { %v4593_v48 = vperm.slane %v4563_v34, 2  ;;  %v4586_v30 = vperm.slane %v4563_v34, 1  ;;  %v4579_v25 = vperm.slane %v4563_v34, 0  ;;  %v4607_v9 = vperm.slane %v4563_v34, 4 }
 0xb24   : > { %v4621_v44 = vperm.slane %v4563_v34, 6  ;;  %v4600_v7 = vperm.slane %v4563_v34, 3  ;;  %v4628_v4 = vperm.slane %v4563_v34, 7  ;;  %v4614_v61 = vperm.slane %v4563_v34, 5 }
 0xb25   : > { %4598 = vperm.xlu2 %7176, %v4593_v48   ;;  %4591 = vperm.xlu0 %7174, %v4586_v30  }
 0xb26   : > { %4584 = vperm.xlu1 %7175, %v4579_v25  }
 0xb28   : > { %v4542_v57 = vpop.f32.mrf.mxu3 }
 0xb29   : > { %v4564_v54 = vmul.f32 0.1, %v4542_v57 }
 0xb2b   : > { %v4642_v15 = vperm.slane %v4564_v54, 1  ;;  %v4649_v3 = vperm.slane %v4564_v54, 2  ;;  %v4663_v22 = vperm.slane %v4564_v54, 4  ;;  %v4635_v20 = vperm.slane %v4564_v54, 0 }
 0xb2c   : > { %v4670_v6 = vperm.slane %v4564_v54, 5  ;;  %v4684_v1 = vperm.slane %v4564_v54, 7  ;;  %v4656_v58 = vperm.slane %v4564_v54, 3  ;;  %v4677_v0 = vperm.slane %v4564_v54, 6 }
 0xb2d   : > { %4612 = vperm.xlu2 %7176, %v4607_v9   ;;  %4626 = vperm.xlu0 %7174, %v4621_v44  }
 0xb2e   : > { %4605 = vperm.xlu1 %7175, %v4600_v7  }
 0xb31   : > { %v4545_v10 = vpop.f32.mrf.mxu3 }
 0xb32   : > { %v4565_v13 = vmul.f32 0.1, %v4545_v10 }
 0xb34   : > { %v4705_v59 = vperm.slane %v4565_v13, 2  ;;  %v4691_v43 = vperm.slane %v4565_v13, 0  ;;  %v4726_v8 = vperm.slane %v4565_v13, 5  ;;  %v4712_v24 = vperm.slane %v4565_v13, 3 }
 0xb35   : > { %4633 = vperm.xlu2 %7176, %v4628_v4   ;;  %4647 = vperm.xlu0 %7174, %v4642_v15   ;;  %v4698_v41 = vperm.slane %v4565_v13, 1  ;;  %v4733_v55 = vperm.slane %v4565_v13, 6  ;;  %v4719_v50 = vperm.slane %v4565_v13, 4  ;;  %v4740_v49 = vperm.slane %v4565_v13, 7 }
 0xb36   : > { %4619 = vperm.xlu1 %7175, %v4614_v61  }
 0xb39   : > { %v4548_v33 = vpop.f32.mrf.mxu3 }
 0xb3a   : > { %v4566_v29 = vmul.f32 0.1, %v4548_v33 }
 0xb3c   : > { %v4747_v51 = vperm.slane %v4566_v29, 0  ;;  %v4754_v18 = vperm.slane %v4566_v29, 1  ;;  %v4768_v27 = vperm.slane %v4566_v29, 3  ;;  %v4775_v12 = vperm.slane %v4566_v29, 4 }
 0xb3d   : > { %4654 = vperm.xlu2 %7176, %v4649_v3   ;;  %4668 = vperm.xlu0 %7174, %v4663_v22   ;;  %v4789_v63 = vperm.slane %v4566_v29, 6  ;;  %v4761_v45 = vperm.slane %v4566_v29, 2  ;;  %v4796_v42 = vperm.slane %v4566_v29, 7  ;;  %v4782_v26 = vperm.slane %v4566_v29, 5 }
 0xb3e   : > { %4640 = vperm.xlu1 %7175, %v4635_v20  }
 0xb41   : > { %v4551_v47 = vpop.f32.mrf.mxu3 }
 0xb42   : > { %v4567_v60 = vmul.f32 0.1, %v4551_v47 }
 0xb44   : > { %v4810_v11 = vperm.slane %v4567_v60, 1  ;;  %v4817_v16 = vperm.slane %v4567_v60, 2  ;;  %v4831_v19 = vperm.slane %v4567_v60, 4  ;;  %v4803_v14 = vperm.slane %v4567_v60, 0 }
 0xb45   : > { %4675 = vperm.xlu2 %7176, %v4670_v6   ;;  %4689 = vperm.xlu0 %7174, %v4684_v1   ;;  %v4838_v31 = vperm.slane %v4567_v60, 5  ;;  %v4852_v32 = vperm.slane %v4567_v60, 7  ;;  %v4824_v38 = vperm.slane %v4567_v60, 3  ;;  %v4845_v23 = vperm.slane %v4567_v60, 6  ;;  %v12151_v60 = vld [vmem:[#allocation75_spill] sm:$0xff] }
 0xb46   : > { %4661 = vperm.xlu1 %7175, %v4656_v58  }
 0xb49   : > { %v4554_v40 = vpop.f32.mrf.mxu3 }
 0xb4a   : > { %v4568_v37 = vmul.f32 0.1, %v4554_v40  ;;  %v12154_v40 = vld [vmem:[#allocation72_spill] sm:$0xff] }
 0xb4c   : > { %v4873_v52 = vperm.slane %v4568_v37, 2  ;;  %v4859_v36 = vperm.slane %v4568_v37, 0  ;;  %v4894_v2 = vperm.slane %v4568_v37, 5  ;;  %v4880_v17 = vperm.slane %v4568_v37, 3 }
 0xb4d   : > { %4710 = vperm.xlu0 %7174, %v4705_v59   ;;  %4696 = vperm.xlu2 %7176, %v4691_v43   ;;  %v4866_v21 = vperm.slane %v4568_v37, 1  ;;  %v4901_v34 = vperm.slane %v4568_v37, 6  ;;  %v4887_v30 = vperm.slane %v4568_v37, 4  ;;  %v4908_v54 = vperm.slane %v4568_v37, 7  ;;  %v12155_v37 = vld [vmem:[#allocation73_spill] sm:$0xff] }
 0xb4e   : > { %4682 = vperm.xlu1 %7175, %v4677_v0  }
 0xb51   : > { %v4557_v56 = vpop.f32.mrf.mxu3 }
 0xb52   : > { %v4569_v35 = vmul.f32 0.1, %v4557_v56  ;;  %v12157_v56 = vld [vmem:[#allocation38_spill] sm:$0xff] }
 0xb54   : > { %v4915_v48 = vperm.slane %v4569_v35, 0  ;;  %v4922_v57 = vperm.slane %v4569_v35, 1  ;;  %v4936_v7 = vperm.slane %v4569_v35, 3  ;;  %v4943_v3 = vperm.slane %v4569_v35, 4 }
 0xb55   : > { %4731 = vperm.xlu0 %7174, %v4726_v8   ;;  %4717 = vperm.xlu2 %7176, %v4712_v24   ;;  %v4957_v22 = vperm.slane %v4569_v35, 6  ;;  %v4929_v6 = vperm.slane %v4569_v35, 2  ;;  %v4964_v59 = vperm.slane %v4569_v35, 7  ;;  %v4950_v0 = vperm.slane %v4569_v35, 5  ;;  %v12158_v35 = vld [vmem:[#allocation36_spill] sm:$0xff] }
 0xb56   : > { %4703 = vperm.xlu1 %7175, %v4698_v41  }
 0xb59   : > { %v4560_v20 = vpop.f32.mrf.mxu3 }
 0xb5a   : > { %v4570_v1 = vmul.f32 0.1, %v4560_v20  ;;  %v12163_v20 = vld [vmem:[#allocation42_spill] sm:$0xff] }
 0xb5c   : > { %v4978_v43 = vperm.slane %v4570_v1, 1  ;;  %v4985_v41 = vperm.slane %v4570_v1, 2  ;;  %v4999_v29 = vperm.slane %v4570_v1, 4 }
 0xb5d   : > { %4738 = vperm.xlu2 %7176, %v4733_v55   ;;  %4752 = vperm.xlu0 %7174, %v4747_v51   ;;  %v4971_v55 = vperm.slane %v4570_v1, 0 }
 0xb5e   : > { %4724 = vperm.xlu1 %7175, %v4719_v50  }
 0xb65   : > { %4759 = vperm.xlu2 %7176, %v4754_v18   ;;  %4773 = vperm.xlu0 %7174, %v4768_v27   ;;  %v5006_v27 = vperm.slane %v4570_v1, 5 }
 0xb66   : > { %4745 = vperm.xlu1 %7175, %v4740_v49   ;;  %v5020_v49 = vperm.slane %v4570_v1, 7 }
 0xb6d   : > { %4780 = vperm.xlu2 %7176, %v4775_v12   ;;  %4794 = vperm.xlu0 %7174, %v4789_v63   ;;  %v4992_v12 = vperm.slane %v4570_v1, 3 }
 0xb6e   : > { %4766 = vperm.xlu1 %7175, %v4761_v45  }
 0xb75   : > { %4801 = vperm.xlu2 %7176, %v4796_v42   ;;  %4815 = vperm.xlu0 %7174, %v4810_v11   ;;  %v5013_v11 = vperm.slane %v4570_v1, 6  ;;  %v12164_v1 = vld [vmem:[#allocation44_spill] sm:$0xff] }
 0xb76   : > { %4787 = vperm.xlu1 %7175, %v4782_v26   ;;  %v12152_v26 = vld [vmem:[#allocation71_spill] sm:$0xff] }
 0xb7d   : > { %4822 = vperm.xlu2 %7176, %v4817_v16   ;;  %4836 = vperm.xlu0 %7174, %v4831_v19   ;;  %v12153_v19 = vmov 0  }
 0xb7e   : > { %4808 = vperm.xlu1 %7175, %v4803_v14  }
 0xb7f   : > { %v10534_v28 = vpop.permute.xlu2 %4598 }
 0xb80   : > { %v5093_v16 = vadd.f32 %v10534_v28, %v12152_v26 }
 0xb85   : > { %4843 = vperm.xlu2 %7176, %v4838_v31   ;;  %4857 = vperm.xlu0 %7174, %v4852_v32  }
 0xb86   : > { %4829 = vperm.xlu1 %7175, %v4824_v38  }
 0xb87   : > { %v10536_v5 = vpop.permute.xlu2 %4612 }
 0xb8d   : > { %4878 = vperm.xlu0 %7174, %v4873_v52   ;;  %4864 = vperm.xlu2 %7176, %v4859_v36   ;;  %v12156_v36 = vld [vmem:[#allocation35_spill] sm:$0xff] }
 0xb8e   : > { %4850 = vperm.xlu1 %7175, %v4845_v23  }
 0xb8f   : > { %v10538_v46 = vpop.permute.xlu2 %4633 }
 0xb90   : > { %v5098_v52 = vadd.f32 %v10538_v46, %v12155_v37  ;;  %v12173_v37 = vld [vmem:[#allocation53_spill] sm:$0xff] }
 0xb95   : > { %4899 = vperm.xlu0 %7174, %v4894_v2   ;;  %4885 = vperm.xlu2 %7176, %v4880_v17  }
 0xb96   : > { %4871 = vperm.xlu1 %7175, %v4866_v21  }
 0xb97   : > { %v10540_v53 = vpop.permute.xlu2 %4654  ;;  %v10542_v62 = vpop.permute.xlu0 %4591 }
 0xb98   : > { %v4585_v39 = vpop.permute.xlu1 %4584  ;;  %v5092_v28 = vadd.f32 %v10542_v62, %v12156_v36 }
 0xb99   : > { %v5091_v42 = vadd.f32 %v4585_v39, %v12151_v60  ;;  %v5095_v39 = vadd.f32 %v10536_v5, %v12158_v35  ;;  %v12169_v60 = vld [vmem:[#allocation48_spill] sm:$0xff] }
 0xb9a   : > { %v12176_v35 = vld [vmem:[#allocation56_spill] sm:$0xff] }
 0xb9d   : > { %4906 = vperm.xlu2 %7176, %v4901_v34   ;;  %4920 = vperm.xlu0 %7174, %v4915_v48   ;;  %v12159_v34 = vld [vmem:[#allocation74_spill] sm:$0xff] }
 0xb9e   : > { %4892 = vperm.xlu1 %7175, %v4887_v30   ;;  %v5101_v46 = vadd.f32 %v10540_v53, %v12159_v34 }
 0xb9f   : > { %v10544_v25 = vpop.permute.xlu2 %4675  ;;  %v10546_v9 = vpop.permute.xlu0 %4626 }
 0xba0   : > { %v4606_v44 = vpop.permute.xlu1 %4605 }
 0xba1   : > { %v5094_v38 = vadd.f32 %v4606_v44, %v12154_v40  ;;  %v12160_v44 = vld [vmem:[#allocation37_spill] sm:$0xff]  ;;  %v12172_v40 = vld [vmem:[#allocation51_spill] sm:$0xff] }
 0xba5   : > { %4927 = vperm.xlu2 %7176, %v4922_v57   ;;  %4941 = vperm.xlu0 %7174, %v4936_v7   ;;  %v12161_v7 = vld [vmem:[#allocation41_spill] sm:$0xff] }
 0xba6   : > { %4913 = vperm.xlu1 %7175, %v4908_v54   ;;  %v5104_v54 = vadd.f32 %v10544_v25, %v12161_v7  ;;  %v12179_v7 = vld [vmem:[#allocation59_spill] sm:$0xff] }
 0xba7   : > { %v10548_v4 = vpop.permute.xlu2 %4696  ;;  %v10550_v15 = vpop.permute.xlu0 %4647 }
 0xba8   : > { %v4620_v61 = vpop.permute.xlu1 %4619 }
 0xba9   : > { %v5096_v21 = vadd.f32 %v4620_v61, %v12157_v56  ;;  %v12162_v61 = vld [vmem:[#allocation39_spill] sm:$0xff]  ;;  %v12175_v56 = vld [vmem:[#allocation54_spill] sm:$0xff] }
 0xbad   : > { %4948 = vperm.xlu2 %7176, %v4943_v3   ;;  %4962 = vperm.xlu0 %7174, %v4957_v22   ;;  %v5097_v3 = vadd.f32 %v10546_v9, %v12162_v61 }
 0xbae   : > { %4934 = vperm.xlu1 %7175, %v4929_v6  }
 0xbaf   : > { %v10552_v10 = vpop.permute.xlu2 %4717  ;;  %v10554_v58 = vpop.permute.xlu0 %4668 }
 0xbb0   : > { %v4641_v13 = vpop.permute.xlu1 %4640 }
 0xbb1   : > { %v5099_v57 = vadd.f32 %v4641_v13, %v12160_v44  ;;  %v12165_v13 = vld [vmem:[#allocation40_spill] sm:$0xff]  ;;  %v12178_v44 = vld [vmem:[#allocation57_spill] sm:$0xff] }
 0xbb5   : > { %4969 = vperm.xlu2 %7176, %v4964_v59   ;;  %4983 = vperm.xlu0 %7174, %v4978_v43   ;;  %v5107_v59 = vadd.f32 %v10548_v4, %v12164_v1  ;;  %v5100_v43 = vadd.f32 %v10550_v15, %v12165_v13  ;;  %v12182_v1 = vld [vmem:[#allocation62_spill] sm:$0xff] }
 0xbb6   : > { %4955 = vperm.xlu1 %7175, %v4950_v0  }
 0xbb7   : > { %v10556_v8 = vpop.permute.xlu2 %4738  ;;  %v10558_v24 = vpop.permute.xlu0 %4689 }
 0xbb8   : > { %v4662_v33 = vpop.permute.xlu1 %4661 }
 0xbb9   : > { %v5102_v6 = vadd.f32 %v4662_v33, %v12163_v20  ;;  %v12168_v33 = vld [vmem:[#allocation43_spill] sm:$0xff]  ;;  %v12181_v20 = vld [vmem:[#allocation60_spill] sm:$0xff] }
 0xbbd   : > { %4990 = vperm.xlu2 %7176, %v4985_v41   ;;  %5004 = vperm.xlu0 %7174, %v4999_v29   ;;  %v12166_v41 = vld [vmem:[#allocation45_spill] sm:$0xff] }
 0xbbe   : > { %4976 = vperm.xlu1 %7175, %v4971_v55   ;;  %v12167_v55 = vld [vmem:[#allocation47_spill] sm:$0xff] }
 0xbbf   : > { %v10560_v51 = vpop.permute.xlu2 %4759  ;;  %v10562_v50 = vpop.permute.xlu0 %4710 }
 0xbc0   : > { %v4683_v18 = vpop.permute.xlu1 %4682 }
 0xbc1   : > { %v5105_v29 = vadd.f32 %v4683_v18, %v12166_v41  ;;  %v12171_v18 = vld [vmem:[#allocation46_spill] sm:$0xff]  ;;  %v12184_v41 = vld [vmem:[#allocation63_spill] sm:$0xff] }
 0xbc5   : > { %5011 = vperm.xlu2 %7176, %v5006_v27   ;;  %5025 = vperm.xlu0 %7174, %v5020_v49   ;;  %v5110_v27 = vadd.f32 %v10552_v10, %v12167_v55  ;;  %v5103_v49 = vadd.f32 %v10554_v58, %v12168_v33  ;;  %v12185_v55 = vld [vmem:[#allocation65_spill] sm:$0xff] }
 0xbc6   : > { %4997 = vperm.xlu1 %7175, %v4992_v12  }
 0xbc7   : > { %v10564_v63 = vpop.permute.xlu2 %4780  ;;  %v10566_v47 = vpop.permute.xlu0 %4731 }
 0xbc8   : > { %v4704_v45 = vpop.permute.xlu1 %4703 }
 0xbcd   : > { %7177 = vset.pattern.permute.xlu2 %v12153_v19  ;;  %7179 = vset.pattern.permute.xlu0 %v12153_v19 }
 0xbce   : > { %5018 = vperm.xlu1 %7175, %v5013_v11   ;;  %5220 = vperm.xlu2 %7177, %v5091_v42   ;;  %v5108_v42 = vadd.f32 %v4704_v45, %v12169_v60  ;;  %v12170_v11 = vld [vmem:[#allocation50_spill] sm:$0xff]  ;;  %v12174_v45 = vld [vmem:[#allocation49_spill] sm:$0xff] }
 0xbcf   : > { %5226 = vperm.xlu0 %7179, %v5093_v16   ;;  %v10573_v14 = vpop.permute.xlu2 %4801  ;;  %v10575_v31 = vpop.permute.xlu0 %4752  ;;  %v5113_v26 = vadd.f32 %v10556_v8, %v12170_v11  ;;  %v5106_v16 = vadd.f32 %v10558_v24, %v12171_v18  ;;  %v5109_v36 = vadd.f32 %v10562_v50, %v12174_v45  ;;  %v12187_v60 = vld [vmem:[#allocation66_spill] sm:$0xff]  ;;  %v12188_v11 = vld [vmem:[#allocation68_spill] sm:$0xff] }
 0xbd0   : > { %v4725_v32 = vpop.permute.xlu1 %4724 }
 0xbd6   : > { %7178 = vset.pattern.permute.xlu1 %v12153_v19  ;;  %5229 = vperm.xlu2 %7177, %v5094_v38   ;;  %v5111_v38 = vadd.f32 %v4725_v32, %v12172_v40  ;;  %v12177_v32 = vld [vmem:[#allocation52_spill] sm:$0xff]  ;;  %v12190_v40 = vld [vmem:[#allocation69_spill] sm:$0xff] }
 0xbd7   : > { %5241 = vperm.xlu0 %7179, %v5098_v52   ;;  %5223 = vperm.xlu1 %7178, %v5092_v28   ;;  %v10583_v23 = vpop.permute.xlu2 %4822  ;;  %v10585_v2 = vpop.permute.xlu0 %4773  ;;  %v5116_v52 = vadd.f32 %v10560_v51, %v12173_v37  ;;  %v5112_v34 = vadd.f32 %v10566_v47, %v12177_v32  ;;  %v12191_v37 = vld [vmem:[#allocation6_spill] sm:$0xff] }
 0xbd8   : > { %v4746_v17 = vpop.permute.xlu1 %4745 }
 0xbde   : > { %5235 = vperm.xlu2 %7177, %v5096_v21   ;;  %v5114_v21 = vadd.f32 %v4746_v17, %v12175_v56  ;;  %v12180_v17 = vld [vmem:[#allocation55_spill] sm:$0xff]  ;;  %v12193_v56 = vld [vmem:[#allocation8_spill] sm:$0xff] }
 0xbdf   : > { %5250 = vperm.xlu0 %7179, %v5101_v46   ;;  %5232 = vperm.xlu1 %7178, %v5095_v39   ;;  %v10592_v62 = vpop.permute.xlu2 %4843  ;;  %v10594_v48 = vpop.permute.xlu0 %4794  ;;  %v5119_v39 = vadd.f32 %v10564_v63, %v12176_v35  ;;  %v5115_v61 = vadd.f32 %v10575_v31, %v12180_v17  ;;  %v12194_v35 = vld [vmem:[#allocation7_spill] sm:$0xff]  ;;  %v12198_v17 = vld [vmem:[#allocation18_spill] sm:$0xff] }
 0xbe0   : > { %v4767_v30 = vpop.permute.xlu1 %4766 }
 0xbe6   : > { %5244 = vperm.xlu2 %7177, %v5099_v57   ;;  %v5117_v57 = vadd.f32 %v4767_v30, %v12178_v44  ;;  %v12183_v30 = vld [vmem:[#allocation58_spill] sm:$0xff] }
 0xbe7   : > { %5259 = vperm.xlu0 %7179, %v5104_v54   ;;  %5238 = vperm.xlu1 %7178, %v5097_v3   ;;  %v10601_v5 = vpop.permute.xlu2 %4864  ;;  %v10603_v53 = vpop.permute.xlu0 %4815  ;;  %v5122_v54 = vadd.f32 %v10573_v14, %v12179_v7  ;;  %v5118_v13 = vadd.f32 %v10585_v2, %v12183_v30  ;;  %v12196_v44 = vld [vmem:[#allocation10_spill] sm:$0xff]  ;;  %v12197_v7 = vld [vmem:[#allocation9_spill] sm:$0xff] }
 0xbe8   : > { %v4788_v22 = vpop.permute.xlu1 %4787  ;;  %v12201_v30 = vld [vmem:[#allocation21_spill] sm:$0xff] }
 0xbee   : > { %5253 = vperm.xlu2 %7177, %v5102_v6   ;;  %v5120_v6 = vadd.f32 %v4788_v22, %v12181_v20  ;;  %v12186_v22 = vld [vmem:[#allocation61_spill] sm:$0xff]  ;;  %v12199_v20 = vld [vmem:[#allocation12_spill] sm:$0xff] }
 0xbef   : > { %5268 = vperm.xlu0 %7179, %v5107_v59   ;;  %5247 = vperm.xlu1 %7178, %v5100_v43   ;;  %v10610_v25 = vpop.permute.xlu2 %4885  ;;  %v10612_v9 = vpop.permute.xlu0 %4836  ;;  %v5125_v59 = vadd.f32 %v10583_v23, %v12182_v1  ;;  %v5121_v33 = vadd.f32 %v10594_v48, %v12186_v22  ;;  %v12200_v1 = vld [vmem:[#allocation11_spill] sm:$0xff]  ;;  %v12203_v22 = vld [vmem:[#allocation14_spill] sm:$0xff] }
 0xbf0   : > { %v4809_v0 = vpop.permute.xlu1 %4808 }
 0xbf6   : > { %5262 = vperm.xlu2 %7177, %v5105_v29   ;;  %v5123_v29 = vadd.f32 %v4809_v0, %v12184_v41  ;;  %v12189_v0 = vld [vmem:[#allocation64_spill] sm:$0xff] }
 0xbf7   : > { %5277 = vperm.xlu0 %7179, %v5110_v27   ;;  %5256 = vperm.xlu1 %7178, %v5103_v49   ;;  %v10619_v4 = vpop.permute.xlu2 %4906  ;;  %v10621_v15 = vpop.permute.xlu0 %4857  ;;  %v5128_v27 = vadd.f32 %v10592_v62, %v12185_v55  ;;  %v5124_v18 = vadd.f32 %v10603_v53, %v12189_v0 }
 0xbf8   : > { %v4830_v12 = vpop.permute.xlu1 %4829 }
 0xbfe   : > { %5271 = vperm.xlu2 %7177, %v5108_v42   ;;  %v5126_v42 = vadd.f32 %v4830_v12, %v12187_v60  ;;  %v12192_v12 = vld [vmem:[#allocation67_spill] sm:$0xff]  ;;  %v12204_v60 = vld [vmem:[#allocation13_spill] sm:$0xff] }
 0xbff   : > { %5286 = vperm.xlu0 %7179, %v5113_v26   ;;  %5265 = vperm.xlu1 %7178, %v5106_v16   ;;  %v10628_v10 = vpop.permute.xlu2 %4927  ;;  %v10630_v58 = vpop.permute.xlu0 %4878  ;;  %v5131_v26 = vadd.f32 %v10601_v5, %v12188_v11  ;;  %v5127_v45 = vadd.f32 %v10612_v9, %v12192_v12 }
 0xc00   : > { %v4851_v19 = vpop.permute.xlu1 %4850 }
 0xc06   : > { %5280 = vperm.xlu2 %7177, %v5111_v38   ;;  %v5129_v38 = vadd.f32 %v4851_v19, %v12190_v40  ;;  %v12195_v19 = vld [vmem:[#allocation15_spill] sm:$0xff] }
 0xc07   : > { %5295 = vperm.xlu0 %7179, %v5116_v52   ;;  %5274 = vperm.xlu1 %7178, %v5109_v36   ;;  %v10637_v8 = vpop.permute.xlu2 %4948  ;;  %v10639_v24 = vpop.permute.xlu0 %4899  ;;  %v5134_v52 = vadd.f32 %v10610_v25, %v12191_v37  ;;  %v5130_v32 = vadd.f32 %v10621_v15, %v12195_v19 }
 0xc08   : > { %v4872_v28 = vpop.permute.xlu1 %4871 }
 0xc0e   : > { %5289 = vperm.xlu2 %7177, %v5114_v21   ;;  %v5132_v21 = vadd.f32 %v4872_v28, %v12193_v56  ;;  %v5133_v28 = vadd.f32 %v10630_v58, %v12198_v17  ;;  %v12207_v56 = vld [vmem:[#allocation16_spill] sm:$0xff] }
 0xc0f   : > { %5304 = vperm.xlu0 %7179, %v5119_v39   ;;  %5283 = vperm.xlu1 %7178, %v5112_v34   ;;  %v10646_v51 = vpop.permute.xlu2 %4969  ;;  %v10648_v50 = vpop.permute.xlu0 %4920  ;;  %v5137_v39 = vadd.f32 %v10619_v4, %v12194_v35  ;;  %v12208_v35 = vld [vmem:[#allocation28_spill] sm:$0xff] }
 0xc10   : > { %v4893_v46 = vpop.permute.xlu1 %4892 }
 0xc16   : > { %5298 = vperm.xlu2 %7177, %v5117_v57   ;;  %v5135_v57 = vadd.f32 %v4893_v46, %v12196_v44  ;;  %v5136_v46 = vadd.f32 %v10639_v24, %v12201_v30  ;;  %v12209_v44 = vld [vmem:[#allocation20_spill] sm:$0xff]  ;;  %v5555_v30 = vld [vmem:[#allocation2 + $0x1] sm:$0xff] }
 0xc17   : > { %5313 = vperm.xlu0 %7179, %v5122_v54   ;;  %5292 = vperm.xlu1 %7178, %v5115_v61   ;;  %v10655_v63 = vpop.permute.xlu2 %4990  ;;  %v10657_v47 = vpop.permute.xlu0 %4941  ;;  %v5140_v54 = vadd.f32 %v10628_v10, %v12197_v7  ;;  %v12210_v7 = vld [vmem:[#allocation19_spill] sm:$0xff] }
 0xc18   : > { %v4914_v3 = vpop.permute.xlu1 %4913 }
 0xc1e   : > { %5307 = vperm.xlu2 %7177, %v5120_v6   ;;  %v5138_v6 = vadd.f32 %v4914_v3, %v12199_v20 }
 0xc1f   : > { %5322 = vperm.xlu0 %7179, %v5125_v59   ;;  %5301 = vperm.xlu1 %7178, %v5118_v13   ;;  %v10664_v14 = vpop.permute.xlu2 %5011  ;;  %v10666_v31 = vpop.permute.xlu0 %4962  ;;  %v5143_v59 = vadd.f32 %v10637_v8, %v12200_v1  ;;  %v12202_v13 = vld [vmem:[#allocation70_spill] sm:$0xff] }
 0xc20   : > { %v4935_v43 = vpop.permute.xlu1 %4934 }
 0xc21   : > { %v5141_v8 = vadd.f32 %v4935_v43, %v12203_v22 }
 0xc26   : > { %5316 = vperm.xlu2 %7177, %v5123_v29  }
 0xc27   : > { %5331 = vperm.xlu0 %7179, %v5128_v27   ;;  %5310 = vperm.xlu1 %7178, %v5121_v33   ;;  %v10673_v23 = vpop.permute.xlu0 %4983 }
 0xc28   : > { %v10675_v2 = vpop.permute.xlu1 %4955  ;;  %v5221_v49 = vpop.permute.xlu2 %5220 }
 0xc29   : > { %v5411_v58 = vperm.slane %v5221_v49, %v12202_v13  ;;  %v12205_v49 = vld [vmem:[#allocation25_spill] sm:$0xff] }
 0xc2a   : > { %v5139_v11 = vadd.f32 %v10648_v50, %v12205_v49 }
 0xc2e   : > { %5325 = vperm.xlu2 %7177, %v5126_v42   ;;  %v5146_v42 = vadd.f32 %v10646_v51, %v12204_v60 }
 0xc2f   : > { %5340 = vperm.xlu0 %7179, %v5131_v26   ;;  %5319 = vperm.xlu1 %7178, %v5124_v18   ;;  %v10682_v62 = vpop.permute.xlu0 %5004 }
 0xc30   : > { %v10684_v48 = vpop.permute.xlu1 %4976  ;;  %v5230_v16 = vpop.permute.xlu2 %5229 }
 0xc31   : > { %v5414_v26 = vperm.slane %v5230_v16, %v12202_v13  ;;  %v12206_v16 = vld [vmem:[#allocation17_spill] sm:$0xff] }
 0xc32   : > { %v5144_v12 = vadd.f32 %v10675_v2, %v12206_v16 }
 0xc36   : > { %5334 = vperm.xlu2 %7177, %v5129_v38  }
 0xc37   : > { %5349 = vperm.xlu0 %7179, %v5134_v52   ;;  %5328 = vperm.xlu1 %7178, %v5127_v45   ;;  %v10691_v5 = vpop.permute.xlu0 %5025 }
 0xc38   : > { %v10693_v53 = vpop.permute.xlu1 %4997  ;;  %v5236_v36 = vpop.permute.xlu2 %5235 }
 0xc39   : > { %v5416_v40 = vperm.slane %v5236_v36, %v12202_v13 }
 0xc3e   : > { %5343 = vperm.xlu2 %7177, %v5132_v21   ;;  %v5149_v21 = vadd.f32 %v10655_v63, %v12207_v56 }
 0xc3f   : > { %5358 = vperm.xlu0 %7179, %v5137_v39   ;;  %5337 = vperm.xlu1 %7178, %v5130_v32   ;;  %v5142_v39 = vadd.f32 %v10657_v47, %v12208_v35  ;;  %v5152_v47 = vadd.f32 %v10664_v14, %v12210_v7  ;;  %v12212_v14 = vld [vmem:[#allocation22_spill] sm:$0xff] }
 0xc40   : > { %v10700_v25 = vpop.permute.xlu1 %5018  ;;  %v5245_v9 = vpop.permute.xlu2 %5244  ;;  %v5150_v1 = vadd.f32 %v10693_v53, %v12212_v14 }
 0xc41   : > { %v5227_v34 = vpop.permute.xlu0 %5226  ;;  %v5419_v63 = vperm.slane %v5245_v9, %v12202_v13 }
 0xc42   : > { %v5413_v3 = vperm.slane %v5227_v34, %v12202_v13 }
 0xc46   : > { %5352 = vperm.xlu2 %7177, %v5135_v57   ;;  %v5147_v57 = vadd.f32 %v10684_v48, %v12209_v44 }
 0xc47   : > { %5367 = vperm.xlu0 %7179, %v5140_v54   ;;  %5346 = vperm.xlu1 %7178, %v5133_v28   ;;  %v12211_v54 = vld [vmem:[#allocation31_spill] sm:$0xff] }
 0xc48   : > { %v10707_v4 = vpop.permute.xlu2 %5253  ;;  %v5145_v17 = vadd.f32 %v10666_v31, %v12211_v54 }
 0xc49   : > { %v5224_v15 = vpop.permute.xlu1 %5223  ;;  %v5242_v61 = vpop.permute.xlu0 %5241  ;;  %v5422_v48 = vperm.slane %v10707_v4, %v12202_v13 }
 0xc4a   : > { %v5412_v10 = vperm.slane %v5224_v15, %v12202_v13  ;;  %v5418_v52 = vperm.slane %v5242_v61, %v12202_v13 }
 0xc4c   : > { %v5475_v29 = vsel %vm1591_vm3, %v5412_v10, %v5411_v58 }
 0xc4d   : > { %v5476_v33 = vsel %vm1593_vm4, %v5413_v3, %v5475_v29 }
 0xc4e   : > { %5361 = vperm.xlu2 %7177, %v5138_v6   ;;  %v5477_v0 = vsel %vm1595_vm5, %v5414_v26, %v5476_v33 }
 0xc4f   : > { %5376 = vperm.xlu0 %7179, %v5143_v59   ;;  %5355 = vperm.xlu1 %7178, %v5136_v46   ;;  %v12213_v46 = vld [vmem:[#allocation23_spill] sm:$0xff] }
 0xc50   : > { %v10716_v41 = vpop.permute.xlu2 %5262  ;;  %v5148_v10 = vadd.f32 %v10673_v23, %v12213_v46  ;;  %v12214_v23 = vld [vmem:[#allocation33_spill] sm:$0xff] }
 0xc51   : > { %v5233_v55 = vpop.permute.xlu1 %5232  ;;  %v5251_v27 = vpop.permute.xlu0 %5250  ;;  %v5425_v53 = vperm.slane %v10716_v41, %v12202_v13 }
 0xc52   : > { %v5415_v24 = vperm.slane %v5233_v55, %v12202_v13  ;;  %v5421_v15 = vperm.slane %v5251_v27, %v12202_v13 }
 0xc54   : > { %v5478_v18 = vsel %vm1597_vm6, %v5415_v24, %v5477_v0  ;;  %v12215_v24 = vld [vmem:[#allocation24_spill] sm:$0xff] }
 0xc55   : > { %v5479_v50 = vsel %vm1599_vm7, %v5416_v40, %v5478_v18  ;;  %v5151_v60 = vadd.f32 %v10682_v62, %v12215_v24  ;;  %v12216_v18 = vld [vmem:[#allocation26_spill] sm:$0xff] }
 0xc56   : > { %5370 = vperm.xlu2 %7177, %v5141_v8   ;;  %v5153_v8 = vadd.f32 %v10700_v25, %v12214_v23  ;;  %v5154_v40 = vadd.f32 %v10691_v5, %v12216_v18 }
 0xc57   : > { %5385 = vperm.xlu0 %7179, %v5146_v42   ;;  %5364 = vperm.xlu1 %7178, %v5139_v11  }
 0xc58   : > { %v10730_v43 = vpop.permute.xlu2 %5271 }
 0xc59   : > { %v5239_v38 = vpop.permute.xlu1 %5238  ;;  %v5260_v37 = vpop.permute.xlu0 %5259  ;;  %v5428_v26 = vperm.slane %v10730_v43, %v12202_v13 }
 0xc5a   : > { %v5417_v51 = vperm.slane %v5239_v38, %v12202_v13  ;;  %v5424_v29 = vperm.slane %v5260_v37, %v12202_v13 }
 0xc5c   : > { %v5480_v45 = vsel %vm1601_vm8, %v5417_v51, %v5479_v50 }
 0xc5d   : > { %v5481_v36 = vsel %vm1603_vm9, %v5418_v52, %v5480_v45 }
 0xc5e   : > { %5539 = vst.msk [vmem:[#allocation2 + $0x11] sm:$0xff] %vm300_vm1, %v5481_v36  ;;  %5379 = vperm.xlu2 %7177, %v5144_v12  }
 0xc5f   : > { %5394 = vperm.xlu0 %7179, %v5149_v21   ;;  %5373 = vperm.xlu1 %7178, %v5142_v39  }
 0xc60   : > { %v5281_v34 = vpop.permute.xlu2 %5280 }
 0xc61   : > { %v5248_v19 = vpop.permute.xlu1 %5247  ;;  %v5269_v32 = vpop.permute.xlu0 %5268  ;;  %v5431_v52 = vperm.slane %v5281_v34, %v12202_v13 }
 0xc62   : > { %v5420_v2 = vperm.slane %v5248_v19, %v12202_v13  ;;  %v5427_v41 = vperm.slane %v5269_v32, %v12202_v13 }
 0xc64   : > { %v5482_v28 = vsel %vm1591_vm3, %v5420_v2, %v5419_v63  ;;  %v5489_v25 = vsel %vm1591_vm3, %v5428_v26, %v5427_v41 }
 0xc65   : > { %v5483_v61 = vsel %vm1593_vm4, %v5421_v15, %v5482_v28  ;;  %v10786_v38 = vld [vmem:[#allocation2 + $0x11] sm:$0xff] }
 0xc66   : > { %5388 = vperm.xlu2 %7177, %v5147_v57   ;;  %v5484_v59 = vsel %vm1595_vm5, %v5422_v48, %v5483_v61 }
 0xc67   : > { %5403 = vperm.xlu0 %7179, %v5152_v47   ;;  %5382 = vperm.xlu1 %7178, %v5145_v17  }
 0xc68   : > { %v5290_v31 = vpop.permute.xlu2 %5289 }
 0xc69   : > { %v5257_v20 = vpop.permute.xlu1 %5256  ;;  %v5278_v6 = vpop.permute.xlu0 %5277  ;;  %v5434_v56 = vperm.slane %v5290_v31, %v12202_v13 }
 0xc6a   : > { %v5423_v9 = vperm.slane %v5257_v20, %v12202_v13  ;;  %v5430_v37 = vperm.slane %v5278_v6, %v12202_v13 }
 0xc6c   : > { %v5485_v58 = vsel %vm1597_vm6, %v5423_v9, %v5484_v59 }
 0xc6d   : > { %v5486_v4 = vsel %vm1599_vm7, %v5424_v29, %v5485_v58 }
 0xc6e   : > { %5397 = vperm.xlu2 %7177, %v5150_v1   ;;  %v5487_v22 = vsel %vm1601_vm8, %v5425_v53, %v5486_v4 }
 0xc6f   : > { %5391 = vperm.xlu1 %7178, %v5148_v10   ;;  %5627 = vrot.lane.b32.xlu0 %v5555_v30, %s7200_s14 }
 0xc70   : > { %v5299_v42 = vpop.permute.xlu2 %5298 }
 0xc71   : > { %v5266_v55 = vpop.permute.xlu1 %5265  ;;  %v5287_v27 = vpop.permute.xlu0 %5286  ;;  %v5437_v54 = vperm.slane %v5299_v42, %v12202_v13 }
 0xc72   : > { %v5426_v3 = vperm.slane %v5266_v55, %v12202_v13  ;;  %v5433_v5 = vperm.slane %v5287_v27, %v12202_v13 }
 0xc74   : > { %v5488_v33 = vsel %vm1603_vm9, %v5426_v3, %v5487_v22 }
 0xc75   : > { %5540 = vst.msk [vmem:[#allocation2 + $0x21] sm:$0xff] %vm300_vm1, %v5488_v33 }
 0xc76   : > { %5406 = vperm.xlu2 %7177, %v5153_v8  }
 0xc77   : > { %5400 = vperm.xlu1 %7178, %v5151_v60  }
 0xc78   : > { %v5308_v51 = vpop.permute.xlu2 %5307 }
 0xc79   : > { %v5275_v49 = vpop.permute.xlu1 %5274  ;;  %v5296_v11 = vpop.permute.xlu0 %5295  ;;  %v5440_v48 = vperm.slane %v5308_v51, %v12202_v13 }
 0xc7a   : > { %v5429_v0 = vperm.slane %v5275_v49, %v12202_v13  ;;  %v5436_v57 = vperm.slane %v5296_v11, %v12202_v13 }
 0xc7c   : > { %v5490_v62 = vsel %vm1593_vm4, %v5429_v0, %v5489_v25  ;;  %v10800_v36 = vld [vmem:[#allocation2 + $0x21] sm:$0xff] }
 0xc7d   : > { %v5491_v43 = vsel %vm1595_vm5, %v5430_v37, %v5490_v62 }
 0xc7e   : > { %5629 = vrot.lane.b32.xlu2 %v10786_v38, %s7200_s14  ;;  %v5492_v45 = vsel %vm1597_vm6, %v5431_v52, %v5491_v43 }
 0xc7f   : > { %5409 = vperm.xlu1 %7178, %v5154_v40  }
 0xc80   : > { %v5317_v34 = vpop.permute.xlu2 %5316 }
 0xc81   : > { %v5284_v50 = vpop.permute.xlu1 %5283  ;;  %v5305_v16 = vpop.permute.xlu0 %5304  ;;  %v5443_v4 = vperm.slane %v5317_v34, %v12202_v13 }
 0xc82   : > { %v5432_v12 = vperm.slane %v5284_v50, %v12202_v13  ;;  %v5439_v20 = vperm.slane %v5305_v16, %v12202_v13 }
 0xc84   : > { %v5493_v21 = vsel %vm1599_vm7, %v5432_v12, %v5492_v45 }
 0xc85   : > { %v5494_v35 = vsel %vm1601_vm8, %v5433_v5, %v5493_v21 }
 0xc86   : > { %v5495_v39 = vsel %vm1603_vm9, %v5434_v56, %v5494_v35 }
 0xc87   : > { %5541 = vst.msk [vmem:[#allocation2 + $0x31] sm:$0xff] %vm300_vm1, %v5495_v39  ;;  %5631 = vrot.lane.b32.xlu1 %v10800_v36, %s7200_s14 }
 0xc88   : > { %v5326_v28 = vpop.permute.xlu2 %5325 }
 0xc89   : > { %v5293_v19 = vpop.permute.xlu1 %5292  ;;  %v5314_v32 = vpop.permute.xlu0 %5313  ;;  %v5446_v33 = vperm.slane %v5326_v28, %v12202_v13 }
 0xc8a   : > { %v5435_v2 = vperm.slane %v5293_v19, %v12202_v13  ;;  %v5442_v1 = vperm.slane %v5314_v32, %v12202_v13  ;;  %v5563_v32 = vld [vmem:[#allocation2 + $0x2] sm:$0xff] }
 0xc8c   : > { %v5496_v63 = vsel %vm1591_vm3, %v5436_v57, %v5435_v2 }
 0xc8d   : > { %v5497_v15 = vsel %vm1593_vm4, %v5437_v54, %v5496_v63 }
 0xc8e   : > { %v10806_v44 = vld [vmem:[#allocation2 + $0x31] sm:$0xff] }
 0xc8f   : > { %5633 = vrot.lane.b32.xlu0 %v10806_v44, %s7200_s14 }
 0xc90   : > { %v5335_v10 = vpop.permute.xlu2 %5334 }
 0xc91   : > { %v5302_v7 = vpop.permute.xlu1 %5301  ;;  %v5323_v47 = vpop.permute.xlu0 %5322  ;;  %v5449_v26 = vperm.slane %v5335_v10, %v12202_v13 }
 0xc92   : > { %v5438_v17 = vperm.slane %v5302_v7, %v12202_v13  ;;  %v5445_v3 = vperm.slane %v5323_v47, %v12202_v13 }
 0xc94   : > { %v5498_v61 = vsel %vm1595_vm5, %v5438_v17, %v5497_v15  ;;  %v10866_v15 = vld [vmem:[#allocation2 + $0x32] sm:$0xff] }
 0xc95   : > { %v5499_v6 = vsel %vm1597_vm6, %v5439_v20, %v5498_v61 }
 0xc96   : > { %v5500_v31 = vsel %vm1599_vm7, %v5440_v48, %v5499_v6 }
 0xc98   : > { %v5344_v22 = vpop.permute.xlu2 %5343 }
 0xc99   : > { %v5311_v9 = vpop.permute.xlu1 %5310  ;;  %v5332_v59 = vpop.permute.xlu0 %5331  ;;  %v5452_v52 = vperm.slane %v5344_v22, %v12202_v13 }
 0xc9a   : > { %v5441_v14 = vperm.slane %v5311_v9, %v12202_v13  ;;  %v5448_v41 = vperm.slane %v5332_v59, %v12202_v13 }
 0xc9c   : > { %v5501_v30 = vsel %vm1601_vm8, %v5441_v14, %v5500_v31 }
 0xc9d   : > { %v5502_v46 = vsel %vm1603_vm9, %v5442_v1, %v5501_v30 }
 0xc9e   : > { %5542 = vst.msk [vmem:[#allocation2 + $0x41] sm:$0xff] %vm300_vm1, %v5502_v46  ;;  %v10880_v46 = vld [vmem:[#allocation2 + $0x10] sm:$0xff] }
 0xca0   : > { %v5353_v25 = vpop.permute.xlu2 %5352 }
 0xca1   : > { %v5320_v58 = vpop.permute.xlu1 %5319  ;;  %v5341_v53 = vpop.permute.xlu0 %5340  ;;  %v5455_v35 = vperm.slane %v5353_v25, %v12202_v13 }
 0xca2   : > { %v5444_v29 = vperm.slane %v5320_v58, %v12202_v13  ;;  %v5451_v37 = vperm.slane %v5341_v53, %v12202_v13 }
 0xca4   : > { %v5503_v27 = vsel %vm1591_vm3, %v5444_v29, %v5443_v4  ;;  %v5510_v16 = vsel %vm1591_vm3, %v5452_v52, %v5451_v37  ;;  %v5564_v29 = vld [vmem:[#allocation2 + $0x12] sm:$0xff] }
 0xca5   : > { %v10827_v55 = vld [vmem:[#allocation2 + $0x41] sm:$0xff]  ;;  %v5504_v23 = vsel %vm1593_vm4, %v5445_v3, %v5503_v27 }
 0xca6   : > { %5635 = vrot.lane.b32.xlu2 %v10827_v55, %s7200_s14  ;;  %v5505_v60 = vsel %vm1595_vm5, %v5446_v33, %v5504_v23 }
 0xca8   : > { %v5362_v12 = vpop.permute.xlu2 %5361 }
 0xca9   : > { %v5329_v8 = vpop.permute.xlu1 %5328  ;;  %v5350_v49 = vpop.permute.xlu0 %5349  ;;  %v5458_v63 = vperm.slane %v5362_v12, %v12202_v13  ;;  %v10916_v12 = vld [vmem:[#allocation2 + $0x30] sm:$0xff] }
 0xcaa   : > { %v5447_v24 = vperm.slane %v5329_v8, %v12202_v13  ;;  %v5454_v56 = vperm.slane %v5350_v49, %v12202_v13 }
 0xcac   : > { %v5506_v42 = vsel %vm1597_vm6, %v5447_v24, %v5505_v60  ;;  %v10893_v60 = vld [vmem:[#allocation2 + $0x20] sm:$0xff] }
 0xcad   : > { %v5507_v11 = vsel %vm1599_vm7, %v5448_v41, %v5506_v42  ;;  %v5567_v41 = vld [vmem:[#allocation2 + $0x42] sm:$0xff] }
 0xcae   : > { %v5508_v40 = vsel %vm1601_vm8, %v5449_v26, %v5507_v11 }
 0xcb0   : > { %v5371_v54 = vpop.permute.xlu2 %5370 }
 0xcb1   : > { %v5338_v0 = vpop.permute.xlu1 %5337  ;;  %v5359_v51 = vpop.permute.xlu0 %5358  ;;  %v5461_v31 = vperm.slane %v5371_v54, %v12202_v13 }
 0xcb2   : > { %v5450_v18 = vperm.slane %v5338_v0, %v12202_v13  ;;  %v5457_v34 = vperm.slane %v5359_v51, %v12202_v13 }
 0xcb4   : > { %v5509_v62 = vsel %vm1603_vm9, %v5450_v18, %v5508_v40 }
 0xcb5   : > { %5543 = vst.msk [vmem:[#allocation2 + $0x51] sm:$0xff] %vm300_vm1, %v5509_v62 }
 0xcb8   : > { %v5380_v9 = vpop.permute.xlu2 %5379 }
 0xcb9   : > { %v5347_v43 = vpop.permute.xlu1 %5346  ;;  %v5368_v2 = vpop.permute.xlu0 %5367  ;;  %v5464_v27 = vperm.slane %v5380_v9, %v12202_v13 }
 0xcba   : > { %v5453_v50 = vperm.slane %v5347_v43, %v12202_v13  ;;  %v5460_v48 = vperm.slane %v5368_v2, %v12202_v13 }
 0xcbc   : > { %v10849_v5 = vld [vmem:[#allocation2 + $0x51] sm:$0xff]  ;;  %v5511_v45 = vsel %vm1593_vm4, %v5453_v50, %v5510_v16 }
 0xcbd   : > { %5637 = vrot.lane.b32.xlu1 %v10849_v5, %s7200_s14  ;;  %v5512_v21 = vsel %vm1595_vm5, %v5454_v56, %v5511_v45  ;;  %v5565_v56 = vld [vmem:[#allocation2 + $0x22] sm:$0xff] }
 0xcbe   : > { %v5513_v57 = vsel %vm1597_vm6, %v5455_v35, %v5512_v21 }
 0xcc0   : > { %v5389_v22 = vpop.permute.xlu2 %5388 }
 0xcc1   : > { %v5356_v39 = vpop.permute.xlu1 %5355  ;;  %v5377_v61 = vpop.permute.xlu0 %5376  ;;  %v5467_v0 = vperm.slane %v5389_v22, %v12202_v13 }
 0xcc2   : > { %v5456_v19 = vperm.slane %v5356_v39, %v12202_v13  ;;  %v5463_v58 = vperm.slane %v5377_v61, %v12202_v13 }
 0xcc4   : > { %v5514_v7 = vsel %vm1599_vm7, %v5456_v19, %v5513_v57  ;;  %v5568_v57 = vld [vmem:[#allocation2 + $0x52] sm:$0xff] }
 0xcc5   : > { %v5515_v47 = vsel %vm1601_vm8, %v5457_v34, %v5514_v7  ;;  %5659 = vrot.lane.b32.xlu1 %v5563_v32, %s7201_s15 }
 0xcc6   : > { %v5516_v17 = vsel %vm1603_vm9, %v5458_v63, %v5515_v47  ;;  %v10936_v63 = vld [vmem:[#allocation2 + $0x40] sm:$0xff] }
 0xcc7   : > { %5544 = vst.msk [vmem:[#allocation2 + $0x61] sm:$0xff] %vm300_vm1, %v5516_v17  ;;  %v5947_v17 = vld [vmem:[%s11720_s5 + $0x40] sm:$0xff] }
 0xcc8   : > { %v5398_v25 = vpop.permute.xlu2 %5397  ;;  %5979 = vmatpush.msrb.mxu0 %v5947_v17 }
 0xcc9   : > { %v5365_v28 = vpop.permute.xlu1 %5364  ;;  %v5386_v4 = vpop.permute.xlu0 %5385  ;;  %v5470_v43 = vperm.slane %v5398_v25, %v12202_v13 }
 0xcca   : > { %v5459_v20 = vperm.slane %v5365_v28, %v12202_v13  ;;  %v5466_v8 = vperm.slane %v5386_v4, %v12202_v13 }
 0xccc   : > { %v5517_v14 = vsel %vm1591_vm3, %v5460_v48, %v5459_v20  ;;  %v5944_v48 = vld [vmem:[%s11720_s5 + $0x28] sm:$0xff] }
 0xccd   : > { %5665 = vrot.lane.b32.xlu1 %v10866_v15, %s7201_s15  ;;  %v5518_v30 = vsel %vm1593_vm4, %v5461_v31, %v5517_v14  ;;  %v5943_v14 = vld [vmem:[%s11720_s5 + $0x20] sm:$0xff] }
 0xcce   : > { %v10871_v6 = vld [vmem:[#allocation2 + $0x61] sm:$0xff] }
 0xccf   : > { %5639 = vrot.lane.b32.xlu0 %v10871_v6, %s7200_s14  ;;  %v5569_v28 = vld [vmem:[#allocation2 + $0x62] sm:$0xff] }
 0xcd0   : > { %v5407_v21 = vpop.permute.xlu2 %5406 }
 0xcd1   : > { %v5374_v1 = vpop.permute.xlu1 %5373  ;;  %v5395_v49 = vpop.permute.xlu0 %5394  ;;  %v5473_v39 = vperm.slane %v5407_v21, %v12202_v13 }
 0xcd2   : > { %v5462_v59 = vperm.slane %v5374_v1, %v12202_v13  ;;  %v5469_v62 = vperm.slane %v5395_v49, %v12202_v13  ;;  %v5942_v1 = vld [vmem:[%s11720_s5 + $0x18] sm:$0xff] }
 0xcd4   : > { %v5519_v10 = vsel %vm1595_vm5, %v5462_v59, %v5518_v30 }
 0xcd5   : > { %5691 = vrot.lane.b32.xlu1 %v10880_v46, %s7202_s16  ;;  %v5520_v53 = vsel %vm1597_vm6, %v5463_v58, %v5519_v10  ;;  %v5940_v10 = vld [vmem:[%s11720_s5 + $0x8] sm:$0xff] }
 0xcd6   : > { %v5521_v33 = vsel %vm1599_vm7, %v5464_v27, %v5520_v53 }
 0xcd7   : > { %5661 = vrot.lane.b32.xlu0 %v5564_v29, %s7201_s15 }
 0xcd8   : > { %v10985_v54 = vpop.permute.xlu2 %5629 }
 0xcd9   : > { %v5383_v3 = vpop.permute.xlu1 %5382  ;;  %v5404_v50 = vpop.permute.xlu0 %5403 }
 0xcda   : > { %v5465_v23 = vperm.slane %v5383_v3, %v12202_v13 }
 0xcdc   : > { %v5522_v24 = vsel %vm1601_vm8, %v5465_v23, %v5521_v33 }
 0xcdd   : > { %v5523_v42 = vsel %vm1603_vm9, %v5466_v8, %v5522_v24  ;;  %5787 = vrot.lane.b32.xlu1 %v10893_v60, %s7205_s19 }
 0xcde   : > { %5545 = vst.msk [vmem:[#allocation2 + $0x71] sm:$0xff] %vm300_vm1, %v5523_v42  ;;  %v5610_v42 = vld [vmem:[#allocation2 + $0x91] sm:$0xff] }
 0xcdf   : > { %5667 = vrot.lane.b32.xlu0 %v5567_v41, %s7201_s15 }
 0xce1   : > { %v5392_v11 = vpop.permute.xlu1 %5391  ;;  %v5628_v7 = vpop.permute.xlu0 %5627 }
 0xce2   : > { %v5468_v26 = vperm.slane %v5392_v11, %v12202_v13 }
 0xce4   : > { %v5524_v40 = vsel %vm1591_vm3, %v5468_v26, %v5467_v0 }
 0xce5   : > { %5693 = vrot.lane.b32.xlu1 %v10893_v60, %s7202_s16  ;;  %v10904_v18 = vld [vmem:[#allocation2 + $0x71] sm:$0xff]  ;;  %v5525_v37 = vsel %vm1593_vm4, %v5469_v62, %v5524_v40 }
 0xce6   : > { %5641 = vrot.lane.b32.xlu2 %v10904_v18, %s7200_s14  ;;  %v5526_v16 = vsel %vm1595_vm5, %v5470_v43, %v5525_v37  ;;  %v5593_v31 = vld [vmem:[#allocation2 + $0x72] sm:$0xff] }
 0xce7   : > { %5723 = vrot.lane.b32.xlu0 %v10786_v38, %s7203_s17  ;;  %v5472_v38 = vperm.slane %v5404_v50, %v12202_v13 }
 0xce9   : > { %v5401_v51 = vpop.permute.xlu1 %5400 }
 0xcea   : > { %v5471_v52 = vperm.slane %v5401_v51, %v12202_v13 }
 0xcec   : > { %v5527_v45 = vsel %vm1597_vm6, %v5471_v52, %v5526_v16 }
 0xced   : > { %5789 = vrot.lane.b32.xlu1 %v10916_v12, %s7205_s19  ;;  %v5528_v35 = vsel %vm1599_vm7, %v5472_v38, %v5527_v45 }
 0xcee   : > { %5663 = vrot.lane.b32.xlu2 %v5565_v56, %s7201_s15  ;;  %v5529_v34 = vsel %vm1601_vm8, %v5473_v39, %v5528_v35 }
 0xcef   : > { %5819 = vrot.lane.b32.xlu0 %v10800_v36, %s7206_s20 }
 0xcf1   : > { %v5410_v19 = vpop.permute.xlu1 %5409 }
 0xcf2   : > { %v5474_v32 = vperm.slane %v5410_v19, %v12202_v13  ;;  %v10948_v13 = vld [vmem:[#allocation2 + $0x50] sm:$0xff] }
 0xcf4   : > { %v5530_v2 = vsel %vm1603_vm9, %v5474_v32, %v5529_v34 }
 0xcf5   : > { %5546 = vst.msk [vmem:[#allocation2 + $0x81] sm:$0xff] %vm300_vm1, %v5530_v2  ;;  %5695 = vrot.lane.b32.xlu1 %v10916_v12, %s7202_s16 }
 0xcf6   : > { %5669 = vrot.lane.b32.xlu2 %v5568_v57, %s7201_s15 }
 0xcf7   : > { %5725 = vrot.lane.b32.xlu0 %v10800_v36, %s7203_s17  ;;  %v10961_v36 = vld [vmem:[#allocation2 + $0x60] sm:$0xff] }
 0xcfc   : > { %v5617_v4 = vld [vmem:[#allocation2 + $0x82] sm:$0xff] }
 0xcfd   : > { %5791 = vrot.lane.b32.xlu1 %v10936_v63, %s7205_s19  ;;  %v5586_v22 = vld [vmem:[#allocation2 + $0x81] sm:$0xff] }
 0xcfe   : > { %5755 = vrot.lane.b32.xlu2 %v5564_v29, %s7204_s18  ;;  %v5939_v29 = vld [vmem:[%s11720_s5] sm:$0xff] }
 0xcff   : > { %5821 = vrot.lane.b32.xlu0 %v10806_v44, %s7206_s20  ;;  %v5601_v23 = vld [vmem:[#allocation2 + $0x80] sm:$0xff] }
 0xd00   : > { %v11000_v20 = vpop.permute.xlu2 %5635 }
 0xd01   : > { %v11005_v9 = vpop.permute.xlu0 %5633 }
 0xd05   : > { %5697 = vrot.lane.b32.xlu1 %v10936_v63, %s7202_s16 }
 0xd06   : > { %5851 = vrot.lane.b32.xlu2 %v5565_v56, %s7207_s21 }
 0xd07   : > { %5727 = vrot.lane.b32.xlu0 %v10806_v44, %s7203_s17  ;;  %v10972_v44 = vpop.permute.xlu1 %5631 }
 0xd0d   : > { %5793 = vrot.lane.b32.xlu1 %v10948_v13, %s7205_s19 }
 0xd0e   : > { %5757 = vrot.lane.b32.xlu2 %v5565_v56, %s7204_s18  ;;  %v5618_v56 = vld [vmem:[#allocation2 + $0x92] sm:$0xff] }
 0xd0f   : > { %5823 = vrot.lane.b32.xlu0 %v10827_v55, %s7206_s20 }
 0xd15   : > { %5699 = vrot.lane.b32.xlu1 %v10948_v13, %s7202_s16 }
 0xd16   : > { %5853 = vrot.lane.b32.xlu2 %v10866_v15, %s7207_s21 }
 0xd17   : > { %5729 = vrot.lane.b32.xlu0 %v10827_v55, %s7203_s17  ;;  %v10976_v55 = vld [vmem:[#allocation2 + $0x70] sm:$0xff] }
 0xd1d   : > { %5795 = vrot.lane.b32.xlu1 %v10961_v36, %s7205_s19 }
 0xd1e   : > { %5759 = vrot.lane.b32.xlu2 %v10866_v15, %s7204_s18  ;;  %v5945_v15 = vld [vmem:[%s11720_s5 + $0x30] sm:$0xff] }
 0xd1f   : > { %5825 = vrot.lane.b32.xlu0 %v10849_v5, %s7206_s20 }
 0xd25   : > { %5701 = vrot.lane.b32.xlu1 %v10961_v36, %s7202_s16 }
 0xd26   : > { %5855 = vrot.lane.b32.xlu2 %v5567_v41, %s7207_s21 }
 0xd27   : > { %5731 = vrot.lane.b32.xlu0 %v10849_v5, %s7203_s17  ;;  %v5946_v5 = vld [vmem:[%s11720_s5 + $0x38] sm:$0xff] }
 0xd28   : > { %5980 = vmatpush.msrb.mxu0 %v5946_v5 }
 0xd2a   : > { %5981 = vmatpush.msrb.mxu0 %v5945_v15  ;;  %v5877_v15 = vsel %vm300_vm1, %v10893_v60, %v10972_v44  ;;  %v5878_v44 = vsel %vm300_vm1, %v10916_v12, %v11005_v9  ;;  %v5879_v9 = vsel %vm300_vm1, %v10936_v63, %v11000_v20 }
 0xd2c   : > { %5982 = vmatpush.msrb.mxu0 %v5944_v48 }
 0xd2d   : > { %5797 = vrot.lane.b32.xlu1 %v10976_v55, %s7205_s19 }
 0xd2e   : > { %5761 = vrot.lane.b32.xlu2 %v5567_v41, %s7204_s18  ;;  %5983 = vmatpush.msrb.mxu0 %v5943_v14  ;;  %v5547_v41 = vld [vmem:[#allocation2] sm:$0xff] }
 0xd2f   : > { %v10981_v47 = vpop.permute.xlu1 %5637  ;;  %5827 = vrot.lane.b32.xlu0 %v10871_v6, %s7206_s20  ;;  %v5875_v11 = vsel %vm300_vm1, %v5547_v41, %v5628_v7 }
 0xd30   : > { %5984 = vmatpush.msrb.mxu0 %v5942_v1 }
 0xd35   : > { %5671 = vrot.lane.b32.xlu1 %v5569_v28, %s7201_s15 }
 0xd36   : > { %5857 = vrot.lane.b32.xlu2 %v5568_v57, %s7207_s21 }
 0xd37   : > { %v5660_v61 = vpop.permute.xlu1 %5659  ;;  %5733 = vrot.lane.b32.xlu0 %v10871_v6, %s7203_s17  ;;  %v5941_v6 = vld [vmem:[%s11720_s5 + $0x10] sm:$0xff] }
 0xd38   : > { %5985 = vmatpush.msrb.mxu0 %v5941_v6  ;;  %v5883_v0 = vsel %vm484_vm0, %v5875_v11, %v5660_v61 }
 0xd3a   : > { %5986 = vmatpush.msrb.mxu0 %v5940_v10 }
 0xd3c   : > { %5987 = vmatpush.msrb.mxu0 %v5939_v29 }
 0xd3d   : > { %5767 = vrot.lane.b32.xlu1 %v5593_v31, %s7204_s18 }
 0xd3e   : > { %5763 = vrot.lane.b32.xlu2 %v5568_v57, %s7204_s18 }
 0xd3f   : > { %v11018_v59 = vpop.permute.xlu1 %5665  ;;  %5829 = vrot.lane.b32.xlu0 %v10904_v18, %s7206_s20 }
 0xd40   : > { %v11022_v30 = vpop.permute.xlu2 %5641 }
 0xd41   : > { %v11027_v58 = vpop.permute.xlu0 %5639 }
 0xd45   : > { %5863 = vrot.lane.b32.xlu1 %v5617_v4, %s7207_s21 }
 0xd46   : > { %5859 = vrot.lane.b32.xlu2 %v5569_v28, %s7207_s21 }
 0xd47   : > { %v5692_v53 = vpop.permute.xlu1 %5691  ;;  %5703 = vrot.lane.b32.xlu0 %v10976_v55, %s7202_s16 }
 0xd48   : > { %v5664_v27 = vpop.permute.xlu2 %5663  ;;  %v5891_v40 = vsel %vm2016_vm10, %v5883_v0, %v5692_v53 }
 0xd49   : > { %v5662_v3 = vpop.permute.xlu0 %5661  ;;  %v5885_v48 = vsel %vm484_vm0, %v5877_v15, %v5664_v27 }
 0xd4d   : > { %5737 = vrot.lane.b32.xlu1 %v5586_v22, %s7203_s17 }
 0xd4e   : > { %5765 = vrot.lane.b32.xlu2 %v5569_v28, %s7204_s18 }
 0xd4f   : > { %v5788_v8 = vpop.permute.xlu1 %5787  ;;  %5799 = vrot.lane.b32.xlu0 %v5601_v23, %s7205_s19 }
 0xd50   : > { %v11039_v33 = vpop.permute.xlu2 %5669 }
 0xd51   : > { %v11041_v24 = vpop.permute.xlu0 %5667 }
 0xd55   : > { %5833 = vrot.lane.b32.xlu1 %v5610_v42, %s7206_s20 }
 0xd56   : > { %5861 = vrot.lane.b32.xlu2 %v5593_v31, %s7207_s21 }
 0xd57   : > { %v5694_v49 = vpop.permute.xlu1 %5693  ;;  %5673 = vrot.lane.b32.xlu0 %v5593_v31, %s7201_s15 }
 0xd58   : > { %v5756_v26 = vpop.permute.xlu2 %5755 }
 0xd59   : > { %v5724_v25 = vpop.permute.xlu0 %5723 }
 0xd5a   : > { %v5899_v62 = vsel %vm2025_vm11, %v5891_v40, %v5724_v25 }
 0xd5b   : > { %v5907_v37 = vsel %vm2034_vm12, %v5899_v62, %v5756_v26  ;;  %v5887_v62 = vsel %vm484_vm0, %v5879_v9, %v11041_v24  ;;  %v5880_v24 = vsel %vm300_vm1, %v10948_v13, %v10981_v47 }
 0xd5c   : > { %v5915_v52 = vsel %vm2043_vm13, %v5907_v37, %v5788_v8 }
 0xd5e   : > { %5735 = vrot.lane.b32.xlu2 %v10904_v18, %s7203_s17  ;;  %v5876_v18 = vsel %vm300_vm1, %v10880_v46, %v10985_v54  ;;  %v5602_v54 = vld [vmem:[#allocation2 + $0x90] sm:$0xff] }
 0xd5f   : > { %v5790_v51 = vpop.permute.xlu1 %5789  ;;  %5769 = vrot.lane.b32.xlu0 %v5617_v4, %s7204_s18  ;;  %v5884_v35 = vsel %vm484_vm0, %v5876_v18, %v5662_v3 }
 0xd60   : > { %v5852_v43 = vpop.permute.xlu2 %5851  ;;  %v5892_v19 = vsel %vm2016_vm10, %v5884_v35, %v5694_v49 }
 0xd61   : > { %v5820_v50 = vpop.permute.xlu0 %5819 }
 0xd62   : > { %v5923_v16 = vsel %vm2052_vm14, %v5915_v52, %v5820_v50 }
 0xd63   : > { %v5931_v45 = vsel %vm2061_vm2, %v5923_v16, %v5852_v43 }
 0xd64   : > { %7086 = vmatmul.msk.f32.vlgmr.msrb.gmra.mxu0 %vm2079_vm15, %v5931_v45 }
 0xd66   : > { %5831 = vrot.lane.b32.xlu2 %v5586_v22, %s7206_s20 }
 0xd67   : > { %v5696_v21 = vpop.permute.xlu1 %5695  ;;  %5865 = vrot.lane.b32.xlu0 %v5618_v56, %s7207_s21 }
 0xd68   : > { %v5758_v38 = vpop.permute.xlu2 %5757  ;;  %v5893_v1 = vsel %vm2016_vm10, %v5885_v48, %v5696_v21 }
 0xd69   : > { %v5726_v39 = vpop.permute.xlu0 %5725 }
 0xd6a   : > { %v5900_v32 = vsel %vm2025_vm11, %v5892_v19, %v5726_v39 }
 0xd6b   : > { %v5908_v34 = vsel %vm2034_vm12, %v5900_v32, %v5758_v38  ;;  %v5888_v38 = vsel %vm484_vm0, %v5880_v24, %v11039_v33  ;;  %v5881_v33 = vsel %vm300_vm1, %v10961_v36, %v11027_v58  ;;  %v5882_v58 = vsel %vm300_vm1, %v10976_v55, %v11022_v30 }
 0xd6c   : > { %v5916_v7 = vsel %vm2043_vm13, %v5908_v34, %v5790_v51 }
 0xd6e   : > { %5705 = vrot.lane.b32.xlu2 %v5601_v23, %s7202_s16  ;;  %v5886_v23 = vsel %vm484_vm0, %v5878_v44, %v11018_v59 }
 0xd6f   : > { %v5792_v2 = vpop.permute.xlu1 %5791 }
 0xd70   : > { %v5854_v57 = vpop.permute.xlu2 %5853 }
 0xd71   : > { %v5822_v17 = vpop.permute.xlu0 %5821 }
 0xd72   : > { %v5924_v5 = vsel %vm2052_vm14, %v5916_v7, %v5822_v17 }
 0xd73   : > { %v5932_v46 = vsel %vm2061_vm2, %v5924_v5, %v5854_v57 }
 0xd74   : > { %7087 = vmatmul.msk.f32.gmra.mxu0 %vm2079_vm15, %v5932_v46 }
 0xd76   : > { %5801 = vrot.lane.b32.xlu2 %v5602_v54, %s7205_s19 }
 0xd77   : > { %v5698_v28 = vpop.permute.xlu1 %5697 }
 0xd78   : > { %v5760_v61 = vpop.permute.xlu2 %5759  ;;  %v5894_v42 = vsel %vm2016_vm10, %v5886_v23, %v5698_v28 }
 0xd79   : > { %v5728_v14 = vpop.permute.xlu0 %5727 }
 0xd7a   : > { %v5901_v31 = vsel %vm2025_vm11, %v5893_v1, %v5728_v14 }
 0xd7b   : > { %v5909_v6 = vsel %vm2034_vm12, %v5901_v31, %v5760_v61 }
 0xd7c   : > { %v5917_v4 = vsel %vm2043_vm13, %v5909_v6, %v5792_v2 }
 0xd7f   : > { %v5794_v10 = vpop.permute.xlu1 %5793 }
 0xd80   : > { %v5856_v29 = vpop.permute.xlu2 %5855 }
 0xd81   : > { %v5824_v53 = vpop.permute.xlu0 %5823 }
 0xd82   : > { %v5925_v3 = vsel %vm2052_vm14, %v5917_v4, %v5824_v53 }
 0xd83   : > { %v5933_v22 = vsel %vm2061_vm2, %v5925_v3, %v5856_v29 }
 0xd84   : > { %7088 = vmatmul.msk.f32.gmra.mxu0 %vm2079_vm15, %v5933_v22 }
 0xd87   : > { %v5700_v60 = vpop.permute.xlu1 %5699 }
 0xd88   : > { %v5762_v27 = vpop.permute.xlu2 %5761  ;;  %v5895_v51 = vsel %vm2016_vm10, %v5887_v62, %v5700_v60 }
 0xd89   : > { %v5730_v8 = vpop.permute.xlu0 %5729 }
 0xd8a   : > { %v5902_v41 = vsel %vm2025_vm11, %v5894_v42, %v5730_v8 }
 0xd8b   : > { %v5910_v49 = vsel %vm2034_vm12, %v5902_v41, %v5762_v27 }
 0xd8c   : > { %v5918_v0 = vsel %vm2043_vm13, %v5910_v49, %v5794_v10  ;;  %v6029_v49 = vld [vmem:[#allocation3 + $0x1] sm:$0xff] }
 0xd8d   : > { %6101 = vrot.lane.b32.xlu2 %v6029_v49, %s7200_s14 }
 0xd8f   : > { %v5796_v26 = vpop.permute.xlu1 %5795 }
 0xd90   : > { %v5858_v11 = vpop.permute.xlu2 %5857 }
 0xd91   : > { %v5826_v25 = vpop.permute.xlu0 %5825 }
 0xd92   : > { %v5926_v40 = vsel %vm2052_vm14, %v5918_v0, %v5826_v25 }
 0xd93   : > { %v5934_v12 = vsel %vm2061_vm2, %v5926_v40, %v5858_v11 }
 0xd94   : > { %7089 = vmatmul.msk.f32.gmra.mxu0 %vm2079_vm15, %v5934_v12 }
 0xd97   : > { %v5702_v43 = vpop.permute.xlu1 %5701 }
 0xd98   : > { %v5764_v59 = vpop.permute.xlu2 %5763  ;;  %v5896_v39 = vsel %vm2016_vm10, %v5888_v38, %v5702_v43 }
 0xd99   : > { %v5732_v37 = vpop.permute.xlu0 %5731 }
 0xd9a   : > { %v5903_v52 = vsel %vm2025_vm11, %v5895_v51, %v5732_v37  ;;  %v6037_v51 = vld [vmem:[#allocation3 + $0x2] sm:$0xff] }
 0xd9b   : > { %v5911_v50 = vsel %vm2034_vm12, %v5903_v52, %v5764_v59 }
 0xd9c   : > { %v5919_v45 = vsel %vm2043_vm13, %v5911_v50, %v5796_v26 }
 0xd9f   : > { %v5798_v20 = vpop.permute.xlu1 %5797 }
 0xda0   : > { %v5860_v16 = vpop.permute.xlu2 %5859 }
 0xda1   : > { %v5828_v56 = vpop.permute.xlu0 %5827 }
 0xda2   : > { %v5927_v21 = vsel %vm2052_vm14, %v5919_v45, %v5828_v56 }
 0xda3   : > { %v5935_v63 = vsel %vm2061_vm2, %v5927_v21, %v5860_v16 }
 0xda4   : > { %7090 = vmatmul.msk.f32.gmra.mxu0 %vm2079_vm15, %v5935_v63 }
 0xda7   : > { %v5672_v34 = vpop.permute.xlu1 %5671 }
 0xda8   : > { %v5766_v18 = vpop.permute.xlu2 %5765  ;;  %v5889_v54 = vsel %vm484_vm0, %v5881_v33, %v5672_v34 }
 0xda9   : > { %v5734_v35 = vpop.permute.xlu0 %5733 }
 0xdaa   : > { %v5904_v19 = vsel %vm2025_vm11, %v5896_v39, %v5734_v35 }
 0xdab   : > { %v5912_v32 = vsel %vm2034_vm12, %v5904_v19, %v5766_v18 }
 0xdac   : > { %v5920_v57 = vsel %vm2043_vm13, %v5912_v32, %v5798_v20 }
 0xdaf   : > { %v5768_v5 = vpop.permute.xlu1 %5767 }
 0xdb0   : > { %v5862_v2 = vpop.permute.xlu2 %5861 }
 0xdb1   : > { %v5830_v7 = vpop.permute.xlu0 %5829 }
 0xdb2   : > { %v5928_v17 = vsel %vm2052_vm14, %v5920_v57, %v5830_v7 }
 0xdb3   : > { %v5936_v13 = vsel %vm2061_vm2, %v5928_v17, %v5862_v2 }
 0xdb4   : > { %7091 = vmatmul.msk.f32.gmra.mxu0 %vm2079_vm15, %v5936_v13 }
 0xdb7   : > { %v5864_v31 = vpop.permute.xlu1 %5863 }
 0xdb8   : > { %v5736_v47 = vpop.permute.xlu2 %5735 }
 0xdb9   : > { %v5704_v46 = vpop.permute.xlu0 %5703 }
 0xdba   : > { %v5897_v28 = vsel %vm2016_vm10, %v5889_v54, %v5704_v46 }
 0xdbb   : > { %v5905_v15 = vsel %vm2025_vm11, %v5897_v28, %v5736_v47 }
 0xdbc   : > { %v5913_v48 = vsel %vm2034_vm12, %v5905_v15, %v5768_v5 }
 0xdbf   : > { %v5738_v53 = vpop.permute.xlu1 %5737 }
 0xdc0   : > { %v5832_v61 = vpop.permute.xlu2 %5831 }
 0xdc1   : > { %v5800_v14 = vpop.permute.xlu0 %5799 }
 0xdc2   : > { %v5921_v1 = vsel %vm2043_vm13, %v5913_v48, %v5800_v14  ;;  %v6421_v48 = vld [vmem:[%s11721_s6 + $0x40] sm:$0xff]  ;;  %v6420_v14 = vld [vmem:[%s11721_s6 + $0x38] sm:$0xff] }
 0xdc3   : > { %v5929_v6 = vsel %vm2052_vm14, %v5921_v1, %v5832_v61  ;;  %6453 = vmatpush.msrb.mxu1 %v6421_v48  ;;  %v6419_v1 = vld [vmem:[%s11721_s6 + $0x30] sm:$0xff] }
 0xdc4   : > { %v5937_v10 = vsel %vm2061_vm2, %v5929_v6, %v5864_v31 }
 0xdc5   : > { %7092 = vmatmul.msk.f32.gmra.mxu0 %vm2079_vm15, %v5937_v10  ;;  %6454 = vmatpush.msrb.mxu1 %v6420_v14  ;;  %v6418_v10 = vld [vmem:[%s11721_s6 + $0x28] sm:$0xff] }
 0xdc7   : > { %v5834_v8 = vpop.permute.xlu1 %5833  ;;  %6455 = vmatpush.msrb.mxu1 %v6419_v1 }
 0xdc8   : > { %v5706_v29 = vpop.permute.xlu2 %5705 }
 0xdc9   : > { %v5674_v36 = vpop.permute.xlu0 %5673  ;;  %6456 = vmatpush.msrb.mxu1 %v6418_v10 }
 0xdca   : > { %v5890_v4 = vsel %vm484_vm0, %v5882_v58, %v5674_v36  ;;  %v6417_v36 = vld [vmem:[%s11721_s6 + $0x20] sm:$0xff]  ;;  %v6416_v58 = vld [vmem:[%s11721_s6 + $0x18] sm:$0xff] }
 0xdcb   : > { %v5898_v3 = vsel %vm2016_vm10, %v5890_v4, %v5706_v29  ;;  %6457 = vmatpush.msrb.mxu1 %v6417_v36  ;;  %v6415_v4 = vld [vmem:[%s11721_s6 + $0x10] sm:$0xff] }
 0xdcc   : > { %v5906_v60 = vsel %vm2025_vm11, %v5898_v3, %v5738_v53 }
 0xdcd   : > { %6458 = vmatpush.msrb.mxu1 %v6416_v58 }
 0xdcf   : > { %6459 = vmatpush.msrb.mxu1 %v6415_v4 }
 0xdd0   : > { %v5802_v27 = vpop.permute.xlu2 %5801 }
 0xdd1   : > { %v5770_v22 = vpop.permute.xlu0 %5769 }
 0xdd2   : > { %v5914_v44 = vsel %vm2034_vm12, %v5906_v60, %v5770_v22  ;;  %v6414_v22 = vld [vmem:[%s11721_s6 + $0x8] sm:$0xff]  ;;  %v6413_v60 = vld [vmem:[%s11721_s6] sm:$0xff] }
 0xdd3   : > { %v5922_v23 = vsel %vm2043_vm13, %v5914_v44, %v5802_v27  ;;  %6460 = vmatpush.msrb.mxu1 %v6414_v22 }
 0xdd4   : > { %v5930_v42 = vsel %vm2052_vm14, %v5922_v23, %v5834_v8 }
 0xdd5   : > { %6461 = vmatpush.msrb.mxu1 %v6413_v60 }
 0xdd9   : > { %v5866_v41 = vpop.permute.xlu0 %5865 }
 0xdda   : > { %v5938_v55 = vsel %vm2061_vm2, %v5930_v42, %v5866_v41 }
 0xddb   : > { %7093 = vmatmul.msk.f32.gmra.mxu0 %vm2079_vm15, %v5938_v55 }
 0xde1   : > { %v5989_v30 = vpop.f32.mrf.mxu0 }
 0xde2   : > { %6013 = vst.msk [vmem:[#allocation3 + $0x11] sm:$0xff] %vm300_vm1, %v5989_v30 }
 0xde7   : > { %v11179_v24 = vpop.permute.xlu2 %6101 }
 0xde9   : > { %v6030_v11 = vld [vmem:[#allocation3 + $0x11] sm:$0xff] }
 0xdea   : > { %6103 = vrot.lane.b32.xlu1 %v6030_v11, %s7200_s14  ;;  %v6061_v16 = vld [vmem:[#allocation3 + $0x12] sm:$0xff] }
 0xdeb   : > { %v11164_v56 = vld [vmem:[#allocation3 + $0x10] sm:$0xff] }
 0xdf1   : > { %v5992_v26 = vpop.f32.mrf.mxu0 }
 0xdf2   : > { %6014 = vst.msk [vmem:[#allocation3 + $0x21] sm:$0xff] %vm300_vm1, %v5992_v26  ;;  %v6021_v26 = vld [vmem:[#allocation3] sm:$0xff] }
 0xdf9   : > { %v6031_v0 = vld [vmem:[#allocation3 + $0x21] sm:$0xff] }
 0xdfa   : > { %6105 = vrot.lane.b32.xlu0 %v6031_v0, %s7200_s14  ;;  %v6039_v62 = vld [vmem:[#allocation3 + $0x22] sm:$0xff] }
 0xdfb   : > { %v6069_v63 = vld [vmem:[#allocation3 + $0x20] sm:$0xff] }
 0xe01   : > { %v5995_v25 = vpop.f32.mrf.mxu0 }
 0xe02   : > { %6015 = vst.msk [vmem:[#allocation3 + $0x31] sm:$0xff] %vm300_vm1, %v5995_v25  ;;  %v6349_v25 = vsel %vm300_vm1, %v6021_v26, %v11179_v24 }
 0xe09   : > { %v6032_v40 = vld [vmem:[#allocation3 + $0x31] sm:$0xff] }
 0xe0a   : > { %6107 = vrot.lane.b32.xlu2 %v6032_v40, %s7200_s14  ;;  %v6040_v52 = vld [vmem:[#allocation3 + $0x32] sm:$0xff] }
 0xe0b   : > { %v6070_v18 = vld [vmem:[#allocation3 + $0x30] sm:$0xff] }
 0xe11   : > { %v5998_v12 = vpop.f32.mrf.mxu0 }
 0xe12   : > { %6016 = vst.msk [vmem:[#allocation3 + $0x41] sm:$0xff] %vm300_vm1, %v5998_v12 }
 0xe19   : > { %v6033_v9 = vld [vmem:[#allocation3 + $0x41] sm:$0xff] }
 0xe1a   : > { %6109 = vrot.lane.b32.xlu1 %v6033_v9, %s7200_s14  ;;  %v6087_v39 = vld [vmem:[#allocation3 + $0x42] sm:$0xff] }
 0xe1b   : > { %v6071_v34 = vld [vmem:[#allocation3 + $0x40] sm:$0xff] }
 0xe21   : > { %v6001_v59 = vpop.f32.mrf.mxu0 }
 0xe22   : > { %6017 = vst.msk [vmem:[#allocation3 + $0x51] sm:$0xff] %vm300_vm1, %v6001_v59  ;;  %6137 = vrot.lane.b32.xlu1 %v6039_v62, %s7201_s15 }
 0xe29   : > { %v6034_v37 = vld [vmem:[#allocation3 + $0x51] sm:$0xff] }
 0xe2a   : > { %6111 = vrot.lane.b32.xlu0 %v6034_v37, %s7200_s14  ;;  %v6088_v2 = vld [vmem:[#allocation3 + $0x52] sm:$0xff] }
 0xe2b   : > { %v6072_v57 = vld [vmem:[#allocation3 + $0x50] sm:$0xff] }
 0xe31   : > { %v6004_v43 = vpop.f32.mrf.mxu0 }
 0xe32   : > { %6018 = vst.msk [vmem:[#allocation3 + $0x61] sm:$0xff] %vm300_vm1, %v6004_v43  ;;  %6133 = vrot.lane.b32.xlu0 %v6037_v51, %s7201_s15 }
 0xe39   : > { %v11156_v50 = vld [vmem:[#allocation3 + $0x61] sm:$0xff] }
 0xe3a   : > { %6139 = vrot.lane.b32.xlu0 %v6040_v52, %s7201_s15  ;;  %6113 = vrot.lane.b32.xlu2 %v11156_v50, %s7200_s14  ;;  %v6050_v47 = vld [vmem:[#allocation3 + $0x60] sm:$0xff] }
 0xe3b   : > { %v6089_v46 = vld [vmem:[#allocation3 + $0x62] sm:$0xff] }
 0xe42   : > { %6229 = vrot.lane.b32.xlu0 %v6061_v16, %s7204_s18  ;;  %6135 = vrot.lane.b32.xlu2 %v6061_v16, %s7201_s15  ;;  %v6007_v45 = vpop.f32.mrf.mxu0 }
 0xe43   : > { %6019 = vst.msk [vmem:[#allocation3 + $0x71] sm:$0xff] %vm300_vm1, %v6007_v45 }
 0xe4a   : > { %6325 = vrot.lane.b32.xlu0 %v6039_v62, %s7207_s21  ;;  %6165 = vrot.lane.b32.xlu2 %v11164_v56, %s7202_s16  ;;  %v11169_v21 = vld [vmem:[#allocation3 + $0x71] sm:$0xff] }
 0xe4b   : > { %6115 = vrot.lane.b32.xlu1 %v11169_v21, %s7200_s14  ;;  %v6074_v54 = vld [vmem:[#allocation3 + $0x70] sm:$0xff] }
 0xe4c   : > { %v6067_v29 = vld [vmem:[#allocation3 + $0x72] sm:$0xff] }
 0xe52   : > { %6231 = vrot.lane.b32.xlu0 %v6039_v62, %s7204_s18  ;;  %6261 = vrot.lane.b32.xlu2 %v6069_v63, %s7205_s19 }
 0xe53   : > { %6197 = vrot.lane.b32.xlu1 %v6030_v11, %s7203_s17 }
 0xe58   : > { %v6010_v20 = vpop.f32.mrf.mxu0 }
 0xe59   : > { %6020 = vst.msk [vmem:[#allocation3 + $0x81] sm:$0xff] %vm300_vm1, %v6010_v20  ;;  %v6076_v20 = vld [vmem:[#allocation3 + $0x90] sm:$0xff] }
 0xe5a   : > { %6327 = vrot.lane.b32.xlu0 %v6040_v52, %s7207_s21  ;;  %6167 = vrot.lane.b32.xlu2 %v6069_v63, %s7202_s16 }
 0xe5b   : > { %6293 = vrot.lane.b32.xlu1 %v6031_v0, %s7206_s20 }
 0xe5c   : > { %v11203_v7 = vpop.permute.xlu1 %6103 }
 0xe5d   : > { %v6350_v24 = vsel %vm300_vm1, %v11164_v56, %v11203_v7 }
 0xe60   : > { %v6091_v44 = vld [vmem:[#allocation3 + $0x82] sm:$0xff] }
 0xe61   : > { %v6075_v42 = vld [vmem:[#allocation3 + $0x80] sm:$0xff] }
 0xe62   : > { %6233 = vrot.lane.b32.xlu0 %v6040_v52, %s7204_s18  ;;  %6263 = vrot.lane.b32.xlu2 %v6070_v18, %s7205_s19  ;;  %v6060_v41 = vld [vmem:[#allocation3 + $0x81] sm:$0xff] }
 0xe63   : > { %6199 = vrot.lane.b32.xlu1 %v6031_v0, %s7203_s17  ;;  %v6084_v0 = vld [vmem:[#allocation3 + $0x91] sm:$0xff] }
 0xe64   : > { %v6108_v38 = vpop.permute.xlu2 %6107 }
 0xe65   : > { %v11186_v35 = vsel %vm300_vm1, %v6070_v18, %v6108_v38 }
 0xe6a   : > { %6329 = vrot.lane.b32.xlu0 %v6087_v39, %s7207_s21  ;;  %6169 = vrot.lane.b32.xlu2 %v6070_v18, %s7202_s16 }
 0xe6b   : > { %6295 = vrot.lane.b32.xlu1 %v6032_v40, %s7206_s20 }
 0xe6c   : > { %v6106_v19 = vpop.permute.xlu0 %6105 }
 0xe6d   : > { %v11192_v32 = vsel %vm300_vm1, %v6069_v63, %v6106_v19  ;;  %v6092_v63 = vld [vmem:[#allocation3 + $0x92] sm:$0xff] }
 0xe72   : > { %6235 = vrot.lane.b32.xlu0 %v6087_v39, %s7204_s18  ;;  %6265 = vrot.lane.b32.xlu2 %v6071_v34, %s7205_s19 }
 0xe73   : > { %6201 = vrot.lane.b32.xlu1 %v6032_v40, %s7203_s17 }
 0xe7a   : > { %6331 = vrot.lane.b32.xlu0 %v6088_v2, %s7207_s21  ;;  %6171 = vrot.lane.b32.xlu2 %v6071_v34, %s7202_s16 }
 0xe7b   : > { %6297 = vrot.lane.b32.xlu1 %v6033_v9, %s7206_s20 }
 0xe82   : > { %6205 = vrot.lane.b32.xlu0 %v6034_v37, %s7203_s17  ;;  %6267 = vrot.lane.b32.xlu2 %v6072_v57, %s7205_s19 }
 0xe83   : > { %6203 = vrot.lane.b32.xlu1 %v6033_v9, %s7203_s17 }
 0xe8a   : > { %6301 = vrot.lane.b32.xlu0 %v11156_v50, %s7206_s20  ;;  %6141 = vrot.lane.b32.xlu2 %v6087_v39, %s7201_s15 }
 0xe8b   : > { %6299 = vrot.lane.b32.xlu1 %v6034_v37, %s7206_s20 }
 0xe8c   : > { %v6110_v17 = vpop.permute.xlu1 %6109 }
 0xe8d   : > { %v11210_v13 = vsel %vm300_vm1, %v6071_v34, %v6110_v17 }
 0xe92   : > { %6175 = vrot.lane.b32.xlu0 %v6050_v47, %s7202_s16  ;;  %6237 = vrot.lane.b32.xlu2 %v6088_v2, %s7204_s18 }
 0xe93   : > { %6173 = vrot.lane.b32.xlu1 %v6072_v57, %s7202_s16 }
 0xe94   : > { %v6114_v33 = vpop.permute.xlu2 %6113  ;;  %v6138_v8 = vpop.permute.xlu1 %6137 }
 0xe95   : > { %v11216_v5 = vsel %vm300_vm1, %v6050_v47, %v6114_v33 }
 0xe9a   : > { %6333 = vrot.lane.b32.xlu2 %v6089_v46, %s7207_s21  ;;  %6271 = vrot.lane.b32.xlu0 %v6074_v54, %s7205_s19 }
 0xe9b   : > { %6269 = vrot.lane.b32.xlu1 %v6050_v47, %s7205_s19 }
 0xe9c   : > { %v11221_v28 = vpop.permute.xlu2 %6135  ;;  %v6112_v15 = vpop.permute.xlu0 %6111 }
 0xe9d   : > { %v11224_v61 = vsel %vm300_vm1, %v6072_v57, %v6112_v15  ;;  %v6358_v38 = vsel %vm484_vm0, %v6350_v24, %v11221_v28  ;;  %v6359_v28 = vsel %vm484_vm0, %v11192_v32, %v6138_v8 }
 0xea2   : > { %6207 = vrot.lane.b32.xlu2 %v11156_v50, %s7203_s17  ;;  %6145 = vrot.lane.b32.xlu0 %v6089_v46, %s7201_s15 }
 0xea3   : > { %6143 = vrot.lane.b32.xlu1 %v6088_v2, %s7201_s15 }
 0xea4   : > { %v6166_v31 = vpop.permute.xlu2 %6165  ;;  %v6134_v6 = vpop.permute.xlu0 %6133 }
 0xea5   : > { %v6357_v40 = vsel %vm484_vm0, %v6349_v25, %v6134_v6 }
 0xea6   : > { %v6365_v62 = vsel %vm2016_vm10, %v6357_v40, %v6166_v31 }
 0xeaa   : > { %6303 = vrot.lane.b32.xlu2 %v11169_v21, %s7206_s20  ;;  %6241 = vrot.lane.b32.xlu0 %v6067_v29, %s7204_s18 }
 0xeab   : > { %6239 = vrot.lane.b32.xlu1 %v6089_v46, %s7204_s18 }
 0xeac   : > { %v6262_v53 = vpop.permute.xlu2 %6261  ;;  %v11255_v3 = vpop.permute.xlu0 %6139 }
 0xead   : > { %v6360_v32 = vsel %vm484_vm0, %v11186_v35, %v11255_v3 }
 0xeb2   : > { %6177 = vrot.lane.b32.xlu2 %v6074_v54, %s7202_s16  ;;  %6337 = vrot.lane.b32.xlu0 %v6091_v44, %s7207_s21 }
 0xeb3   : > { %6335 = vrot.lane.b32.xlu1 %v6067_v29, %s7207_s21 }
 0xeb4   : > { %v6168_v27 = vpop.permute.xlu2 %6167  ;;  %v6230_v23 = vpop.permute.xlu0 %6229 }
 0xeb5   : > { %v6366_v19 = vsel %vm2016_vm10, %v6358_v38, %v6168_v27 }
 0xeba   : > { %6273 = vrot.lane.b32.xlu2 %v6075_v42, %s7205_s19  ;;  %6211 = vrot.lane.b32.xlu0 %v6060_v41, %s7203_s17 }
 0xebb   : > { %6209 = vrot.lane.b32.xlu1 %v11169_v21, %s7203_s17  ;;  %s7208_s17 = smov 20  }
 0xebc   : > { %v6264_v55 = vpop.permute.xlu2 %6263  ;;  %v6326_v30 = vpop.permute.xlu0 %6325 }
 0xebd   : > { %v6116_v49 = vpop.permute.xlu1 %6115 }
 0xebe   : > { %v11271_v11 = vsel %vm300_vm1, %v6074_v54, %v6116_v49 }
 0xec2   : > { %6147 = vrot.lane.b32.xlu2 %v6067_v29, %s7201_s15  ;;  %6307 = vrot.lane.b32.xlu0 %v6084_v0, %s7206_s20 }
 0xec3   : > { %6305 = vrot.lane.b32.xlu1 %v6060_v41, %s7206_s20  ;;  %s7211_s20 = smov 4  }
 0xec4   : > { %v6232_v12 = vpop.permute.xlu0 %6231  ;;  %v6170_v9 = vpop.permute.xlu2 %6169 }
 0xec5   : > { %v6198_v59 = vpop.permute.xlu1 %6197  ;;  %v6367_v48 = vsel %vm2016_vm10, %v6359_v28, %v6170_v9 }
 0xec6   : > { %v6373_v37 = vsel %vm2025_vm11, %v6365_v62, %v6198_v59 }
 0xec7   : > { %v6381_v51 = vsel %vm2034_vm12, %v6373_v37, %v6230_v23 }
 0xec8   : > { %v6389_v50 = vsel %vm2043_vm13, %v6381_v51, %v6262_v53 }
 0xeca   : > { %6243 = vrot.lane.b32.xlu2 %v6091_v44, %s7204_s18  ;;  %s7209_s18 = smov 28  }
 0xecb   : > { %6179 = vrot.lane.b32.xlu1 %v6075_v42, %s7202_s16 }
 0xecc   : > { %v6328_v43 = vpop.permute.xlu0 %6327  ;;  %v6266_v45 = vpop.permute.xlu2 %6265 }
 0xecd   : > { %v6294_v52 = vpop.permute.xlu1 %6293 }
 0xece   : > { %v6397_v16 = vsel %vm2052_vm14, %v6389_v50, %v6294_v52 }
 0xecf   : > { %v6405_v21 = vsel %vm2061_vm2, %v6397_v16, %v6326_v30 }
 0xed0   : > { %7094 = vmatmul.msk.f32.vlgmr.msrb.gmra.mxu1 %vm2079_vm15, %v6405_v21 }
 0xed2   : > { %6339 = vrot.lane.b32.xlu2 %v6092_v63, %s7207_s21  ;;  %s7213_s21 = smov 120  }
 0xed3   : > { %6275 = vrot.lane.b32.xlu1 %v6076_v20, %s7205_s19  ;;  %s7210_s19 = smov 12  }
 0xed4   : > { %v6234_v18 = vpop.permute.xlu0 %6233  ;;  %v6172_v2 = vpop.permute.xlu2 %6171 }
 0xed5   : > { %v6200_v39 = vpop.permute.xlu1 %6199  ;;  %v6368_v53 = vsel %vm2016_vm10, %v6360_v32, %v6172_v2 }
 0xed6   : > { %v6374_v34 = vsel %vm2025_vm11, %v6366_v19, %v6200_v39 }
 0xed7   : > { %v6382_v57 = vsel %vm2034_vm12, %v6374_v34, %v6232_v12 }
 0xed8   : > { %v6390_v33 = vsel %vm2043_vm13, %v6382_v57, %v6264_v55 }
 0xedc   : > { %v6330_v17 = vpop.permute.xlu0 %6329  ;;  %v6268_v7 = vpop.permute.xlu2 %6267 }
 0xedd   : > { %v6296_v47 = vpop.permute.xlu1 %6295 }
 0xede   : > { %v6398_v46 = vsel %vm2052_vm14, %v6390_v33, %v6296_v47 }
 0xedf   : > { %v6406_v56 = vsel %vm2061_vm2, %v6398_v46, %v6328_v43 }
 0xee0   : > { %7095 = vmatmul.msk.f32.gmra.mxu1 %vm2079_vm15, %v6406_v56 }
 0xee4   : > { %v6236_v54 = vpop.permute.xlu0 %6235  ;;  %v6142_v6 = vpop.permute.xlu2 %6141 }
 0xee5   : > { %v6202_v15 = vpop.permute.xlu1 %6201  ;;  %v6361_v30 = vsel %vm484_vm0, %v11210_v13, %v6142_v6 }
 0xee6   : > { %v6375_v14 = vsel %vm2025_vm11, %v6367_v48, %v6202_v15 }
 0xee7   : > { %v6383_v1 = vsel %vm2034_vm12, %v6375_v14, %v6234_v18 }
 0xee8   : > { %v6391_v36 = vsel %vm2043_vm13, %v6383_v1, %v6266_v45 }
 0xeec   : > { %v6332_v31 = vpop.permute.xlu0 %6331  ;;  %v6238_v60 = vpop.permute.xlu2 %6237 }
 0xeed   : > { %v6298_v10 = vpop.permute.xlu1 %6297 }
 0xeee   : > { %v6399_v58 = vsel %vm2052_vm14, %v6391_v36, %v6298_v10 }
 0xeef   : > { %v6407_v29 = vsel %vm2061_vm2, %v6399_v58, %v6330_v17 }
 0xef0   : > { %7096 = vmatmul.msk.f32.gmra.mxu1 %vm2079_vm15, %v6407_v29 }
 0xef4   : > { %v6206_v22 = vpop.permute.xlu0 %6205  ;;  %v6334_v35 = vpop.permute.xlu2 %6333 }
 0xef5   : > { %v6204_v4 = vpop.permute.xlu1 %6203 }
 0xef6   : > { %v6376_v44 = vsel %vm2025_vm11, %v6368_v53, %v6204_v4 }
 0xef7   : > { %v6384_v27 = vsel %vm2034_vm12, %v6376_v44, %v6236_v54 }
 0xef8   : > { %v6392_v8 = vsel %vm2043_vm13, %v6384_v27, %v6268_v7 }
 0xefc   : > { %v6302_v55 = vpop.permute.xlu0 %6301  ;;  %v6208_v25 = vpop.permute.xlu2 %6207 }
 0xefd   : > { %v6300_v23 = vpop.permute.xlu1 %6299 }
 0xefe   : > { %v6400_v42 = vsel %vm2052_vm14, %v6392_v8, %v6300_v23 }
 0xeff   : > { %v6408_v41 = vsel %vm2061_vm2, %v6400_v42, %v6332_v31 }
 0xf00   : > { %7097 = vmatmul.msk.f32.gmra.mxu1 %vm2079_vm15, %v6408_v41 }
 0xf04   : > { %v6176_v26 = vpop.permute.xlu0 %6175  ;;  %v6304_v51 = vpop.permute.xlu2 %6303 }
 0xf05   : > { %v6174_v3 = vpop.permute.xlu1 %6173 }
 0xf06   : > { %v6369_v49 = vsel %vm2016_vm10, %v6361_v30, %v6174_v3 }
 0xf07   : > { %v6377_v0 = vsel %vm2025_vm11, %v6369_v49, %v6206_v22 }
 0xf08   : > { %v6385_v12 = vsel %vm2034_vm12, %v6377_v0, %v6238_v60 }
 0xf0c   : > { %v6272_v37 = vpop.permute.xlu0 %6271  ;;  %v6178_v21 = vpop.permute.xlu2 %6177 }
 0xf0d   : > { %v6270_v40 = vpop.permute.xlu1 %6269 }
 0xf0e   : > { %v6393_v9 = vsel %vm2043_vm13, %v6385_v12, %v6270_v40 }
 0xf0f   : > { %v6401_v59 = vsel %vm2052_vm14, %v6393_v9, %v6302_v55 }
 0xf10   : > { %v6409_v62 = vsel %vm2061_vm2, %v6401_v59, %v6334_v35 }
 0xf11   : > { %7098 = vmatmul.msk.f32.gmra.mxu1 %vm2079_vm15, %v6409_v62 }
 0xf14   : > { %v6146_v16 = vpop.permute.xlu0 %6145 }
 0xf15   : > { %v6144_v13 = vpop.permute.xlu1 %6143  ;;  %v6363_v19 = vsel %vm484_vm0, %v11216_v5, %v6146_v16 }
 0xf16   : > { %v6362_v43 = vsel %vm484_vm0, %v11224_v61, %v6144_v13  ;;  %v6274_v61 = vpop.permute.xlu2 %6273  ;;  %v6371_v2 = vsel %vm2016_vm10, %v6363_v19, %v6178_v21 }
 0xf17   : > { %v6370_v52 = vsel %vm2016_vm10, %v6362_v43, %v6176_v26 }
 0xf18   : > { %v6378_v45 = vsel %vm2025_vm11, %v6370_v52, %v6208_v25 }
 0xf1c   : > { %v6242_v39 = vpop.permute.xlu0 %6241 }
 0xf1d   : > { %v6240_v50 = vpop.permute.xlu1 %6239 }
 0xf1e   : > { %v6386_v63 = vsel %vm2034_vm12, %v6378_v45, %v6240_v50  ;;  %v6148_v33 = vpop.permute.xlu2 %6147 }
 0xf1f   : > { %v6394_v20 = vsel %vm2043_vm13, %v6386_v63, %v6272_v37  ;;  %v6364_v48 = vsel %vm484_vm0, %v11271_v11, %v6148_v33 }
 0xf20   : > { %v6402_v18 = vsel %vm2052_vm14, %v6394_v20, %v6304_v51 }
 0xf24   : > { %v6338_v17 = vpop.permute.xlu0 %6337 }
 0xf25   : > { %v6336_v24 = vpop.permute.xlu1 %6335 }
 0xf26   : > { %v6410_v38 = vsel %vm2061_vm2, %v6402_v18, %v6336_v24  ;;  %v6244_v5 = vpop.permute.xlu2 %6243 }
 0xf27   : > { %7099 = vmatmul.msk.f32.gmra.mxu1 %vm2079_vm15, %v6410_v38 }
 0xf2c   : > { %v6212_v28 = vpop.permute.xlu0 %6211 }
 0xf2d   : > { %v6210_v34 = vpop.permute.xlu1 %6209 }
 0xf2e   : > { %v6379_v57 = vsel %vm2025_vm11, %v6371_v2, %v6210_v34  ;;  %v6340_v36 = vpop.permute.xlu2 %6339 }
 0xf2f   : > { %v6387_v47 = vsel %vm2034_vm12, %v6379_v57, %v6242_v39 }
 0xf30   : > { %v6395_v56 = vsel %vm2043_vm13, %v6387_v47, %v6274_v61 }
 0xf34   : > { %v6308_v31 = vpop.permute.xlu0 %6307 }
 0xf35   : > { %v6306_v46 = vpop.permute.xlu1 %6305 }
 0xf36   : > { %v6403_v7 = vsel %vm2052_vm14, %v6395_v56, %v6306_v46 }
 0xf37   : > { %v6411_v54 = vsel %vm2061_vm2, %v6403_v7, %v6338_v17 }
 0xf38   : > { %7100 = vmatmul.msk.f32.gmra.mxu1 %vm2079_vm15, %v6411_v54 }
 0xf3d   : > { %v6180_v15 = vpop.permute.xlu1 %6179 }
 0xf3e   : > { %v6372_v14 = vsel %vm2016_vm10, %v6364_v48, %v6180_v15 }
 0xf3f   : > { %v6380_v1 = vsel %vm2025_vm11, %v6372_v14, %v6212_v28 }
 0xf40   : > { %v6388_v10 = vsel %vm2034_vm12, %v6380_v1, %v6244_v5 }
 0xf45   : > { %v6276_v6 = vpop.permute.xlu1 %6275 }
 0xf46   : > { %v6396_v58 = vsel %vm2043_vm13, %v6388_v10, %v6276_v6 }
 0xf47   : > { %v6404_v29 = vsel %vm2052_vm14, %v6396_v58, %v6308_v31 }
 0xf48   : > { %v6412_v32 = vsel %vm2061_vm2, %v6404_v29, %v6340_v36 }
 0xf49   : > { %7101 = vmatmul.msk.f32.gmra.mxu1 %vm2079_vm15, %v6412_v32 }
 0xf4d   : > { %v11357_v4 = vpop.f32.mrf.mxu1 }
 0xf4e   : > { %v6612_v55 = vrot.slane %v11357_v4, 7  ;;  %v6510_v3 = vrot.slane %v11357_v4, 1  ;;  %v6527_v30 = vrot.slane %v11357_v4, 2  ;;  %v6544_v49 = vrot.slane %v11357_v4, 3 }
 0xf4f   : > { %v6561_v51 = vrot.slane %v11357_v4, 4  ;;  %v6578_v13 = vrot.slane %v11357_v4, 5  ;;  %v6595_v43 = vrot.slane %v11357_v4, 6 }
 0xf5d   : > { %v11359_v11 = vpop.f32.mrf.mxu1 }
 0xf5e   : > { %v6495_v53 = vrot.slane %v11359_v11, 7  ;;  %v6613_v8 = vrot.slane %v11359_v11, 6  ;;  %v6528_v0 = vrot.slane %v11359_v11, 1  ;;  %v6545_v25 = vrot.slane %v11359_v11, 2 }
 0xf5f   : > { %v6579_v9 = vrot.slane %v11359_v11, 4  ;;  %v6596_v59 = vrot.slane %v11359_v11, 5  ;;  %v6562_v50 = vrot.slane %v11359_v11, 3  ;;  %v6511_v21 = vsel %vm1591_vm3, %v11359_v11, %v6510_v3 }
 0xf60   : > { %v11364_v22 = vsel %vm1591_vm3, %v6495_v53, %v11357_v4  ;;  %v6614_v40 = vsel %vm1591_vm3, %v6613_v8, %v6612_v55  ;;  %v6546_v20 = vsel %vm1591_vm3, %v6545_v25, %v6544_v49  ;;  %v6529_v24 = vsel %vm1591_vm3, %v6528_v0, %v6527_v30 }
 0xf61   : > { %v6597_v19 = vsel %vm1591_vm3, %v6596_v59, %v6595_v43  ;;  %v6580_v34 = vsel %vm1591_vm3, %v6579_v9, %v6578_v13 }
 0xf6d   : > { %v11366_v60 = vpop.f32.mrf.mxu1 }
 0xf6e   : > { %v6615_v41 = vrot.slane %v11366_v60, 5  ;;  %v6547_v45 = vrot.slane %v11366_v60, 1  ;;  %v6512_v18 = vrot.slane %v11366_v60, 7  ;;  %v6530_v61 = vsel %vm1593_vm4, %v11366_v60, %v6529_v24 }
 0xf6f   : > { %v6598_v17 = vrot.slane %v11366_v60, 4  ;;  %v6581_v47 = vrot.slane %v11366_v60, 3  ;;  %v6564_v3 = vrot.slane %v11366_v60, 2 }
 0xf70   : > { %v6616_v62 = vsel %vm1593_vm4, %v6615_v41, %v6614_v40  ;;  %v6548_v33 = vsel %vm1593_vm4, %v6547_v45, %v6546_v20  ;;  %v6513_v5 = vsel %vm1593_vm4, %v6512_v18, %v6511_v21  ;;  %v6563_v45 = vsel %vm1591_vm3, %v6562_v50, %v6561_v51 }
 0xf71   : > { %v6599_v43 = vsel %vm1593_vm4, %v6598_v17, %v6597_v19  ;;  %v6565_v20 = vsel %vm1593_vm4, %v6564_v3, %v6563_v45  ;;  %vm6629_vm3 = vcmask 31744  }
 0xf7d   : > { %v11368_v44 = vpop.f32.mrf.mxu1 }
 0xf7e   : > { %v6617_v35 = vrot.slane %v11368_v44, 4  ;;  %v6531_v57 = vrot.slane %v11368_v44, 7  ;;  %v6514_v7 = vrot.slane %v11368_v44, 6  ;;  %v6549_v48 = vsel %vm1595_vm5, %v11368_v44, %v6548_v33 }
 0xf7f   : > { %v6600_v0 = vrot.slane %v11368_v44, 3  ;;  %v6583_v9 = vrot.slane %v11368_v44, 2  ;;  %v6566_v13 = vrot.slane %v11368_v44, 1 }
 0xf80   : > { %v6618_v52 = vsel %vm1595_vm5, %v6617_v35, %v6616_v62  ;;  %v6532_v10 = vsel %vm1595_vm5, %v6531_v57, %v6530_v61  ;;  %v6515_v53 = vsel %vm1595_vm5, %v6514_v7, %v6513_v5  ;;  %v6499_v5 = vrot.slane %v11368_v44, 5 }
 0xf81   : > { %v6601_v21 = vsel %vm1595_vm5, %v6600_v0, %v6599_v43  ;;  %v6567_v50 = vsel %vm1595_vm5, %v6566_v13, %v6565_v20 }
 0xf8e   : > { %v11370_v27 = vpop.f32.mrf.mxu1 }
 0xf8f   : > { %v6619_v26 = vrot.slane %v11370_v27, 3  ;;  %v6550_v46 = vrot.slane %v11370_v27, 7  ;;  %v6533_v56 = vrot.slane %v11370_v27, 6  ;;  %v6516_v15 = vrot.slane %v11370_v27, 5 }
 0xf90   : > { %v6602_v62 = vrot.slane %v11370_v27, 2  ;;  %v6568_v17 = vsel %vm1597_vm6, %v11370_v27, %v6567_v50 }
 0xf91   : > { %v6620_v16 = vsel %vm1597_vm6, %v6619_v26, %v6618_v52  ;;  %v6551_v29 = vsel %vm1597_vm6, %v6550_v46, %v6549_v48  ;;  %v6534_v32 = vsel %vm1597_vm6, %v6533_v56, %v6532_v10  ;;  %v6517_v35 = vsel %vm1597_vm6, %v6516_v15, %v6515_v53 }
 0xf92   : > { %v6603_v11 = vsel %vm1597_vm6, %v6602_v62, %v6601_v21  ;;  %v6497_v56 = vrot.slane %v11366_v60, 6  ;;  %v6501_v48 = vrot.slane %v11370_v27, 4 }
 0xfa4   : > { %v11372_v23 = vpop.f32.mrf.mxu1 }
 0xfa5   : > { %v6621_v12 = vrot.slane %v11372_v23, 2  ;;  %v6552_v54 = vrot.slane %v11372_v23, 6  ;;  %v6535_v28 = vrot.slane %v11372_v23, 5  ;;  %v6518_v31 = vrot.slane %v11372_v23, 4 }
 0xfa6   : > { %v6604_v52 = vrot.slane %v11372_v23, 1  ;;  %v6569_v24 = vrot.slane %v11372_v23, 7  ;;  %v6503_v60 = vrot.slane %v11372_v23, 3 }
 0xfa7   : > { %v6622_v63 = vsel %vm1599_vm7, %v6621_v12, %v6620_v16  ;;  %v6553_v41 = vsel %vm1599_vm7, %v6552_v54, %v6551_v29  ;;  %v6536_v55 = vsel %vm1599_vm7, %v6535_v28, %v6534_v32  ;;  %v6519_v26 = vsel %vm1599_vm7, %v6518_v31, %v6517_v35 }
 0xfa8   : > { %v6582_v16 = vsel %vm1593_vm4, %v6581_v47, %v6580_v34  ;;  %v6605_v34 = vsel %vm1599_vm7, %v6604_v52, %v6603_v11  ;;  %v6570_v46 = vsel %vm1599_vm7, %v6569_v24, %v6568_v17  ;;  %v7218_v29 = vmov 7  }
 0xfb5   : > { %v11375_v42 = vpop.f32.mrf.mxu1 }
 0xfb6   : > { %v6623_v37 = vrot.slane %v11375_v42, 1  ;;  %v6554_v14 = vrot.slane %v11375_v42, 5  ;;  %v6537_v1 = vrot.slane %v11375_v42, 4  ;;  %v6520_v58 = vrot.slane %v11375_v42, 3 }
 0xfb7   : > { %v6571_v4 = vrot.slane %v11375_v42, 6  ;;  %v6606_v47 = vsel %vm1601_vm8, %v11375_v42, %v6605_v34 }
 0xfb8   : > { %v6624_v39 = vsel %vm1601_vm8, %v6623_v37, %v6622_v63  ;;  %v6555_v30 = vsel %vm1601_vm8, %v6554_v14, %v6553_v41  ;;  %v6538_v49 = vsel %vm1601_vm8, %v6537_v1, %v6536_v55  ;;  %v6521_v12 = vsel %vm1601_vm8, %v6520_v58, %v6519_v26 }
 0xfb9   : > { %v6585_v37 = vrot.slane %v11370_v27, 1  ;;  %v6588_v63 = vrot.slane %v11375_v42, 7  ;;  %v6572_v28 = vsel %vm1601_vm8, %v6571_v4, %v6570_v46  ;;  %v6498_v14 = vsel %vm1593_vm4, %v6497_v56, %v11364_v22  ;;  %v11543_v22 = vld [vmem:[%s11722_s7] ss:$0 sm:$0xff] }
 0xfba   : > { %v6505_v1 = vrot.slane %v11375_v42, 2  ;;  %v6500_v31 = vsel %vm1595_vm5, %v6499_v5, %v6498_v14  ;;  %v7216_v42 = vmov 1   ;;  %v7217_v58 = vmov 2  }
 0xfbb   : > { %7180 = vset.pattern.permute.xlu1 %v7216_v42  ;;  %vm6632_vm4 = vcmask 97280   ;;  %v12217_v42 = vmov 0.0  }
 0xfc6   : > { %v11405_v38 = vpop.f32.mrf.mxu1 }
 0xfc7   : > { %v11414_v2 = vsel %vm1603_vm9, %v11405_v38, %v6624_v39  ;;  %v6556_v6 = vrot.slane %v11405_v38, 4  ;;  %v6539_v36 = vrot.slane %v11405_v38, 3  ;;  %v6522_v8 = vrot.slane %v11405_v38, 2 }
 0xfc8   : > { %6700 = vrot.lane.b32.xlu0 %v11414_v2, %s7208_s17  ;;  %6665 = vrot.lane.b32.xlu2 %v11414_v2, %s7202_s16  ;;  %v6607_v18 = vrot.slane %v11405_v38, 7  ;;  %v6584_v39 = vsel %vm1595_vm5, %v6583_v9, %v6582_v16  ;;  %v6590_v61 = vrot.slane %v11405_v38, 6  ;;  %v6573_v19 = vrot.slane %v11405_v38, 5 }
 0xfc9   : > { %6626 = vrot.lane.b32.xlu1 %v11414_v2, %s7209_s18  ;;  %v11454_v25 = vsel %vm1603_vm9, %v6556_v6, %v6555_v30  ;;  %v11457_v40 = vsel %vm1603_vm9, %v6539_v36, %v6538_v49  ;;  %v11466_v59 = vsel %vm1603_vm9, %v6522_v8, %v6521_v12  ;;  %v6586_v51 = vsel %vm1597_vm6, %v6585_v37, %v6584_v39 }
 0xfca   : > { %v6587_v57 = vsel %vm1599_vm7, %v11372_v23, %v6586_v51  ;;  %v6608_v7 = vsel %vm1603_vm9, %v6607_v18, %v6606_v47  ;;  %v6574_v15 = vsel %vm1603_vm9, %v6573_v19, %v6572_v28  ;;  %v6507_v44 = vrot.slane %v11405_v38, 1 }
 0xfcb   : > { %v6589_v33 = vsel %vm1601_vm8, %v6588_v63, %v6587_v57  ;;  %v6502_v6 = vsel %vm1597_vm6, %v6501_v48, %v6500_v31  ;;  %v7215_v23 = vmov 3   ;;  %v7219_v8 = vmov 4  }
 0xfcc   : > { %v6591_v54 = vsel %vm1603_vm9, %v6590_v61, %v6589_v33  ;;  %v6504_v10 = vsel %vm1599_vm7, %v6503_v60, %v6502_v6  ;;  %7182 = vset.pattern.permute.xlu0 %v7215_v23  ;;  %v7220_v30 = vmov 6   ;;  %v7221_v49 = vmov 5  }
 0xfcd   : > { %v6506_v36 = vsel %vm1601_vm8, %v6505_v1, %v6504_v10  ;;  %vm6635_vm5 = vcmask 162816   ;;  %vm6638_vm6 = vcmask 228352   ;;  %v7223_v57 = vmov 8  }
 0xfce   : > { %v6508_v27 = vsel %vm1603_vm9, %v6507_v44, %v6506_v36  ;;  %vm342_vm7 = vcmask 277504   ;;  %vm344_vm8 = vcmask 271360  }
 0xfcf   : > { %343 = vst.msk [vmem:[#allocation4] sm:$0xff] %vm342_vm7, %v12217_v42 }
 0xfd0   : > { %6558 = vrot.lane.b32.xlu2 %v11454_v25, %s7210_s19  ;;  %6541 = vrot.lane.b32.xlu0 %v11457_v40, %s7200_s14  ;;  %345 = vst.msk [vmem:[#allocation4 + $0x8] sm:$0x3] %vm344_vm8, %v12217_v42 }
 0xfd1   : > { %6524 = vrot.lane.b32.xlu1 %v11466_v59, %s7211_s20  ;;  %346 = vst.msk [vmem:[#allocation4 + $0x10] sm:$0xff] %vm342_vm7, %v12217_v42 }
 0xfd2   : > { %347 = vst.msk [vmem:[#allocation4 + $0x18] sm:$0x3] %vm344_vm8, %v12217_v42 }
 0xfd3   : > { %348 = vst.msk [vmem:[#allocation4 + $0x20] sm:$0xff] %vm342_vm7, %v12217_v42 }
 0xfd4   : > { %349 = vst.msk [vmem:[#allocation4 + $0x28] sm:$0x3] %vm344_vm8, %v12217_v42 }
 0xfd5   : > { %350 = vst.msk [vmem:[#allocation4 + $0x30] sm:$0xff] %vm342_vm7, %v12217_v42 }
 0xfd6   : > { %351 = vst.msk [vmem:[#allocation4 + $0x38] sm:$0x3] %vm344_vm8, %v12217_v42 }
 0xfd8   : > { %6609 = vrot.lane.b32.xlu2 %v6608_v7, %s7202_s16  ;;  %6592 = vrot.lane.b32.xlu0 %v6591_v54, %s7208_s17  ;;  %s7212_s16 = smov 124  }
 0xfd9   : > { %6575 = vrot.lane.b32.xlu1 %v6574_v15, %s7201_s15 }
 0xfe0   : > { %6653 = vrot.lane.b32.xlu0 %v11454_v25, %s7200_s14  ;;  %6646 = vrot.lane.b32.xlu2 %v6508_v27, %s7212_s16 }
 0xfe1   : > { %6650 = vrot.lane.b32.xlu1 %v11457_v40, %s7211_s20 }
 0xfe8   : > { %6662 = vrot.lane.b32.xlu0 %v6608_v7, %s7208_s17  ;;  %6656 = vrot.lane.b32.xlu2 %v6574_v15, %s7210_s19 }
 0xfe9   : > { %6659 = vrot.lane.b32.xlu1 %v6591_v54, %s7201_s15 }
 0xff0   : > { %6681 = vrot.lane.b32.xlu0 %v6508_v27, %s7213_s21  ;;  %6684 = vrot.lane.b32.xlu2 %v11466_v59, %s7212_s16 }
 0xff1   : > { %6688 = vrot.lane.b32.xlu1 %v11454_v25, %s7211_s20 }
 0xff8   : > { %6691 = vrot.lane.b32.xlu0 %v6574_v15, %s7200_s14  ;;  %6694 = vrot.lane.b32.xlu2 %v6591_v54, %s7210_s19 }
 0xff9   : > { %6697 = vrot.lane.b32.xlu1 %v6608_v7, %s7201_s15 }
0x1000   : > { %6719 = vrot.lane.b32.xlu0 %v11466_v59, %s7213_s21  ;;  %6722 = vrot.lane.b32.xlu2 %v11457_v40, %s7212_s16 }
0x1001   : > { %6716 = vrot.lane.b32.xlu1 %v6508_v27, %s7214_s22 }
0x1008   : > { %6729 = vrot.lane.b32.xlu0 %v6591_v54, %s7200_s14  ;;  %6732 = vrot.lane.b32.xlu2 %v6608_v7, %s7210_s19  ;;  %s7222_s14 = smov 1  }
0x1009   : > { %6726 = vrot.lane.b32.xlu1 %v6574_v15, %s7211_s20 }
0x1010   : > { %6756 = vperm.xlu2 %7177, %v11543_v22   ;;  %6783 = vperm.xlu0 %7182, %v11543_v22  }
0x1011   : > { %6735 = vrot.lane.b32.xlu1 %v11414_v2, %s7201_s15  ;;  %s7224_s15 = smov 126  }
0x1018   : > { %7181 = vset.pattern.permute.xlu2 %v7217_v58  ;;  %7186 = vset.pattern.permute.xlu0 %v7223_v57 }
0x1019   : > { %6762 = vperm.xlu1 %7180, %v11543_v22   ;;  %6772 = vperm.xlu2 %7181, %v11543_v22  }
0x1021   : > { %7185 = vset.pattern.permute.xlu1 %v7218_v29  ;;  %7183 = vset.pattern.permute.xlu2 %v7219_v8 }
0x1022   : > { %v6666_v38 = vpop.permute.xlu2 %6665  ;;  %6816 = vperm.xlu1 %7185, %v11543_v22   ;;  %6789 = vperm.xlu2 %7183, %v11543_v22  }
0x102a   : > { %v6559_v32 = vpop.permute.xlu2 %6558  ;;  %7187 = vset.pattern.permute.xlu1 %v7220_v30  ;;  %7184 = vset.pattern.permute.xlu2 %v7221_v49 }
0x102b   : > { %6799 = vperm.xlu2 %7184, %v11543_v22  }
0x1032   : > { %v6610_v55 = vpop.permute.xlu2 %6609 }
0x103a   : > { %v6701_v53 = vpop.permute.xlu0 %6700  ;;  %v6647_v37 = vpop.permute.xlu2 %6646 }
0x103b   : > { %v6627_v2 = vpop.permute.xlu1 %6626  ;;  %v6668_v21 = vsel %vm6629_vm3, %v6647_v37, %v11466_v59 }
0x1042   : > { %v6542_v41 = vpop.permute.xlu0 %6541  ;;  %v6657_v20 = vpop.permute.xlu2 %6656 }
0x1043   : > { %v6525_v35 = vpop.permute.xlu1 %6524 }
0x1044   : > { %v6630_v3 = vsel %vm6629_vm3, %v6508_v27, %v6525_v35 }
0x1045   : > { %v6631_v26 = vsel %vm300_vm1, %v6630_v3, %v6542_v41 }
0x1046   : > { %v6633_v9 = vsel %vm6632_vm4, %v6631_v26, %v6559_v32 }
0x104a   : > { %v6593_v0 = vpop.permute.xlu0 %6592  ;;  %v6685_v50 = vpop.permute.xlu2 %6684 }
0x104b   : > { %v6576_v12 = vpop.permute.xlu1 %6575 }
0x104c   : > { %v6634_v62 = vsel %vm484_vm0, %v6633_v9, %v6576_v12 }
0x104d   : > { %v6636_v13 = vsel %vm6635_vm5, %v6634_v62, %v6593_v0 }
0x104e   : > { %v6637_v43 = vsel %vm2016_vm10, %v6636_v13, %v6610_v55 }
0x104f   : > { %v6639_v52 = vsel %vm6638_vm6, %v6637_v43, %v6627_v2 }
0x1050   : > { %6641 = vrot.lane.b32.xlu0 %v6639_v52, %s7222_s14 }
0x1052   : > { %v6654_v16 = vpop.permute.xlu0 %6653  ;;  %v6695_v46 = vpop.permute.xlu2 %6694 }
0x1053   : > { %v6651_v45 = vpop.permute.xlu1 %6650 }
0x1054   : > { %v6669_v63 = vsel %vm300_vm1, %v6668_v21, %v6651_v45 }
0x1055   : > { %v6670_v24 = vsel %vm6632_vm4, %v6669_v63, %v6654_v16 }
0x1056   : > { %v6671_v61 = vsel %vm484_vm0, %v6670_v24, %v6657_v20 }
0x105a   : > { %v6663_v18 = vpop.permute.xlu0 %6662  ;;  %v6723_v60 = vpop.permute.xlu2 %6722 }
0x105b   : > { %v6660_v39 = vpop.permute.xlu1 %6659 }
0x105c   : > { %v6672_v4 = vsel %vm6635_vm5, %v6671_v61, %v6660_v39 }
0x105d   : > { %v6673_v11 = vsel %vm2016_vm10, %v6672_v4, %v6663_v18 }
0x105e   : > { %v6674_v51 = vsel %vm6638_vm6, %v6673_v11, %v6666_v38 }
0x105f   : > { %6676 = vrot.lane.b32.xlu1 %v6674_v51, %s7222_s14 }
0x1062   : > { %v6682_v19 = vpop.permute.xlu0 %6681  ;;  %v6733_v36 = vpop.permute.xlu2 %6732 }
0x1063   : > { %v6689_v59 = vpop.permute.xlu1 %6688  ;;  %v6703_v34 = vsel %vm6629_vm3, %v6682_v19, %v6685_v50 }
0x1064   : > { %v6704_v17 = vsel %vm300_vm1, %v6703_v34, %v11457_v40 }
0x1065   : > { %v6705_v33 = vsel %vm6632_vm4, %v6704_v17, %v6689_v59 }
0x1067   : > { %6810 = vperm.xlu1 %7187, %v11543_v22  }
0x106a   : > { %v6692_v47 = vpop.permute.xlu0 %6691 }
0x106b   : > { %v6698_v56 = vpop.permute.xlu1 %6697  ;;  %v6706_v7 = vsel %vm484_vm0, %v6705_v33, %v6692_v47 }
0x106c   : > { %v6707_v54 = vsel %vm6635_vm5, %v6706_v7, %v6695_v46 }
0x106d   : > { %v6708_v28 = vsel %vm2016_vm10, %v6707_v54, %v6698_v56 }
0x106e   : > { %v6709_v5 = vsel %vm6638_vm6, %v6708_v28, %v6701_v53 }
0x106f   : > { %6711 = vrot.lane.b32.xlu2 %v6709_v5, %s7222_s14 }
0x1072   : > { %v6720_v48 = vpop.permute.xlu0 %6719 }
0x1073   : > { %v6717_v15 = vpop.permute.xlu1 %6716 }
0x1074   : > { %v6738_v40 = vsel %vm6629_vm3, %v6717_v15, %v6720_v48 }
0x1075   : > { %v6739_v14 = vsel %vm300_vm1, %v6738_v40, %v6723_v60 }
0x1076   : > { %v6740_v31 = vsel %vm6632_vm4, %v6739_v14, %v11454_v25  ;;  %v11599_v25 = vpop.permute.xlu2 %6756 }
0x107a   : > { %v6730_v6 = vpop.permute.xlu0 %6729 }
0x107b   : > { %v6727_v1 = vpop.permute.xlu1 %6726 }
0x107c   : > { %v6741_v44 = vsel %vm484_vm0, %v6740_v31, %v6727_v1  ;;  %vm6644_vm0 = vcmask 269320  }
0x107d   : > { %v6742_v10 = vsel %vm6635_vm5, %v6741_v44, %v6730_v6 }
0x107e   : > { %v6743_v23 = vsel %vm2016_vm10, %v6742_v10, %v6733_v36  ;;  %v6773_v58 = vpop.permute.xlu2 %6772 }
0x1082   : > { %v6784_v32 = vpop.permute.xlu0 %6783 }
0x1083   : > { %v6736_v27 = vpop.permute.xlu1 %6735 }
0x1084   : > { %v6744_v38 = vsel %vm6638_vm6, %v6743_v23, %v6736_v27 }
0x1085   : > { %6746 = vrot.lane.b32.xlu0 %v6744_v38, %s7222_s14 }
0x1086   : > { %v11601_v29 = vpop.permute.xlu2 %6789 }
0x108b   : > { %v6763_v53 = vpop.permute.xlu1 %6762 }
0x108d   : > { %6826 = vperm.xlu0 %7186, %v11543_v22  }
0x108e   : > { %v11603_v2 = vpop.permute.xlu2 %6799 }
0x1094   : > { %v11606_v41 = vpop.permute.xlu1 %6816 }
0x10c2   : > { %v6642_v8 = vpop.permute.xlu0 %6641 }
0x10c3   : > { %6645 = vst.msk [vmem:[#allocation4 + $0x1] sm:$0xff] %vm6644_vm0, %v6642_v8 }
0x10c9   : > { %v6712_v55 = vpop.permute.xlu2 %6711 }
0x10ca   : > { %6715 = vst.msk [vmem:[#allocation4 + $0x21] sm:$0xff] %vm6644_vm0, %v6712_v55  ;;  %v11609_v35 = vld [vmem:[#allocation4 + $0x1] sm:$0xff] }
0x10cb   : > { %v6802_v22 = vmul.f32 %v11603_v2, %v11609_v35  ;;  %v11614_v3 = vmul.f32 %v6784_v32, %v11609_v35  ;;  %v6792_v61 = vmul.f32 %v11601_v29, %v11609_v35  ;;  %v6839_v4 = vmul.f32 %v11609_v35, %v6763_v53  ;;  %v11677_v56 = vld [vmem:[#allocation4 + $0x2] sm:$0xff] }
0x10cc   : > { %v6845_v50 = vmul.f32 %v11609_v35, %v6773_v58  ;;  %v6963_v54 = vmul.f32 %v11677_v56, %v11606_v41 }
0x10cd   : > { %6804 = vrot.lane.b32.xlu2 %v6802_v22, %s7224_s15 }
0x10d1   : > { %v6677_v30 = vpop.permute.xlu1 %6676  ;;  %v11617_v49 = vld [vmem:[#allocation4 + $0x21] sm:$0xff] }
0x10d2   : > { %6680 = vst.msk [vmem:[#allocation4 + $0x11] sm:$0xff] %vm6644_vm0, %v6677_v30  ;;  %v11621_v26 = vmul.f32 %v11617_v49, %v6784_v32  ;;  %v6901_v43 = vmul.f32 %v11617_v49, %v11601_v29  ;;  %v6907_v16 = vmul.f32 %v11617_v49, %v11603_v2  ;;  %v6933_v59 = vmul.f32 %v11617_v49, %v6763_v53 }
0x10d3   : > { %v6939_v34 = vmul.f32 %v11617_v49, %v6773_v58  ;;  %v6869_v57 = vmul.f32 %v11617_v49, %v11606_v41 }
0x10d9   : > { %v11623_v0 = vld [vmem:[#allocation4 + $0x11] sm:$0xff]  ;;  %v6811_v44 = vpop.permute.xlu1 %6810 }
0x10da   : > { %v6819_v12 = vmul.f32 %v11606_v41, %v11623_v0  ;;  %v6860_v9 = vmul.f32 %v11623_v0, %v11603_v2  ;;  %v11630_v62 = vmul.f32 %v11623_v0, %v6784_v32  ;;  %v6886_v37 = vmul.f32 %v11623_v0, %v6763_v53 }
0x10db   : > { %v6892_v13 = vmul.f32 %v11623_v0, %v6773_v58  ;;  %v6854_v19 = vmul.f32 %v11623_v0, %v11601_v29  ;;  %v6884_v15 = vmul.f32 %v11623_v0, %v11599_v25 }
0x10dc   : > { %6821 = vrot.lane.b32.xlu2 %v6819_v12, %s7225_s25 }
0x10e4   : > { %6888 = vrot.lane.b32.xlu2 %v6886_v37, %s7225_s25 }
0x10ec   : > { %6894 = vrot.lane.b32.xlu2 %v6892_v13, %s7224_s15 }
0x10f4   : > { %6903 = vrot.lane.b32.xlu2 %v6901_v43, %s7225_s25 }
0x10f7   : > { %v6747_v52 = vpop.permute.xlu0 %6746 }
0x10f8   : > { %6750 = vst.msk [vmem:[#allocation4 + $0x31] sm:$0xff] %vm6644_vm0, %v6747_v52 }
0x10fc   : > { %6909 = vrot.lane.b32.xlu2 %v6907_v16, %s7224_s15 }
0x10ff   : > { %v6913_v45 = vld [vmem:[#allocation4 + $0x31] sm:$0xff]  ;;  %v6827_v39 = vpop.permute.xlu0 %6826 }
0x1100   : > { %v6752_v21 = vld [vmem:[#allocation4 + $0x30] sm:$0xff]  ;;  %v6916_v24 = vmul.f32 %v6913_v45, %v11606_v41  ;;  %v11645_v18 = vmul.f32 %v6913_v45, %v6784_v32  ;;  %v6922_v11 = vmul.f32 %v6913_v45, %v6827_v39  ;;  %v6829_v51 = vmul.f32 %v6827_v39, %v11623_v0 }
0x1101   : > { %v6775_v63 = vmul.f32 %v6773_v58, %v6752_v21  ;;  %v6765_v20 = vmul.f32 %v6763_v53, %v6752_v21  ;;  %v6948_v17 = vmul.f32 %v6913_v45, %v11601_v29  ;;  %v6875_v33 = vmul.f32 %v11617_v49, %v6827_v39 }
0x1102   : > { %v6954_v46 = vmul.f32 %v6913_v45, %v11603_v2  ;;  %v6969_v5 = vmul.f32 %v11677_v56, %v6827_v39  ;;  %v6914_v36 = vmul.f32 %v6913_v45, %v6811_v44  ;;  %v6759_v29 = vmul.f32 %v11599_v25, %v6752_v21 }
0x1103   : > { %6777 = vrot.lane.b32.xlu1 %v6775_v63, %s7224_s15  ;;  %6767 = vrot.lane.b32.xlu0 %v6765_v20, %s7225_s25 }
0x1104   : > { %6918 = vrot.lane.b32.xlu2 %v6916_v24, %s7225_s25 }
0x110b   : > { %6794 = vrot.lane.b32.xlu1 %v6792_v61, %s7225_s25  ;;  %6841 = vrot.lane.b32.xlu0 %v6839_v4, %s7225_s25 }
0x110c   : > { %6924 = vrot.lane.b32.xlu2 %v6922_v11, %s7224_s15 }
0x1113   : > { %6847 = vrot.lane.b32.xlu0 %v6845_v50, %s7224_s15  ;;  %6831 = vrot.lane.b32.xlu1 %v6829_v51, %s7224_s15  ;;  %v6867_v51 = vmul.f32 %v11617_v49, %v6811_v44 }
0x111b   : > { %6856 = vrot.lane.b32.xlu0 %v6854_v19, %s7225_s25  ;;  %6935 = vrot.lane.b32.xlu1 %v6933_v59, %s7225_s25 }
0x1123   : > { %6862 = vrot.lane.b32.xlu0 %v6860_v9, %s7224_s15  ;;  %6941 = vrot.lane.b32.xlu1 %v6939_v34, %s7224_s15  ;;  %v6837_v9 = vmul.f32 %v11609_v35, %v11599_v25 }
0x1127   : > { %v6805_v47 = vpop.permute.xlu2 %6804 }
0x112b   : > { %6871 = vrot.lane.b32.xlu0 %v6869_v57, %s7225_s25  ;;  %6950 = vrot.lane.b32.xlu1 %v6948_v17, %s7225_s25 }
0x1133   : > { %6877 = vrot.lane.b32.xlu0 %v6875_v33, %s7224_s15  ;;  %6956 = vrot.lane.b32.xlu1 %v6954_v46, %s7224_s15  ;;  %v6961_v46 = vmul.f32 %v11677_v56, %v6811_v44 }
0x1136   : > { %v6822_v7 = vpop.permute.xlu2 %6821 }
0x113b   : > { %6965 = vrot.lane.b32.xlu1 %v6963_v54, %s7225_s25 }
0x113e   : > { %v6889_v28 = vpop.permute.xlu2 %6888 }
0x113f   : > { %v6891_v48 = vadd.f32 %v6889_v28, %v6884_v15 }
0x1143   : > { %6971 = vrot.lane.b32.xlu1 %v6969_v5, %s7224_s15 }
0x1146   : > { %v6895_v40 = vpop.permute.xlu2 %6894 }
0x1147   : > { %v6897_v60 = vadd.f32 %v6895_v40, %v6891_v48 }
0x1149   : > { %v6900_v14 = vadd.f32 %v11621_v26, %v6897_v60  ;;  %v6813_v26 = vmul.f32 %v6811_v44, %v11623_v0  ;;  %v6931_v0 = vmul.f32 %v11617_v49, %v11599_v25 }
0x114e   : > { %v6904_v1 = vpop.permute.xlu2 %6903 }
0x114f   : > { %v6906_v31 = vadd.f32 %v6904_v1, %v6900_v14 }
0x1156   : > { %v6910_v6 = vpop.permute.xlu2 %6909 }
0x1157   : > { %v6912_v10 = vadd.f32 %v6910_v6, %v6906_v31 }
0x1159   : > { %v6915_v27 = vadd.f32 %v6914_v36, %v6912_v10 }
0x115e   : > { %v6919_v23 = vpop.permute.xlu2 %6918 }
0x115f   : > { %v6921_v42 = vadd.f32 %v6919_v23, %v6915_v27 }
0x1166   : > { %v6925_v38 = vpop.permute.xlu2 %6924 }
0x1167   : > { %v6927_v58 = vadd.f32 %v6925_v38, %v6921_v42 }
0x1169   : > { %7103 = vst.msk [vmem:[%s11691_s9 + $0x10] sm:$0xff] %vm2025_vm11, %v6927_v58 }
0x1175   : > { %v6778_v32 = vpop.permute.xlu1 %6777  ;;  %v6768_v53 = vpop.permute.xlu0 %6767 }
0x1176   : > { %v6770_v2 = vadd.f32 %v6768_v53, %v6759_v29 }
0x1178   : > { %v6780_v8 = vadd.f32 %v6778_v32, %v6770_v2 }
0x117a   : > { %v6787_v41 = vadd.f32 %v11614_v3, %v6780_v8 }
0x117d   : > { %v6795_v55 = vpop.permute.xlu1 %6794  ;;  %v6842_v22 = vpop.permute.xlu0 %6841 }
0x117e   : > { %v6797_v30 = vadd.f32 %v6795_v55, %v6787_v41  ;;  %v6844_v13 = vadd.f32 %v6842_v22, %v6837_v9 }
0x1180   : > { %v6807_v12 = vadd.f32 %v6805_v47, %v6797_v30 }
0x1182   : > { %v6814_v37 = vadd.f32 %v6813_v26, %v6807_v12 }
0x1184   : > { %v6824_v43 = vadd.f32 %v6822_v7, %v6814_v37 }
0x1185   : > { %v6832_v52 = vpop.permute.xlu1 %6831  ;;  %v6848_v16 = vpop.permute.xlu0 %6847 }
0x1186   : > { %v6834_v45 = vadd.f32 %v6832_v52, %v6824_v43  ;;  %v6850_v21 = vadd.f32 %v6848_v16, %v6844_v13 }
0x1188   : > { %6835 = vst.msk [vmem:[%s11691_s9] sm:$0xff] %vm2025_vm11, %v6834_v45  ;;  %v6853_v3 = vadd.f32 %v11630_v62, %v6850_v21 }
0x118d   : > { %v6936_v63 = vpop.permute.xlu1 %6935  ;;  %v6857_v20 = vpop.permute.xlu0 %6856 }
0x118e   : > { %v6938_v24 = vadd.f32 %v6936_v63, %v6931_v0  ;;  %v6859_v39 = vadd.f32 %v6857_v20, %v6853_v3 }
0x1195   : > { %v6942_v61 = vpop.permute.xlu1 %6941  ;;  %v6863_v35 = vpop.permute.xlu0 %6862 }
0x1196   : > { %v6944_v4 = vadd.f32 %v6942_v61, %v6938_v24  ;;  %v6865_v11 = vadd.f32 %v6863_v35, %v6859_v39 }
0x1198   : > { %v6947_v50 = vadd.f32 %v11645_v18, %v6944_v4  ;;  %v6868_v19 = vadd.f32 %v6867_v51, %v6865_v11 }
0x119d   : > { %v6951_v59 = vpop.permute.xlu1 %6950  ;;  %v6872_v62 = vpop.permute.xlu0 %6871 }
0x119e   : > { %v6953_v34 = vadd.f32 %v6951_v59, %v6947_v50  ;;  %v6874_v57 = vadd.f32 %v6872_v62, %v6868_v19 }
0x11a5   : > { %v6957_v17 = vpop.permute.xlu1 %6956  ;;  %v6878_v47 = vpop.permute.xlu0 %6877 }
0x11a6   : > { %v6959_v25 = vadd.f32 %v6957_v17, %v6953_v34  ;;  %v6880_v33 = vadd.f32 %v6878_v47, %v6874_v57 }
0x11a8   : > { %7102 = vst.msk [vmem:[%s11691_s9 + $0x8] sm:$0xff] %vm2025_vm11, %v6880_v33  ;;  %v6962_v7 = vadd.f32 %v6961_v46, %v6959_v25 }
0x11ad   : > { %v6966_v54 = vpop.permute.xlu1 %6965 }
0x11ae   : > { %v6968_v28 = vadd.f32 %v6966_v54, %v6962_v7 }
0x11b5   : > { %v6972_v49 = vpop.permute.xlu1 %6971 }
0x11b6   : > { %v6974_v5 = vadd.f32 %v6972_v49, %v6968_v28 }
0x11b8   : > { %7104 = vst.msk [vmem:[%s11691_s9 + $0x18] sm:$0xff] %vm2025_vm11, %v6974_v5 }
0x11b9 PF: > { %s18_s27 = sadd.s32 1, %s7196_s27  }
0x11ba   : > { %p15_p4 = scmp.ge.s32.totalorder %s18_s27, 4  }
0x11bc   :  { %17 = sbr.rel (!%p15_p4) target bundleno = 1 (0x1), region = 94 }

</bundles_post_ra>
